<compile_context>
chip_gen: v7x
topology: tpu7x:2x2x1
jax: 0.10.0
libtpu: 0.0.40
codegen_flags: <defaults>
</compile_context>

<pallas_src>
import functools
import math

import jax
import jax.numpy as jnp
from jax.experimental import pallas as pl
from jax.experimental.pallas import tpu as pltpu


def _residual_block_kernel(x_ref, w_ref, b_ref, gamma_ref, beta_ref, o_ref,
                           xs_ref, *, K, H, W, eps):
    """One channel-block of the ConvMixer residual:
       depthwise conv(KxK,"same") + bias -> GELU(tanh) -> BatchNorm2d -> + x

    Block layouts (channels-last, channel block `cb` on the 128-wide lane axis):
       x_ref / o_ref : (N, H, W, cb)
       w_ref         : (K*K, 1, cb)          depthwise taps, tap-major
       b/gamma/beta  : (1, cb)
       xs_ref        : (K, N, H+2p, W, cb)   K W-pre-shifted, zero-padded slabs
    """
    pad = (K - 1) // 2
    N = x_ref.shape[0]
    cb = x_ref.shape[-1]
    x = x_ref[...]                                        # (N, H, W, cb)

    # --- K W-pre-shifted, zero-padded copies of the input slab --------------
    # xs[v][n, h, j, c] == xpad[n, h, j + v, c] where xpad is the zero-halo
    # input.  Only the border strips are zero-stored (no full-scratch zero
    # fill) and the interior is written exactly once per v.  After this, tap
    # (u, v) is just an H-shift of xs[v], i.e. the K*K accumulation loop only
    # slices a non-(8,128)-tiled dim -> no per-tap sublane realignment.
    # TODO(synk): confirm in the Mosaic dump that these K unaligned W-shifts
    # lower to K (not K*K) sublane realignments as intended.
    if pad > 0:
        z_rows = jnp.zeros((N, pad, W, cb), jnp.float32)  # hoisted (no CSE in loop)
    for v in range(K):
        lo = max(0, pad - v)                 # dest columns [lo, hi) carry data
        hi = min(W, W + pad - v)
        if pad > 0:
            xs_ref[v, :, 0:pad, :, :] = z_rows                       # top rows
            xs_ref[v, :, pad + H:2 * pad + H, :, :] = z_rows         # bottom rows
        if lo > 0:
            xs_ref[v, :, pad:pad + H, 0:lo, :] = jnp.zeros(
                (N, H, lo, cb), jnp.float32)
        if hi < W:
            xs_ref[v, :, pad:pad + H, hi:W, :] = jnp.zeros(
                (N, H, W - hi, cb), jnp.float32)
        xs_ref[v, :, pad:pad + H, lo:hi, :] = x[:, :, lo + v - pad:hi + v - pad, :]

    # --- depthwise "same" conv (cross-correlation, like torch.nn.Conv2d) ----
    # First tap initializes the accumulator (no zeros-materialize + add).
    acc = w_ref[0] * xs_ref[0, :, 0:H, :, :]              # f32
    for u in range(K):
        for v in range(K):
            if u == 0 and v == 0:
                continue
            acc = acc + w_ref[u * K + v] * xs_ref[v, :, u:u + H, :, :]
    acc = acc + b_ref[...]                                # conv bias

    # --- GELU, tanh form (tanh runs on the EUP slot, off the VALU path) -----
    # TODO(synk): torch.nn.GELU defaults to the exact erf form; the tanh
    # approximation is used here (and matched by residual_ref below).
    c0 = math.sqrt(2.0 / math.pi)
    c1 = c0 * 0.044715
    t = acc * acc
    g = 0.5 * acc * (1.0 + jnp.tanh(acc * (c0 + c1 * t)))

    # --- BatchNorm2d (training-mode batch statistics), single pass in f32 ---
    # TODO(synk): single-pass E[g^2]-mean^2 variance; switch to a two-pass
    # (shifted) form if slabs grow and tolerances tighten.
    inv_cnt = 1.0 / float(N * H * W)
    s1 = jnp.sum(g, axis=(0, 1, 2), keepdims=True)        # (1, 1, 1, cb)
    s2 = jnp.sum(g * g, axis=(0, 1, 2), keepdims=True)
    mean = s1 * inv_cnt
    var = s2 * inv_cnt - mean * mean
    scale = gamma_ref[...] * jax.lax.rsqrt(var + eps)
    bn = (g - mean) * scale + beta_ref[...]

    # --- Residual: fn(x) + x -------------------------------------------------
    o_ref[...] = (bn + x).astype(o_ref.dtype)


def _vmem_capacity_bytes():
    try:
        info = pltpu.get_tpu_info()
        return int(getattr(info, "vmem_capacity_bytes", 64 * 1024 * 1024))
    except Exception:
        return 64 * 1024 * 1024          # conservative default (v7x per-core)


def _pick_c_blk_and_limit(N, H, W, C, K, pad):
    """Largest lane-dense channel block that fits the per-step VMEM budget."""
    cap = _vmem_capacity_bytes()
    budget = int(cap * 0.7)              # headroom for Mosaic internal scratch

    def step_bytes(cb):
        io = 2 * 2 * N * H * W * cb * 4                    # in + out, double-buffered
        params = 2 * (K * K * cb + 3 * 8 * cb) * 4         # taps + bias/gamma/beta
        xs = K * N * (H + 2 * pad) * W * cb * 4            # shifted-slab scratch
        return io + params + xs

    if C % 128 == 0:
        # Largest block that fits and still gives >= 2 parallel grid steps
        # (bigger blocks amortize per-step overhead on v5e/v6e; >= 4 steps
        # would be ideal for v7x's 2 TensorCores when C allows it).
        cands = [cb for cb in (512, 384, 256, 128) if C % cb == 0 and C // cb >= 2]
        c_blk = next((cb for cb in cands if step_bytes(cb) <= budget), 128)
        # TODO(synk): if even c_blk=128 exceeds the budget (large N*H*W on
        # v7x's 64 MiB VMEM), add an 'arbitrary' grid axis over N with a
        # two-phase BatchNorm instead of shrinking the lane block below 128.
    else:
        c_blk = C                                          # small-C fallback

    need = step_bytes(c_blk)
    vmem_limit = int(max(32 * 1024 * 1024,
                         min(int(cap * 0.9), 2 * need + (8 << 20))))
    vmem_limit = max(vmem_limit, need + (4 << 20))
    vmem_limit = int(min(vmem_limit, int(cap * 0.95)))
    return c_blk, vmem_limit


def residual_forward(x, w, b, gamma, beta, *, eps=1e-5, c_blk=None):
    """ConvMixer residual block, channels-last fast path.

    x: (N, H, W, C) f32 (NHWC), w: (C, 1, K, K) torch-style depthwise weight,
    b / gamma / beta: (C,).  Returns (N, H, W, C).
    """
    N, H, W, C = x.shape
    K = w.shape[-1]
    pad = (K - 1) // 2
    # TODO(synk): pad=(K-1)//2 assumes odd K; torch padding='same' with even K
    # pads asymmetrically and is not handled here.

    auto_c_blk, vmem_limit = _pick_c_blk_and_limit(N, H, W, C, K, pad)
    if c_blk is None:
        c_blk = auto_c_blk
    if C % c_blk != 0:
        c_blk = C

    # Tap-major depthwise weights: (K*K, 1, C), w_r[u*K+v, 0, c] = w[c, 0, u, v]
    w_r = jnp.transpose(w.reshape(C, K * K), (1, 0)).reshape(K * K, 1, C)
    b_r = b.reshape(1, C)
    g_r = gamma.reshape(1, C)
    bt_r = beta.reshape(1, C)

    kernel = functools.partial(_residual_block_kernel, K=K, H=H, W=W, eps=eps)

    elems = N * H * W * C
    cost = pl.CostEstimate(
        flops=int((2 * K * K + 16) * elems),
        transcendentals=int(elems),
        bytes_accessed=int(8 * elems + 4 * (K * K + 3) * C))

    out = pl.pallas_call(
        kernel,
        out_shape=jax.ShapeDtypeStruct((N, H, W, C), x.dtype),
        grid_spec=pltpu.PrefetchScalarGridSpec(
            num_scalar_prefetch=0,
            grid=(C // c_blk,),
            in_specs=[
                pl.BlockSpec((N, H, W, c_blk), lambda c: (0, 0, 0, c)),
                pl.BlockSpec((K * K, 1, c_blk), lambda c: (0, 0, c)),
                pl.BlockSpec((1, c_blk), lambda c: (0, c)),
                pl.BlockSpec((1, c_blk), lambda c: (0, c)),
                pl.BlockSpec((1, c_blk), lambda c: (0, c)),
            ],
            out_specs=pl.BlockSpec((N, H, W, c_blk), lambda c: (0, 0, 0, c)),
            scratch_shapes=[
                pltpu.VMEM((K, N, H + 2 * pad, W, c_blk), jnp.float32)],
        ),
        compiler_params=pltpu.CompilerParams(
            dimension_semantics=("parallel",),
            vmem_limit_bytes=vmem_limit),
        cost_estimate=cost,
    )(x, w_r, b_r, g_r, bt_r)
    return out


def residual_forward_nchw(x, w, b, gamma, beta, **kw):
    """Drop-in NCHW wrapper (PyTorch layout).  Prefer the NHWC entry above to
    avoid the two extra HBM transpose passes."""
    y = residual_forward(jnp.transpose(x, (0, 2, 3, 1)), w, b, gamma, beta, **kw)
    return jnp.transpose(y, (0, 3, 1, 2))


def residual_ref(x, w, b, gamma, beta, eps=1e-5):
    """Pure-JAX NHWC reference for the same residual block (tanh GELU)."""
    C = x.shape[-1]
    w_hwio = jnp.transpose(w, (2, 3, 1, 0))               # (K, K, 1, C)
    y = jax.lax.conv_general_dilated(
        x, w_hwio, window_strides=(1, 1), padding="SAME",
        dimension_numbers=("NHWC", "HWIO", "NHWC"), feature_group_count=C)
    y = y + b
    y = 0.5 * y * (1.0 + jnp.tanh(math.sqrt(2.0 / math.pi)
                                  * (y + 0.044715 * y ** 3)))
    mean = y.mean(axis=(0, 1, 2), keepdims=True)
    var = ((y - mean) ** 2).mean(axis=(0, 1, 2), keepdims=True)
    y = gamma * (y - mean) * jax.lax.rsqrt(var + eps) + beta
    return y + x


if __name__ == "__main__":
    key = jax.random.PRNGKey(0)
    # Smallest ConvMixer-like config that is lane-dense (C multiple of 128)
    # and gives >=2 channel-parallel grid steps for megacore.
    N, C, H, W, K = 2, 256, 16, 16, 5
    kx, kw, kb, kg, kbt = jax.random.split(key, 5)

    x = jax.random.normal(kx, (N, H, W, C), jnp.float32)        # NHWC
    w = jax.random.normal(kw, (C, 1, K, K), jnp.float32) * (1.0 / K)
    b = jax.random.normal(kb, (C,), jnp.float32) * 0.1
    gamma = 1.0 + 0.1 * jax.random.normal(kg, (C,), jnp.float32)
    beta = 0.1 * jax.random.normal(kbt, (C,), jnp.float32)

    out = jax.block_until_ready(residual_forward(x, w, b, gamma, beta))
    ref = residual_ref(x, w, b, gamma, beta)

    assert out.shape == x.shape and out.dtype == x.dtype
    err = float(jnp.max(jnp.abs(out - ref)))
    assert jnp.allclose(out, ref, rtol=1e-4, atol=1e-4), f"max abs err {err}"
    print("KERNEL_OK")
</pallas_src>

<mosaic_0001>
module attributes {stable_mosaic.version = 11 : i64} {
  func.func @_residual_block_kernel(%arg0: i32, %arg1: memref<2x16x16x128xf32, #tpu.memory_space<vmem>>, %arg2: memref<25x1x128xf32, #tpu.memory_space<vmem>>, %arg3: memref<1x128xf32, #tpu.memory_space<vmem>>, %arg4: memref<1x128xf32, #tpu.memory_space<vmem>>, %arg5: memref<1x128xf32, #tpu.memory_space<vmem>>, %arg6: memref<2x16x16x128xf32, #tpu.memory_space<vmem>>, %arg7: memref<5x2x20x16x128xf32, #tpu.memory_space<vmem>>) attributes {dimension_semantics = [#tpu.dimension_semantics<parallel>], iteration_bounds = array<i64: 2>, scalar_prefetch = 0 : i64, scratch_operands = 1 : i64, tpu.core_type = #tpu.core_type<tc>, window_params = [{transform_indices = @transform_0, window_bounds = array<i64: 2, 16, 16, 128>}, {transform_indices = @transform_1, window_bounds = array<i64: 25, 1, 128>}, {transform_indices = @transform_2, window_bounds = array<i64: 1, 128>}, {transform_indices = @transform_3, window_bounds = array<i64: 1, 128>}, {transform_indices = @transform_4, window_bounds = array<i64: 1, 128>}, {transform_indices = @transform_5, window_bounds = array<i64: 2, 16, 16, 128>}]} {
    %c0 = arith.constant 0 : index
    %c0_0 = arith.constant 0 : index
    %c0_1 = arith.constant 0 : index
    %c0_2 = arith.constant 0 : index
    %0 = vector.load %arg1[%c0, %c0_0, %c0_1, %c0_2] : memref<2x16x16x128xf32, #tpu.memory_space<vmem>>, vector<2x16x16x128xf32>
    %cst = arith.constant 0.000000e+00 : f32
    %1 = vector.broadcast %cst : f32 to vector<2x2x16x128xf32>
    %c0_3 = arith.constant 0 : index
    %c0_4 = arith.constant 0 : index
    %c0_5 = arith.constant 0 : index
    %c0_6 = arith.constant 0 : index
    %c0_7 = arith.constant 0 : index
    %2 = vector.load %arg7[%c0_3, %c0_4, %c0_5, %c0_6, %c0_7] : memref<5x2x20x16x128xf32, #tpu.memory_space<vmem>>, vector<1x2x2x16x128xf32>
    %3 = vector.shape_cast %2 : vector<1x2x2x16x128xf32> to vector<2x2x16x128xf32>
    %4 = vector.shape_cast %1 : vector<2x2x16x128xf32> to vector<1x2x2x16x128xf32>
    tpu.vector_store %arg7[%c0_3, %c0_4, %c0_5, %c0_6, %c0_7], %4 {strides = array<i32>} : memref<5x2x20x16x128xf32, #tpu.memory_space<vmem>>, vector<1x2x2x16x128xf32>,
    %c0_8 = arith.constant 0 : index
    %c0_9 = arith.constant 0 : index
    %c18 = arith.constant 18 : index
    %c0_10 = arith.constant 0 : index
    %c0_11 = arith.constant 0 : index
    %5 = vector.load %arg7[%c0_8, %c0_9, %c18, %c0_10, %c0_11] : memref<5x2x20x16x128xf32, #tpu.memory_space<vmem>>, vector<1x2x2x16x128xf32>
    %6 = vector.shape_cast %5 : vector<1x2x2x16x128xf32> to vector<2x2x16x128xf32>
    %7 = vector.shape_cast %1 : vector<2x2x16x128xf32> to vector<1x2x2x16x128xf32>
    tpu.vector_store %arg7[%c0_8, %c0_9, %c18, %c0_10, %c0_11], %7 {strides = array<i32>} : memref<5x2x20x16x128xf32, #tpu.memory_space<vmem>>, vector<1x2x2x16x128xf32>,
    %cst_12 = arith.constant 0.000000e+00 : f32
    %8 = vector.broadcast %cst_12 : f32 to vector<2x16x2x128xf32>
    %c0_13 = arith.constant 0 : index
    %c0_14 = arith.constant 0 : index
    %c2 = arith.constant 2 : index
    %c0_15 = arith.constant 0 : index
    %c0_16 = arith.constant 0 : index
    %9 = vector.load %arg7[%c0_13, %c0_14, %c2, %c0_15, %c0_16] : memref<5x2x20x16x128xf32, #tpu.memory_space<vmem>>, vector<1x2x16x2x128xf32>
    %10 = vector.shape_cast %9 : vector<1x2x16x2x128xf32> to vector<2x16x2x128xf32>
    %11 = vector.shape_cast %8 : vector<2x16x2x128xf32> to vector<1x2x16x2x128xf32>
    tpu.vector_store %arg7[%c0_13, %c0_14, %c2, %c0_15, %c0_16], %11 {strides = array<i32>} : memref<5x2x20x16x128xf32, #tpu.memory_space<vmem>>, vector<1x2x16x2x128xf32>,
    %12 = vector.extract_strided_slice %0 {offsets = [0, 0, 0, 0], sizes = [2, 16, 14, 128], strides = [1, 1, 1, 1]} : vector<2x16x16x128xf32> to vector<2x16x14x128xf32>
    %c0_17 = arith.constant 0 : index
    %c0_18 = arith.constant 0 : index
    %c2_19 = arith.constant 2 : index
    %c2_20 = arith.constant 2 : index
    %c0_21 = arith.constant 0 : index
    %13 = vector.load %arg7[%c0_17, %c0_18, %c2_19, %c2_20, %c0_21] : memref<5x2x20x16x128xf32, #tpu.memory_space<vmem>>, vector<1x2x16x14x128xf32>
    %14 = vector.shape_cast %13 : vector<1x2x16x14x128xf32> to vector<2x16x14x128xf32>
    %15 = vector.shape_cast %12 : vector<2x16x14x128xf32> to vector<1x2x16x14x128xf32>
    tpu.vector_store %arg7[%c0_17, %c0_18, %c2_19, %c2_20, %c0_21], %15 {strides = array<i32>} : memref<5x2x20x16x128xf32, #tpu.memory_space<vmem>>, vector<1x2x16x14x128xf32>,
    %c1 = arith.constant 1 : index
    %c0_22 = arith.constant 0 : index
    %c0_23 = arith.constant 0 : index
    %c0_24 = arith.constant 0 : index
    %c0_25 = arith.constant 0 : index
    %16 = vector.load %arg7[%c1, %c0_22, %c0_23, %c0_24, %c0_25] : memref<5x2x20x16x128xf32, #tpu.memory_space<vmem>>, vector<1x2x2x16x128xf32>
    %17 = vector.shape_cast %16 : vector<1x2x2x16x128xf32> to vector<2x2x16x128xf32>
    %18 = vector.shape_cast %1 : vector<2x2x16x128xf32> to vector<1x2x2x16x128xf32>
    tpu.vector_store %arg7[%c1, %c0_22, %c0_23, %c0_24, %c0_25], %18 {strides = array<i32>} : memref<5x2x20x16x128xf32, #tpu.memory_space<vmem>>, vector<1x2x2x16x128xf32>,
    %c1_26 = arith.constant 1 : index
    %c0_27 = arith.constant 0 : index
    %c18_28 = arith.constant 18 : index
    %c0_29 = arith.constant 0 : index
    %c0_30 = arith.constant 0 : index
    %19 = vector.load %arg7[%c1_26, %c0_27, %c18_28, %c0_29, %c0_30] : memref<5x2x20x16x128xf32, #tpu.memory_space<vmem>>, vector<1x2x2x16x128xf32>
    %20 = vector.shape_cast %19 : vector<1x2x2x16x128xf32> to vector<2x2x16x128xf32>
    %21 = vector.shape_cast %1 : vector<2x2x16x128xf32> to vector<1x2x2x16x128xf32>
    tpu.vector_store %arg7[%c1_26, %c0_27, %c18_28, %c0_29, %c0_30], %21 {strides = array<i32>} : memref<5x2x20x16x128xf32, #tpu.memory_space<vmem>>, vector<1x2x2x16x128xf32>,
    %cst_31 = arith.constant 0.000000e+00 : f32
    %22 = vector.broadcast %cst_31 : f32 to vector<2x16x1x128xf32>
    %c1_32 = arith.constant 1 : index
    %c0_33 = arith.constant 0 : index
    %c2_34 = arith.constant 2 : index
    %c0_35 = arith.constant 0 : index
    %c0_36 = arith.constant 0 : index
    %23 = vector.load %arg7[%c1_32, %c0_33, %c2_34, %c0_35, %c0_36] : memref<5x2x20x16x128xf32, #tpu.memory_space<vmem>>, vector<1x2x16x1x128xf32>
    %24 = vector.shape_cast %23 : vector<1x2x16x1x128xf32> to vector<2x16x1x128xf32>
    %25 = vector.shape_cast %22 : vector<2x16x1x128xf32> to vector<1x2x16x1x128xf32>
    tpu.vector_store %arg7[%c1_32, %c0_33, %c2_34, %c0_35, %c0_36], %25 {strides = array<i32>} : memref<5x2x20x16x128xf32, #tpu.memory_space<vmem>>, vector<1x2x16x1x128xf32>,
    %26 = vector.extract_strided_slice %0 {offsets = [0, 0, 0, 0], sizes = [2, 16, 15, 128], strides = [1, 1, 1, 1]} : vector<2x16x16x128xf32> to vector<2x16x15x128xf32>
    %c1_37 = arith.constant 1 : index
    %c0_38 = arith.constant 0 : index
    %c2_39 = arith.constant 2 : index
    %c1_40 = arith.constant 1 : index
    %c0_41 = arith.constant 0 : index
    %27 = vector.load %arg7[%c1_37, %c0_38, %c2_39, %c1_40, %c0_41] : memref<5x2x20x16x128xf32, #tpu.memory_space<vmem>>, vector<1x2x16x15x128xf32>
    %28 = vector.shape_cast %27 : vector<1x2x16x15x128xf32> to vector<2x16x15x128xf32>
    %29 = vector.shape_cast %26 : vector<2x16x15x128xf32> to vector<1x2x16x15x128xf32>
    tpu.vector_store %arg7[%c1_37, %c0_38, %c2_39, %c1_40, %c0_41], %29 {strides = array<i32>} : memref<5x2x20x16x128xf32, #tpu.memory_space<vmem>>, vector<1x2x16x15x128xf32>,
    %c2_42 = arith.constant 2 : index
    %c0_43 = arith.constant 0 : index
    %c0_44 = arith.constant 0 : index
    %c0_45 = arith.constant 0 : index
    %c0_46 = arith.constant 0 : index
    %30 = vector.load %arg7[%c2_42, %c0_43, %c0_44, %c0_45, %c0_46] : memref<5x2x20x16x128xf32, #tpu.memory_space<vmem>>, vector<1x2x2x16x128xf32>
    %31 = vector.shape_cast %30 : vector<1x2x2x16x128xf32> to vector<2x2x16x128xf32>
    %32 = vector.shape_cast %1 : vector<2x2x16x128xf32> to vector<1x2x2x16x128xf32>
    tpu.vector_store %arg7[%c2_42, %c0_43, %c0_44, %c0_45, %c0_46], %32 {strides = array<i32>} : memref<5x2x20x16x128xf32, #tpu.memory_space<vmem>>, vector<1x2x2x16x128xf32>,
    %c2_47 = arith.constant 2 : index
    %c0_48 = arith.constant 0 : index
    %c18_49 = arith.constant 18 : index
    %c0_50 = arith.constant 0 : index
    %c0_51 = arith.constant 0 : index
    %33 = vector.load %arg7[%c2_47, %c0_48, %c18_49, %c0_50, %c0_51] : memref<5x2x20x16x128xf32, #tpu.memory_space<vmem>>, vector<1x2x2x16x128xf32>
    %34 = vector.shape_cast %33 : vector<1x2x2x16x128xf32> to vector<2x2x16x128xf32>
    %35 = vector.shape_cast %1 : vector<2x2x16x128xf32> to vector<1x2x2x16x128xf32>
    tpu.vector_store %arg7[%c2_47, %c0_48, %c18_49, %c0_50, %c0_51], %35 {strides = array<i32>} : memref<5x2x20x16x128xf32, #tpu.memory_space<vmem>>, vector<1x2x2x16x128xf32>,
    %c2_52 = arith.constant 2 : index
    %c0_53 = arith.constant 0 : index
    %c2_54 = arith.constant 2 : index
    %c0_55 = arith.constant 0 : index
    %c0_56 = arith.constant 0 : index
    %36 = vector.load %arg7[%c2_52, %c0_53, %c2_54, %c0_55, %c0_56] : memref<5x2x20x16x128xf32, #tpu.memory_space<vmem>>, vector<1x2x16x16x128xf32>
    %37 = vector.shape_cast %36 : vector<1x2x16x16x128xf32> to vector<2x16x16x128xf32>
    %38 = vector.shape_cast %0 : vector<2x16x16x128xf32> to vector<1x2x16x16x128xf32>
    tpu.vector_store %arg7[%c2_52, %c0_53, %c2_54, %c0_55, %c0_56], %38 {strides = array<i32>} : memref<5x2x20x16x128xf32, #tpu.memory_space<vmem>>, vector<1x2x16x16x128xf32>,
    %c3 = arith.constant 3 : index
    %c0_57 = arith.constant 0 : index
    %c0_58 = arith.constant 0 : index
    %c0_59 = arith.constant 0 : index
    %c0_60 = arith.constant 0 : index
    %39 = vector.load %arg7[%c3, %c0_57, %c0_58, %c0_59, %c0_60] : memref<5x2x20x16x128xf32, #tpu.memory_space<vmem>>, vector<1x2x2x16x128xf32>
    %40 = vector.shape_cast %39 : vector<1x2x2x16x128xf32> to vector<2x2x16x128xf32>
    %41 = vector.shape_cast %1 : vector<2x2x16x128xf32> to vector<1x2x2x16x128xf32>
    tpu.vector_store %arg7[%c3, %c0_57, %c0_58, %c0_59, %c0_60], %41 {strides = array<i32>} : memref<5x2x20x16x128xf32, #tpu.memory_space<vmem>>, vector<1x2x2x16x128xf32>,
    %c3_61 = arith.constant 3 : index
    %c0_62 = arith.constant 0 : index
    %c18_63 = arith.constant 18 : index
    %c0_64 = arith.constant 0 : index
    %c0_65 = arith.constant 0 : index
    %42 = vector.load %arg7[%c3_61, %c0_62, %c18_63, %c0_64, %c0_65] : memref<5x2x20x16x128xf32, #tpu.memory_space<vmem>>, vector<1x2x2x16x128xf32>
    %43 = vector.shape_cast %42 : vector<1x2x2x16x128xf32> to vector<2x2x16x128xf32>
    %44 = vector.shape_cast %1 : vector<2x2x16x128xf32> to vector<1x2x2x16x128xf32>
    tpu.vector_store %arg7[%c3_61, %c0_62, %c18_63, %c0_64, %c0_65], %44 {strides = array<i32>} : memref<5x2x20x16x128xf32, #tpu.memory_space<vmem>>, vector<1x2x2x16x128xf32>,
    %cst_66 = arith.constant 0.000000e+00 : f32
    %45 = vector.broadcast %cst_66 : f32 to vector<2x16x1x128xf32>
    %c3_67 = arith.constant 3 : index
    %c0_68 = arith.constant 0 : index
    %c2_69 = arith.constant 2 : index
    %c15 = arith.constant 15 : index
    %c0_70 = arith.constant 0 : index
    %46 = vector.load %arg7[%c3_67, %c0_68, %c2_69, %c15, %c0_70] : memref<5x2x20x16x128xf32, #tpu.memory_space<vmem>>, vector<1x2x16x1x128xf32>
    %47 = vector.shape_cast %46 : vector<1x2x16x1x128xf32> to vector<2x16x1x128xf32>
    %48 = vector.shape_cast %45 : vector<2x16x1x128xf32> to vector<1x2x16x1x128xf32>
    tpu.vector_store %arg7[%c3_67, %c0_68, %c2_69, %c15, %c0_70], %48 {strides = array<i32>} : memref<5x2x20x16x128xf32, #tpu.memory_space<vmem>>, vector<1x2x16x1x128xf32>,
    %49 = vector.extract_strided_slice %0 {offsets = [0, 0, 1, 0], sizes = [2, 16, 15, 128], strides = [1, 1, 1, 1]} : vector<2x16x16x128xf32> to vector<2x16x15x128xf32>
    %c3_71 = arith.constant 3 : index
    %c0_72 = arith.constant 0 : index
    %c2_73 = arith.constant 2 : index
    %c0_74 = arith.constant 0 : index
    %c0_75 = arith.constant 0 : index
    %50 = vector.load %arg7[%c3_71, %c0_72, %c2_73, %c0_74, %c0_75] : memref<5x2x20x16x128xf32, #tpu.memory_space<vmem>>, vector<1x2x16x15x128xf32>
    %51 = vector.shape_cast %50 : vector<1x2x16x15x128xf32> to vector<2x16x15x128xf32>
    %52 = vector.shape_cast %49 : vector<2x16x15x128xf32> to vector<1x2x16x15x128xf32>
    tpu.vector_store %arg7[%c3_71, %c0_72, %c2_73, %c0_74, %c0_75], %52 {strides = array<i32>} : memref<5x2x20x16x128xf32, #tpu.memory_space<vmem>>, vector<1x2x16x15x128xf32>,
    %c4 = arith.constant 4 : index
    %c0_76 = arith.constant 0 : index
    %c0_77 = arith.constant 0 : index
    %c0_78 = arith.constant 0 : index
    %c0_79 = arith.constant 0 : index
    %53 = vector.load %arg7[%c4, %c0_76, %c0_77, %c0_78, %c0_79] : memref<5x2x20x16x128xf32, #tpu.memory_space<vmem>>, vector<1x2x2x16x128xf32>
    %54 = vector.shape_cast %53 : vector<1x2x2x16x128xf32> to vector<2x2x16x128xf32>
    %55 = vector.shape_cast %1 : vector<2x2x16x128xf32> to vector<1x2x2x16x128xf32>
    tpu.vector_store %arg7[%c4, %c0_76, %c0_77, %c0_78, %c0_79], %55 {strides = array<i32>} : memref<5x2x20x16x128xf32, #tpu.memory_space<vmem>>, vector<1x2x2x16x128xf32>,
    %c4_80 = arith.constant 4 : index
    %c0_81 = arith.constant 0 : index
    %c18_82 = arith.constant 18 : index
    %c0_83 = arith.constant 0 : index
    %c0_84 = arith.constant 0 : index
    %56 = vector.load %arg7[%c4_80, %c0_81, %c18_82, %c0_83, %c0_84] : memref<5x2x20x16x128xf32, #tpu.memory_space<vmem>>, vector<1x2x2x16x128xf32>
    %57 = vector.shape_cast %56 : vector<1x2x2x16x128xf32> to vector<2x2x16x128xf32>
    %58 = vector.shape_cast %1 : vector<2x2x16x128xf32> to vector<1x2x2x16x128xf32>
    tpu.vector_store %arg7[%c4_80, %c0_81, %c18_82, %c0_83, %c0_84], %58 {strides = array<i32>} : memref<5x2x20x16x128xf32, #tpu.memory_space<vmem>>, vector<1x2x2x16x128xf32>,
    %cst_85 = arith.constant 0.000000e+00 : f32
    %59 = vector.broadcast %cst_85 : f32 to vector<2x16x2x128xf32>
    %c4_86 = arith.constant 4 : index
    %c0_87 = arith.constant 0 : index
    %c2_88 = arith.constant 2 : index
    %c14 = arith.constant 14 : index
    %c0_89 = arith.constant 0 : index
    %60 = vector.load %arg7[%c4_86, %c0_87, %c2_88, %c14, %c0_89] : memref<5x2x20x16x128xf32, #tpu.memory_space<vmem>>, vector<1x2x16x2x128xf32>
    %61 = vector.shape_cast %60 : vector<1x2x16x2x128xf32> to vector<2x16x2x128xf32>
    %62 = vector.shape_cast %59 : vector<2x16x2x128xf32> to vector<1x2x16x2x128xf32>
    tpu.vector_store %arg7[%c4_86, %c0_87, %c2_88, %c14, %c0_89], %62 {strides = array<i32>} : memref<5x2x20x16x128xf32, #tpu.memory_space<vmem>>, vector<1x2x16x2x128xf32>,
    %63 = vector.extract_strided_slice %0 {offsets = [0, 0, 2, 0], sizes = [2, 16, 14, 128], strides = [1, 1, 1, 1]} : vector<2x16x16x128xf32> to vector<2x16x14x128xf32>
    %c4_90 = arith.constant 4 : index
    %c0_91 = arith.constant 0 : index
    %c2_92 = arith.constant 2 : index
    %c0_93 = arith.constant 0 : index
    %c0_94 = arith.constant 0 : index
    %64 = vector.load %arg7[%c4_90, %c0_91, %c2_92, %c0_93, %c0_94] : memref<5x2x20x16x128xf32, #tpu.memory_space<vmem>>, vector<1x2x16x14x128xf32>
    %65 = vector.shape_cast %64 : vector<1x2x16x14x128xf32> to vector<2x16x14x128xf32>
    %66 = vector.shape_cast %63 : vector<2x16x14x128xf32> to vector<1x2x16x14x128xf32>
    tpu.vector_store %arg7[%c4_90, %c0_91, %c2_92, %c0_93, %c0_94], %66 {strides = array<i32>} : memref<5x2x20x16x128xf32, #tpu.memory_space<vmem>>, vector<1x2x16x14x128xf32>,
    %c0_95 = arith.constant 0 : index
    %c0_96 = arith.constant 0 : index
    %c0_97 = arith.constant 0 : index
    %67 = vector.load %arg2[%c0_95, %c0_96, %c0_97] : memref<25x1x128xf32, #tpu.memory_space<vmem>>, vector<1x1x128xf32>
    %68 = vector.shape_cast %67 : vector<1x1x128xf32> to vector<1x128xf32>
    %c0_98 = arith.constant 0 : index
    %c0_99 = arith.constant 0 : index
    %c0_100 = arith.constant 0 : index
    %c0_101 = arith.constant 0 : index
    %c0_102 = arith.constant 0 : index
    %69 = vector.load %arg7[%c0_98, %c0_99, %c0_100, %c0_101, %c0_102] : memref<5x2x20x16x128xf32, #tpu.memory_space<vmem>>, vector<1x2x16x16x128xf32>
    %70 = vector.shape_cast %69 : vector<1x2x16x16x128xf32> to vector<2x16x16x128xf32>
    %71 = vector.shape_cast %68 : vector<1x128xf32> to vector<1x1x1x128xf32>
    %72 = vector.broadcast %71 : vector<1x1x1x128xf32> to vector<2x16x16x128xf32>
    %73 = arith.mulf %72, %70 : vector<2x16x16x128xf32>
    %c1_103 = arith.constant 1 : index
    %c0_104 = arith.constant 0 : index
    %c0_105 = arith.constant 0 : index
    %74 = vector.load %arg2[%c1_103, %c0_104, %c0_105] : memref<25x1x128xf32, #tpu.memory_space<vmem>>, vector<1x1x128xf32>
    %75 = vector.shape_cast %74 : vector<1x1x128xf32> to vector<1x128xf32>
    %c1_106 = arith.constant 1 : index
    %c0_107 = arith.constant 0 : index
    %c0_108 = arith.constant 0 : index
    %c0_109 = arith.constant 0 : index
    %c0_110 = arith.constant 0 : index
    %76 = vector.load %arg7[%c1_106, %c0_107, %c0_108, %c0_109, %c0_110] : memref<5x2x20x16x128xf32, #tpu.memory_space<vmem>>, vector<1x2x16x16x128xf32>
    %77 = vector.shape_cast %76 : vector<1x2x16x16x128xf32> to vector<2x16x16x128xf32>
    %78 = vector.shape_cast %75 : vector<1x128xf32> to vector<1x1x1x128xf32>
    %79 = vector.broadcast %78 : vector<1x1x1x128xf32> to vector<2x16x16x128xf32>
    %80 = arith.mulf %79, %77 : vector<2x16x16x128xf32>
    %81 = arith.addf %73, %80 : vector<2x16x16x128xf32>
    %c2_111 = arith.constant 2 : index
    %c0_112 = arith.constant 0 : index
    %c0_113 = arith.constant 0 : index
    %82 = vector.load %arg2[%c2_111, %c0_112, %c0_113] : memref<25x1x128xf32, #tpu.memory_space<vmem>>, vector<1x1x128xf32>
    %83 = vector.shape_cast %82 : vector<1x1x128xf32> to vector<1x128xf32>
    %c2_114 = arith.constant 2 : index
    %c0_115 = arith.constant 0 : index
    %c0_116 = arith.constant 0 : index
    %c0_117 = arith.constant 0 : index
    %c0_118 = arith.constant 0 : index
    %84 = vector.load %arg7[%c2_114, %c0_115, %c0_116, %c0_117, %c0_118] : memref<5x2x20x16x128xf32, #tpu.memory_space<vmem>>, vector<1x2x16x16x128xf32>
    %85 = vector.shape_cast %84 : vector<1x2x16x16x128xf32> to vector<2x16x16x128xf32>
    %86 = vector.shape_cast %83 : vector<1x128xf32> to vector<1x1x1x128xf32>
    %87 = vector.broadcast %86 : vector<1x1x1x128xf32> to vector<2x16x16x128xf32>
    %88 = arith.mulf %87, %85 : vector<2x16x16x128xf32>
    %89 = arith.addf %81, %88 : vector<2x16x16x128xf32>
    %c3_119 = arith.constant 3 : index
    %c0_120 = arith.constant 0 : index
    %c0_121 = arith.constant 0 : index
    %90 = vector.load %arg2[%c3_119, %c0_120, %c0_121] : memref<25x1x128xf32, #tpu.memory_space<vmem>>, vector<1x1x128xf32>
    %91 = vector.shape_cast %90 : vector<1x1x128xf32> to vector<1x128xf32>
    %c3_122 = arith.constant 3 : index
    %c0_123 = arith.constant 0 : index
    %c0_124 = arith.constant 0 : index
    %c0_125 = arith.constant 0 : index
    %c0_126 = arith.constant 0 : index
    %92 = vector.load %arg7[%c3_122, %c0_123, %c0_124, %c0_125, %c0_126] : memref<5x2x20x16x128xf32, #tpu.memory_space<vmem>>, vector<1x2x16x16x128xf32>
    %93 = vector.shape_cast %92 : vector<1x2x16x16x128xf32> to vector<2x16x16x128xf32>
    %94 = vector.shape_cast %91 : vector<1x128xf32> to vector<1x1x1x128xf32>
    %95 = vector.broadcast %94 : vector<1x1x1x128xf32> to vector<2x16x16x128xf32>
    %96 = arith.mulf %95, %93 : vector<2x16x16x128xf32>
    %97 = arith.addf %89, %96 : vector<2x16x16x128xf32>
    %c4_127 = arith.constant 4 : index
    %c0_128 = arith.constant 0 : index
    %c0_129 = arith.constant 0 : index
    %98 = vector.load %arg2[%c4_127, %c0_128, %c0_129] : memref<25x1x128xf32, #tpu.memory_space<vmem>>, vector<1x1x128xf32>
    %99 = vector.shape_cast %98 : vector<1x1x128xf32> to vector<1x128xf32>
    %c4_130 = arith.constant 4 : index
    %c0_131 = arith.constant 0 : index
    %c0_132 = arith.constant 0 : index
    %c0_133 = arith.constant 0 : index
    %c0_134 = arith.constant 0 : index
    %100 = vector.load %arg7[%c4_130, %c0_131, %c0_132, %c0_133, %c0_134] : memref<5x2x20x16x128xf32, #tpu.memory_space<vmem>>, vector<1x2x16x16x128xf32>
    %101 = vector.shape_cast %100 : vector<1x2x16x16x128xf32> to vector<2x16x16x128xf32>
    %102 = vector.shape_cast %99 : vector<1x128xf32> to vector<1x1x1x128xf32>
    %103 = vector.broadcast %102 : vector<1x1x1x128xf32> to vector<2x16x16x128xf32>
    %104 = arith.mulf %103, %101 : vector<2x16x16x128xf32>
    %105 = arith.addf %97, %104 : vector<2x16x16x128xf32>
    %c5 = arith.constant 5 : index
    %c0_135 = arith.constant 0 : index
    %c0_136 = arith.constant 0 : index
    %106 = vector.load %arg2[%c5, %c0_135, %c0_136] : memref<25x1x128xf32, #tpu.memory_space<vmem>>, vector<1x1x128xf32>
    %107 = vector.shape_cast %106 : vector<1x1x128xf32> to vector<1x128xf32>
    %c0_137 = arith.constant 0 : index
    %c0_138 = arith.constant 0 : index
    %c1_139 = arith.constant 1 : index
    %c0_140 = arith.constant 0 : index
    %c0_141 = arith.constant 0 : index
    %108 = vector.load %arg7[%c0_137, %c0_138, %c1_139, %c0_140, %c0_141] : memref<5x2x20x16x128xf32, #tpu.memory_space<vmem>>, vector<1x2x16x16x128xf32>
    %109 = vector.shape_cast %108 : vector<1x2x16x16x128xf32> to vector<2x16x16x128xf32>
    %110 = vector.shape_cast %107 : vector<1x128xf32> to vector<1x1x1x128xf32>
    %111 = vector.broadcast %110 : vector<1x1x1x128xf32> to vector<2x16x16x128xf32>
    %112 = arith.mulf %111, %109 : vector<2x16x16x128xf32>
    %113 = arith.addf %105, %112 : vector<2x16x16x128xf32>
    %c6 = arith.constant 6 : index
    %c0_142 = arith.constant 0 : index
    %c0_143 = arith.constant 0 : index
    %114 = vector.load %arg2[%c6, %c0_142, %c0_143] : memref<25x1x128xf32, #tpu.memory_space<vmem>>, vector<1x1x128xf32>
    %115 = vector.shape_cast %114 : vector<1x1x128xf32> to vector<1x128xf32>
    %c1_144 = arith.constant 1 : index
    %c0_145 = arith.constant 0 : index
    %c1_146 = arith.constant 1 : index
    %c0_147 = arith.constant 0 : index
    %c0_148 = arith.constant 0 : index
    %116 = vector.load %arg7[%c1_144, %c0_145, %c1_146, %c0_147, %c0_148] : memref<5x2x20x16x128xf32, #tpu.memory_space<vmem>>, vector<1x2x16x16x128xf32>
    %117 = vector.shape_cast %116 : vector<1x2x16x16x128xf32> to vector<2x16x16x128xf32>
    %118 = vector.shape_cast %115 : vector<1x128xf32> to vector<1x1x1x128xf32>
    %119 = vector.broadcast %118 : vector<1x1x1x128xf32> to vector<2x16x16x128xf32>
    %120 = arith.mulf %119, %117 : vector<2x16x16x128xf32>
    %121 = arith.addf %113, %120 : vector<2x16x16x128xf32>
    %c7 = arith.constant 7 : index
    %c0_149 = arith.constant 0 : index
    %c0_150 = arith.constant 0 : index
    %122 = vector.load %arg2[%c7, %c0_149, %c0_150] : memref<25x1x128xf32, #tpu.memory_space<vmem>>, vector<1x1x128xf32>
    %123 = vector.shape_cast %122 : vector<1x1x128xf32> to vector<1x128xf32>
    %c2_151 = arith.constant 2 : index
    %c0_152 = arith.constant 0 : index
    %c1_153 = arith.constant 1 : index
    %c0_154 = arith.constant 0 : index
    %c0_155 = arith.constant 0 : index
    %124 = vector.load %arg7[%c2_151, %c0_152, %c1_153, %c0_154, %c0_155] : memref<5x2x20x16x128xf32, #tpu.memory_space<vmem>>, vector<1x2x16x16x128xf32>
    %125 = vector.shape_cast %124 : vector<1x2x16x16x128xf32> to vector<2x16x16x128xf32>
    %126 = vector.shape_cast %123 : vector<1x128xf32> to vector<1x1x1x128xf32>
    %127 = vector.broadcast %126 : vector<1x1x1x128xf32> to vector<2x16x16x128xf32>
    %128 = arith.mulf %127, %125 : vector<2x16x16x128xf32>
    %129 = arith.addf %121, %128 : vector<2x16x16x128xf32>
    %c8 = arith.constant 8 : index
    %c0_156 = arith.constant 0 : index
    %c0_157 = arith.constant 0 : index
    %130 = vector.load %arg2[%c8, %c0_156, %c0_157] : memref<25x1x128xf32, #tpu.memory_space<vmem>>, vector<1x1x128xf32>
    %131 = vector.shape_cast %130 : vector<1x1x128xf32> to vector<1x128xf32>
    %c3_158 = arith.constant 3 : index
    %c0_159 = arith.constant 0 : index
    %c1_160 = arith.constant 1 : index
    %c0_161 = arith.constant 0 : index
    %c0_162 = arith.constant 0 : index
    %132 = vector.load %arg7[%c3_158, %c0_159, %c1_160, %c0_161, %c0_162] : memref<5x2x20x16x128xf32, #tpu.memory_space<vmem>>, vector<1x2x16x16x128xf32>
    %133 = vector.shape_cast %132 : vector<1x2x16x16x128xf32> to vector<2x16x16x128xf32>
    %134 = vector.shape_cast %131 : vector<1x128xf32> to vector<1x1x1x128xf32>
    %135 = vector.broadcast %134 : vector<1x1x1x128xf32> to vector<2x16x16x128xf32>
    %136 = arith.mulf %135, %133 : vector<2x16x16x128xf32>
    %137 = arith.addf %129, %136 : vector<2x16x16x128xf32>
    %c9 = arith.constant 9 : index
    %c0_163 = arith.constant 0 : index
    %c0_164 = arith.constant 0 : index
    %138 = vector.load %arg2[%c9, %c0_163, %c0_164] : memref<25x1x128xf32, #tpu.memory_space<vmem>>, vector<1x1x128xf32>
    %139 = vector.shape_cast %138 : vector<1x1x128xf32> to vector<1x128xf32>
    %c4_165 = arith.constant 4 : index
    %c0_166 = arith.constant 0 : index
    %c1_167 = arith.constant 1 : index
    %c0_168 = arith.constant 0 : index
    %c0_169 = arith.constant 0 : index
    %140 = vector.load %arg7[%c4_165, %c0_166, %c1_167, %c0_168, %c0_169] : memref<5x2x20x16x128xf32, #tpu.memory_space<vmem>>, vector<1x2x16x16x128xf32>
    %141 = vector.shape_cast %140 : vector<1x2x16x16x128xf32> to vector<2x16x16x128xf32>
    %142 = vector.shape_cast %139 : vector<1x128xf32> to vector<1x1x1x128xf32>
    %143 = vector.broadcast %142 : vector<1x1x1x128xf32> to vector<2x16x16x128xf32>
    %144 = arith.mulf %143, %141 : vector<2x16x16x128xf32>
    %145 = arith.addf %137, %144 : vector<2x16x16x128xf32>
    %c10 = arith.constant 10 : index
    %c0_170 = arith.constant 0 : index
    %c0_171 = arith.constant 0 : index
    %146 = vector.load %arg2[%c10, %c0_170, %c0_171] : memref<25x1x128xf32, #tpu.memory_space<vmem>>, vector<1x1x128xf32>
    %147 = vector.shape_cast %146 : vector<1x1x128xf32> to vector<1x128xf32>
    %c0_172 = arith.constant 0 : index
    %c0_173 = arith.constant 0 : index
    %c2_174 = arith.constant 2 : index
    %c0_175 = arith.constant 0 : index
    %c0_176 = arith.constant 0 : index
    %148 = vector.load %arg7[%c0_172, %c0_173, %c2_174, %c0_175, %c0_176] : memref<5x2x20x16x128xf32, #tpu.memory_space<vmem>>, vector<1x2x16x16x128xf32>
    %149 = vector.shape_cast %148 : vector<1x2x16x16x128xf32> to vector<2x16x16x128xf32>
    %150 = vector.shape_cast %147 : vector<1x128xf32> to vector<1x1x1x128xf32>
    %151 = vector.broadcast %150 : vector<1x1x1x128xf32> to vector<2x16x16x128xf32>
    %152 = arith.mulf %151, %149 : vector<2x16x16x128xf32>
    %153 = arith.addf %145, %152 : vector<2x16x16x128xf32>
    %c11 = arith.constant 11 : index
    %c0_177 = arith.constant 0 : index
    %c0_178 = arith.constant 0 : index
    %154 = vector.load %arg2[%c11, %c0_177, %c0_178] : memref<25x1x128xf32, #tpu.memory_space<vmem>>, vector<1x1x128xf32>
    %155 = vector.shape_cast %154 : vector<1x1x128xf32> to vector<1x128xf32>
    %c1_179 = arith.constant 1 : index
    %c0_180 = arith.constant 0 : index
    %c2_181 = arith.constant 2 : index
    %c0_182 = arith.constant 0 : index
    %c0_183 = arith.constant 0 : index
    %156 = vector.load %arg7[%c1_179, %c0_180, %c2_181, %c0_182, %c0_183] : memref<5x2x20x16x128xf32, #tpu.memory_space<vmem>>, vector<1x2x16x16x128xf32>
    %157 = vector.shape_cast %156 : vector<1x2x16x16x128xf32> to vector<2x16x16x128xf32>
    %158 = vector.shape_cast %155 : vector<1x128xf32> to vector<1x1x1x128xf32>
    %159 = vector.broadcast %158 : vector<1x1x1x128xf32> to vector<2x16x16x128xf32>
    %160 = arith.mulf %159, %157 : vector<2x16x16x128xf32>
    %161 = arith.addf %153, %160 : vector<2x16x16x128xf32>
    %c12 = arith.constant 12 : index
    %c0_184 = arith.constant 0 : index
    %c0_185 = arith.constant 0 : index
    %162 = vector.load %arg2[%c12, %c0_184, %c0_185] : memref<25x1x128xf32, #tpu.memory_space<vmem>>, vector<1x1x128xf32>
    %163 = vector.shape_cast %162 : vector<1x1x128xf32> to vector<1x128xf32>
    %c2_186 = arith.constant 2 : index
    %c0_187 = arith.constant 0 : index
    %c2_188 = arith.constant 2 : index
    %c0_189 = arith.constant 0 : index
    %c0_190 = arith.constant 0 : index
    %164 = vector.load %arg7[%c2_186, %c0_187, %c2_188, %c0_189, %c0_190] : memref<5x2x20x16x128xf32, #tpu.memory_space<vmem>>, vector<1x2x16x16x128xf32>
    %165 = vector.shape_cast %164 : vector<1x2x16x16x128xf32> to vector<2x16x16x128xf32>
    %166 = vector.shape_cast %163 : vector<1x128xf32> to vector<1x1x1x128xf32>
    %167 = vector.broadcast %166 : vector<1x1x1x128xf32> to vector<2x16x16x128xf32>
    %168 = arith.mulf %167, %165 : vector<2x16x16x128xf32>
    %169 = arith.addf %161, %168 : vector<2x16x16x128xf32>
    %c13 = arith.constant 13 : index
    %c0_191 = arith.constant 0 : index
    %c0_192 = arith.constant 0 : index
    %170 = vector.load %arg2[%c13, %c0_191, %c0_192] : memref<25x1x128xf32, #tpu.memory_space<vmem>>, vector<1x1x128xf32>
    %171 = vector.shape_cast %170 : vector<1x1x128xf32> to vector<1x128xf32>
    %c3_193 = arith.constant 3 : index
    %c0_194 = arith.constant 0 : index
    %c2_195 = arith.constant 2 : index
    %c0_196 = arith.constant 0 : index
    %c0_197 = arith.constant 0 : index
    %172 = vector.load %arg7[%c3_193, %c0_194, %c2_195, %c0_196, %c0_197] : memref<5x2x20x16x128xf32, #tpu.memory_space<vmem>>, vector<1x2x16x16x128xf32>
    %173 = vector.shape_cast %172 : vector<1x2x16x16x128xf32> to vector<2x16x16x128xf32>
    %174 = vector.shape_cast %171 : vector<1x128xf32> to vector<1x1x1x128xf32>
    %175 = vector.broadcast %174 : vector<1x1x1x128xf32> to vector<2x16x16x128xf32>
    %176 = arith.mulf %175, %173 : vector<2x16x16x128xf32>
    %177 = arith.addf %169, %176 : vector<2x16x16x128xf32>
    %c14_198 = arith.constant 14 : index
    %c0_199 = arith.constant 0 : index
    %c0_200 = arith.constant 0 : index
    %178 = vector.load %arg2[%c14_198, %c0_199, %c0_200] : memref<25x1x128xf32, #tpu.memory_space<vmem>>, vector<1x1x128xf32>
    %179 = vector.shape_cast %178 : vector<1x1x128xf32> to vector<1x128xf32>
    %c4_201 = arith.constant 4 : index
    %c0_202 = arith.constant 0 : index
    %c2_203 = arith.constant 2 : index
    %c0_204 = arith.constant 0 : index
    %c0_205 = arith.constant 0 : index
    %180 = vector.load %arg7[%c4_201, %c0_202, %c2_203, %c0_204, %c0_205] : memref<5x2x20x16x128xf32, #tpu.memory_space<vmem>>, vector<1x2x16x16x128xf32>
    %181 = vector.shape_cast %180 : vector<1x2x16x16x128xf32> to vector<2x16x16x128xf32>
    %182 = vector.shape_cast %179 : vector<1x128xf32> to vector<1x1x1x128xf32>
    %183 = vector.broadcast %182 : vector<1x1x1x128xf32> to vector<2x16x16x128xf32>
    %184 = arith.mulf %183, %181 : vector<2x16x16x128xf32>
    %185 = arith.addf %177, %184 : vector<2x16x16x128xf32>
    %c15_206 = arith.constant 15 : index
    %c0_207 = arith.constant 0 : index
    %c0_208 = arith.constant 0 : index
    %186 = vector.load %arg2[%c15_206, %c0_207, %c0_208] : memref<25x1x128xf32, #tpu.memory_space<vmem>>, vector<1x1x128xf32>
    %187 = vector.shape_cast %186 : vector<1x1x128xf32> to vector<1x128xf32>
    %c0_209 = arith.constant 0 : index
    %c0_210 = arith.constant 0 : index
    %c3_211 = arith.constant 3 : index
    %c0_212 = arith.constant 0 : index
    %c0_213 = arith.constant 0 : index
    %188 = vector.load %arg7[%c0_209, %c0_210, %c3_211, %c0_212, %c0_213] : memref<5x2x20x16x128xf32, #tpu.memory_space<vmem>>, vector<1x2x16x16x128xf32>
    %189 = vector.shape_cast %188 : vector<1x2x16x16x128xf32> to vector<2x16x16x128xf32>
    %190 = vector.shape_cast %187 : vector<1x128xf32> to vector<1x1x1x128xf32>
    %191 = vector.broadcast %190 : vector<1x1x1x128xf32> to vector<2x16x16x128xf32>
    %192 = arith.mulf %191, %189 : vector<2x16x16x128xf32>
    %193 = arith.addf %185, %192 : vector<2x16x16x128xf32>
    %c16 = arith.constant 16 : index
    %c0_214 = arith.constant 0 : index
    %c0_215 = arith.constant 0 : index
    %194 = vector.load %arg2[%c16, %c0_214, %c0_215] : memref<25x1x128xf32, #tpu.memory_space<vmem>>, vector<1x1x128xf32>
    %195 = vector.shape_cast %194 : vector<1x1x128xf32> to vector<1x128xf32>
    %c1_216 = arith.constant 1 : index
    %c0_217 = arith.constant 0 : index
    %c3_218 = arith.constant 3 : index
    %c0_219 = arith.constant 0 : index
    %c0_220 = arith.constant 0 : index
    %196 = vector.load %arg7[%c1_216, %c0_217, %c3_218, %c0_219, %c0_220] : memref<5x2x20x16x128xf32, #tpu.memory_space<vmem>>, vector<1x2x16x16x128xf32>
    %197 = vector.shape_cast %196 : vector<1x2x16x16x128xf32> to vector<2x16x16x128xf32>
    %198 = vector.shape_cast %195 : vector<1x128xf32> to vector<1x1x1x128xf32>
    %199 = vector.broadcast %198 : vector<1x1x1x128xf32> to vector<2x16x16x128xf32>
    %200 = arith.mulf %199, %197 : vector<2x16x16x128xf32>
    %201 = arith.addf %193, %200 : vector<2x16x16x128xf32>
    %c17 = arith.constant 17 : index
    %c0_221 = arith.constant 0 : index
    %c0_222 = arith.constant 0 : index
    %202 = vector.load %arg2[%c17, %c0_221, %c0_222] : memref<25x1x128xf32, #tpu.memory_space<vmem>>, vector<1x1x128xf32>
    %203 = vector.shape_cast %202 : vector<1x1x128xf32> to vector<1x128xf32>
    %c2_223 = arith.constant 2 : index
    %c0_224 = arith.constant 0 : index
    %c3_225 = arith.constant 3 : index
    %c0_226 = arith.constant 0 : index
    %c0_227 = arith.constant 0 : index
    %204 = vector.load %arg7[%c2_223, %c0_224, %c3_225, %c0_226, %c0_227] : memref<5x2x20x16x128xf32, #tpu.memory_space<vmem>>, vector<1x2x16x16x128xf32>
    %205 = vector.shape_cast %204 : vector<1x2x16x16x128xf32> to vector<2x16x16x128xf32>
    %206 = vector.shape_cast %203 : vector<1x128xf32> to vector<1x1x1x128xf32>
    %207 = vector.broadcast %206 : vector<1x1x1x128xf32> to vector<2x16x16x128xf32>
    %208 = arith.mulf %207, %205 : vector<2x16x16x128xf32>
    %209 = arith.addf %201, %208 : vector<2x16x16x128xf32>
    %c18_228 = arith.constant 18 : index
    %c0_229 = arith.constant 0 : index
    %c0_230 = arith.constant 0 : index
    %210 = vector.load %arg2[%c18_228, %c0_229, %c0_230] : memref<25x1x128xf32, #tpu.memory_space<vmem>>, vector<1x1x128xf32>
    %211 = vector.shape_cast %210 : vector<1x1x128xf32> to vector<1x128xf32>
    %c3_231 = arith.constant 3 : index
    %c0_232 = arith.constant 0 : index
    %c3_233 = arith.constant 3 : index
    %c0_234 = arith.constant 0 : index
    %c0_235 = arith.constant 0 : index
    %212 = vector.load %arg7[%c3_231, %c0_232, %c3_233, %c0_234, %c0_235] : memref<5x2x20x16x128xf32, #tpu.memory_space<vmem>>, vector<1x2x16x16x128xf32>
    %213 = vector.shape_cast %212 : vector<1x2x16x16x128xf32> to vector<2x16x16x128xf32>
    %214 = vector.shape_cast %211 : vector<1x128xf32> to vector<1x1x1x128xf32>
    %215 = vector.broadcast %214 : vector<1x1x1x128xf32> to vector<2x16x16x128xf32>
    %216 = arith.mulf %215, %213 : vector<2x16x16x128xf32>
    %217 = arith.addf %209, %216 : vector<2x16x16x128xf32>
    %c19 = arith.constant 19 : index
    %c0_236 = arith.constant 0 : index
    %c0_237 = arith.constant 0 : index
    %218 = vector.load %arg2[%c19, %c0_236, %c0_237] : memref<25x1x128xf32, #tpu.memory_space<vmem>>, vector<1x1x128xf32>
    %219 = vector.shape_cast %218 : vector<1x1x128xf32> to vector<1x128xf32>
    %c4_238 = arith.constant 4 : index
    %c0_239 = arith.constant 0 : index
    %c3_240 = arith.constant 3 : index
    %c0_241 = arith.constant 0 : index
    %c0_242 = arith.constant 0 : index
    %220 = vector.load %arg7[%c4_238, %c0_239, %c3_240, %c0_241, %c0_242] : memref<5x2x20x16x128xf32, #tpu.memory_space<vmem>>, vector<1x2x16x16x128xf32>
    %221 = vector.shape_cast %220 : vector<1x2x16x16x128xf32> to vector<2x16x16x128xf32>
    %222 = vector.shape_cast %219 : vector<1x128xf32> to vector<1x1x1x128xf32>
    %223 = vector.broadcast %222 : vector<1x1x1x128xf32> to vector<2x16x16x128xf32>
    %224 = arith.mulf %223, %221 : vector<2x16x16x128xf32>
    %225 = arith.addf %217, %224 : vector<2x16x16x128xf32>
    %c20 = arith.constant 20 : index
    %c0_243 = arith.constant 0 : index
    %c0_244 = arith.constant 0 : index
    %226 = vector.load %arg2[%c20, %c0_243, %c0_244] : memref<25x1x128xf32, #tpu.memory_space<vmem>>, vector<1x1x128xf32>
    %227 = vector.shape_cast %226 : vector<1x1x128xf32> to vector<1x128xf32>
    %c0_245 = arith.constant 0 : index
    %c0_246 = arith.constant 0 : index
    %c4_247 = arith.constant 4 : index
    %c0_248 = arith.constant 0 : index
    %c0_249 = arith.constant 0 : index
    %228 = vector.load %arg7[%c0_245, %c0_246, %c4_247, %c0_248, %c0_249] : memref<5x2x20x16x128xf32, #tpu.memory_space<vmem>>, vector<1x2x16x16x128xf32>
    %229 = vector.shape_cast %228 : vector<1x2x16x16x128xf32> to vector<2x16x16x128xf32>
    %230 = vector.shape_cast %227 : vector<1x128xf32> to vector<1x1x1x128xf32>
    %231 = vector.broadcast %230 : vector<1x1x1x128xf32> to vector<2x16x16x128xf32>
    %232 = arith.mulf %231, %229 : vector<2x16x16x128xf32>
    %233 = arith.addf %225, %232 : vector<2x16x16x128xf32>
    %c21 = arith.constant 21 : index
    %c0_250 = arith.constant 0 : index
    %c0_251 = arith.constant 0 : index
    %234 = vector.load %arg2[%c21, %c0_250, %c0_251] : memref<25x1x128xf32, #tpu.memory_space<vmem>>, vector<1x1x128xf32>
    %235 = vector.shape_cast %234 : vector<1x1x128xf32> to vector<1x128xf32>
    %c1_252 = arith.constant 1 : index
    %c0_253 = arith.constant 0 : index
    %c4_254 = arith.constant 4 : index
    %c0_255 = arith.constant 0 : index
    %c0_256 = arith.constant 0 : index
    %236 = vector.load %arg7[%c1_252, %c0_253, %c4_254, %c0_255, %c0_256] : memref<5x2x20x16x128xf32, #tpu.memory_space<vmem>>, vector<1x2x16x16x128xf32>
    %237 = vector.shape_cast %236 : vector<1x2x16x16x128xf32> to vector<2x16x16x128xf32>
    %238 = vector.shape_cast %235 : vector<1x128xf32> to vector<1x1x1x128xf32>
    %239 = vector.broadcast %238 : vector<1x1x1x128xf32> to vector<2x16x16x128xf32>
    %240 = arith.mulf %239, %237 : vector<2x16x16x128xf32>
    %241 = arith.addf %233, %240 : vector<2x16x16x128xf32>
    %c22 = arith.constant 22 : index
    %c0_257 = arith.constant 0 : index
    %c0_258 = arith.constant 0 : index
    %242 = vector.load %arg2[%c22, %c0_257, %c0_258] : memref<25x1x128xf32, #tpu.memory_space<vmem>>, vector<1x1x128xf32>
    %243 = vector.shape_cast %242 : vector<1x1x128xf32> to vector<1x128xf32>
    %c2_259 = arith.constant 2 : index
    %c0_260 = arith.constant 0 : index
    %c4_261 = arith.constant 4 : index
    %c0_262 = arith.constant 0 : index
    %c0_263 = arith.constant 0 : index
    %244 = vector.load %arg7[%c2_259, %c0_260, %c4_261, %c0_262, %c0_263] : memref<5x2x20x16x128xf32, #tpu.memory_space<vmem>>, vector<1x2x16x16x128xf32>
    %245 = vector.shape_cast %244 : vector<1x2x16x16x128xf32> to vector<2x16x16x128xf32>
    %246 = vector.shape_cast %243 : vector<1x128xf32> to vector<1x1x1x128xf32>
    %247 = vector.broadcast %246 : vector<1x1x1x128xf32> to vector<2x16x16x128xf32>
    %248 = arith.mulf %247, %245 : vector<2x16x16x128xf32>
    %249 = arith.addf %241, %248 : vector<2x16x16x128xf32>
    %c23 = arith.constant 23 : index
    %c0_264 = arith.constant 0 : index
    %c0_265 = arith.constant 0 : index
    %250 = vector.load %arg2[%c23, %c0_264, %c0_265] : memref<25x1x128xf32, #tpu.memory_space<vmem>>, vector<1x1x128xf32>
    %251 = vector.shape_cast %250 : vector<1x1x128xf32> to vector<1x128xf32>
    %c3_266 = arith.constant 3 : index
    %c0_267 = arith.constant 0 : index
    %c4_268 = arith.constant 4 : index
    %c0_269 = arith.constant 0 : index
    %c0_270 = arith.constant 0 : index
    %252 = vector.load %arg7[%c3_266, %c0_267, %c4_268, %c0_269, %c0_270] : memref<5x2x20x16x128xf32, #tpu.memory_space<vmem>>, vector<1x2x16x16x128xf32>
    %253 = vector.shape_cast %252 : vector<1x2x16x16x128xf32> to vector<2x16x16x128xf32>
    %254 = vector.shape_cast %251 : vector<1x128xf32> to vector<1x1x1x128xf32>
    %255 = vector.broadcast %254 : vector<1x1x1x128xf32> to vector<2x16x16x128xf32>
    %256 = arith.mulf %255, %253 : vector<2x16x16x128xf32>
    %257 = arith.addf %249, %256 : vector<2x16x16x128xf32>
    %c24 = arith.constant 24 : index
    %c0_271 = arith.constant 0 : index
    %c0_272 = arith.constant 0 : index
    %258 = vector.load %arg2[%c24, %c0_271, %c0_272] : memref<25x1x128xf32, #tpu.memory_space<vmem>>, vector<1x1x128xf32>
    %259 = vector.shape_cast %258 : vector<1x1x128xf32> to vector<1x128xf32>
    %c4_273 = arith.constant 4 : index
    %c0_274 = arith.constant 0 : index
    %c4_275 = arith.constant 4 : index
    %c0_276 = arith.constant 0 : index
    %c0_277 = arith.constant 0 : index
    %260 = vector.load %arg7[%c4_273, %c0_274, %c4_275, %c0_276, %c0_277] : memref<5x2x20x16x128xf32, #tpu.memory_space<vmem>>, vector<1x2x16x16x128xf32>
    %261 = vector.shape_cast %260 : vector<1x2x16x16x128xf32> to vector<2x16x16x128xf32>
    %262 = vector.shape_cast %259 : vector<1x128xf32> to vector<1x1x1x128xf32>
    %263 = vector.broadcast %262 : vector<1x1x1x128xf32> to vector<2x16x16x128xf32>
    %264 = arith.mulf %263, %261 : vector<2x16x16x128xf32>
    %265 = arith.addf %257, %264 : vector<2x16x16x128xf32>
    %c0_278 = arith.constant 0 : index
    %c0_279 = arith.constant 0 : index
    %266 = vector.load %arg3[%c0_278, %c0_279] : memref<1x128xf32, #tpu.memory_space<vmem>>, vector<1x128xf32>
    %267 = vector.shape_cast %266 : vector<1x128xf32> to vector<1x1x1x128xf32>
    %268 = vector.broadcast %267 : vector<1x1x1x128xf32> to vector<2x16x16x128xf32>
    %269 = arith.addf %265, %268 : vector<2x16x16x128xf32>
    %270 = arith.mulf %269, %269 : vector<2x16x16x128xf32>
    %cst_280 = arith.constant 5.000000e-01 : f32
    %271 = vector.broadcast %cst_280 : f32 to vector<2x16x16x128xf32>
    %272 = arith.mulf %271, %269 : vector<2x16x16x128xf32>
    %cst_281 = arith.constant 0.0356774069 : f32
    %273 = vector.broadcast %cst_281 : f32 to vector<2x16x16x128xf32>
    %274 = arith.mulf %273, %270 : vector<2x16x16x128xf32>
    %cst_282 = arith.constant 0.797884583 : f32
    %275 = vector.broadcast %cst_282 : f32 to vector<2x16x16x128xf32>
    %276 = arith.addf %275, %274 : vector<2x16x16x128xf32>
    %277 = arith.mulf %269, %276 : vector<2x16x16x128xf32>
    %278 = math.tanh %277 : vector<2x16x16x128xf32>
    %cst_283 = arith.constant 1.000000e+00 : f32
    %279 = vector.broadcast %cst_283 : f32 to vector<2x16x16x128xf32>
    %280 = arith.addf %279, %278 : vector<2x16x16x128xf32>
    %281 = arith.mulf %272, %280 : vector<2x16x16x128xf32>
    %cst_284 = arith.constant dense<0.000000e+00> : vector<128xf32>
    %282 = vector.multi_reduction <add>, %281, %cst_284 [0, 1, 2] : vector<2x16x16x128xf32> to vector<128xf32>
    %283 = vector.shape_cast %282 : vector<128xf32> to vector<1x1x1x128xf32>
    %284 = arith.mulf %281, %281 : vector<2x16x16x128xf32>
    %cst_285 = arith.constant dense<0.000000e+00> : vector<128xf32>
    %285 = vector.multi_reduction <add>, %284, %cst_285 [0, 1, 2] : vector<2x16x16x128xf32> to vector<128xf32>
    %286 = vector.shape_cast %285 : vector<128xf32> to vector<1x1x1x128xf32>
    %cst_286 = arith.constant 0.001953125 : f32
    %287 = vector.broadcast %cst_286 : f32 to vector<1x1x1x128xf32>
    %288 = arith.mulf %283, %287 : vector<1x1x1x128xf32>
    %cst_287 = arith.constant 0.001953125 : f32
    %289 = vector.broadcast %cst_287 : f32 to vector<1x1x1x128xf32>
    %290 = arith.mulf %286, %289 : vector<1x1x1x128xf32>
    %291 = arith.mulf %288, %288 : vector<1x1x1x128xf32>
    %292 = arith.subf %290, %291 : vector<1x1x1x128xf32>
    %c0_288 = arith.constant 0 : index
    %c0_289 = arith.constant 0 : index
    %293 = vector.load %arg4[%c0_288, %c0_289] : memref<1x128xf32, #tpu.memory_space<vmem>>, vector<1x128xf32>
    %cst_290 = arith.constant 9.99999974E-6 : f32
    %294 = vector.broadcast %cst_290 : f32 to vector<1x1x1x128xf32>
    %295 = arith.addf %292, %294 : vector<1x1x1x128xf32>
    %296 = math.rsqrt %295 : vector<1x1x1x128xf32>
    %297 = vector.shape_cast %293 : vector<1x128xf32> to vector<1x1x1x128xf32>
    %298 = arith.mulf %297, %296 : vector<1x1x1x128xf32>
    %299 = vector.broadcast %288 : vector<1x1x1x128xf32> to vector<2x16x16x128xf32>
    %300 = arith.subf %281, %299 : vector<2x16x16x128xf32>
    %301 = vector.broadcast %298 : vector<1x1x1x128xf32> to vector<2x16x16x128xf32>
    %302 = arith.mulf %300, %301 : vector<2x16x16x128xf32>
    %c0_291 = arith.constant 0 : index
    %c0_292 = arith.constant 0 : index
    %303 = vector.load %arg5[%c0_291, %c0_292] : memref<1x128xf32, #tpu.memory_space<vmem>>, vector<1x128xf32>
    %304 = vector.shape_cast %303 : vector<1x128xf32> to vector<1x1x1x128xf32>
    %305 = vector.broadcast %304 : vector<1x1x1x128xf32> to vector<2x16x16x128xf32>
    %306 = arith.addf %302, %305 : vector<2x16x16x128xf32>
    %307 = arith.addf %306, %0 : vector<2x16x16x128xf32>
    %c0_293 = arith.constant 0 : index
    %c0_294 = arith.constant 0 : index
    %c0_295 = arith.constant 0 : index
    %c0_296 = arith.constant 0 : index
    %308 = vector.load %arg6[%c0_293, %c0_294, %c0_295, %c0_296] : memref<2x16x16x128xf32, #tpu.memory_space<vmem>>, vector<2x16x16x128xf32>
    tpu.vector_store %arg6[%c0_293, %c0_294, %c0_295, %c0_296], %307 {strides = array<i32>} : memref<2x16x16x128xf32, #tpu.memory_space<vmem>>, vector<2x16x16x128xf32>,
    return
  }
  func.func @transform_0(%arg0: i32) -> (i32, i32, i32, i32) {
    %c0_i32 = arith.constant 0 : i32
    %c0_i32_0 = arith.constant 0 : i32
    %c0_i32_1 = arith.constant 0 : i32
    %c0_i32_2 = arith.constant 0 : i32
    return %c0_i32, %c0_i32_0, %c0_i32_1, %arg0 : i32, i32, i32, i32
  }
  func.func @transform_1(%arg0: i32) -> (i32, i32, i32) {
    %c0_i32 = arith.constant 0 : i32
    %c0_i32_0 = arith.constant 0 : i32
    %c0_i32_1 = arith.constant 0 : i32
    return %c0_i32, %c0_i32_0, %arg0 : i32, i32, i32
  }
  func.func @transform_2(%arg0: i32) -> (i32, i32) {
    %c0_i32 = arith.constant 0 : i32
    %c0_i32_0 = arith.constant 0 : i32
    return %c0_i32, %arg0 : i32, i32
  }
  func.func @transform_3(%arg0: i32) -> (i32, i32) {
    %c0_i32 = arith.constant 0 : i32
    %c0_i32_0 = arith.constant 0 : i32
    return %c0_i32, %arg0 : i32, i32
  }
  func.func @transform_4(%arg0: i32) -> (i32, i32) {
    %c0_i32 = arith.constant 0 : i32
    %c0_i32_0 = arith.constant 0 : i32
    return %c0_i32, %arg0 : i32, i32
  }
  func.func @transform_5(%arg0: i32) -> (i32, i32, i32, i32) {
    %c0_i32 = arith.constant 0 : i32
    %c0_i32_0 = arith.constant 0 : i32
    %c0_i32_1 = arith.constant 0 : i32
    %c0_i32_2 = arith.constant 0 : i32
    return %c0_i32, %c0_i32_0, %c0_i32_1, %arg0 : i32, i32, i32, i32
  }
}

</mosaic_0001>

<bundles_post_ra>
// kernel: tpu_custom_call.1
= control target key start
LH: loop header
LB: loop body
LE: loop exit
PB: predicated region body
PF: predicated region fallthrough
CT: control target
= control target key end

     0   :  { %s14685_s0 = inlined_call_operand.hbm [shape: f32[2,16,16,256], index: 0, kind: input, shape index: {}]   ;;  %s14686_s1 = inlined_call_operand.hbm [shape: f32[25,1,256], index: 1, kind: input, shape index: {}]   ;;  %s14687_s2 = inlined_call_operand.vmem [shape: f32[1,256], index: 2, kind: input, shape index: {}]   ;;  %s14688_s3 = inlined_call_operand.vmem [shape: f32[1,256], index: 3, kind: input, shape index: {}]   ;;  %s14689_s4 = inlined_call_operand.vmem [shape: f32[1,256], index: 4, kind: input, shape index: {}]   ;;  %s14690_s5 = inlined_call_operand.hbm [shape: f32[2,16,16,256], index: 5, kind: output, shape index: {}]  }
   0x1   :  { %15163 = sst [smem:[#allocation150_spill]] %s14685_s0 }
   0x2   :  { %10 = vsyncpa [#allocation4], 0 }
   0x3   :  { %12 = vsyncpa [#allocation4 + $0x1], 0 }
   0x4   :  { %13 = vsyncpa [#allocation7], 0 }
   0x5   :  { %15 = vsyncpa [#allocation7 + $0x1], 0 }
   0x6   :  { %16 = vsyncpa [#allocation5], 0 }
   0x7   :  { %18 = vsyncpa [#allocation5 + $0x1], 0  ;;  %s7827_s18 = smov 0   ;;  %s7829_s19 = smov 0  }
   0x8   :  { %s7831_s20 = smov 0   ;;  %s7833_s21 = smov 0  }
   0x9 LB: > { %s7848_s22 = sadd.s32 4294967295, %s7782_s21   ;;  %s7141_s23 = sadd.s32 4294967294, %s7782_s21   ;;  %s7782_s21 = sphi %s7833_s21, %s16206_s21   ;;  %s7778_s20 = sphi %s7831_s20, %s16205_s20   ;;  %s7774_s19 = sphi %s7829_s19, %s16204_s19   ;;  %s7770_s18 = sphi %s7827_s18, %s16203_s18  }
   0xa   : > { %s7852_s24 = sadd.s32 1, %s7782_s21   ;;  %s31_s25 = sadd.s32 1, %s7778_s20 }
   0xb   : > { %s28_s26 = ssub.s32 %s7782_s21, %s7852_s24  ;;  %p38_p0 = scmp.ne.s32.totalorder %s7778_s20, %s7774_s19 }
   0xc   : > { %p29_p1 = scmp.eq.s32.totalorder %s28_s26, 0  ;;  %p39_p2 = scmp.eq.s32.totalorder %s7782_s21, 0 }
   0xd   : > { %p44_p3 = scmp.ne.s32.totalorder %s7774_s19, %s7770_s18  ;;  %p45_p4 = scmp.eq.s32.totalorder %s7848_s22, 0 }
   0xe   : > { %s7864_s27 = scalar_select %p29_p1, %s7778_s20, %s31_s25  }
   0xf   : > { %p7866_p5 = por %p39_p2, %p38_p0  ;;  %p7870_p6 = por %p45_p4, %p44_p3 }
  0x10   : > { %p172_p7 = scmp.eq.s32.totalorder %s7848_s22, 1  ;;  %p178_p8 = scmp.eq.s32.totalorder %s7141_s23, 1 }
  0x11   : > { %s15165_s29 = scalar_select %p7870_p6, 1, 0 }
  0x12   : > { %p7224_p10 = scmp.lt.s32.totalorder %s7782_s21, 2  ;;  %p7877_p11 = por %p172_p7, %p38_p0 }
  0x13   : > { %p7881_p12 = por %p178_p8, %p44_p3  ;;  %s7886_s7 = sand.u32 1, %s7778_s20  }
  0x14   : > { %s15166_s30 = scalar_select %p7877_p11, 1, 0 }
  0x15   : > { %s15167_s6 = scalar_select %p7881_p12, 1, 0 }
  0x16   : > { %s7145_s8 = sshll.u32 %s7782_s21, 7  ;;  %s7144_s9 = sshll.u32 %s7886_s7, 9 }
  0x17   : > { %s15168_s0 = sld [smem:[#allocation150_spill]]  ;;  %s202_s13 = scalar_lea.vmem [#allocation3], %s7144_s9 }
  0x18   : > { %s208_s14 = sshll.u32 %s202_s13, 4  ;;  %p7897_p13 = pnand %p7224_p10, %p7866_p5  ;;  %s7901_s14 = int_to_ptr.vmem [resolvable:$true] %s208_s14 }
  0x19   : > { %s199_s16 = scalar_lea.sflag [#allocation4], %s7886_s7 }
  0x1a   : > { %p7654_p2 = pneg %p7897_p13 }
  0x1d   : > { %s7893_s12 = scalar_lea.hbm %s15168_s0, %s7145_s8  ;;  %s7657_s26 = scalar_lea.hbm %s15168_s0, 16384 }
  0x1e   : > { %s7652_s17 = scalar_lea.hbm %s7893_s12, 8192  ;;  %p7658_p5 = scmp.lt.u32.totalorder %s7893_s12, %s15168_s0 }
  0x1f   : > { %p7653_p1 = scmp.ne.s32.totalorder %s7893_s12, %s7652_s17  ;;  %p7659_p7 = scmp.lt.u32.totalorder %s7657_s26, %s7652_s17 }
  0x20   : > { %p7661_p10 = scmp.lt.u32.totalorder %s7652_s17, %s7893_s12 }
  0x21   : > { %p7655_p3 = pnand %p7654_p2, %p7653_p1  ;;  %p7660_p8 = por %p7659_p7, %p7658_p5 }
  0x23   : > { %p7656_p4 = pneg %p7655_p3  ;;  %p7662_p9 = por %p7661_p10, %p7660_p8 }
  0x25   : > { %p7663_p0 = pnand %p7662_p9, %p7656_p4 }
  0x27   : > { %7666 = shalt.err (!%p7663_p0)
}
  0x28   : > { %s7667_s9 = scalar_lea.vmem %s7901_s14, 8192  ;;  %s7784_s10 = smov [#allocation3]  }
  0x29   : > { %p7668_p1 = scmp.ne.s32.totalorder %s7901_s14, %s7667_s9  ;;  %s7672_s11 = sshll.u32 %s7784_s10, 4  ;;  %s7673_s11 = int_to_ptr.vmem [resolvable:$false] %s7672_s11 }
  0x2a   : > { %s7674_s13 = scalar_lea.vmem %s7673_s11, 16384  ;;  %p7675_p11 = scmp.lt.s32.totalorder %s7901_s14, %s7673_s11 }
  0x2b   : > { %p7670_p3 = pnand %p7668_p1, %p7654_p2  ;;  %p7676_p5 = scmp.lt.s32.totalorder %s7674_s13, %s7667_s9 }
  0x2d   : > { %p7671_p12 = pneg %p7670_p3  ;;  %p7677_p7 = por %p7676_p5, %p7675_p11 }
  0x2f   : > { %p7678_p8 = pnand %p7677_p7, %p7671_p12 }
  0x31   : > { %7681 = shalt.err (!%p7678_p8)
}
  0x32   : > { %s7785_s17 = smov 256   ;;  %s7786_s23 = smov 128  }
  0x33   : > { %s7787_s25 = smov 8   ;;  %p254_p9 = scmp.lt.s32.totalorder %s7782_s21, 3 }
  0x34   : > { %7216 = dma.hbm_to_vmem [thread:$0]  (!%p7897_p13), %s7893_s12, 8192, %s7901_s14, %s199_s16, %s7785_s17, %s7786_s23, %s7787_s25  }
  0x35   : > { %s7205_s26 = smul.u32 25, %s7886_s7  ;;  %s7146_s28 = sshll.u32 %s7782_s21, 4 }
  0x36   : > { %p15170_p11 = scmp.ge.s32.totalorder %s7782_s21, 1  ;;  %s7944_s11 = scalar_lea.hbm %s14686_s1, %s7146_s28 }
  0x37   : > { %s222_s13 = scalar_lea.vmem [#allocation6], %s7205_s26  ;;  %s219_s12 = scalar_lea.sflag [#allocation7], %s7886_s7 }
  0x38   : > { %p7937_p12 = pnand %p15170_p11, %p254_p9  ;;  %s228_s0 = sshll.u32 %s222_s13, 4  ;;  %s7946_s0 = int_to_ptr.vmem [resolvable:$true] %s228_s0 }
  0x39   : > { %s7682_s14 = scalar_lea.hbm %s7944_s11, 400  ;;  %s7687_s23 = scalar_lea.hbm %s14686_s1, 800 }
  0x3a   : > { %p7683_p0 = scmp.ne.s32.totalorder %s7944_s11, %s7682_s14  ;;  %p7688_p1 = scmp.lt.u32.totalorder %s7944_s11, %s14686_s1 }
  0x3b   : > { %p7689_p3 = scmp.lt.u32.totalorder %s7687_s23, %s7682_s14  ;;  %p7691_p7 = scmp.lt.u32.totalorder %s7682_s14, %s7944_s11 }
  0x3c   : > { %p7685_p4 = pnand %p7683_p0, %p7654_p2 }
  0x3d   : > { %p7690_p5 = por %p7689_p3, %p7688_p1 }
  0x3e   : > { %p7686_p10 = pneg %p7685_p4 }
  0x3f   : > { %p7692_p8 = por %p7691_p7, %p7690_p5 }
  0x41   : > { %p7693_p9 = pnand %p7692_p8, %p7686_p10 }
  0x43   : > { %7696 = shalt.err (!%p7693_p9)
}
  0x44   : > { %s7697_s26 = scalar_lea.vmem %s7946_s0, 400  ;;  %s7788_s9 = smov [#allocation6]  }
  0x45   : > { %p7698_p11 = scmp.ne.s32.totalorder %s7946_s0, %s7697_s26  ;;  %s7702_s10 = sshll.u32 %s7788_s9, 4  ;;  %s7703_s10 = int_to_ptr.vmem [resolvable:$false] %s7702_s10 }
  0x46   : > { %s7704_s13 = scalar_lea.vmem %s7703_s10, 800  ;;  %p7705_p6 = scmp.lt.s32.totalorder %s7946_s0, %s7703_s10 }
  0x47   : > { %p7700_p0 = pnand %p7698_p11, %p7654_p2  ;;  %p7706_p1 = scmp.lt.s32.totalorder %s7704_s13, %s7697_s26 }
  0x49   : > { %p7701_p4 = pneg %p7700_p0  ;;  %p7707_p3 = por %p7706_p1, %p7705_p6 }
  0x4b   : > { %p7708_p5 = pnand %p7707_p3, %p7701_p4 }
  0x4d   : > { %7711 = shalt.err (!%p7708_p5)
}
  0x4e   : > { %s7789_s14 = smov 32   ;;  %s7790_s16 = smov 16  }
  0x4f   : > { %s7791_s17 = smov 1   ;;  %258 = sbr.rel (%p7937_p12) target bundleno = 1322 (0x52a), region = 40 }
  0x50   : > { %7219 = dma.hbm_to_vmem [thread:$0]  (!%p7897_p13), %s7944_s11, 400, %s7946_s0, %s219_s12, %s7789_s14, %s7790_s16, %s7791_s17  }
  0x56   : > { %s7977_s23 = sand.u32 1, %s7774_s19   ;;  %p15172_p6 = scmp.ne.s32.totalorder %s15165_s29, 0 }
  0x57   : > { %s7148_s25 = sshll.u32 %s7977_s23, 9  ;;  %s261_s28 = scalar_lea.sflag [#allocation4], %s7977_s23 }
  0x58   : > { %s7983_s26 = scalar_lea.vmem [#allocation3], %s7148_s25 }
  0x59   : > { %7757 = dma.done.wait (%p15172_p6), %s261_s28, 8192  }
  0x5a   : > { %7759 = vsyncadd (%p15172_p6), %s261_s28, 4294959104  ;;  %s7206_s0 = smul.u32 25, %s7977_s23  ;;  %s270_s7 = scalar_lea.sflag [#allocation7], %s7977_s23 }
  0x5c   : > { %s7991_s15 = scalar_lea.vmem [#allocation6], %s7206_s0 }
  0x5d   : > { %7761 = dma.done.wait (%p15172_p6), %s270_s7, 400  }
  0x5e   : > { %7763 = vsyncadd (%p15172_p6), %s270_s7, 4294966896  ;;  %v7792_v0 = vmov 0.0   ;;  %v8127_v1 = vld [vmem:[%s7983_s26] sm:$0xff]  ;;  %v8135_v2 = vld [vmem:[%s7983_s26 + $0x8] sm:$0xff]  ;;  %p314_p13 = scmp.lt.s32.totalorder %s7848_s22, 1  ;;  %s14288_s28 = scalar_lea.vmem [#allocation8], %s7148_s25 }
  0x5f   : > { %387 = vst [vmem:[#allocation2] sm:$0xff] %v7792_v0  ;;  %405 = vst [vmem:[#allocation2 + $0x20] sm:$0x3] %v7792_v0  ;;  %v8138_v3 = vld [vmem:[%s7983_s26 + $0x10] sm:$0xff]  ;;  %v8151_v4 = vld [vmem:[%s7983_s26 + $0x18] sm:$0xff]  ;;  %s7202_s25 = sshll.u32 %s7848_s22, 7 }
  0x60   : > { %406 = vst [vmem:[#allocation2 + $0x30] sm:$0x3] %v7792_v0  ;;  %407 = vst [vmem:[#allocation2 + $0x40] sm:$0x3] %v7792_v0  ;;  %v8154_v5 = vld [vmem:[%s7983_s26 + $0x20] sm:$0xff]  ;;  %v8167_v6 = vld [vmem:[%s7983_s26 + $0x28] sm:$0xff]  ;;  %s14631_s7 = scalar_lea.hbm %s14690_s5, %s7202_s25 }
  0x61   : > { %408 = vst [vmem:[#allocation2 + $0x50] sm:$0x3] %v7792_v0  ;;  %409 = vst [vmem:[#allocation2 + $0x60] sm:$0x3] %v7792_v0  ;;  %v8170_v7 = vld [vmem:[%s7983_s26 + $0x30] sm:$0xff]  ;;  %v8173_v8 = vld [vmem:[%s7983_s26 + $0x38] sm:$0xff] }
  0x62   : > { %410 = vst [vmem:[#allocation2 + $0x70] sm:$0x3] %v7792_v0  ;;  %411 = vst [vmem:[#allocation2 + $0x80] sm:$0x3] %v7792_v0  ;;  %v8191_v9 = vld [vmem:[%s7983_s26 + $0x40] sm:$0xff]  ;;  %v8194_v10 = vld [vmem:[%s7983_s26 + $0x48] sm:$0xff] }
  0x63   : > { %412 = vst [vmem:[#allocation2 + $0x90] sm:$0x3] %v7792_v0  ;;  %413 = vst [vmem:[#allocation2 + $0xa0] sm:$0x3] %v7792_v0  ;;  %v8197_v11 = vld [vmem:[%s7983_s26 + $0x50] sm:$0xff]  ;;  %v8215_v12 = vld [vmem:[%s7983_s26 + $0x58] sm:$0xff] }
  0x64   : > { %414 = vst [vmem:[#allocation2 + $0xb0] sm:$0x3] %v7792_v0  ;;  %415 = vst [vmem:[#allocation2 + $0xc0] sm:$0x3] %v7792_v0  ;;  %v8218_v13 = vld [vmem:[%s7983_s26 + $0x60] sm:$0xff]  ;;  %v8221_v14 = vld [vmem:[%s7983_s26 + $0x68] sm:$0xff] }
  0x65   : > { %416 = vst [vmem:[#allocation2 + $0xd0] sm:$0x3] %v7792_v0  ;;  %417 = vst [vmem:[#allocation2 + $0xe0] sm:$0x3] %v7792_v0  ;;  %v8239_v15 = vld [vmem:[%s7983_s26 + $0x70] sm:$0xff]  ;;  %v8242_v16 = vld [vmem:[%s7983_s26 + $0x78] sm:$0xff] }
  0x66   : > { %418 = vst [vmem:[#allocation2 + $0xf0] sm:$0x3] %v7792_v0  ;;  %419 = vst [vmem:[#allocation2 + $0x100] sm:$0x3] %v7792_v0  ;;  %v8245_v17 = vld [vmem:[%s7983_s26 + $0x80] sm:$0xff]  ;;  %v8263_v18 = vld [vmem:[%s7983_s26 + $0x88] sm:$0xff] }
  0x67   : > { %420 = vst [vmem:[#allocation2 + $0x110] sm:$0x3] %v7792_v0  ;;  %421 = vst [vmem:[#allocation2 + $0x160] sm:$0x3] %v7792_v0  ;;  %v8266_v19 = vld [vmem:[%s7983_s26 + $0x90] sm:$0xff]  ;;  %v8269_v20 = vld [vmem:[%s7983_s26 + $0x98] sm:$0xff] }
  0x68   : > { %422 = vst [vmem:[#allocation2 + $0x170] sm:$0x3] %v7792_v0  ;;  %423 = vst [vmem:[#allocation2 + $0x180] sm:$0x3] %v7792_v0  ;;  %v8287_v21 = vld [vmem:[%s7991_s15] ss:$0 sm:$0xff] }
  0x69   : > { %424 = vst [vmem:[#allocation2 + $0x190] sm:$0x3] %v7792_v0  ;;  %425 = vst [vmem:[#allocation2 + $0x1a0] sm:$0x3] %v7792_v0  ;;  %v8290_v22 = vld [vmem:[%s7991_s15 + $0x1] ss:$0 sm:$0xff] }
  0x6a   : > { %426 = vst [vmem:[#allocation2 + $0x1b0] sm:$0x3] %v7792_v0  ;;  %427 = vst [vmem:[#allocation2 + $0x1c0] sm:$0x3] %v7792_v0  ;;  %v1000_v23 = vmul.f32 0.0, %v8287_v21  ;;  %v1136_v24 = vmul.f32 0.0, %v8290_v22 }
  0x6b   : > { %428 = vst [vmem:[#allocation2 + $0x1d0] sm:$0x3] %v7792_v0  ;;  %429 = vst [vmem:[#allocation2 + $0x1e0] sm:$0x3] %v7792_v0  ;;  %v8295_v25 = vld [vmem:[%s7991_s15 + $0x2] ss:$0 sm:$0xff] }
  0x6c   : > { %430 = vst [vmem:[#allocation2 + $0x1f0] sm:$0x3] %v7792_v0  ;;  %431 = vst [vmem:[#allocation2 + $0x200] sm:$0x3] %v7792_v0  ;;  %v1200_v26 = vadd.f32 %v1136_v24, %v1000_v23  ;;  %v1336_v27 = vmul.f32 0.0, %v8295_v25  ;;  %v343_v29 = vld [vmem:[%s7983_s26 + $0xa0] sm:$0xff]  ;;  %v8338_v51 = vmul.f32 %v8295_v25, %v8127_v1  ;;  %v8346_v55 = vmul.f32 %v8295_v25, %v8135_v2 }
  0x6d   : > { %432 = vst [vmem:[#allocation2 + $0x210] sm:$0x3] %v7792_v0  ;;  %433 = vst [vmem:[#allocation2 + $0x220] sm:$0x3] %v7792_v0  ;;  %v8299_v28 = vld [vmem:[%s7991_s15 + $0x3] ss:$0 sm:$0xff]  ;;  %v8350_v56 = vmul.f32 %v8295_v25, %v8138_v3  ;;  %v8354_v57 = vmul.f32 %v8295_v25, %v8151_v4  ;;  %v8358_v59 = vmul.f32 %v8295_v25, %v8154_v5 }
  0x6e   : > { %434 = vst [vmem:[#allocation2 + $0x230] sm:$0x3] %v7792_v0  ;;  %435 = vst [vmem:[#allocation2 + $0x240] sm:$0x3] %v7792_v0  ;;  %v1400_v30 = vadd.f32 %v1336_v27, %v1200_v26  ;;  %v1536_v31 = vmul.f32 0.0, %v8299_v28  ;;  %v344_v52 = vld [vmem:[%s7983_s26 + $0xa8] sm:$0xff]  ;;  %v8362_v60 = vmul.f32 %v8295_v25, %v8167_v6  ;;  %v8366_v61 = vmul.f32 %v8295_v25, %v8170_v7 }
  0x6f   : > { %436 = vst [vmem:[#allocation2 + $0x250] sm:$0x3] %v7792_v0  ;;  %520 = vst [vmem:[#allocation2 + $0x2a0] sm:$0x1] %v7792_v0  ;;  %v8304_v32 = vld [vmem:[%s7991_s15 + $0x4] ss:$0 sm:$0xff]  ;;  %v8370_v62 = vmul.f32 %v8295_v25, %v8173_v8  ;;  %v8405_v23 = vmul.f32 %v8295_v25, %v8221_v14  ;;  %v8421_v26 = vmul.f32 %v8295_v25, %v8263_v18 }
  0x70   : > { %521 = vst [vmem:[#allocation2 + $0x2b0] sm:$0x1] %v7792_v0  ;;  %522 = vst [vmem:[#allocation2 + $0x2c0] sm:$0x1] %v7792_v0  ;;  %v1600_v33 = vadd.f32 %v1536_v31, %v1400_v30  ;;  %v1736_v34 = vmul.f32 0.0, %v8304_v32  ;;  %v8437_v30 = vmul.f32 %v8295_v25, %v8269_v20  ;;  %s10250_s29 = scalar_select %p314_p13, %s7848_s22, 1 }
  0x71   : > { %523 = vst [vmem:[#allocation2 + $0x2d0] sm:$0x1] %v7792_v0  ;;  %524 = vst [vmem:[#allocation2 + $0x2e0] sm:$0x1] %v7792_v0  ;;  %v8308_v35 = vld [vmem:[%s7991_s15 + $0x5] ss:$0 sm:$0xff] }
  0x72   : > { %525 = vst [vmem:[#allocation2 + $0x2f0] sm:$0x1] %v7792_v0  ;;  %526 = vst [vmem:[#allocation2 + $0x300] sm:$0x1] %v7792_v0  ;;  %v8310_v36 = vadd.f32 %v1736_v34, %v1600_v33  ;;  %v1937_v37 = vmul.f32 0.0, %v8308_v35  ;;  %s10273_s12 = scalar_lea.vmem %s14687_s2, %s10250_s29  ;;  %s319_s13 = scalar_lea.vmem %s14688_s3, %s10250_s29 }
  0x73   : > { %527 = vst [vmem:[#allocation2 + $0x310] sm:$0x1] %v7792_v0  ;;  %528 = vst [vmem:[#allocation2 + $0x320] sm:$0x1] %v7792_v0  ;;  %v8314_v38 = vld [vmem:[%s7991_s15 + $0x6] ss:$0 sm:$0xff]  ;;  %s322_s17 = scalar_lea.vmem %s14689_s4, %s10250_s29 }
  0x74   : > { %529 = vst [vmem:[#allocation2 + $0x330] sm:$0x1] %v7792_v0  ;;  %530 = vst [vmem:[#allocation2 + $0x340] sm:$0x1] %v7792_v0  ;;  %v2001_v39 = vadd.f32 %v1937_v37, %v8310_v36  ;;  %v2138_v40 = vmul.f32 0.0, %v8314_v38  ;;  %s7018_s22 = sshll.u32 %s14288_s28, 4  ;;  %s14633_s22 = int_to_ptr.vmem [resolvable:$true] %s7018_s22 }
  0x75   : > { %531 = vst [vmem:[#allocation2 + $0x350] sm:$0x1] %v7792_v0  ;;  %532 = vst [vmem:[#allocation2 + $0x360] sm:$0x1] %v7792_v0  ;;  %v8319_v41 = vld [vmem:[%s7991_s15 + $0x7] ss:$0 sm:$0xff] }
  0x76   : > { %533 = vst [vmem:[#allocation2 + $0x370] sm:$0x1] %v7792_v0  ;;  %534 = vst [vmem:[#allocation2 + $0x380] sm:$0x1] %v7792_v0  ;;  %v2202_v42 = vadd.f32 %v2138_v40, %v2001_v39  ;;  %v2339_v43 = vmul.f32 0.0, %v8319_v41  ;;  %s7712_s29 = scalar_lea.vmem %s14633_s22, 8192 }
  0x77   : > { %535 = vst [vmem:[#allocation2 + $0x390] sm:$0x1] %v7792_v0  ;;  %536 = vst [vmem:[#allocation2 + $0x3e0] sm:$0x1] %v7792_v0  ;;  %v8323_v44 = vld [vmem:[%s7991_s15 + $0x8] ss:$0 sm:$0xff]  ;;  %p7713_p2 = scmp.ne.s32.totalorder %s14633_s22, %s7712_s29 }
  0x78   : > { %537 = vst [vmem:[#allocation2 + $0x3f0] sm:$0x1] %v7792_v0  ;;  %538 = vst [vmem:[#allocation2 + $0x400] sm:$0x1] %v7792_v0  ;;  %v7168_v45 = vld [vmem:[%s7991_s15 + $0x9] ss:$0 sm:$0xff]  ;;  %v2403_v63 = vadd.f32 %v2339_v43, %v2202_v42 }
  0x79   : > { %539 = vst [vmem:[#allocation2 + $0x410] sm:$0x1] %v7792_v0  ;;  %540 = vst [vmem:[#allocation2 + $0x420] sm:$0x1] %v7792_v0  ;;  %v8327_v46 = vld [vmem:[%s7991_s15 + $0xf] ss:$0 sm:$0xff] }
  0x7a   : > { %541 = vst [vmem:[#allocation2 + $0x430] sm:$0x1] %v7792_v0  ;;  %542 = vst [vmem:[#allocation2 + $0x440] sm:$0x1] %v7792_v0  ;;  %v2540_v47 = vmul.f32 0.0, %v8323_v44  ;;  %v2741_v48 = vmul.f32 0.0, %v7168_v45 }
  0x7b   : > { %543 = vst [vmem:[#allocation2 + $0x450] sm:$0x1] %v7792_v0  ;;  %544 = vst [vmem:[#allocation2 + $0x460] sm:$0x1] %v7792_v0  ;;  %v8331_v49 = vmul.f32 0.0, %v8327_v46  ;;  %p16200_p12 = scmp.ne.s32.totalorder %s15166_s30, 0 }
  0x7c   : > { %545 = vst [vmem:[#allocation2 + $0x470] sm:$0x1] %v7792_v0  ;;  %546 = vst [vmem:[#allocation2 + $0x480] sm:$0x1] %v7792_v0  ;;  %v8334_v50 = vld [vmem:[%s7991_s15 + $0x14] ss:$0 sm:$0xff]  ;;  %v2604_v27 = vadd.f32 %v2540_v47, %v2403_v63 }
  0x7d   : > { %547 = vst [vmem:[#allocation2 + $0x490] sm:$0x1] %v7792_v0  ;;  %548 = vst [vmem:[#allocation2 + $0x4a0] sm:$0x1] %v7792_v0  ;;  %v8342_v54 = vmul.f32 0.0, %v8334_v50  ;;  %p7714_p10 = pnand %p7713_p2, %p16200_p12  ;;  %s7793_s8 = smov [#allocation8]  }
  0x7e   : > { %549 = vst [vmem:[#allocation2 + $0x4b0] sm:$0x1] %v7792_v0  ;;  %550 = vst [vmem:[#allocation2 + $0x4c0] sm:$0x1] %v7792_v0  ;;  %s7716_s11 = sshll.u32 %s7793_s8, 4  ;;  %s7717_s11 = int_to_ptr.vmem [resolvable:$false] %s7716_s11 }
  0x7f   : > { %551 = vst [vmem:[#allocation2 + $0x4d0] sm:$0x1] %v7792_v0  ;;  %718 = vst [vmem:[#allocation2 + $0x7af] sm:$0x1] %v7792_v0  ;;  %p7715_p7 = pneg %p7714_p10  ;;  %p7719_p8 = scmp.lt.s32.totalorder %s14633_s22, %s7717_s11 }
  0x80   : > { %719 = vst [vmem:[#allocation2 + $0x7bf] sm:$0x1] %v7792_v0  ;;  %720 = vst [vmem:[#allocation2 + $0x7cf] sm:$0x1] %v7792_v0 }
  0x81   : > { %721 = vst [vmem:[#allocation2 + $0x7df] sm:$0x1] %v7792_v0  ;;  %722 = vst [vmem:[#allocation2 + $0x7ef] sm:$0x1] %v7792_v0 }
  0x82   : > { %723 = vst [vmem:[#allocation2 + $0x7ff] sm:$0x1] %v7792_v0  ;;  %724 = vst [vmem:[#allocation2 + $0x80f] sm:$0x1] %v7792_v0 }
  0x83   : > { %725 = vst [vmem:[#allocation2 + $0x81f] sm:$0x1] %v7792_v0  ;;  %726 = vst [vmem:[#allocation2 + $0x82f] sm:$0x1] %v7792_v0 }
  0x84   : > { %727 = vst [vmem:[#allocation2 + $0x83f] sm:$0x1] %v7792_v0  ;;  %728 = vst [vmem:[#allocation2 + $0x84f] sm:$0x1] %v7792_v0 }
  0x85   : > { %729 = vst [vmem:[#allocation2 + $0x85f] sm:$0x1] %v7792_v0  ;;  %730 = vst [vmem:[#allocation2 + $0x86f] sm:$0x1] %v7792_v0 }
  0x86   : > { %731 = vst [vmem:[#allocation2 + $0x87f] sm:$0x1] %v7792_v0  ;;  %732 = vst [vmem:[#allocation2 + $0x88f] sm:$0x1] %v7792_v0 }
  0x87   : > { %733 = vst [vmem:[#allocation2 + $0x89f] sm:$0x1] %v7792_v0  ;;  %734 = vst [vmem:[#allocation2 + $0x8ef] sm:$0x1] %v7792_v0 }
  0x88   : > { %735 = vst [vmem:[#allocation2 + $0x8ff] sm:$0x1] %v7792_v0  ;;  %736 = vst [vmem:[#allocation2 + $0x90f] sm:$0x1] %v7792_v0 }
  0x89   : > { %737 = vst [vmem:[#allocation2 + $0x91f] sm:$0x1] %v7792_v0  ;;  %738 = vst [vmem:[#allocation2 + $0x92f] sm:$0x1] %v7792_v0 }
  0x8a   : > { %739 = vst [vmem:[#allocation2 + $0x93f] sm:$0x1] %v7792_v0  ;;  %740 = vst [vmem:[#allocation2 + $0x94f] sm:$0x1] %v7792_v0 }
  0x8b   : > { %741 = vst [vmem:[#allocation2 + $0x95f] sm:$0x1] %v7792_v0  ;;  %742 = vst [vmem:[#allocation2 + $0x96f] sm:$0x1] %v7792_v0 }
  0x8c   : > { %743 = vst [vmem:[#allocation2 + $0x97f] sm:$0x1] %v7792_v0  ;;  %744 = vst [vmem:[#allocation2 + $0x98f] sm:$0x1] %v7792_v0 }
  0x8d   : > { %745 = vst [vmem:[#allocation2 + $0x99f] sm:$0x1] %v7792_v0  ;;  %746 = vst [vmem:[#allocation2 + $0x9af] sm:$0x1] %v7792_v0 }
  0x8e   : > { %747 = vst [vmem:[#allocation2 + $0x9bf] sm:$0x1] %v7792_v0  ;;  %748 = vst [vmem:[#allocation2 + $0x9cf] sm:$0x1] %v7792_v0 }
  0x8f   : > { %749 = vst [vmem:[#allocation2 + $0x9df] sm:$0x1] %v7792_v0  ;;  %833 = vst [vmem:[#allocation2 + $0xa2e] sm:$0x3] %v7792_v0 }
  0x90   : > { %834 = vst [vmem:[#allocation2 + $0xa3e] sm:$0x3] %v7792_v0  ;;  %835 = vst [vmem:[#allocation2 + $0xa4e] sm:$0x3] %v7792_v0 }
  0x91   : > { %836 = vst [vmem:[#allocation2 + $0xa5e] sm:$0x3] %v7792_v0  ;;  %837 = vst [vmem:[#allocation2 + $0xa6e] sm:$0x3] %v7792_v0 }
  0x92   : > { %838 = vst [vmem:[#allocation2 + $0xa7e] sm:$0x3] %v7792_v0  ;;  %839 = vst [vmem:[#allocation2 + $0xa8e] sm:$0x3] %v7792_v0 }
  0x93   : > { %840 = vst [vmem:[#allocation2 + $0xa9e] sm:$0x3] %v7792_v0  ;;  %841 = vst [vmem:[#allocation2 + $0xaae] sm:$0x3] %v7792_v0 }
  0x94   : > { %842 = vst [vmem:[#allocation2 + $0xabe] sm:$0x3] %v7792_v0  ;;  %843 = vst [vmem:[#allocation2 + $0xace] sm:$0x3] %v7792_v0 }
  0x95   : > { %844 = vst [vmem:[#allocation2 + $0xade] sm:$0x3] %v7792_v0  ;;  %845 = vst [vmem:[#allocation2 + $0xaee] sm:$0x3] %v7792_v0 }
  0x96   : > { %846 = vst [vmem:[#allocation2 + $0xafe] sm:$0x3] %v7792_v0  ;;  %847 = vst [vmem:[#allocation2 + $0xb0e] sm:$0x3] %v7792_v0 }
  0x97   : > { %848 = vst [vmem:[#allocation2 + $0xb1e] sm:$0x3] %v7792_v0  ;;  %849 = vst [vmem:[#allocation2 + $0xb6e] sm:$0x3] %v7792_v0 }
  0x98   : > { %850 = vst [vmem:[#allocation2 + $0xb7e] sm:$0x3] %v7792_v0  ;;  %851 = vst [vmem:[#allocation2 + $0xb8e] sm:$0x3] %v7792_v0 }
  0x99   : > { %852 = vst [vmem:[#allocation2 + $0xb9e] sm:$0x3] %v7792_v0  ;;  %853 = vst [vmem:[#allocation2 + $0xbae] sm:$0x3] %v7792_v0 }
  0x9a   : > { %854 = vst [vmem:[#allocation2 + $0xbbe] sm:$0x3] %v7792_v0  ;;  %855 = vst [vmem:[#allocation2 + $0xbce] sm:$0x3] %v7792_v0 }
  0x9b   : > { %856 = vst [vmem:[#allocation2 + $0xbde] sm:$0x3] %v7792_v0  ;;  %857 = vst [vmem:[#allocation2 + $0xbee] sm:$0x3] %v7792_v0 }
  0x9c   : > { %858 = vst [vmem:[#allocation2 + $0xbfe] sm:$0x3] %v7792_v0  ;;  %859 = vst [vmem:[#allocation2 + $0xc0e] sm:$0x3] %v7792_v0 }
  0x9d   : > { %860 = vst [vmem:[#allocation2 + $0xc1e] sm:$0x3] %v7792_v0  ;;  %861 = vst [vmem:[#allocation2 + $0xc2e] sm:$0x3] %v7792_v0 }
  0x9e   : > { %862 = vst [vmem:[#allocation2 + $0xc3e] sm:$0x3] %v7792_v0  ;;  %863 = vst [vmem:[#allocation2 + $0xc4e] sm:$0x3] %v7792_v0 }
  0x9f   : > { %864 = vst [vmem:[#allocation2 + $0xc5e] sm:$0x3] %v7792_v0  ;;  %437 = vst [vmem:[#allocation2 + $0x22] sm:$0xff] %v8127_v1  ;;  %v8374_v0 = vmul.f32 %v8295_v25, %v8191_v9 }
  0xa0   : > { %552 = vst [vmem:[#allocation2 + $0x2a1] sm:$0xff] %v8127_v1  ;;  %635 = vst [vmem:[#allocation2 + $0x520] sm:$0xff] %v8127_v1 }
  0xa1   : > { %750 = vst [vmem:[#allocation2 + $0x79f] sm:$0xfe] %v8127_v1  ;;  %865 = vst [vmem:[#allocation2 + $0xa1e] sm:$0xfc] %v8127_v1  ;;  %v8378_v1 = vmul.f32 %v8295_v25, %v8194_v10 }
  0xa2   : > { %438 = vst [vmem:[#allocation2 + $0x2a] sm:$0x3f] %v8135_v2  ;;  %553 = vst [vmem:[#allocation2 + $0x2a9] sm:$0x7f] %v8135_v2 }
  0xa3   : > { %636 = vst [vmem:[#allocation2 + $0x528] sm:$0xff] %v8135_v2  ;;  %751 = vst [vmem:[#allocation2 + $0x7a7] sm:$0xff] %v8135_v2 }
  0xa4   : > { %866 = vst [vmem:[#allocation2 + $0xa26] sm:$0xff] %v8135_v2  ;;  %439 = vst [vmem:[#allocation2 + $0x32] sm:$0xff] %v8138_v3  ;;  %v8382_v2 = vmul.f32 %v8295_v25, %v8197_v11 }
  0xa5   : > { %554 = vst [vmem:[#allocation2 + $0x2b1] sm:$0xff] %v8138_v3  ;;  %637 = vst [vmem:[#allocation2 + $0x530] sm:$0xff] %v8138_v3 }
  0xa6   : > { %752 = vst [vmem:[#allocation2 + $0x7af] sm:$0xfe] %v8138_v3  ;;  %867 = vst [vmem:[#allocation2 + $0xa2e] sm:$0xfc] %v8138_v3  ;;  %v934_v53 = vld [vmem:[#allocation2 + $0x20] sm:$0xff] }
  0xa7   : > { %440 = vst [vmem:[#allocation2 + $0x3a] sm:$0x3f] %v8151_v4  ;;  %555 = vst [vmem:[#allocation2 + $0x2b9] sm:$0x7f] %v8151_v4  ;;  %v1939_v3 = vmul.f32 %v8308_v35, %v934_v53 }
  0xa8   : > { %638 = vst [vmem:[#allocation2 + $0x538] sm:$0xff] %v8151_v4  ;;  %753 = vst [vmem:[#allocation2 + $0x7b7] sm:$0xff] %v8151_v4 }
  0xa9   : > { %868 = vst [vmem:[#allocation2 + $0xa36] sm:$0xff] %v8151_v4  ;;  %441 = vst [vmem:[#allocation2 + $0x42] sm:$0xff] %v8154_v5  ;;  %v935_v58 = vld [vmem:[#allocation2 + $0x28] sm:$0xff] }
  0xaa   : > { %556 = vst [vmem:[#allocation2 + $0x2c1] sm:$0xff] %v8154_v5  ;;  %639 = vst [vmem:[#allocation2 + $0x540] sm:$0xff] %v8154_v5  ;;  %v8386_v4 = vld [vmem:[%s7991_s15 + $0xa] ss:$0 sm:$0xff] }
  0xab   : > { %754 = vst [vmem:[#allocation2 + $0x7bf] sm:$0xfe] %v8154_v5  ;;  %869 = vst [vmem:[#allocation2 + $0xa3e] sm:$0xfc] %v8154_v5  ;;  %v8390_v5 = vmul.f32 %v8295_v25, %v8215_v12  ;;  %v936_v24 = vld [vmem:[#allocation2 + $0x30] sm:$0xff] }
  0xac   : > { %442 = vst [vmem:[#allocation2 + $0x4a] sm:$0x3f] %v8167_v6  ;;  %557 = vst [vmem:[#allocation2 + $0x2c9] sm:$0x7f] %v8167_v6  ;;  %v8454_v37 = vmul.f32 %v8287_v21, %v936_v24  ;;  %v8460_v39 = vmul.f32 %v8386_v4, %v936_v24  ;;  %v8463_v42 = vmul.f32 %v8327_v46, %v936_v24 }
  0xad   : > { %640 = vst [vmem:[#allocation2 + $0x548] sm:$0xff] %v8167_v6  ;;  %755 = vst [vmem:[#allocation2 + $0x7c7] sm:$0xff] %v8167_v6 }
  0xae   : > { %870 = vst [vmem:[#allocation2 + $0xa46] sm:$0xff] %v8167_v6  ;;  %443 = vst [vmem:[#allocation2 + $0x52] sm:$0xff] %v8170_v7  ;;  %v8394_v6 = vmul.f32 %v8295_v25, %v8218_v13 }
  0xaf   : > { %558 = vst [vmem:[#allocation2 + $0x2d1] sm:$0xff] %v8170_v7  ;;  %641 = vst [vmem:[#allocation2 + $0x550] sm:$0xff] %v8170_v7 }
  0xb0   : > { %756 = vst [vmem:[#allocation2 + $0x7cf] sm:$0xfe] %v8170_v7  ;;  %871 = vst [vmem:[#allocation2 + $0xa4e] sm:$0xfc] %v8170_v7  ;;  %v8398_v7 = vmul.f32 %v8319_v41, %v8191_v9  ;;  %v938_v31 = vld [vmem:[#allocation2 + $0x40] sm:$0xff] }
  0xb1   : > { %444 = vst [vmem:[#allocation2 + $0x5a] sm:$0x3f] %v8173_v8  ;;  %559 = vst [vmem:[#allocation2 + $0x2d9] sm:$0x7f] %v8173_v8  ;;  %v8483_v63 = vmul.f32 %v8308_v35, %v938_v31 }
  0xb2   : > { %642 = vst [vmem:[#allocation2 + $0x558] sm:$0xff] %v8173_v8  ;;  %757 = vst [vmem:[#allocation2 + $0x7d7] sm:$0xff] %v8173_v8 }
  0xb3   : > { %872 = vst [vmem:[#allocation2 + $0xa56] sm:$0xff] %v8173_v8  ;;  %445 = vst [vmem:[#allocation2 + $0x62] sm:$0xff] %v8191_v9  ;;  %v1940_v8 = vmul.f32 %v8308_v35, %v935_v58  ;;  %v939_v40 = vld [vmem:[#allocation2 + $0x48] sm:$0xff] }
  0xb4   : > { %560 = vst [vmem:[#allocation2 + $0x2e1] sm:$0xff] %v8191_v9  ;;  %643 = vst [vmem:[#allocation2 + $0x560] sm:$0xff] %v8191_v9 }
  0xb5   : > { %758 = vst [vmem:[#allocation2 + $0x7df] sm:$0xfe] %v8191_v9  ;;  %873 = vst [vmem:[#allocation2 + $0xa5e] sm:$0xfc] %v8191_v9  ;;  %v8417_v9 = vmul.f32 %v8295_v25, %v8245_v17  ;;  %v8451_v34 = vadd.f32 %v1940_v8, %v8310_v36  ;;  %v8486_v8 = vmul.f32 %v8386_v4, %v938_v31 }
  0xb6   : > { %446 = vst [vmem:[#allocation2 + $0x6a] sm:$0x3f] %v8194_v10  ;;  %561 = vst [vmem:[#allocation2 + $0x2e9] sm:$0x7f] %v8194_v10 }
  0xb7   : > { %644 = vst [vmem:[#allocation2 + $0x568] sm:$0xff] %v8194_v10  ;;  %759 = vst [vmem:[#allocation2 + $0x7e7] sm:$0xff] %v8194_v10 }
  0xb8   : > { %874 = vst [vmem:[#allocation2 + $0xa66] sm:$0xff] %v8194_v10  ;;  %447 = vst [vmem:[#allocation2 + $0x72] sm:$0xff] %v8197_v11 }
  0xb9   : > { %562 = vst [vmem:[#allocation2 + $0x2f1] sm:$0xff] %v8197_v11  ;;  %645 = vst [vmem:[#allocation2 + $0x570] sm:$0xff] %v8197_v11 }
  0xba   : > { %760 = vst [vmem:[#allocation2 + $0x7ef] sm:$0xfe] %v8197_v11  ;;  %875 = vst [vmem:[#allocation2 + $0xa6e] sm:$0xfc] %v8197_v11  ;;  %v8401_v11 = vld [vmem:[#allocation2 + $0x2a0] sm:$0xff] }
  0xbb   : > { %448 = vst [vmem:[#allocation2 + $0x7a] sm:$0x3f] %v8215_v12  ;;  %563 = vst [vmem:[#allocation2 + $0x2f9] sm:$0x7f] %v8215_v12  ;;  %v8448_v33 = vmul.f32 %v8290_v22, %v8401_v11 }
  0xbc   : > { %646 = vst [vmem:[#allocation2 + $0x578] sm:$0xff] %v8215_v12  ;;  %761 = vst [vmem:[#allocation2 + $0x7f7] sm:$0xff] %v8215_v12 }
  0xbd   : > { %876 = vst [vmem:[#allocation2 + $0xa76] sm:$0xff] %v8215_v12  ;;  %449 = vst [vmem:[#allocation2 + $0x82] sm:$0xff] %v8218_v13  ;;  %v8409_v12 = vmul.f32 %v8295_v25, %v8239_v15 }
  0xbe   : > { %564 = vst [vmem:[#allocation2 + $0x301] sm:$0xff] %v8218_v13  ;;  %647 = vst [vmem:[#allocation2 + $0x580] sm:$0xff] %v8218_v13 }
  0xbf   : > { %762 = vst [vmem:[#allocation2 + $0x7ff] sm:$0xfe] %v8218_v13  ;;  %877 = vst [vmem:[#allocation2 + $0xa7e] sm:$0xfc] %v8218_v13  ;;  %v8413_v13 = vmul.f32 %v8295_v25, %v8242_v16 }
  0xc0   : > { %450 = vst [vmem:[#allocation2 + $0x8a] sm:$0x3f] %v8221_v14  ;;  %565 = vst [vmem:[#allocation2 + $0x309] sm:$0x7f] %v8221_v14 }
  0xc1   : > { %648 = vst [vmem:[#allocation2 + $0x588] sm:$0xff] %v8221_v14  ;;  %763 = vst [vmem:[#allocation2 + $0x807] sm:$0xff] %v8221_v14 }
  0xc2   : > { %878 = vst [vmem:[#allocation2 + $0xa86] sm:$0xff] %v8221_v14  ;;  %451 = vst [vmem:[#allocation2 + $0x92] sm:$0xff] %v8239_v15  ;;  %v8425_v14 = vmul.f32 %v8295_v25, %v8266_v19  ;;  %v8457_v25 = vmul.f32 %v8308_v35, %v936_v24  ;;  %v8489_v24 = vmul.f32 %v8327_v46, %v938_v31 }
  0xc3   : > { %566 = vst [vmem:[#allocation2 + $0x311] sm:$0xff] %v8239_v15  ;;  %649 = vst [vmem:[#allocation2 + $0x590] sm:$0xff] %v8239_v15 }
  0xc4   : > { %764 = vst [vmem:[#allocation2 + $0x80f] sm:$0xfe] %v8239_v15  ;;  %879 = vst [vmem:[#allocation2 + $0xa8e] sm:$0xfc] %v8239_v15  ;;  %v8429_v15 = vmul.f32 %v8319_v41, %v8194_v10  ;;  %v2942_v10 = vmul.f32 %v8386_v4, %v935_v58 }
  0xc5   : > { %452 = vst [vmem:[#allocation2 + $0x9a] sm:$0x3f] %v8242_v16  ;;  %567 = vst [vmem:[#allocation2 + $0x319] sm:$0x7f] %v8242_v16 }
  0xc6   : > { %650 = vst [vmem:[#allocation2 + $0x598] sm:$0xff] %v8242_v16  ;;  %765 = vst [vmem:[#allocation2 + $0x817] sm:$0xff] %v8242_v16 }
  0xc7   : > { %880 = vst [vmem:[#allocation2 + $0xa96] sm:$0xff] %v8242_v16  ;;  %453 = vst [vmem:[#allocation2 + $0xa2] sm:$0xff] %v8245_v17  ;;  %v8432_v16 = vmul.f32 %v8287_v21, %v934_v53 }
  0xc8   : > { %568 = vst [vmem:[#allocation2 + $0x321] sm:$0xff] %v8245_v17  ;;  %651 = vst [vmem:[#allocation2 + $0x5a0] sm:$0xff] %v8245_v17 }
  0xc9   : > { %766 = vst [vmem:[#allocation2 + $0x81f] sm:$0xfe] %v8245_v17  ;;  %881 = vst [vmem:[#allocation2 + $0xa9e] sm:$0xfc] %v8245_v17  ;;  %v937_v17 = vld [vmem:[#allocation2 + $0x38] sm:$0xff] }
  0xca   : > { %15173 = vst [vmem:[#allocation12_spill] sm:$0xff] %v8269_v20  ;;  %454 = vst [vmem:[#allocation2 + $0xaa] sm:$0x3f] %v8263_v18  ;;  %v8466_v43 = vmul.f32 %v8287_v21, %v937_v17  ;;  %v8469_v45 = vmul.f32 %v8308_v35, %v937_v17  ;;  %v8472_v47 = vmul.f32 %v8386_v4, %v937_v17 }
  0xcb   : > { %569 = vst [vmem:[#allocation2 + $0x329] sm:$0x7f] %v8263_v18  ;;  %652 = vst [vmem:[#allocation2 + $0x5a8] sm:$0xff] %v8263_v18 }
  0xcc   : > { %767 = vst [vmem:[#allocation2 + $0x827] sm:$0xff] %v8263_v18  ;;  %882 = vst [vmem:[#allocation2 + $0xaa6] sm:$0xff] %v8263_v18  ;;  %v8440_v18 = vadd.f32 %v1939_v3, %v8310_v36  ;;  %v940_v3 = vld [vmem:[#allocation2 + $0x50] sm:$0xff] }
  0xcd   : > { %455 = vst [vmem:[#allocation2 + $0xb2] sm:$0xff] %v8266_v19  ;;  %570 = vst [vmem:[#allocation2 + $0x331] sm:$0xff] %v8266_v19 }
  0xce   : > { %653 = vst [vmem:[#allocation2 + $0x5b0] sm:$0xff] %v8266_v19  ;;  %768 = vst [vmem:[#allocation2 + $0x82f] sm:$0xfe] %v8266_v19 }
  0xcf   : > { %883 = vst [vmem:[#allocation2 + $0xaae] sm:$0xfc] %v8266_v19  ;;  %456 = vst [vmem:[#allocation2 + $0xba] sm:$0x3f] %v8269_v20  ;;  %v8443_v19 = vmul.f32 %v8287_v21, %v935_v58  ;;  %v8480_v58 = vmul.f32 %v8287_v21, %v938_v31 }
  0xd0   : > { %571 = vst [vmem:[#allocation2 + $0x339] sm:$0x7f] %v8269_v20  ;;  %654 = vst [vmem:[#allocation2 + $0x5b8] sm:$0xff] %v8269_v20 }
  0xd1   : > { %769 = vst [vmem:[#allocation2 + $0x837] sm:$0xff] %v8269_v20  ;;  %884 = vst [vmem:[#allocation2 + $0xab6] sm:$0xff] %v8269_v20 }
  0xd2   : > { %15174 = vst [vmem:[#allocation13_spill] sm:$0xff] %v8299_v28  ;;  %457 = vst [vmem:[#allocation2 + $0xc2] sm:$0xff] %v343_v29 }
  0xd3   : > { %572 = vst [vmem:[#allocation2 + $0x341] sm:$0xff] %v343_v29  ;;  %770 = vst [vmem:[#allocation2 + $0x83f] sm:$0xfe] %v343_v29 }
  0xd4   : > { %885 = vst [vmem:[#allocation2 + $0xabe] sm:$0xfc] %v343_v29  ;;  %15175 = vst [vmem:[#allocation14_spill] sm:$0xff] %v8304_v32  ;;  %v2941_v29 = vmul.f32 %v8386_v4, %v934_v53  ;;  %v8477_v53 = vmul.f32 %v8327_v46, %v937_v17  ;;  %v8498_v17 = vmul.f32 %v8308_v35, %v939_v40 }
  0xd5   : > { %15176 = vst [vmem:[#allocation15_spill] sm:$0xff] %v8310_v36  ;;  %15177 = vst [vmem:[#allocation16_spill] sm:$0xff] %v8314_v38  ;;  %v8504_v36 = vmul.f32 %v8327_v46, %v939_v40 }
  0xd6   : > { %15178 = vst [vmem:[#allocation17_spill] sm:$0xff] %v8319_v41  ;;  %15179 = vst [vmem:[#allocation18_spill] sm:$0xff] %v8323_v44 }
  0xd7   : > { %15180 = vst [vmem:[#allocation19_spill] sm:$0xff] %v8331_v49  ;;  %15181 = vst [vmem:[#allocation20_spill] sm:$0xff] %v8342_v54  ;;  %v8492_v54 = vmul.f32 %v8334_v50, %v938_v31  ;;  %v8501_v49 = vmul.f32 %v8386_v4, %v939_v40  ;;  %v8511_v31 = vmul.f32 %v8287_v21, %v940_v3 }
  0xd8   : > { %458 = vst [vmem:[#allocation2 + $0xca] sm:$0x3f] %v344_v52  ;;  %573 = vst [vmem:[#allocation2 + $0x349] sm:$0x7f] %v344_v52 }
  0xd9   : > { %656 = vst [vmem:[#allocation2 + $0x5c8] sm:$0xff] %v344_v52  ;;  %771 = vst [vmem:[#allocation2 + $0x847] sm:$0xff] %v344_v52 }
  0xda   : > { %886 = vst [vmem:[#allocation2 + $0xac6] sm:$0xff] %v344_v52  ;;  %15182 = vst [vmem:[#allocation21_spill] sm:$0xff] %v8398_v7  ;;  %v8474_v52 = vadd.f32 %v2741_v48, %v2604_v27  ;;  %v8495_v48 = vmul.f32 %v8287_v21, %v939_v40  ;;  %v941_v27 = vld [vmem:[#allocation2 + $0x58] sm:$0xff] }
  0xdb   : > { %15183 = vst [vmem:[#allocation22_spill] sm:$0xff] %v8401_v11  ;;  %15184 = vst [vmem:[#allocation23_spill] sm:$0xff] %v8413_v13  ;;  %v346_v13 = vld [vmem:[%s7983_s26 + $0xb8] sm:$0xff] }
  0xdc   : > { %15185 = vst [vmem:[#allocation24_spill] sm:$0xff] %v8417_v9  ;;  %15186 = vst [vmem:[#allocation25_spill] sm:$0xff] %v8421_v26 }
  0xdd   : > { %15187 = vst [vmem:[#allocation26_spill] sm:$0xff] %v8425_v14  ;;  %15188 = vst [vmem:[#allocation27_spill] sm:$0xff] %v8429_v15  ;;  %v8752_v14 = vld [vmem:[#allocation2 + $0x318] sm:$0xff] }
  0xde   : > { %15189 = vst [vmem:[#allocation28_spill] sm:$0xff] %v8437_v30  ;;  %15190 = vst [vmem:[#allocation29_spill] sm:$0xff] %v8440_v18  ;;  %v8750_v30 = vld [vmem:[#allocation2 + $0x310] sm:$0xff] }
  0xdf   : > { %15191 = vst [vmem:[#allocation30_spill] sm:$0xff] %v8451_v34  ;;  %15192 = vst [vmem:[#allocation31_spill] sm:$0xff] %v8457_v25  ;;  %v8730_v25 = vld [vmem:[#allocation2 + $0x2f0] sm:$0xff] }
  0xe0   : > { %15193 = vst [vmem:[#allocation32_spill] sm:$0xff] %v8460_v39  ;;  %15194 = vst [vmem:[#allocation33_spill] sm:$0xff] %v8463_v42  ;;  %v8517_v42 = vmul.f32 %v8386_v4, %v940_v3  ;;  %v8538_v39 = vmul.f32 %v8386_v4, %v941_v27  ;;  %v1150_v26 = vmul.f32 %v8290_v22, %v8730_v25 }
  0xe1   : > { %15195 = vst [vmem:[#allocation34_spill] sm:$0xff] %v8469_v45  ;;  %15196 = vst [vmem:[#allocation35_spill] sm:$0xff] %v8472_v47  ;;  %v8532_v47 = vmul.f32 %v8287_v21, %v941_v27  ;;  %v8726_v45 = vld [vmem:[#allocation2 + $0x2e0] sm:$0xff] }
  0xe2   : > { %15197 = vst [vmem:[#allocation36_spill] sm:$0xff] %v8474_v52  ;;  %15198 = vst [vmem:[#allocation37_spill] sm:$0xff] %v8477_v53  ;;  %v8507_v53 = vmul.f32 %v8334_v50, %v939_v40  ;;  %v8523_v40 = vadd.f32 %v2941_v29, %v8474_v52  ;;  %v8544_v29 = vmul.f32 %v8334_v50, %v941_v27 }
  0xe3   : > { %15199 = vst [vmem:[#allocation38_spill] sm:$0xff] %v8483_v63  ;;  %15200 = vst [vmem:[#allocation39_spill] sm:$0xff] %v8486_v8  ;;  %v8520_v8 = vmul.f32 %v8327_v46, %v940_v3 }
  0xe4   : > { %15201 = vst [vmem:[#allocation40_spill] sm:$0xff] %v8489_v24  ;;  %15202 = vst [vmem:[#allocation41_spill] sm:$0xff] %v8492_v54  ;;  %v345_v24 = vld [vmem:[%s7983_s26 + $0xb0] sm:$0xff]  ;;  %v8514_v54 = vmul.f32 %v8308_v35, %v940_v3 }
  0xe5   : > { %15203 = vst [vmem:[#allocation42_spill] sm:$0xff] %v8498_v17  ;;  %15204 = vst [vmem:[#allocation43_spill] sm:$0xff] %v8501_v49  ;;  %v942_v49 = vld [vmem:[#allocation2 + $0x60] sm:$0xff]  ;;  %v8714_v17 = vld [vmem:[#allocation2 + $0x2d8] sm:$0xff] }
  0xe6   : > { %15205 = vst [vmem:[#allocation44_spill] sm:$0xff] %v8504_v36  ;;  %15206 = vst [vmem:[#allocation45_spill] sm:$0xff] %v8507_v53  ;;  %v8526_v53 = vadd.f32 %v2942_v10, %v8474_v52  ;;  %v8529_v36 = vmul.f32 %v8334_v50, %v940_v3  ;;  %v944_v10 = vld [vmem:[#allocation2 + $0x70] sm:$0xff]  ;;  %v8547_v3 = vmul.f32 %v8287_v21, %v942_v49 }
  0xe7   : > { %15207 = vst [vmem:[#allocation46_spill] sm:$0xff] %v8514_v54  ;;  %15208 = vst [vmem:[#allocation47_spill] sm:$0xff] %v8517_v42  ;;  %v943_v42 = vld [vmem:[#allocation2 + $0x68] sm:$0xff]  ;;  %v8550_v52 = vmul.f32 %v8308_v35, %v942_v49  ;;  %v8583_v15 = vmul.f32 %v8386_v4, %v944_v10  ;;  %v8586_v7 = vmul.f32 %v8327_v46, %v944_v10 }
  0xe8   : > { %15209 = vst [vmem:[#allocation48_spill] sm:$0xff] %v8520_v8  ;;  %459 = vst [vmem:[#allocation2 + $0xd2] sm:$0xff] %v345_v24  ;;  %v8535_v8 = vmul.f32 %v8308_v35, %v941_v27  ;;  %v8571_v44 = vmul.f32 %v8327_v46, %v943_v42  ;;  %v8710_v54 = vld [vmem:[#allocation2 + $0x2c8] sm:$0xff] }
  0xe9   : > { %574 = vst [vmem:[#allocation2 + $0x351] sm:$0xff] %v345_v24  ;;  %772 = vst [vmem:[#allocation2 + $0x84f] sm:$0xfe] %v345_v24 }
  0xea   : > { %887 = vst [vmem:[#allocation2 + $0xace] sm:$0xfc] %v345_v24  ;;  %15210 = vst [vmem:[#allocation49_spill] sm:$0xff] %v8523_v40  ;;  %v8541_v24 = vmul.f32 %v8327_v46, %v941_v27  ;;  %v945_v40 = vld [vmem:[#allocation2 + $0x78] sm:$0xff]  ;;  %v8562_v27 = vmul.f32 %v8287_v21, %v943_v42 }
  0xeb   : > { %15211 = vst [vmem:[#allocation50_spill] sm:$0xff] %v8526_v53  ;;  %15212 = vst [vmem:[#allocation51_spill] sm:$0xff] %v8529_v36  ;;  %v8553_v36 = vmul.f32 %v8386_v4, %v942_v49  ;;  %v8556_v53 = vmul.f32 %v8327_v46, %v942_v49  ;;  %v8598_v20 = vmul.f32 %v8386_v4, %v945_v40 }
  0xec   : > { %15213 = vst [vmem:[#allocation52_spill] sm:$0xff] %v8535_v8  ;;  %15214 = vst [vmem:[#allocation53_spill] sm:$0xff] %v8538_v39  ;;  %v8559_v39 = vmul.f32 %v8334_v50, %v942_v49  ;;  %v8580_v49 = vmul.f32 %v8308_v35, %v944_v10  ;;  %v8601_v41 = vmul.f32 %v8327_v46, %v945_v40 }
  0xed   : > { %15215 = vst [vmem:[#allocation54_spill] sm:$0xff] %v8541_v24  ;;  %15216 = vst [vmem:[#allocation55_spill] sm:$0xff] %v8544_v29  ;;  %v8565_v29 = vmul.f32 %v8308_v35, %v943_v42  ;;  %v8568_v24 = vmul.f32 %v8386_v4, %v943_v42 }
  0xee   : > { %15217 = vst [vmem:[#allocation56_spill] sm:$0xff] %v8550_v52  ;;  %15218 = vst [vmem:[#allocation57_spill] sm:$0xff] %v8553_v36  ;;  %v8574_v36 = vmul.f32 %v8334_v50, %v943_v42  ;;  %v947_v42 = vld [vmem:[#allocation2 + $0x88] sm:$0xff]  ;;  %v8692_v52 = vld [vmem:[#allocation2 + $0x2b0] sm:$0xff] }
  0xef   : > { %15219 = vst [vmem:[#allocation58_spill] sm:$0xff] %v8556_v53  ;;  %15220 = vst [vmem:[#allocation59_spill] sm:$0xff] %v8559_v39  ;;  %v8577_v53 = vmul.f32 %v8287_v21, %v944_v10  ;;  %v946_v39 = vld [vmem:[#allocation2 + $0x80] sm:$0xff]  ;;  %v8631_v11 = vmul.f32 %v8327_v46, %v947_v42 }
  0xf0   : > { %15221 = vst [vmem:[#allocation60_spill] sm:$0xff] %v8565_v29  ;;  %15222 = vst [vmem:[#allocation61_spill] sm:$0xff] %v8568_v24  ;;  %v8589_v24 = vmul.f32 %v8334_v50, %v944_v10  ;;  %v8607_v10 = vmul.f32 %v8287_v21, %v946_v39  ;;  %v8613_v34 = vmul.f32 %v8386_v4, %v946_v39  ;;  %v8678_v29 = vld [vmem:[#allocation2 + $0x2a8] sm:$0xff] }
  0xf1   : > { %15223 = vst [vmem:[#allocation62_spill] sm:$0xff] %v8571_v44  ;;  %15224 = vst [vmem:[#allocation63_spill] sm:$0xff] %v8574_v36  ;;  %v8592_v44 = vmul.f32 %v8287_v21, %v945_v40  ;;  %v8595_v36 = vmul.f32 %v8308_v35, %v945_v40  ;;  %v8616_v18 = vmul.f32 %v8327_v46, %v946_v39 }
  0xf2   : > { %15225 = vst [vmem:[#allocation64_spill] sm:$0xff] %v8580_v49  ;;  %15226 = vst [vmem:[#allocation65_spill] sm:$0xff] %v8583_v15  ;;  %v8604_v15 = vmul.f32 %v8334_v50, %v945_v40  ;;  %v8619_v38 = vmul.f32 %v8334_v50, %v946_v39  ;;  %v8622_v40 = vmul.f32 %v8287_v21, %v947_v42 }
  0xf3   : > { %15227 = vst [vmem:[#allocation66_spill] sm:$0xff] %v8586_v7  ;;  %15228 = vst [vmem:[#allocation67_spill] sm:$0xff] %v8589_v24  ;;  %v948_v7 = vld [vmem:[#allocation2 + $0x90] sm:$0xff]  ;;  %v8610_v24 = vmul.f32 %v8308_v35, %v946_v39 }
  0xf4   : > { %15229 = vst [vmem:[#allocation68_spill] sm:$0xff] %v8595_v36  ;;  %15230 = vst [vmem:[#allocation69_spill] sm:$0xff] %v8598_v20  ;;  %v949_v20 = vld [vmem:[#allocation2 + $0x98] sm:$0xff]  ;;  %v8640_v39 = vmul.f32 %v8308_v35, %v948_v7 }
  0xf5   : > { %15231 = vst [vmem:[#allocation70_spill] sm:$0xff] %v8601_v41  ;;  %15232 = vst [vmem:[#allocation71_spill] sm:$0xff] %v8604_v15  ;;  %v8625_v15 = vmul.f32 %v8308_v35, %v947_v42  ;;  %v8628_v41 = vmul.f32 %v8386_v4, %v947_v42  ;;  %v8658_v36 = vmul.f32 %v8386_v4, %v949_v20 }
  0xf6   : > { %15233 = vst [vmem:[#allocation72_spill] sm:$0xff] %v8610_v24  ;;  %15234 = vst [vmem:[#allocation73_spill] sm:$0xff] %v8613_v34  ;;  %v8634_v34 = vmul.f32 %v8334_v50, %v947_v42  ;;  %v8643_v24 = vmul.f32 %v8386_v4, %v948_v7  ;;  %v951_v42 = vld [vmem:[#allocation2 + $0xa8] sm:$0xff] }
  0xf7   : > { %15235 = vst [vmem:[#allocation74_spill] sm:$0xff] %v8616_v18  ;;  %15236 = vst [vmem:[#allocation75_spill] sm:$0xff] %v8619_v38  ;;  %v8637_v18 = vmul.f32 %v8287_v21, %v948_v7  ;;  %v950_v38 = vld [vmem:[#allocation2 + $0xa0] sm:$0xff]  ;;  %v8699_v8 = vmul.f32 %v8327_v46, %v951_v42 }
  0xf8   : > { %15237 = vst [vmem:[#allocation76_spill] sm:$0xff] %v8625_v15  ;;  %15238 = vst [vmem:[#allocation77_spill] sm:$0xff] %v8628_v41  ;;  %v8646_v15 = vmul.f32 %v8327_v46, %v948_v7  ;;  %v8649_v41 = vmul.f32 %v8334_v50, %v948_v7  ;;  %v8667_v7 = vmul.f32 %v8287_v21, %v950_v38 }
  0xf9   : > { %15239 = vst [vmem:[#allocation78_spill] sm:$0xff] %v8631_v11  ;;  %15240 = vst [vmem:[#allocation79_spill] sm:$0xff] %v8634_v34  ;;  %v8652_v11 = vmul.f32 %v8287_v21, %v949_v20  ;;  %v8655_v34 = vmul.f32 %v8308_v35, %v949_v20  ;;  %v8673_v49 = vmul.f32 %v8386_v4, %v950_v38 }
  0xfa   : > { %15241 = vst [vmem:[#allocation80_spill] sm:$0xff] %v8640_v39  ;;  %15242 = vst [vmem:[#allocation81_spill] sm:$0xff] %v8643_v24  ;;  %v8661_v39 = vmul.f32 %v8327_v46, %v949_v20  ;;  %v8664_v24 = vmul.f32 %v8334_v50, %v949_v20  ;;  %v8684_v20 = vmul.f32 %v8287_v21, %v951_v42 }
  0xfb   : > { %15243 = vst [vmem:[#allocation82_spill] sm:$0xff] %v8646_v15  ;;  %15244 = vst [vmem:[#allocation83_spill] sm:$0xff] %v8649_v41  ;;  %v952_v15 = vld [vmem:[#allocation2 + $0xb0] sm:$0xff]  ;;  %v8670_v41 = vmul.f32 %v8308_v35, %v950_v38 }
  0xfc   : > { %15245 = vst [vmem:[#allocation84_spill] sm:$0xff] %v8655_v34  ;;  %15246 = vst [vmem:[#allocation85_spill] sm:$0xff] %v8658_v36  ;;  %v8676_v34 = vmul.f32 %v8327_v46, %v950_v38  ;;  %v953_v36 = vld [vmem:[#allocation2 + $0xb8] sm:$0xff]  ;;  %v8717_v63 = vmul.f32 %v8386_v4, %v952_v15 }
  0xfd   : > { %15247 = vst [vmem:[#allocation86_spill] sm:$0xff] %v8661_v39  ;;  %15248 = vst [vmem:[#allocation87_spill] sm:$0xff] %v8664_v24  ;;  %v8681_v39 = vmul.f32 %v8334_v50, %v950_v38  ;;  %v8687_v24 = vmul.f32 %v8308_v35, %v951_v42  ;;  %v8702_v38 = vmul.f32 %v8334_v50, %v951_v42 }
  0xfe   : > { %15249 = vst [vmem:[#allocation88_spill] sm:$0xff] %v8670_v41  ;;  %15250 = vst [vmem:[#allocation89_spill] sm:$0xff] %v8673_v49  ;;  %v8690_v41 = vmul.f32 %v8386_v4, %v951_v42  ;;  %v8694_v49 = vld [vmem:[#allocation2 + $0x2b8] sm:$0xff]  ;;  %v8723_v42 = vmul.f32 %v8334_v50, %v952_v15  ;;  %v8733_v32 = vmul.f32 %v8308_v35, %v953_v36 }
  0xff   : > { %15251 = vst [vmem:[#allocation90_spill] sm:$0xff] %v8676_v34  ;;  %15252 = vst [vmem:[#allocation91_spill] sm:$0xff] %v8678_v29  ;;  %v8696_v34 = vld [vmem:[#allocation2 + $0x2c0] sm:$0xff]  ;;  %v8736_v28 = vmul.f32 %v8386_v4, %v953_v36  ;;  %v1141_v4 = vmul.f32 %v8290_v22, %v8678_v29 }
 0x100   : > { %15253 = vst [vmem:[#allocation92_spill] sm:$0xff] %v8681_v39  ;;  %15254 = vst [vmem:[#allocation93_spill] sm:$0xff] %v8687_v24  ;;  %v8705_v39 = vmul.f32 %v8287_v21, %v952_v15  ;;  %v8708_v24 = vmul.f32 %v8308_v35, %v952_v15  ;;  %v8754_v35 = vld [vmem:[#allocation2 + $0x320] sm:$0xff] }
 0x101   : > { %15255 = vst [vmem:[#allocation94_spill] sm:$0xff] %v8690_v41  ;;  %15256 = vst [vmem:[#allocation95_spill] sm:$0xff] %v8692_v52  ;;  %v8712_v41 = vld [vmem:[#allocation2 + $0x2d0] sm:$0xff] }
 0x102   : > { %15257 = vst [vmem:[#allocation96_spill] sm:$0xff] %v8694_v49  ;;  %15258 = vst [vmem:[#allocation97_spill] sm:$0xff] %v8696_v34  ;;  %v1146_v29 = vmul.f32 %v8290_v22, %v8712_v41 }
 0x103   : > { %15259 = vst [vmem:[#allocation98_spill] sm:$0xff] %v8699_v8  ;;  %15260 = vst [vmem:[#allocation99_spill] sm:$0xff] %v8702_v38  ;;  %v8720_v8 = vmul.f32 %v8327_v46, %v952_v15  ;;  %v1023_v38 = vmul.f32 %v8287_v21, %v953_v36  ;;  %v8742_v15 = vmul.f32 %v8334_v50, %v953_v36  ;;  %v8746_v21 = vld [vmem:[#allocation2 + $0x300] sm:$0xff] }
 0x104   : > { %15261 = vst [vmem:[#allocation100_spill] sm:$0xff] %v8708_v24  ;;  %15262 = vst [vmem:[#allocation101_spill] sm:$0xff] %v8710_v54  ;;  %v8728_v24 = vld [vmem:[#allocation2 + $0x2e8] sm:$0xff]  ;;  %v1144_v50 = vmul.f32 %v8290_v22, %v8696_v34 }
 0x105   : > { %15263 = vst [vmem:[#allocation102_spill] sm:$0xff] %v8712_v41  ;;  %15264 = vst [vmem:[#allocation103_spill] sm:$0xff] %v8714_v17  ;;  %v1149_v34 = vmul.f32 %v8290_v22, %v8728_v24 }
 0x106   : > { %15265 = vst [vmem:[#allocation104_spill] sm:$0xff] %v8717_v63  ;;  %15266 = vst [vmem:[#allocation105_spill] sm:$0xff] %v8720_v8  ;;  %v8739_v63 = vmul.f32 %v8327_v46, %v953_v36  ;;  %v8748_v8 = vld [vmem:[#allocation2 + $0x308] sm:$0xff]  ;;  %v1142_v46 = vmul.f32 %v8290_v22, %v8692_v52  ;;  %v1143_v36 = vmul.f32 %v8290_v22, %v8694_v49 }
 0x107   : > { %15267 = vst [vmem:[#allocation106_spill] sm:$0xff] %v8723_v42  ;;  %15268 = vst [vmem:[#allocation107_spill] sm:$0xff] %v8726_v45  ;;  %v8744_v42 = vld [vmem:[#allocation2 + $0x2f8] sm:$0xff]  ;;  %v1147_v52 = vmul.f32 %v8290_v22, %v8714_v17  ;;  %v1148_v49 = vmul.f32 %v8290_v22, %v8726_v45  ;;  %v1153_v41 = vmul.f32 %v8290_v22, %v8748_v8 }
 0x108   : > { %15269 = vst [vmem:[#allocation108_spill] sm:$0xff] %v8728_v24  ;;  %15270 = vst [vmem:[#allocation109_spill] sm:$0xff] %v8730_v25  ;;  %v1151_v9 = vmul.f32 %v8290_v22, %v8744_v42  ;;  %v1154_v17 = vmul.f32 %v8290_v22, %v8750_v30  ;;  %v1155_v45 = vmul.f32 %v8290_v22, %v8752_v14 }
 0x109   : > { %15271 = vst [vmem:[#allocation110_spill] sm:$0xff] %v8733_v32  ;;  %15272 = vst [vmem:[#allocation111_spill] sm:$0xff] %v8736_v28  ;;  %v8768_v28 = vld [vmem:[#allocation2 + $0x338] sm:$0xff]  ;;  %v1145_v32 = vmul.f32 %v8290_v22, %v8710_v54  ;;  %v1152_v54 = vmul.f32 %v8290_v22, %v8746_v21  ;;  %v1156_v24 = vmul.f32 %v8290_v22, %v8754_v35 }
 0x10a   : > { %15273 = vst [vmem:[#allocation112_spill] sm:$0xff] %v8739_v63  ;;  %15274 = vst [vmem:[#allocation113_spill] sm:$0xff] %v8742_v15  ;;  %v8764_v15 = vld [vmem:[#allocation2 + $0x328] sm:$0xff]  ;;  %v8766_v63 = vld [vmem:[#allocation2 + $0x330] sm:$0xff] }
 0x10b   : > { %15275 = vst [vmem:[#allocation114_spill] sm:$0xff] %v8744_v42  ;;  %15276 = vst [vmem:[#allocation115_spill] sm:$0xff] %v8746_v21  ;;  %v1157_v25 = vmul.f32 %v8290_v22, %v8764_v15  ;;  %v1158_v42 = vmul.f32 %v8290_v22, %v8766_v63  ;;  %v1159_v21 = vmul.f32 %v8290_v22, %v8768_v28 }
 0x10c   : > { %15277 = vst [vmem:[#allocation116_spill] sm:$0xff] %v8748_v8  ;;  %15278 = vst [vmem:[#allocation117_spill] sm:$0xff] %v8750_v30  ;;  %v1204_v8 = vadd.f32 %v8448_v33, %v8432_v16  ;;  %v1208_v30 = vadd.f32 %v1144_v50, %v8480_v58  ;;  %v1210_v22 = vadd.f32 %v1146_v29, %v8511_v31  ;;  %v8889_v50 = vld [vmem:[#allocation2 + $0x838] sm:$0xff] }
 0x10d   : > { %15279 = vst [vmem:[#allocation118_spill] sm:$0xff] %v8752_v14  ;;  %15280 = vst [vmem:[#allocation119_spill] sm:$0xff] %v8754_v35  ;;  %v1205_v35 = vadd.f32 %v1141_v4, %v8443_v19  ;;  %v1206_v14 = vadd.f32 %v1142_v46, %v8454_v37  ;;  %v1212_v16 = vadd.f32 %v1148_v49, %v8547_v3  ;;  %v15290_v3 = vld [vmem:[#allocation26_spill] sm:$0xff]  ;;  %v15291_v49 = vld [vmem:[#allocation28_spill] sm:$0xff] }
 0x10e   : > { %15281 = vst [vmem:[#allocation120_spill] sm:$0xff] %v8764_v15  ;;  %15282 = vst [vmem:[#allocation121_spill] sm:$0xff] %v8766_v63  ;;  %v1207_v15 = vadd.f32 %v1143_v36, %v8466_v43  ;;  %v1209_v63 = vadd.f32 %v1145_v32, %v8495_v48  ;;  %v1213_v33 = vadd.f32 %v1149_v34, %v8562_v27  ;;  %v8885_v46 = vld [vmem:[#allocation2 + $0x828] sm:$0xff]  ;;  %v8887_v36 = vld [vmem:[#allocation2 + $0x830] sm:$0xff] }
 0x10f   : > { %15283 = vst [vmem:[#allocation122_spill] sm:$0xff] %v8768_v28  ;;  %460 = vst [vmem:[#allocation2 + $0xda] sm:$0x3f] %v346_v13  ;;  %v1211_v28 = vadd.f32 %v1147_v52, %v8532_v47  ;;  %v1215_v19 = vadd.f32 %v1151_v9, %v8592_v44  ;;  %v1216_v37 = vadd.f32 %v1152_v54, %v8607_v10  ;;  %v8826_v9 = vld [vmem:[#allocation2 + $0x7a0] sm:$0xff] }
 0x110   : > { %575 = vst [vmem:[#allocation2 + $0x359] sm:$0x7f] %v346_v13  ;;  %658 = vst [vmem:[#allocation2 + $0x5d8] sm:$0xff] %v346_v13  ;;  %v1217_v43 = vadd.f32 %v1153_v41, %v8622_v40  ;;  %v1218_v58 = vadd.f32 %v1154_v17, %v8637_v18  ;;  %v1219_v32 = vadd.f32 %v1155_v45, %v8652_v11  ;;  %v8828_v11 = vld [vmem:[#allocation2 + $0x7a8] sm:$0xff]  ;;  %v15285_v17 = vld [vmem:[#allocation24_spill] sm:$0xff] }
 0x111   : > { %773 = vst [vmem:[#allocation2 + $0x857] sm:$0xff] %v346_v13  ;;  %888 = vst [vmem:[#allocation2 + $0xad6] sm:$0xff] %v346_v13  ;;  %v1214_v13 = vadd.f32 %v1150_v26, %v8577_v53  ;;  %v1220_v48 = vadd.f32 %v1156_v24, %v8667_v7  ;;  %v1221_v47 = vadd.f32 %v1157_v25, %v8684_v20  ;;  %v8834_v53 = vld [vmem:[#allocation2 + $0x7b0] sm:$0xff]  ;;  %v8854_v24 = vld [vmem:[#allocation2 + $0x7e0] sm:$0xff] }
 0x112   : > { %v1222_v52 = vadd.f32 %v1158_v42, %v8705_v39  ;;  %v1223_v31 = vadd.f32 %v1159_v21, %v1023_v38  ;;  %v1404_v34 = vadd.f32 %v8338_v51, %v1204_v8  ;;  %v1405_v26 = vadd.f32 %v8346_v55, %v1205_v35  ;;  %v8836_v55 = vld [vmem:[#allocation2 + $0x7b8] sm:$0xff]  ;;  %v8871_v20 = vld [vmem:[#allocation2 + $0x810] sm:$0xff]  ;;  %v8875_v42 = vld [vmem:[#allocation2 + $0x820] sm:$0xff]  ;;  %15299 = vst [vmem:[#allocation126_spill] sm:$0xff] %v8885_v46 }
 0x113   : > { %v1406_v44 = vadd.f32 %v8350_v56, %v1206_v14  ;;  %v1407_v54 = vadd.f32 %v8354_v57, %v1207_v15  ;;  %v1408_v41 = vadd.f32 %v8358_v59, %v1208_v30  ;;  %v1409_v18 = vadd.f32 %v8362_v60, %v1209_v63  ;;  %v8838_v56 = vld [vmem:[#allocation2 + $0x7c0] sm:$0xff]  ;;  %v8844_v30 = vld [vmem:[#allocation2 + $0x7c8] sm:$0xff]  ;;  %v8863_v40 = vld [vmem:[#allocation2 + $0x7f8] sm:$0xff]  ;;  %15298 = vst [vmem:[#allocation125_spill] sm:$0xff] %v8875_v42 }
 0x114   : > { %v1410_v25 = vadd.f32 %v8366_v61, %v1210_v22  ;;  %v1411_v45 = vadd.f32 %v8370_v62, %v1211_v28  ;;  %v1412_v51 = vadd.f32 %v8374_v0, %v1212_v16  ;;  %v1413_v57 = vadd.f32 %v8378_v1, %v1213_v33  ;;  %v8846_v61 = vld [vmem:[#allocation2 + $0x7d0] sm:$0xff]  ;;  %v8848_v28 = vld [vmem:[#allocation2 + $0x7d8] sm:$0xff]  ;;  %15300 = vst [vmem:[#allocation127_spill] sm:$0xff] %v8887_v36 }
 0x115   : > { %v1414_v59 = vadd.f32 %v8382_v2, %v1214_v13  ;;  %v1415_v14 = vadd.f32 %v8390_v5, %v1215_v19  ;;  %v1416_v60 = vadd.f32 %v8394_v6, %v1216_v37  ;;  %v1417_v62 = vadd.f32 %v8405_v23, %v1217_v43  ;;  %v15284_v63 = vld [vmem:[#allocation23_spill] sm:$0xff]  ;;  %v15289_v6 = vld [vmem:[#allocation25_spill] sm:$0xff]  ;;  %15301 = vst [vmem:[#allocation128_spill] sm:$0xff] %v8889_v50 }
 0x116   : > { %v1418_v0 = vadd.f32 %v8409_v12, %v1218_v58  ;;  %v1419_v8 = vadd.f32 %v15284_v63, %v1219_v32  ;;  %v1420_v1 = vadd.f32 %v15285_v17, %v1220_v48  ;;  %15286 = vst [vmem:[#allocation23_spill] sm:$0xff] %v8854_v24  ;;  %v8856_v2 = vld [vmem:[#allocation2 + $0x7e8] sm:$0xff]  ;;  %v8858_v5 = vld [vmem:[#allocation2 + $0x7f0] sm:$0xff]  ;;  %v1421_v29 = vadd.f32 %v15289_v6, %v1221_v47  ;;  %v8865_v23 = vld [vmem:[#allocation2 + $0x800] sm:$0xff] }
 0x117   : > { %15287 = vst [vmem:[#allocation24_spill] sm:$0xff] %v8856_v2  ;;  %15288 = vst [vmem:[#allocation123_spill] sm:$0xff] %v8858_v5  ;;  %v1422_v27 = vadd.f32 %v15290_v3, %v1222_v52  ;;  %v1423_v10 = vadd.f32 %v15291_v49, %v1223_v31  ;;  %v8867_v12 = vld [vmem:[#allocation2 + $0x808] sm:$0xff]  ;;  %v15295_v39 = vld [vmem:[#allocation13_spill] sm:$0xff] }
 0x118   : > { %15292 = vst [vmem:[#allocation25_spill] sm:$0xff] %v8863_v40  ;;  %15293 = vst [vmem:[#allocation26_spill] sm:$0xff] %v8865_v23  ;;  %v1540_v7 = vmul.f32 %v15295_v39, %v8826_v9  ;;  %v8873_v38 = vld [vmem:[#allocation2 + $0x818] sm:$0xff]  ;;  %v1541_v15 = vmul.f32 %v15295_v39, %v8828_v11  ;;  %v1542_v21 = vmul.f32 %v15295_v39, %v8834_v53 }
 0x119   : > { %15294 = vst [vmem:[#allocation28_spill] sm:$0xff] %v8867_v12  ;;  %15296 = vst [vmem:[#allocation13_spill] sm:$0xff] %v8871_v20  ;;  %v1543_v35 = vmul.f32 %v15295_v39, %v8836_v55  ;;  %v1544_v4 = vmul.f32 %v15295_v39, %v8838_v56  ;;  %v1545_v22 = vmul.f32 %v15295_v39, %v8844_v30 }
 0x11a   : > { %15297 = vst [vmem:[#allocation124_spill] sm:$0xff] %v8873_v38  ;;  %v1546_v16 = vmul.f32 %v15295_v39, %v8846_v61  ;;  %v1547_v33 = vmul.f32 %v15295_v39, %v8848_v28  ;;  %v1548_v13 = vmul.f32 %v15295_v39, %v8854_v24  ;;  %v1549_v19 = vmul.f32 %v15295_v39, %v8856_v2 }
 0x11b   : > { %v1550_v37 = vmul.f32 %v15295_v39, %v8858_v5  ;;  %v1551_v43 = vmul.f32 %v15295_v39, %v8863_v40  ;;  %v1552_v58 = vmul.f32 %v15295_v39, %v8865_v23  ;;  %v1553_v32 = vmul.f32 %v15295_v39, %v8867_v12  ;;  %v8933_v12 = vld [vmem:[#allocation2 + $0xa28] sm:$0xff] }
 0x11c   : > { %v1554_v48 = vmul.f32 %v15295_v39, %v8871_v20  ;;  %v1555_v47 = vmul.f32 %v15295_v39, %v8873_v38  ;;  %v1556_v52 = vmul.f32 %v15295_v39, %v8875_v42  ;;  %v1557_v31 = vmul.f32 %v15295_v39, %v8885_v46  ;;  %v8931_v42 = vld [vmem:[#allocation2 + $0xa20] sm:$0xff]  ;;  %15303 = vst [vmem:[#allocation130_spill] sm:$0xff] %v8933_v12  ;;  %v9114_v40 = vld [vmem:[#allocation2 + $0x528] sm:$0xff] }
 0x11d   : > { %v1558_v63 = vmul.f32 %v15295_v39, %v8887_v36  ;;  %v1559_v17 = vmul.f32 %v15295_v39, %v8889_v50  ;;  %v8921_v6 = vadd.f32 %v1540_v7, %v1404_v34  ;;  %v8923_v3 = vadd.f32 %v1541_v15, %v1405_v26  ;;  %15302 = vst [vmem:[#allocation129_spill] sm:$0xff] %v8931_v42  ;;  %v8943_v26 = vld [vmem:[#allocation2 + $0xa30] sm:$0xff] }
 0x11e   : > { %v8925_v49 = vadd.f32 %v1542_v21, %v1406_v44  ;;  %v8927_v20 = vadd.f32 %v1543_v35, %v1407_v54  ;;  %v8929_v38 = vadd.f32 %v1544_v4, %v1408_v41  ;;  %v8935_v46 = vadd.f32 %v1545_v22, %v1409_v18  ;;  %15304 = vst [vmem:[#allocation131_spill] sm:$0xff] %v8943_v26  ;;  %v8945_v44 = vld [vmem:[#allocation2 + $0xa38] sm:$0xff]  ;;  %v8947_v54 = vld [vmem:[#allocation2 + $0xa40] sm:$0xff]  ;;  %v8949_v21 = vld [vmem:[#allocation2 + $0xa48] sm:$0xff] }
 0x11f   : > { %v8937_v36 = vadd.f32 %v1546_v16, %v1410_v25  ;;  %v8939_v23 = vadd.f32 %v1547_v33, %v1411_v45  ;;  %v8941_v34 = vadd.f32 %v1548_v13, %v1412_v51  ;;  %15305 = vst [vmem:[#allocation132_spill] sm:$0xff] %v8945_v44  ;;  %15306 = vst [vmem:[#allocation133_spill] sm:$0xff] %v8947_v54  ;;  %v8951_v18 = vld [vmem:[#allocation2 + $0xa50] sm:$0xff]  ;;  %v8953_v25 = vld [vmem:[#allocation2 + $0xa58] sm:$0xff] }
 0x120   : > { %v1613_v41 = vadd.f32 %v1549_v19, %v1413_v57  ;;  %v1614_v39 = vadd.f32 %v1550_v37, %v1414_v59  ;;  %v1615_v7 = vadd.f32 %v1551_v43, %v1415_v14  ;;  %v1616_v15 = vadd.f32 %v1552_v58, %v1416_v60  ;;  %15307 = vst [vmem:[#allocation134_spill] sm:$0xff] %v8949_v21  ;;  %v8955_v22 = vld [vmem:[#allocation2 + $0xa60] sm:$0xff]  ;;  %v8957_v16 = vld [vmem:[#allocation2 + $0xa68] sm:$0xff]  ;;  %v8959_v33 = vld [vmem:[#allocation2 + $0xa70] sm:$0xff] }
 0x121   : > { %15308 = vst [vmem:[#allocation135_spill] sm:$0xff] %v8951_v18  ;;  %15309 = vst [vmem:[#allocation136_spill] sm:$0xff] %v8953_v25  ;;  %v1617_v45 = vadd.f32 %v1553_v32, %v1417_v62  ;;  %v1618_v35 = vadd.f32 %v1554_v48, %v1418_v0  ;;  %v1619_v51 = vadd.f32 %v1555_v47, %v1419_v8  ;;  %v8961_v60 = vld [vmem:[#allocation2 + $0xa78] sm:$0xff]  ;;  %v8963_v13 = vld [vmem:[#allocation2 + $0xa80] sm:$0xff] }
 0x122   : > { %v1620_v4 = vadd.f32 %v1556_v52, %v1420_v1  ;;  %15310 = vst [vmem:[#allocation137_spill] sm:$0xff] %v8955_v22  ;;  %15311 = vst [vmem:[#allocation138_spill] sm:$0xff] %v8957_v16  ;;  %v1621_v57 = vadd.f32 %v1557_v31, %v1421_v29  ;;  %v1622_v59 = vadd.f32 %v1558_v63, %v1422_v27  ;;  %v8965_v19 = vld [vmem:[#allocation2 + $0xa88] sm:$0xff]  ;;  %v8969_v8 = vld [vmem:[#allocation2 + $0xa90] sm:$0xff] }
 0x123   : > { %15312 = vst [vmem:[#allocation139_spill] sm:$0xff] %v8959_v33  ;;  %v1623_v14 = vadd.f32 %v1559_v17, %v1423_v10  ;;  %15313 = vst [vmem:[#allocation140_spill] sm:$0xff] %v8961_v60  ;;  %v15316_v62 = vld [vmem:[#allocation14_spill] sm:$0xff]  ;;  %v8971_v1 = vld [vmem:[#allocation2 + $0xa98] sm:$0xff] }
 0x124   : > { %15314 = vst [vmem:[#allocation141_spill] sm:$0xff] %v8963_v13  ;;  %15315 = vst [vmem:[#allocation142_spill] sm:$0xff] %v8965_v19  ;;  %v1740_v0 = vmul.f32 %v15316_v62, %v8931_v42  ;;  %v8973_v37 = vld [vmem:[#allocation2 + $0xaa0] sm:$0xff]  ;;  %v1741_v29 = vmul.f32 %v15316_v62, %v8933_v12  ;;  %v1742_v27 = vmul.f32 %v15316_v62, %v8943_v26  ;;  %v8983_v58 = vld [vmem:[#allocation2 + $0xaa8] sm:$0xff] }
 0x125   : > { %15317 = vst [vmem:[#allocation14_spill] sm:$0xff] %v8969_v8  ;;  %15318 = vst [vmem:[#allocation143_spill] sm:$0xff] %v8971_v1  ;;  %v1743_v10 = vmul.f32 %v15316_v62, %v8945_v44  ;;  %v1744_v43 = vmul.f32 %v15316_v62, %v8947_v54  ;;  %v8985_v32 = vld [vmem:[#allocation2 + $0xab0] sm:$0xff]  ;;  %v8987_v48 = vld [vmem:[#allocation2 + $0xab8] sm:$0xff]  ;;  %v1745_v47 = vmul.f32 %v15316_v62, %v8949_v21 }
 0x126   : > { %15319 = vst [vmem:[#allocation144_spill] sm:$0xff] %v8973_v37  ;;  %15320 = vst [vmem:[#allocation145_spill] sm:$0xff] %v8983_v58  ;;  %v1746_v52 = vmul.f32 %v15316_v62, %v8951_v18  ;;  %v1747_v31 = vmul.f32 %v15316_v62, %v8953_v25  ;;  %v1748_v63 = vmul.f32 %v15316_v62, %v8955_v22  ;;  %v347_v26 = vld [vmem:[%s7983_s26 + $0xc0] sm:$0xff] }
 0x127   : > { %15321 = vst [vmem:[#allocation146_spill] sm:$0xff] %v8985_v32  ;;  %15322 = vst [vmem:[#allocation147_spill] sm:$0xff] %v8987_v48  ;;  %v1749_v17 = vmul.f32 %v15316_v62, %v8957_v16  ;;  %v1750_v54 = vmul.f32 %v15316_v62, %v8959_v33  ;;  %v1751_v44 = vmul.f32 %v15316_v62, %v8961_v60 }
 0x128   : > { %v1752_v21 = vmul.f32 %v15316_v62, %v8963_v13  ;;  %v1753_v18 = vmul.f32 %v15316_v62, %v8965_v19  ;;  %v1754_v25 = vmul.f32 %v15316_v62, %v8969_v8  ;;  %v1755_v22 = vmul.f32 %v15316_v62, %v8971_v1  ;;  %461 = vst [vmem:[#allocation2 + $0xe2] sm:$0xff] %v347_v26 }
 0x129   : > { %v1756_v16 = vmul.f32 %v15316_v62, %v8973_v37  ;;  %576 = vst [vmem:[#allocation2 + $0x361] sm:$0xff] %v347_v26  ;;  %774 = vst [vmem:[#allocation2 + $0x85f] sm:$0xfe] %v347_v26  ;;  %v1757_v13 = vmul.f32 %v15316_v62, %v8983_v58  ;;  %v1758_v60 = vmul.f32 %v15316_v62, %v8985_v32 }
 0x12a   : > { %889 = vst [vmem:[#allocation2 + $0xade] sm:$0xfc] %v347_v26  ;;  %v1759_v19 = vmul.f32 %v15316_v62, %v8987_v48  ;;  %v1804_v8 = vadd.f32 %v1740_v0, %v8921_v6  ;;  %v1805_v1 = vadd.f32 %v1741_v29, %v8923_v3  ;;  %v1806_v33 = vadd.f32 %v1742_v27, %v8925_v49 }
 0x12b   : > { %v1807_v37 = vadd.f32 %v1743_v10, %v8927_v20  ;;  %v1808_v12 = vadd.f32 %v1744_v43, %v8929_v38  ;;  %v1809_v26 = vadd.f32 %v1745_v47, %v8935_v46  ;;  %v1810_v58 = vadd.f32 %v1746_v52, %v8937_v36  ;;  %v15325_v46 = vld [vmem:[#allocation31_spill] sm:$0xff]  ;;  %v15326_v36 = vld [vmem:[#allocation34_spill] sm:$0xff]  ;;  %v15344_v52 = vld [vmem:[#allocation16_spill] sm:$0xff] }
 0x12c   : > { %v1811_v42 = vadd.f32 %v1747_v31, %v8939_v23  ;;  %v1812_v32 = vadd.f32 %v1748_v63, %v8941_v34  ;;  %v1813_v50 = vadd.f32 %v1749_v17, %v1613_v41  ;;  %v1814_v62 = vadd.f32 %v1750_v54, %v1614_v39  ;;  %v15327_v23 = vld [vmem:[#allocation38_spill] sm:$0xff]  ;;  %v15330_v39 = vld [vmem:[#allocation52_spill] sm:$0xff]  ;;  %v15345_v31 = vld [vmem:[#allocation91_spill] sm:$0xff]  ;;  %15367 = vst [vmem:[#allocation34_spill] sm:$0xff] %v9114_v40 }
 0x12d   : > { %v1815_v48 = vadd.f32 %v1751_v44, %v1615_v7  ;;  %v1816_v6 = vadd.f32 %v1752_v21, %v1616_v15  ;;  %v1817_v0 = vadd.f32 %v1753_v18, %v1617_v45  ;;  %v1818_v3 = vadd.f32 %v1754_v25, %v1618_v35  ;;  %v15328_v34 = vld [vmem:[#allocation42_spill] sm:$0xff]  ;;  %v15331_v15 = vld [vmem:[#allocation56_spill] sm:$0xff]  ;;  %v15346_v17 = vld [vmem:[#allocation95_spill] sm:$0xff] }
 0x12e   : > { %v1819_v29 = vadd.f32 %v1755_v22, %v1619_v51  ;;  %v1820_v49 = vadd.f32 %v1756_v16, %v1620_v4  ;;  %v1821_v27 = vadd.f32 %v1757_v13, %v1621_v57  ;;  %v9029_v20 = vadd.f32 %v1758_v60, %v1622_v59  ;;  %v15329_v54 = vld [vmem:[#allocation46_spill] sm:$0xff]  ;;  %v15332_v18 = vld [vmem:[#allocation60_spill] sm:$0xff] }
 0x12f   : > { %v9031_v38 = vadd.f32 %v1759_v19, %v1623_v14  ;;  %v2005_v10 = vadd.f32 %v15325_v46, %v1804_v8  ;;  %v2006_v43 = vadd.f32 %v15326_v36, %v1805_v1  ;;  %v2007_v47 = vadd.f32 %v15327_v23, %v1806_v33  ;;  %v15333_v45 = vld [vmem:[#allocation64_spill] sm:$0xff]  ;;  %v15340_v8 = vld [vmem:[#allocation93_spill] sm:$0xff]  ;;  %v348_v36 = vld [vmem:[%s7983_s26 + $0xc8] sm:$0xff] }
 0x130   : > { %15323 = vst [vmem:[#allocation148_spill] sm:$0xff] %v9029_v20  ;;  %v2008_v41 = vadd.f32 %v15328_v34, %v1807_v37  ;;  %v2009_v44 = vadd.f32 %v15329_v54, %v1808_v12  ;;  %v2010_v7 = vadd.f32 %v15330_v39, %v1809_v26  ;;  %v2011_v21 = vadd.f32 %v15331_v15, %v1810_v58  ;;  %v15334_v51 = vld [vmem:[#allocation68_spill] sm:$0xff]  ;;  %v15351_v23 = vld [vmem:[#allocation103_spill] sm:$0xff] }
 0x131   : > { %15324 = vst [vmem:[#allocation149_spill] sm:$0xff] %v9031_v38  ;;  %v2012_v25 = vadd.f32 %v15332_v18, %v1811_v42  ;;  %v2013_v35 = vadd.f32 %v15333_v45, %v1812_v32  ;;  %v2014_v4 = vadd.f32 %v15334_v51, %v1813_v50  ;;  %v15335_v22 = vld [vmem:[#allocation72_spill] sm:$0xff]  ;;  %v9053_v1 = vadd.f32 %v15340_v8, %v1819_v29  ;;  %v15342_v50 = vld [vmem:[#allocation110_spill] sm:$0xff]  ;;  %v15349_v29 = vld [vmem:[#allocation101_spill] sm:$0xff] }
 0x132   : > { %v2015_v16 = vadd.f32 %v15335_v22, %v1814_v62  ;;  %v15336_v57 = vld [vmem:[#allocation76_spill] sm:$0xff]  ;;  %v9059_v58 = vadd.f32 %v15342_v50, %v1821_v27  ;;  %v15343_v32 = vld [vmem:[#allocation22_spill] sm:$0xff]  ;;  %v2141_v63 = vmul.f32 %v15344_v52, %v15345_v31  ;;  %v2142_v26 = vmul.f32 %v15344_v52, %v15346_v17  ;;  %v15352_v54 = vld [vmem:[#allocation107_spill] sm:$0xff]  ;;  %462 = vst [vmem:[#allocation2 + $0xea] sm:$0x3f] %v348_v36 }
 0x133   : > { %v2016_v59 = vadd.f32 %v15336_v57, %v1815_v48  ;;  %v15337_v33 = vld [vmem:[#allocation80_spill] sm:$0xff]  ;;  %v2140_v48 = vmul.f32 %v15344_v52, %v15343_v32  ;;  %v15350_v27 = vld [vmem:[#allocation102_spill] sm:$0xff]  ;;  %v2147_v34 = vmul.f32 %v15344_v52, %v15351_v23  ;;  %v2148_v39 = vmul.f32 %v15344_v52, %v15352_v54  ;;  %v15354_v45 = vld [vmem:[#allocation109_spill] sm:$0xff]  ;;  %577 = vst [vmem:[#allocation2 + $0x369] sm:$0x7f] %v348_v36 }
 0x134   : > { %v2017_v14 = vadd.f32 %v15337_v33, %v1816_v6  ;;  %v15338_v60 = vld [vmem:[#allocation84_spill] sm:$0xff]  ;;  %v2146_v46 = vmul.f32 %v15344_v52, %v15350_v27  ;;  %v2150_v51 = vmul.f32 %v15344_v52, %v15354_v45  ;;  %660 = vst [vmem:[#allocation2 + $0x5e8] sm:$0xff] %v348_v36  ;;  %775 = vst [vmem:[#allocation2 + $0x867] sm:$0xff] %v348_v36  ;;  %v15355_v22 = vld [vmem:[#allocation114_spill] sm:$0xff] }
 0x135   : > { %v9047_v13 = vadd.f32 %v15338_v60, %v1817_v0  ;;  %v15339_v12 = vld [vmem:[#allocation88_spill] sm:$0xff]  ;;  %v15348_v0 = vld [vmem:[#allocation97_spill] sm:$0xff]  ;;  %890 = vst [vmem:[#allocation2 + $0xae6] sm:$0xff] %v348_v36  ;;  %v2151_v57 = vmul.f32 %v15344_v52, %v15355_v22  ;;  %v15356_v33 = vld [vmem:[#allocation115_spill] sm:$0xff] }
 0x136   : > { %v9050_v19 = vadd.f32 %v15339_v12, %v1818_v3  ;;  %v15341_v42 = vld [vmem:[#allocation100_spill] sm:$0xff]  ;;  %v2144_v3 = vmul.f32 %v15344_v52, %v15348_v0  ;;  %v2152_v60 = vmul.f32 %v15344_v52, %v15356_v33  ;;  %v15359_v32 = vld [vmem:[#allocation118_spill] sm:$0xff]  ;;  %v15360_v17 = vld [vmem:[#allocation119_spill] sm:$0xff] }
 0x137   : > { %v9056_v37 = vadd.f32 %v15341_v42, %v1820_v49  ;;  %v15347_v62 = vld [vmem:[#allocation96_spill] sm:$0xff]  ;;  %v2145_v49 = vmul.f32 %v15344_v52, %v15349_v29  ;;  %v15358_v42 = vld [vmem:[#allocation117_spill] sm:$0xff]  ;;  %v2155_v31 = vmul.f32 %v15344_v52, %v15359_v32  ;;  %v15363_v54 = vld [vmem:[#allocation122_spill] sm:$0xff] }
 0x138   : > { %v2143_v6 = vmul.f32 %v15344_v52, %v15347_v62  ;;  %v15353_v15 = vld [vmem:[#allocation108_spill] sm:$0xff]  ;;  %v2154_v50 = vmul.f32 %v15344_v52, %v15358_v42  ;;  %v2156_v62 = vmul.f32 %v15344_v52, %v15360_v17  ;;  %v15362_v27 = vld [vmem:[#allocation121_spill] sm:$0xff]  ;;  %v15365_v33 = vld [vmem:[#allocation30_spill] sm:$0xff]  ;;  %v9109_v42 = vadd.f32 %v2142_v26, %v2005_v10 }
 0x139   : > { %v2149_v18 = vmul.f32 %v15344_v52, %v15353_v15  ;;  %v15357_v12 = vld [vmem:[#allocation116_spill] sm:$0xff]  ;;  %v2158_v36 = vmul.f32 %v15344_v52, %v15362_v27  ;;  %v355_v23 = vld [vmem:[%s7983_s26 + $0x100] sm:$0xff]  ;;  %v2159_v15 = vmul.f32 %v15344_v52, %v15363_v54  ;;  %v2208_v17 = vadd.f32 %v2144_v3, %v2007_v47  ;;  %v356_v20 = vld [vmem:[%s7983_s26 + $0x108] sm:$0xff] }
 0x13a   : > { %v2153_v8 = vmul.f32 %v15344_v52, %v15357_v12  ;;  %v15361_v0 = vld [vmem:[#allocation120_spill] sm:$0xff]  ;;  %v15364_v45 = vld [vmem:[#allocation29_spill] sm:$0xff]  ;;  %v9107_v12 = vadd.f32 %v2141_v63, %v15365_v33  ;;  %469 = vst [vmem:[#allocation2 + $0x162] sm:$0xff] %v355_v23  ;;  %584 = vst [vmem:[#allocation2 + $0x3e1] sm:$0xff] %v355_v23  ;;  %v2207_v32 = vadd.f32 %v2143_v6, %v2006_v43 }
 0x13b   : > { %v2157_v29 = vmul.f32 %v15344_v52, %v15361_v0  ;;  %v9104_v22 = vadd.f32 %v2140_v48, %v15364_v45  ;;  %782 = vst [vmem:[#allocation2 + $0x8df] sm:$0xfe] %v355_v23  ;;  %897 = vst [vmem:[#allocation2 + $0xb5e] sm:$0xfc] %v355_v23  ;;  %v2209_v0 = vadd.f32 %v2145_v49, %v2008_v41  ;;  %v9111_v38 = vld [vmem:[#allocation2 + $0x520] sm:$0xff]  ;;  %v9116_v63 = vld [vmem:[#allocation2 + $0x530] sm:$0xff] }
 0x13c   : > { %v2210_v27 = vadd.f32 %v2146_v46, %v2009_v44  ;;  %15366 = vst [vmem:[#allocation31_spill] sm:$0xff] %v9111_v38  ;;  %v2211_v52 = vadd.f32 %v2147_v34, %v2010_v7  ;;  %v2212_v54 = vadd.f32 %v2148_v39, %v2011_v21  ;;  %v2213_v48 = vadd.f32 %v2149_v18, %v2012_v25  ;;  %v9118_v10 = vld [vmem:[#allocation2 + $0x538] sm:$0xff]  ;;  %v9120_v26 = vld [vmem:[#allocation2 + $0x540] sm:$0xff]  ;;  %v9122_v7 = vld [vmem:[#allocation2 + $0x548] sm:$0xff] }
 0x13d   : > { %v2214_v45 = vadd.f32 %v2150_v51, %v2013_v35  ;;  %15368 = vst [vmem:[#allocation38_spill] sm:$0xff] %v9116_v63  ;;  %15369 = vst [vmem:[#allocation42_spill] sm:$0xff] %v9118_v10  ;;  %v2215_v43 = vadd.f32 %v2151_v57, %v2014_v4  ;;  %v2216_v47 = vadd.f32 %v2152_v60, %v2015_v16  ;;  %v9124_v21 = vld [vmem:[#allocation2 + $0x550] sm:$0xff]  ;;  %v9130_v49 = vld [vmem:[#allocation2 + $0x558] sm:$0xff] }
 0x13e   : > { %470 = vst [vmem:[#allocation2 + $0x16a] sm:$0x3f] %v356_v20  ;;  %585 = vst [vmem:[#allocation2 + $0x3e9] sm:$0x7f] %v356_v20  ;;  %v2217_v41 = vadd.f32 %v2153_v8, %v2016_v59  ;;  %v2218_v44 = vadd.f32 %v2154_v50, %v2017_v14  ;;  %v2219_v25 = vadd.f32 %v2155_v31, %v9047_v13  ;;  %v15374_v4 = vld [vmem:[#allocation17_spill] sm:$0xff]  ;;  %v7398_v46 = vld [vmem:[#allocation2 + $0x72] sm:$0xff] }
 0x13f   : > { %668 = vst [vmem:[#allocation2 + $0x668] sm:$0xff] %v356_v20  ;;  %783 = vst [vmem:[#allocation2 + $0x8e7] sm:$0xff] %v356_v20  ;;  %v2220_v35 = vadd.f32 %v2156_v62, %v9050_v19  ;;  %v2221_v6 = vadd.f32 %v2157_v29, %v9053_v1  ;;  %v2222_v3 = vadd.f32 %v2158_v36, %v9056_v37  ;;  %v7399_v39 = vld [vmem:[#allocation2 + $0x578] sm:$0xff]  ;;  %v7400_v51 = vld [vmem:[#allocation2 + $0x82] sm:$0xff] }
 0x140   : > { %898 = vst [vmem:[#allocation2 + $0xb66] sm:$0xff] %v356_v20  ;;  %15370 = vst [vmem:[#allocation46_spill] sm:$0xff] %v9120_v26  ;;  %v2223_v20 = vadd.f32 %v2159_v15, %v9059_v58  ;;  %v2341_v16 = vmul.f32 %v15374_v4, %v9111_v38  ;;  %v2342_v59 = vmul.f32 %v15374_v4, %v9114_v40  ;;  %v7401_v60 = vld [vmem:[#allocation2 + $0x588] sm:$0xff]  ;;  %v7402_v50 = vld [vmem:[#allocation2 + $0x92] sm:$0xff] }
 0x141   : > { %15371 = vst [vmem:[#allocation52_spill] sm:$0xff] %v9122_v7  ;;  %15372 = vst [vmem:[#allocation56_spill] sm:$0xff] %v9124_v21  ;;  %v2343_v14 = vmul.f32 %v15374_v4, %v9116_v63  ;;  %v2344_v13 = vmul.f32 %v15374_v4, %v9118_v10  ;;  %v2345_v19 = vmul.f32 %v15374_v4, %v9120_v26  ;;  %v7403_v62 = vld [vmem:[#allocation2 + $0x598] sm:$0xff]  ;;  %v7404_v36 = vld [vmem:[#allocation2 + $0xa2] sm:$0xff] }
 0x142   : > { %15373 = vst [vmem:[#allocation60_spill] sm:$0xff] %v9130_v49  ;;  %v2346_v1 = vmul.f32 %v15374_v4, %v9122_v7  ;;  %v2347_v37 = vmul.f32 %v15374_v4, %v9124_v21  ;;  %v2348_v58 = vmul.f32 %v15374_v4, %v9130_v49  ;;  %v2351_v34 = vmul.f32 %v7398_v46, %v15374_v4  ;;  %v7405_v15 = vld [vmem:[#allocation2 + $0x5a8] sm:$0xff]  ;;  %v7406_v46 = vld [vmem:[#allocation2 + $0xb2] sm:$0xff]  ;;  %v15376_v63 = vld [vmem:[#allocation21_spill] sm:$0xff] }
 0x143   : > { %v2352_v18 = vmul.f32 %v7399_v39, %v15374_v4  ;;  %v2353_v57 = vmul.f32 %v7400_v51, %v15374_v4  ;;  %v2354_v8 = vmul.f32 %v7401_v60, %v15374_v4  ;;  %v2355_v31 = vmul.f32 %v7402_v50, %v15374_v4  ;;  %v15375_v49 = vld [vmem:[#allocation12_spill] sm:$0xff] }
 0x144   : > { %v2356_v29 = vmul.f32 %v7403_v62, %v15374_v4  ;;  %v2357_v23 = vmul.f32 %v7404_v36, %v15374_v4  ;;  %v2358_v33 = vmul.f32 %v7405_v15, %v15374_v4  ;;  %v2359_v39 = vmul.f32 %v7406_v46, %v15374_v4  ;;  %v15377_v15 = vld [vmem:[#allocation27_spill] sm:$0xff] }
 0x145   : > { %v2360_v51 = vmul.f32 %v15374_v4, %v15375_v49  ;;  %v2405_v60 = vadd.f32 %v2341_v16, %v9104_v22  ;;  %v2406_v21 = vadd.f32 %v2342_v59, %v9107_v12  ;;  %v2407_v50 = vadd.f32 %v2343_v14, %v9109_v42  ;;  %v15387_v59 = vld [vmem:[#allocation125_spill] sm:$0xff] }
 0x146   : > { %v2408_v7 = vadd.f32 %v2344_v13, %v2207_v32  ;;  %v2409_v62 = vadd.f32 %v2345_v19, %v2208_v17  ;;  %v2410_v26 = vadd.f32 %v2346_v1, %v2209_v0  ;;  %v2411_v10 = vadd.f32 %v2347_v37, %v2210_v27  ;;  %v15378_v32 = vld [vmem:[#allocation18_spill] sm:$0xff]  ;;  %v15389_v1 = vld [vmem:[#allocation127_spill] sm:$0xff] }
 0x147   : > { %v2412_v36 = vadd.f32 %v2348_v58, %v2211_v52  ;;  %v2413_v40 = vadd.f32 %v15376_v63, %v2212_v54  ;;  %v2414_v38 = vadd.f32 %v15377_v15, %v2213_v48  ;;  %v2415_v5 = vadd.f32 %v2351_v34, %v2214_v45  ;;  %v15379_v63 = vld [vmem:[#allocation23_spill] sm:$0xff]  ;;  %v15388_v13 = vld [vmem:[#allocation126_spill] sm:$0xff]  ;;  %v15390_v58 = vld [vmem:[#allocation128_spill] sm:$0xff] }
 0x148   : > { %v2416_v46 = vadd.f32 %v2352_v18, %v2215_v43  ;;  %v2417_v2 = vadd.f32 %v2353_v57, %v2216_v47  ;;  %v2418_v24 = vadd.f32 %v2354_v8, %v2217_v41  ;;  %v2419_v49 = vadd.f32 %v2355_v31, %v2218_v44  ;;  %v15380_v43 = vld [vmem:[#allocation24_spill] sm:$0xff]  ;;  %v15381_v47 = vld [vmem:[#allocation123_spill] sm:$0xff]  ;;  %v15382_v41 = vld [vmem:[#allocation25_spill] sm:$0xff] }
 0x149   : > { %v2420_v4 = vadd.f32 %v2356_v29, %v2219_v25  ;;  %v2421_v22 = vadd.f32 %v2357_v23, %v2220_v35  ;;  %v2422_v16 = vadd.f32 %v2358_v33, %v2221_v6  ;;  %v2423_v12 = vadd.f32 %v2359_v39, %v2222_v3  ;;  %v15383_v44 = vld [vmem:[#allocation26_spill] sm:$0xff]  ;;  %v15384_v25 = vld [vmem:[#allocation28_spill] sm:$0xff] }
 0x14a   : > { %v2424_v42 = vadd.f32 %v2360_v51, %v2223_v20  ;;  %v2542_v17 = vmul.f32 %v15378_v32, %v8826_v9  ;;  %v2543_v0 = vmul.f32 %v15378_v32, %v8828_v11  ;;  %v2544_v27 = vmul.f32 %v15378_v32, %v8834_v53  ;;  %v7407_v35 = vld [vmem:[%s7991_s15 + $0x8] ss:$0 sm:$0xff]  ;;  %v15386_v3 = vld [vmem:[#allocation124_spill] sm:$0xff] }
 0x14b   : > { %v2545_v52 = vmul.f32 %v15378_v32, %v8836_v55  ;;  %v2546_v54 = vmul.f32 %v15378_v32, %v8838_v56  ;;  %v2547_v48 = vmul.f32 %v15378_v32, %v8844_v30  ;;  %v2548_v45 = vmul.f32 %v15378_v32, %v8846_v61 }
 0x14c   : > { %v2549_v9 = vmul.f32 %v15378_v32, %v8848_v28  ;;  %v2550_v11 = vmul.f32 %v15378_v32, %v15379_v63  ;;  %v2551_v53 = vmul.f32 %v15378_v32, %v15380_v43  ;;  %v2552_v55 = vmul.f32 %v15378_v32, %v15381_v47  ;;  %v15385_v28 = vld [vmem:[#allocation13_spill] sm:$0xff] }
 0x14d   : > { %v2553_v56 = vmul.f32 %v15378_v32, %v15382_v41  ;;  %v2554_v30 = vmul.f32 %v15378_v32, %v15383_v44  ;;  %v2555_v61 = vmul.f32 %v15378_v32, %v15384_v25  ;;  %v2556_v6 = vmul.f32 %v7407_v35, %v15385_v28 }
 0x14e   : > { %v2557_v20 = vmul.f32 %v7407_v35, %v15386_v3  ;;  %v2558_v14 = vmul.f32 %v7407_v35, %v15387_v59  ;;  %v2559_v19 = vmul.f32 %v7407_v35, %v15388_v13  ;;  %v2560_v37 = vmul.f32 %v7407_v35, %v15389_v1  ;;  %v15407_v3 = vld [vmem:[#allocation144_spill] sm:$0xff]  ;;  %v15408_v59 = vld [vmem:[#allocation145_spill] sm:$0xff]  ;;  %v15409_v13 = vld [vmem:[#allocation146_spill] sm:$0xff] }
 0x14f   : > { %v2561_v34 = vmul.f32 %v7407_v35, %v15390_v58  ;;  %v2606_v18 = vadd.f32 %v2542_v17, %v2405_v60  ;;  %v2607_v57 = vadd.f32 %v2543_v0, %v2406_v21  ;;  %v2608_v8 = vadd.f32 %v2544_v27, %v2407_v50  ;;  %v7408_v60 = vld [vmem:[%s7991_s15 + $0x9] ss:$0 sm:$0xff]  ;;  %v15401_v27 = vld [vmem:[#allocation139_spill] sm:$0xff] }
 0x150   : > { %v2609_v31 = vadd.f32 %v2545_v52, %v2408_v7  ;;  %v2610_v29 = vadd.f32 %v2546_v54, %v2409_v62  ;;  %v2611_v23 = vadd.f32 %v2547_v48, %v2410_v26  ;;  %v2612_v33 = vadd.f32 %v2548_v45, %v2411_v10  ;;  %v15391_v7 = vld [vmem:[#allocation129_spill] sm:$0xff]  ;;  %v15392_v62 = vld [vmem:[#allocation130_spill] sm:$0xff]  ;;  %v15393_v10 = vld [vmem:[#allocation131_spill] sm:$0xff] }
 0x151   : > { %v2613_v39 = vadd.f32 %v2549_v9, %v2412_v36  ;;  %v2614_v51 = vadd.f32 %v2550_v11, %v2413_v40  ;;  %v2615_v15 = vadd.f32 %v2551_v53, %v2414_v38  ;;  %v2616_v32 = vadd.f32 %v2552_v55, %v2415_v5  ;;  %v15394_v40 = vld [vmem:[#allocation132_spill] sm:$0xff]  ;;  %v15395_v5 = vld [vmem:[#allocation133_spill] sm:$0xff]  ;;  %v15404_v53 = vld [vmem:[#allocation142_spill] sm:$0xff] }
 0x152   : > { %v2617_v63 = vadd.f32 %v2553_v56, %v2416_v46  ;;  %v2618_v43 = vadd.f32 %v2554_v30, %v2417_v2  ;;  %v2619_v47 = vadd.f32 %v2555_v61, %v2418_v24  ;;  %v2620_v41 = vadd.f32 %v2556_v6, %v2419_v49  ;;  %v15396_v2 = vld [vmem:[#allocation134_spill] sm:$0xff]  ;;  %v15397_v49 = vld [vmem:[#allocation135_spill] sm:$0xff]  ;;  %v15402_v54 = vld [vmem:[#allocation140_spill] sm:$0xff] }
 0x153   : > { %v2621_v44 = vadd.f32 %v2557_v20, %v2420_v4  ;;  %v2622_v25 = vadd.f32 %v2558_v14, %v2421_v22  ;;  %v2623_v28 = vadd.f32 %v2559_v19, %v2422_v16  ;;  %v2624_v35 = vadd.f32 %v2560_v37, %v2423_v12  ;;  %v15398_v22 = vld [vmem:[#allocation136_spill] sm:$0xff]  ;;  %v15399_v12 = vld [vmem:[#allocation137_spill] sm:$0xff]  ;;  %v15405_v56 = vld [vmem:[#allocation14_spill] sm:$0xff] }
 0x154   : > { %v2625_v21 = vadd.f32 %v2561_v34, %v2424_v42  ;;  %v2743_v50 = vmul.f32 %v7408_v60, %v15391_v7  ;;  %v2744_v26 = vmul.f32 %v7408_v60, %v15392_v62  ;;  %v2745_v36 = vmul.f32 %v7408_v60, %v15393_v10  ;;  %v15400_v42 = vld [vmem:[#allocation138_spill] sm:$0xff]  ;;  %v15403_v45 = vld [vmem:[#allocation141_spill] sm:$0xff]  ;;  %v357_v11 = vld [vmem:[%s7983_s26 + $0x110] sm:$0xff] }
 0x155   : > { %v2746_v38 = vmul.f32 %v7408_v60, %v15394_v40  ;;  %v2747_v46 = vmul.f32 %v7408_v60, %v15395_v5  ;;  %v2748_v24 = vmul.f32 %v7408_v60, %v15396_v2  ;;  %v2749_v4 = vmul.f32 %v7408_v60, %v15397_v49  ;;  %v15406_v61 = vld [vmem:[#allocation143_spill] sm:$0xff]  ;;  %471 = vst [vmem:[#allocation2 + $0x172] sm:$0xff] %v357_v11 }
 0x156   : > { %v2750_v16 = vmul.f32 %v7408_v60, %v15398_v22  ;;  %v2751_v17 = vmul.f32 %v7408_v60, %v15399_v12  ;;  %v2752_v0 = vmul.f32 %v7408_v60, %v15400_v42  ;;  %v2753_v52 = vmul.f32 %v7408_v60, %v15401_v27  ;;  %586 = vst [vmem:[#allocation2 + $0x3f1] sm:$0xff] %v357_v11  ;;  %v15410_v1 = vld [vmem:[#allocation147_spill] sm:$0xff] }
 0x157   : > { %v2754_v48 = vmul.f32 %v7408_v60, %v15402_v54  ;;  %v2755_v9 = vmul.f32 %v7408_v60, %v15403_v45  ;;  %v2756_v55 = vmul.f32 %v7408_v60, %v15404_v53  ;;  %v2757_v30 = vmul.f32 %v7408_v60, %v15405_v56  ;;  %784 = vst [vmem:[#allocation2 + $0x8ef] sm:$0xfe] %v357_v11 }
 0x158   : > { %v2758_v6 = vmul.f32 %v7408_v60, %v15406_v61  ;;  %v2759_v20 = vmul.f32 %v7408_v60, %v15407_v3  ;;  %899 = vst [vmem:[#allocation2 + $0xb6e] sm:$0xfc] %v357_v11  ;;  %v2760_v14 = vmul.f32 %v7408_v60, %v15408_v59  ;;  %v2761_v19 = vmul.f32 %v7408_v60, %v15409_v13  ;;  %v9266_v3 = vld [vmem:[#allocation2 + $0x2e8] sm:$0xff]  ;;  %v15426_v59 = vld [vmem:[#allocation85_spill] sm:$0xff] }
 0x159   : > { %v2762_v37 = vmul.f32 %v7408_v60, %v15410_v1  ;;  %v2807_v58 = vadd.f32 %v2743_v50, %v2606_v18  ;;  %v2808_v34 = vadd.f32 %v2744_v26, %v2607_v57  ;;  %v2809_v7 = vadd.f32 %v2745_v36, %v2608_v8  ;;  %v15413_v57 = vld [vmem:[#allocation32_spill] sm:$0xff]  ;;  %v15420_v26 = vld [vmem:[#allocation61_spill] sm:$0xff]  ;;  %v15428_v1 = vld [vmem:[#allocation94_spill] sm:$0xff] }
 0x15a   : > { %v2810_v62 = vadd.f32 %v2746_v38, %v2609_v31  ;;  %v2811_v10 = vadd.f32 %v2747_v46, %v2610_v29  ;;  %v2812_v40 = vadd.f32 %v2748_v24, %v2611_v23  ;;  %v2813_v5 = vadd.f32 %v2749_v4, %v2612_v33  ;;  %v9230_v31 = vld [vmem:[%s7991_s15 + $0xb] ss:$0 sm:$0xff]  ;;  %v15421_v38 = vld [vmem:[#allocation65_spill] sm:$0xff]  ;;  %v9256_v4 = vld [vmem:[#allocation2 + $0x2d0] sm:$0xff] }
 0x15b   : > { %v2814_v2 = vadd.f32 %v2750_v16, %v2613_v39  ;;  %v2815_v49 = vadd.f32 %v2751_v17, %v2614_v51  ;;  %v2816_v22 = vadd.f32 %v2752_v0, %v2615_v15  ;;  %v2817_v12 = vadd.f32 %v2753_v52, %v2616_v32  ;;  %v3071_v29 = vld [vmem:[#allocation2 + $0x2a0] sm:$0xff]  ;;  %v3072_v23 = vld [vmem:[#allocation2 + $0x2a8] sm:$0xff]  ;;  %v9258_v16 = vld [vmem:[#allocation2 + $0x2d8] sm:$0xff] }
 0x15c   : > { %v2818_v42 = vadd.f32 %v2754_v48, %v2617_v63  ;;  %v2819_v27 = vadd.f32 %v2755_v9, %v2618_v43  ;;  %v2820_v54 = vadd.f32 %v2756_v55, %v2619_v47  ;;  %v2821_v45 = vadd.f32 %v2757_v30, %v2620_v41  ;;  %v15414_v33 = vld [vmem:[#allocation35_spill] sm:$0xff]  ;;  %v15422_v17 = vld [vmem:[#allocation69_spill] sm:$0xff] }
 0x15d   : > { %v2822_v11 = vadd.f32 %v2758_v6, %v2621_v44  ;;  %v2823_v53 = vadd.f32 %v2759_v20, %v2622_v25  ;;  %v2824_v56 = vadd.f32 %v2760_v14, %v2623_v28  ;;  %v9222_v60 = vadd.f32 %v2761_v19, %v2624_v35  ;;  %v15415_v51 = vld [vmem:[#allocation39_spill] sm:$0xff]  ;;  %v9246_v44 = vld [vmem:[#allocation2 + $0x2b8] sm:$0xff]  ;;  %v9248_v25 = vld [vmem:[#allocation2 + $0x2c0] sm:$0xff] }
 0x15e   : > { %v9224_v18 = vadd.f32 %v2762_v37, %v2625_v21  ;;  %v9227_v8 = vadd.f32 %v15413_v57, %v2807_v58  ;;  %v9233_v39 = vadd.f32 %v15414_v33, %v2808_v34  ;;  %v9236_v15 = vadd.f32 %v15415_v51, %v2809_v7  ;;  %v15416_v32 = vld [vmem:[#allocation43_spill] sm:$0xff]  ;;  %v15418_v28 = vld [vmem:[#allocation53_spill] sm:$0xff]  ;;  %v15429_v58 = vld [vmem:[#allocation104_spill] sm:$0xff] }
 0x15f   : > { %15411 = vst [vmem:[#allocation64_spill] sm:$0xff] %v9222_v60  ;;  %v9239_v63 = vadd.f32 %v15416_v32, %v2810_v62  ;;  %v15417_v43 = vld [vmem:[#allocation47_spill] sm:$0xff]  ;;  %v3012_v35 = vadd.f32 %v15418_v28, %v2812_v40  ;;  %v15419_v21 = vld [vmem:[#allocation57_spill] sm:$0xff]  ;;  %v3014_v36 = vadd.f32 %v15420_v26, %v2814_v2  ;;  %v3015_v46 = vadd.f32 %v15421_v38, %v2815_v49 }
 0x160   : > { %15412 = vst [vmem:[#allocation68_spill] sm:$0xff] %v9224_v18  ;;  %v9242_v47 = vadd.f32 %v15417_v43, %v2811_v10  ;;  %v9244_v41 = vld [vmem:[#allocation2 + $0x2b0] sm:$0xff]  ;;  %v3013_v50 = vadd.f32 %v15419_v21, %v2813_v5  ;;  %v9254_v24 = vld [vmem:[#allocation2 + $0x2c8] sm:$0xff]  ;;  %v3016_v0 = vadd.f32 %v15422_v17, %v2816_v22  ;;  %v15423_v52 = vld [vmem:[#allocation73_spill] sm:$0xff]  ;;  %v3020_v14 = vadd.f32 %v15426_v59, %v2820_v54 }
 0x161   : > { %v3017_v48 = vadd.f32 %v15423_v52, %v2817_v12  ;;  %v15424_v9 = vld [vmem:[#allocation77_spill] sm:$0xff]  ;;  %v9268_v20 = vld [vmem:[#allocation2 + $0x2f0] sm:$0xff]  ;;  %v3022_v37 = vadd.f32 %v15428_v1, %v2822_v11  ;;  %v3023_v34 = vadd.f32 %v15429_v58, %v2823_v53  ;;  %v9278_v10 = vld [vmem:[#allocation2 + $0x308] sm:$0xff]  ;;  %v3141_v22 = vmul.f32 %v9230_v31, %v3071_v29 }
 0x162   : > { %v3018_v55 = vadd.f32 %v15424_v9, %v2818_v42  ;;  %v15425_v30 = vld [vmem:[#allocation81_spill] sm:$0xff]  ;;  %15431 = vst [vmem:[#allocation76_spill] sm:$0xff] %v9278_v10  ;;  %v15432_v40 = vld [vmem:[#allocation111_spill] sm:$0xff]  ;;  %v3142_v12 = vmul.f32 %v9230_v31, %v3072_v23  ;;  %v3143_v42 = vmul.f32 %v9230_v31, %v9244_v41  ;;  %v3144_v53 = vmul.f32 %v9230_v31, %v9246_v44  ;;  %v15440_v58 = vld [vmem:[#allocation50_spill] sm:$0xff] }
 0x163   : > { %v3019_v61 = vadd.f32 %v15425_v30, %v2819_v27  ;;  %v9264_v6 = vld [vmem:[#allocation2 + $0x2e0] sm:$0xff]  ;;  %v9274_v7 = vld [vmem:[#allocation2 + $0x2f8] sm:$0xff]  ;;  %v3024_v5 = vadd.f32 %v15432_v40, %v2824_v56  ;;  %v9281_v2 = vld [vmem:[#allocation2 + $0x310] sm:$0xff]  ;;  %v3145_v56 = vmul.f32 %v9230_v31, %v9248_v25  ;;  %v3146_v57 = vmul.f32 %v9230_v31, %v9254_v24 }
 0x164   : > { %v15427_v13 = vld [vmem:[#allocation89_spill] sm:$0xff]  ;;  %15433 = vst [vmem:[#allocation80_spill] sm:$0xff] %v9281_v2  ;;  %v9294_v11 = vld [vmem:[#allocation2 + $0x330] sm:$0xff]  ;;  %v3147_v29 = vmul.f32 %v9230_v31, %v9256_v4  ;;  %v3148_v33 = vmul.f32 %v9230_v31, %v9258_v16  ;;  %v3149_v51 = vmul.f32 %v9230_v31, %v9264_v6  ;;  %v3150_v32 = vmul.f32 %v9230_v31, %v9266_v3 }
 0x165   : > { %v3021_v19 = vadd.f32 %v15427_v13, %v2821_v45  ;;  %v9276_v62 = vld [vmem:[#allocation2 + $0x300] sm:$0xff]  ;;  %v9283_v49 = vld [vmem:[#allocation2 + $0x318] sm:$0xff]  ;;  %v9292_v45 = vld [vmem:[#allocation2 + $0x328] sm:$0xff]  ;;  %15437 = vst [vmem:[#allocation100_spill] sm:$0xff] %v9294_v11  ;;  %v3151_v43 = vmul.f32 %v9230_v31, %v9268_v20  ;;  %v3152_v28 = vmul.f32 %v9230_v31, %v9274_v7  ;;  %v3154_v26 = vmul.f32 %v9230_v31, %v9278_v10 }
 0x166   : > { %15430 = vst [vmem:[#allocation72_spill] sm:$0xff] %v9276_v62  ;;  %15434 = vst [vmem:[#allocation84_spill] sm:$0xff] %v9283_v49  ;;  %v358_v27 = vld [vmem:[%s7983_s26 + $0x118] sm:$0xff]  ;;  %v9290_v54 = vld [vmem:[#allocation2 + $0x320] sm:$0xff]  ;;  %v3153_v21 = vmul.f32 %v9230_v31, %v9276_v62  ;;  %v3155_v38 = vmul.f32 %v9230_v31, %v9281_v2  ;;  %v3156_v17 = vmul.f32 %v9230_v31, %v9283_v49 }
 0x167   : > { %15435 = vst [vmem:[#allocation88_spill] sm:$0xff] %v9290_v54  ;;  %15436 = vst [vmem:[#allocation93_spill] sm:$0xff] %v9292_v45  ;;  %v9304_v23 = vld [vmem:[#allocation2 + $0x338] sm:$0xff]  ;;  %v3157_v52 = vmul.f32 %v9230_v31, %v9290_v54  ;;  %v3158_v9 = vmul.f32 %v9230_v31, %v9292_v45  ;;  %v3159_v30 = vmul.f32 %v9230_v31, %v9294_v11  ;;  %v9428_v10 = vld [vmem:[#allocation2 + $0x7b0] sm:$0xff] }
 0x168   : > { %472 = vst [vmem:[#allocation2 + $0x17a] sm:$0x3f] %v358_v27  ;;  %587 = vst [vmem:[#allocation2 + $0x3f9] sm:$0x7f] %v358_v27  ;;  %v3160_v59 = vmul.f32 %v9230_v31, %v9304_v23  ;;  %v15439_v13 = vld [vmem:[#allocation49_spill] sm:$0xff]  ;;  %v3206_v40 = vadd.f32 %v3142_v12, %v15440_v58  ;;  %v3208_v18 = vadd.f32 %v3144_v53, %v9233_v39  ;;  %v9377_v53 = vld [vmem:[#allocation2 + $0x588] sm:$0xff] }
 0x169   : > { %670 = vst [vmem:[#allocation2 + $0x678] sm:$0xff] %v358_v27  ;;  %785 = vst [vmem:[#allocation2 + $0x8f7] sm:$0xff] %v358_v27  ;;  %v3205_v1 = vadd.f32 %v3141_v22, %v15439_v13  ;;  %v3209_v60 = vadd.f32 %v3145_v56, %v9236_v15  ;;  %v3210_v54 = vadd.f32 %v3146_v57, %v9239_v63  ;;  %v7174_v22 = vld [vmem:[%s7991_s15 + $0xc] ss:$0 sm:$0xff]  ;;  %v9379_v56 = vld [vmem:[#allocation2 + $0x590] sm:$0xff] }
 0x16a   : > { %900 = vst [vmem:[#allocation2 + $0xb76] sm:$0xff] %v358_v27  ;;  %15438 = vst [vmem:[#allocation110_spill] sm:$0xff] %v9304_v23  ;;  %v3207_v27 = vadd.f32 %v3143_v42, %v9227_v8  ;;  %v3211_v45 = vadd.f32 %v3147_v29, %v9242_v47  ;;  %v9339_v49 = vadd.f32 %v3148_v33, %v3012_v35  ;;  %v9356_v63 = vld [vmem:[#allocation2 + $0x560] sm:$0xff]  ;;  %v9358_v47 = vld [vmem:[#allocation2 + $0x568] sm:$0xff] }
 0x16b   : > { %v9341_v11 = vadd.f32 %v3149_v51, %v3013_v50  ;;  %v9343_v2 = vadd.f32 %v3150_v32, %v3014_v36  ;;  %v9345_v31 = vadd.f32 %v3151_v43, %v3015_v46  ;;  %v9348_v12 = vadd.f32 %v3152_v28, %v3016_v0  ;;  %15441 = vst [vmem:[#allocation22_spill] sm:$0xff] %v9356_v63  ;;  %v9360_v35 = vld [vmem:[#allocation2 + $0x570] sm:$0xff]  ;;  %v9381_v57 = vld [vmem:[#allocation2 + $0x598] sm:$0xff]  ;;  %v15450_v29 = vld [vmem:[#allocation34_spill] sm:$0xff] }
 0x16c   : > { %v9350_v8 = vadd.f32 %v3153_v21, %v3017_v48  ;;  %v9352_v39 = vadd.f32 %v3154_v26, %v3018_v55  ;;  %v9354_v15 = vadd.f32 %v3155_v38, %v3019_v61  ;;  %15442 = vst [vmem:[#allocation16_spill] sm:$0xff] %v9358_v47  ;;  %15443 = vst [vmem:[#allocation91_spill] sm:$0xff] %v9360_v35  ;;  %v9370_v48 = vld [vmem:[#allocation2 + $0x578] sm:$0xff]  ;;  %v9372_v55 = vld [vmem:[#allocation2 + $0x580] sm:$0xff] }
 0x16d   : > { %v9362_v50 = vadd.f32 %v3156_v17, %v3020_v14  ;;  %v9364_v36 = vadd.f32 %v3157_v52, %v3021_v19  ;;  %v9366_v46 = vadd.f32 %v3158_v9, %v3022_v37  ;;  %v9368_v0 = vadd.f32 %v3159_v30, %v3023_v34  ;;  %15444 = vst [vmem:[#allocation95_spill] sm:$0xff] %v9370_v48  ;;  %v359_v61 = vld [vmem:[%s7983_s26 + $0x120] sm:$0xff]  ;;  %v15449_v14 = vld [vmem:[#allocation31_spill] sm:$0xff]  ;;  %v15457_v38 = vld [vmem:[#allocation52_spill] sm:$0xff] }
 0x16e   : > { %15445 = vst [vmem:[#allocation96_spill] sm:$0xff] %v9372_v55  ;;  %v9375_v42 = vadd.f32 %v3160_v59, %v3024_v5  ;;  %15446 = vst [vmem:[#allocation97_spill] sm:$0xff] %v9377_v53  ;;  %v3341_v19 = vmul.f32 %v7174_v22, %v15449_v14  ;;  %v3342_v37 = vmul.f32 %v7174_v22, %v15450_v29  ;;  %v15451_v33 = vld [vmem:[#allocation38_spill] sm:$0xff]  ;;  %v9390_v32 = vld [vmem:[#allocation2 + $0x5b0] sm:$0xff] }
 0x16f   : > { %15447 = vst [vmem:[#allocation101_spill] sm:$0xff] %v9379_v56  ;;  %15448 = vst [vmem:[#allocation102_spill] sm:$0xff] %v9381_v57  ;;  %v3343_v34 = vmul.f32 %v7174_v22, %v15451_v33  ;;  %v9386_v51 = vld [vmem:[#allocation2 + $0x5a0] sm:$0xff]  ;;  %v9388_v5 = vld [vmem:[#allocation2 + $0x5a8] sm:$0xff]  ;;  %v3346_v17 = vmul.f32 %v7174_v22, %v15457_v38  ;;  %v3349_v58 = vmul.f32 %v7174_v22, %v9356_v63 }
 0x170   : > { %473 = vst [vmem:[#allocation2 + $0x182] sm:$0xff] %v359_v61  ;;  %588 = vst [vmem:[#allocation2 + $0x401] sm:$0xff] %v359_v61  ;;  %v15455_v43 = vld [vmem:[#allocation42_spill] sm:$0xff]  ;;  %v15458_v52 = vld [vmem:[#allocation56_spill] sm:$0xff]  ;;  %v3351_v14 = vmul.f32 %v7174_v22, %v9360_v35  ;;  %v3352_v29 = vmul.f32 %v7174_v22, %v9370_v48  ;;  %v3353_v33 = vmul.f32 %v7174_v22, %v9372_v55 }
 0x171   : > { %786 = vst [vmem:[#allocation2 + $0x8ff] sm:$0xfe] %v359_v61  ;;  %901 = vst [vmem:[#allocation2 + $0xb7e] sm:$0xfc] %v359_v61  ;;  %v3344_v28 = vmul.f32 %v7174_v22, %v15455_v43  ;;  %v15456_v21 = vld [vmem:[#allocation46_spill] sm:$0xff]  ;;  %v3347_v9 = vmul.f32 %v7174_v22, %v15458_v52  ;;  %v9396_v30 = vld [vmem:[#allocation2 + $0x5b8] sm:$0xff]  ;;  %v3350_v61 = vmul.f32 %v7174_v22, %v9358_v47 }
 0x172   : > { %15452 = vst [vmem:[#allocation103_spill] sm:$0xff] %v9386_v51  ;;  %15453 = vst [vmem:[#allocation107_spill] sm:$0xff] %v9388_v5  ;;  %v3345_v26 = vmul.f32 %v7174_v22, %v15456_v21  ;;  %v15460_v59 = vld [vmem:[#allocation60_spill] sm:$0xff]  ;;  %v3354_v43 = vmul.f32 %v7174_v22, %v9377_v53  ;;  %v3355_v21 = vmul.f32 %v7174_v22, %v9379_v56  ;;  %v9418_v55 = vld [vmem:[%s7991_s15 + $0xd] ss:$0 sm:$0xff] }
 0x173   : > { %15454 = vst [vmem:[#allocation108_spill] sm:$0xff] %v9390_v32  ;;  %15459 = vst [vmem:[#allocation109_spill] sm:$0xff] %v9396_v30  ;;  %v3348_v13 = vmul.f32 %v7174_v22, %v15460_v59  ;;  %v3356_v38 = vmul.f32 %v7174_v22, %v9381_v57  ;;  %v3357_v52 = vmul.f32 %v7174_v22, %v9386_v51  ;;  %v3471_v53 = vld [vmem:[#allocation2 + $0x7a0] sm:$0xff] }
 0x174   : > { %v3358_v59 = vmul.f32 %v7174_v22, %v9388_v5  ;;  %v3359_v63 = vmul.f32 %v7174_v22, %v9390_v32  ;;  %v3360_v47 = vmul.f32 %v7174_v22, %v9396_v30  ;;  %v9411_v23 = vadd.f32 %v3341_v19, %v3205_v1  ;;  %v3472_v32 = vld [vmem:[#allocation2 + $0x7a8] sm:$0xff]  ;;  %15461 = vst [vmem:[#allocation114_spill] sm:$0xff] %v9428_v10  ;;  %v9430_v1 = vld [vmem:[#allocation2 + $0x7b8] sm:$0xff]  ;;  %v9448_v22 = vld [vmem:[#allocation2 + $0x7d0] sm:$0xff] }
 0x175   : > { %v9413_v35 = vadd.f32 %v3342_v37, %v3206_v40  ;;  %v9415_v48 = vadd.f32 %v3343_v34, %v3207_v27  ;;  %v9420_v56 = vadd.f32 %v3344_v28, %v3208_v18  ;;  %v9422_v57 = vadd.f32 %v3345_v26, %v3209_v60  ;;  %15462 = vst [vmem:[#allocation115_spill] sm:$0xff] %v9430_v1  ;;  %v9464_v37 = vld [vmem:[#allocation2 + $0x7e0] sm:$0xff]  ;;  %v9466_v34 = vld [vmem:[#allocation2 + $0x7e8] sm:$0xff]  ;;  %v9482_v26 = vld [vmem:[#allocation2 + $0x7f8] sm:$0xff] }
 0x176   : > { %v9424_v51 = vadd.f32 %v3346_v17, %v3210_v54  ;;  %v9426_v5 = vadd.f32 %v3347_v9, %v3211_v45  ;;  %v9433_v40 = vadd.f32 %v3348_v13, %v9339_v49  ;;  %v9436_v27 = vadd.f32 %v3349_v58, %v9341_v11  ;;  %v9444_v54 = vld [vmem:[#allocation2 + $0x7c0] sm:$0xff]  ;;  %v9446_v45 = vld [vmem:[#allocation2 + $0x7c8] sm:$0xff]  ;;  %15465 = vst [vmem:[#allocation118_spill] sm:$0xff] %v9448_v22  ;;  %v9491_v13 = vld [vmem:[#allocation2 + $0x810] sm:$0xff] }
 0x177   : > { %v9439_v18 = vadd.f32 %v3350_v61, %v9343_v2  ;;  %v9442_v60 = vadd.f32 %v3351_v14, %v9345_v31  ;;  %15463 = vst [vmem:[#allocation116_spill] sm:$0xff] %v9444_v54  ;;  %15464 = vst [vmem:[#allocation117_spill] sm:$0xff] %v9446_v45  ;;  %v9451_v19 = vadd.f32 %v3352_v29, %v9348_v12  ;;  %v9462_v31 = vld [vmem:[#allocation2 + $0x7d8] sm:$0xff]  ;;  %v9484_v17 = vld [vmem:[#allocation2 + $0x800] sm:$0xff] }
 0x178   : > { %v9454_v49 = vadd.f32 %v3353_v33, %v9350_v8  ;;  %v9457_v11 = vadd.f32 %v3354_v43, %v9352_v39  ;;  %v9460_v2 = vadd.f32 %v3355_v21, %v9354_v15  ;;  %15466 = vst [vmem:[#allocation119_spill] sm:$0xff] %v9462_v31  ;;  %15467 = vst [vmem:[#allocation120_spill] sm:$0xff] %v9464_v37  ;;  %v9480_v15 = vld [vmem:[#allocation2 + $0x7f0] sm:$0xff]  ;;  %v9499_v58 = vld [vmem:[#allocation2 + $0x820] sm:$0xff] }
 0x179   : > { %15468 = vst [vmem:[#allocation121_spill] sm:$0xff] %v9466_v34  ;;  %v9469_v28 = vadd.f32 %v3356_v38, %v9362_v50  ;;  %v9472_v12 = vadd.f32 %v3357_v52, %v9364_v36  ;;  %v9475_v8 = vadd.f32 %v3358_v59, %v9366_v46  ;;  %v9478_v39 = vadd.f32 %v3359_v63, %v9368_v0  ;;  %v9489_v50 = vld [vmem:[#allocation2 + $0x808] sm:$0xff]  ;;  %v9493_v36 = vld [vmem:[#allocation2 + $0x818] sm:$0xff] }
 0x17a   : > { %15469 = vst [vmem:[#allocation122_spill] sm:$0xff] %v9480_v15  ;;  %15470 = vst [vmem:[#allocation29_spill] sm:$0xff] %v9482_v26  ;;  %v9487_v9 = vadd.f32 %v3360_v47, %v9375_v42  ;;  %v3541_v46 = vmul.f32 %v9418_v55, %v3471_v53  ;;  %v3542_v63 = vmul.f32 %v9418_v55, %v3472_v32  ;;  %v9501_v61 = vld [vmem:[#allocation2 + $0x828] sm:$0xff]  ;;  %v9503_v47 = vld [vmem:[#allocation2 + $0x830] sm:$0xff] }
 0x17b   : > { %15471 = vst [vmem:[#allocation30_spill] sm:$0xff] %v9484_v17  ;;  %15472 = vst [vmem:[#allocation17_spill] sm:$0xff] %v9489_v50  ;;  %v3543_v0 = vmul.f32 %v9418_v55, %v9428_v10  ;;  %v3544_v42 = vmul.f32 %v9418_v55, %v9430_v1  ;;  %v3545_v14 = vmul.f32 %v9418_v55, %v9444_v54  ;;  %v9513_v29 = vld [vmem:[#allocation2 + $0x838] sm:$0xff] }
 0x17c   : > { %15473 = vst [vmem:[#allocation12_spill] sm:$0xff] %v9491_v13  ;;  %15474 = vst [vmem:[#allocation21_spill] sm:$0xff] %v9493_v36  ;;  %v3546_v53 = vmul.f32 %v9418_v55, %v9446_v45  ;;  %v3547_v32 = vmul.f32 %v9418_v55, %v9448_v22  ;;  %v3548_v33 = vmul.f32 %v9418_v55, %v9462_v31 }
 0x17d   : > { %15475 = vst [vmem:[#allocation27_spill] sm:$0xff] %v9499_v58  ;;  %15476 = vst [vmem:[#allocation18_spill] sm:$0xff] %v9501_v61  ;;  %v3549_v43 = vmul.f32 %v9418_v55, %v9464_v37  ;;  %v3550_v21 = vmul.f32 %v9418_v55, %v9466_v34  ;;  %v3551_v38 = vmul.f32 %v9418_v55, %v9480_v15  ;;  %v360_v37 = vld [vmem:[%s7983_s26 + $0x128] sm:$0xff] }
 0x17e   : > { %15477 = vst [vmem:[#allocation23_spill] sm:$0xff] %v9503_v47  ;;  %15478 = vst [vmem:[#allocation24_spill] sm:$0xff] %v9513_v29  ;;  %v3552_v52 = vmul.f32 %v9418_v55, %v9482_v26  ;;  %v3553_v59 = vmul.f32 %v9418_v55, %v9484_v17  ;;  %v3554_v22 = vmul.f32 %v9418_v55, %v9489_v50 }
 0x17f   : > { %v3555_v31 = vmul.f32 %v9418_v55, %v9491_v13  ;;  %v3556_v34 = vmul.f32 %v9418_v55, %v9493_v36  ;;  %v3557_v15 = vmul.f32 %v9418_v55, %v9499_v58  ;;  %v3558_v26 = vmul.f32 %v9418_v55, %v9501_v61  ;;  %474 = vst [vmem:[#allocation2 + $0x18a] sm:$0x3f] %v360_v37  ;;  %v9552_v61 = vld [vmem:[%s7991_s15 + $0xe] ss:$0 sm:$0xff] }
 0x180   : > { %v3559_v17 = vmul.f32 %v9418_v55, %v9503_v47  ;;  %589 = vst [vmem:[#allocation2 + $0x409] sm:$0x7f] %v360_v37  ;;  %672 = vst [vmem:[#allocation2 + $0x688] sm:$0xff] %v360_v37  ;;  %v3560_v13 = vmul.f32 %v9418_v55, %v9513_v29  ;;  %v9543_v50 = vadd.f32 %v3541_v46, %v9411_v23  ;;  %v3671_v47 = vld [vmem:[#allocation2 + $0xa20] sm:$0xff]  ;;  %v9566_v46 = vld [vmem:[#allocation2 + $0xa30] sm:$0xff] }
 0x181   : > { %787 = vst [vmem:[#allocation2 + $0x907] sm:$0xff] %v360_v37  ;;  %902 = vst [vmem:[#allocation2 + $0xb86] sm:$0xff] %v360_v37  ;;  %v9546_v36 = vadd.f32 %v3542_v63, %v9413_v35  ;;  %v9549_v58 = vadd.f32 %v3543_v0, %v9415_v48  ;;  %v9555_v45 = vadd.f32 %v3544_v42, %v9420_v56  ;;  %v3672_v35 = vld [vmem:[#allocation2 + $0xa28] sm:$0xff]  ;;  %v9568_v48 = vld [vmem:[#allocation2 + $0xa38] sm:$0xff] }
 0x182   : > { %15479 = vst [vmem:[#allocation123_spill] sm:$0xff] %v9552_v61  ;;  %v9558_v37 = vadd.f32 %v3545_v14, %v9422_v57  ;;  %v9561_v55 = vadd.f32 %v3546_v53, %v9424_v51  ;;  %v9564_v23 = vadd.f32 %v3547_v32, %v9426_v5  ;;  %15480 = vst [vmem:[#allocation25_spill] sm:$0xff] %v9566_v46  ;;  %v9574_v42 = vld [vmem:[#allocation2 + $0xa40] sm:$0xff]  ;;  %v9576_v51 = vld [vmem:[#allocation2 + $0xa48] sm:$0xff] }
 0x183   : > { %15481 = vst [vmem:[#allocation26_spill] sm:$0xff] %v9568_v48  ;;  %v3612_v63 = vadd.f32 %v3548_v33, %v9433_v40  ;;  %v3613_v0 = vadd.f32 %v3549_v43, %v9436_v27  ;;  %v3614_v56 = vadd.f32 %v3550_v21, %v9439_v18  ;;  %v3615_v57 = vadd.f32 %v3551_v38, %v9442_v60  ;;  %v9578_v14 = vld [vmem:[#allocation2 + $0xa50] sm:$0xff]  ;;  %v9584_v33 = vld [vmem:[#allocation2 + $0xa58] sm:$0xff]  ;;  %v9586_v27 = vld [vmem:[#allocation2 + $0xa60] sm:$0xff] }
 0x184   : > { %15482 = vst [vmem:[#allocation28_spill] sm:$0xff] %v9574_v42  ;;  %15483 = vst [vmem:[#allocation13_spill] sm:$0xff] %v9576_v51  ;;  %v3616_v5 = vadd.f32 %v3552_v52, %v9451_v19  ;;  %v3617_v53 = vadd.f32 %v3553_v59, %v9454_v49  ;;  %v3618_v32 = vadd.f32 %v3554_v22, %v9457_v11  ;;  %v9588_v18 = vld [vmem:[#allocation2 + $0xa68] sm:$0xff]  ;;  %v9594_v38 = vld [vmem:[#allocation2 + $0xa70] sm:$0xff] }
 0x185   : > { %15484 = vst [vmem:[#allocation124_spill] sm:$0xff] %v9578_v14  ;;  %v3619_v40 = vadd.f32 %v3555_v31, %v9460_v2  ;;  %15485 = vst [vmem:[#allocation125_spill] sm:$0xff] %v9584_v33  ;;  %v3620_v60 = vadd.f32 %v3556_v34, %v9469_v28  ;;  %v3621_v43 = vadd.f32 %v3557_v15, %v9472_v12  ;;  %v9596_v49 = vld [vmem:[#allocation2 + $0xa78] sm:$0xff]  ;;  %v9598_v22 = vld [vmem:[#allocation2 + $0xa80] sm:$0xff] }
 0x186   : > { %15486 = vst [vmem:[#allocation126_spill] sm:$0xff] %v9586_v27  ;;  %15487 = vst [vmem:[#allocation127_spill] sm:$0xff] %v9588_v18  ;;  %v3622_v21 = vadd.f32 %v3558_v26, %v9475_v8  ;;  %v3623_v19 = vadd.f32 %v3559_v17, %v9478_v39  ;;  %v3624_v11 = vadd.f32 %v3560_v13, %v9487_v9  ;;  %v9601_v2 = vld [vmem:[#allocation2 + $0xa88] sm:$0xff]  ;;  %v9603_v31 = vld [vmem:[#allocation2 + $0xa90] sm:$0xff] }
 0x187   : > { %15488 = vst [vmem:[#allocation128_spill] sm:$0xff] %v9594_v38  ;;  %15489 = vst [vmem:[#allocation129_spill] sm:$0xff] %v9596_v49  ;;  %v9605_v52 = vld [vmem:[#allocation2 + $0xa98] sm:$0xff]  ;;  %v3741_v34 = vmul.f32 %v9552_v61, %v3671_v47  ;;  %v3742_v28 = vmul.f32 %v9552_v61, %v3672_v35  ;;  %v3743_v12 = vmul.f32 %v9552_v61, %v9566_v46  ;;  %v9611_v8 = vld [vmem:[#allocation2 + $0xaa0] sm:$0xff] }
 0x188   : > { %15490 = vst [vmem:[#allocation130_spill] sm:$0xff] %v9598_v22  ;;  %15491 = vst [vmem:[#allocation131_spill] sm:$0xff] %v9601_v2  ;;  %v9613_v39 = vld [vmem:[#allocation2 + $0xaa8] sm:$0xff]  ;;  %v9615_v15 = vld [vmem:[#allocation2 + $0xab0] sm:$0xff]  ;;  %v3744_v26 = vmul.f32 %v9552_v61, %v9568_v48  ;;  %v3745_v17 = vmul.f32 %v9552_v61, %v9574_v42  ;;  %v3746_v9 = vmul.f32 %v9552_v61, %v9576_v51 }
 0x189   : > { %15492 = vst [vmem:[#allocation132_spill] sm:$0xff] %v9603_v31  ;;  %15493 = vst [vmem:[#allocation133_spill] sm:$0xff] %v9605_v52  ;;  %v3747_v13 = vmul.f32 %v9552_v61, %v9578_v14  ;;  %v9625_v47 = vld [vmem:[#allocation2 + $0xab8] sm:$0xff]  ;;  %v3748_v59 = vmul.f32 %v9552_v61, %v9584_v33  ;;  %v3749_v35 = vmul.f32 %v9552_v61, %v9586_v27  ;;  %v349_v29 = vld [vmem:[%s7983_s26 + $0xd0] sm:$0xff] }
 0x18a   : > { %15494 = vst [vmem:[#allocation134_spill] sm:$0xff] %v9611_v8  ;;  %15495 = vst [vmem:[#allocation135_spill] sm:$0xff] %v9613_v39  ;;  %v3750_v48 = vmul.f32 %v9552_v61, %v9588_v18  ;;  %v3751_v42 = vmul.f32 %v9552_v61, %v9594_v38  ;;  %v3752_v51 = vmul.f32 %v9552_v61, %v9596_v49 }
 0x18b   : > { %15496 = vst [vmem:[#allocation136_spill] sm:$0xff] %v9615_v15  ;;  %15497 = vst [vmem:[#allocation137_spill] sm:$0xff] %v9625_v47  ;;  %v3753_v14 = vmul.f32 %v9552_v61, %v9598_v22  ;;  %v3754_v46 = vmul.f32 %v9552_v61, %v9601_v2  ;;  %v3755_v33 = vmul.f32 %v9552_v61, %v9603_v31 }
 0x18c   : > { %v3756_v27 = vmul.f32 %v9552_v61, %v9605_v52  ;;  %v3757_v18 = vmul.f32 %v9552_v61, %v9611_v8  ;;  %v3758_v38 = vmul.f32 %v9552_v61, %v9613_v39  ;;  %v3759_v49 = vmul.f32 %v9552_v61, %v9615_v15  ;;  %463 = vst [vmem:[#allocation2 + $0xf2] sm:$0xff] %v349_v29 }
 0x18d   : > { %578 = vst [vmem:[#allocation2 + $0x371] sm:$0xff] %v349_v29  ;;  %776 = vst [vmem:[#allocation2 + $0x86f] sm:$0xfe] %v349_v29  ;;  %v3760_v31 = vmul.f32 %v9552_v61, %v9625_v47  ;;  %v3805_v2 = vadd.f32 %v3741_v34, %v9543_v50  ;;  %v3806_v52 = vadd.f32 %v3742_v28, %v9546_v36 }
 0x18e   : > { %891 = vst [vmem:[#allocation2 + $0xaee] sm:$0xfc] %v349_v29  ;;  %v3807_v22 = vadd.f32 %v3743_v12, %v9549_v58  ;;  %v3808_v8 = vadd.f32 %v3744_v26, %v9555_v45  ;;  %v3809_v39 = vadd.f32 %v3745_v17, %v9558_v37  ;;  %v3810_v54 = vadd.f32 %v3746_v9, %v9561_v55  ;;  %v15500_v37 = vld [vmem:[#allocation33_spill] sm:$0xff]  ;;  %v15518_v17 = vld [vmem:[#allocation112_spill] sm:$0xff] }
 0x18f   : > { %v3811_v15 = vadd.f32 %v3747_v13, %v9564_v23  ;;  %v3812_v1 = vadd.f32 %v3748_v59, %v3612_v63  ;;  %v3813_v10 = vadd.f32 %v3749_v35, %v3613_v0  ;;  %v3814_v29 = vadd.f32 %v3750_v48, %v3614_v56  ;;  %v15501_v26 = vld [vmem:[#allocation37_spill] sm:$0xff]  ;;  %v15502_v63 = vld [vmem:[#allocation40_spill] sm:$0xff] }
 0x190   : > { %v3815_v30 = vadd.f32 %v3751_v42, %v3615_v57  ;;  %v3816_v62 = vadd.f32 %v3752_v51, %v3616_v5  ;;  %v3817_v61 = vadd.f32 %v3753_v14, %v3617_v53  ;;  %v3818_v50 = vadd.f32 %v3754_v46, %v3618_v32  ;;  %v15503_v48 = vld [vmem:[#allocation44_spill] sm:$0xff]  ;;  %v15505_v51 = vld [vmem:[#allocation54_spill] sm:$0xff] }
 0x191   : > { %v3819_v34 = vadd.f32 %v3755_v33, %v3619_v40  ;;  %v3820_v36 = vadd.f32 %v3756_v27, %v3620_v60  ;;  %v3821_v28 = vadd.f32 %v3757_v18, %v3621_v43  ;;  %v3822_v58 = vadd.f32 %v3758_v38, %v3622_v21  ;;  %v15504_v57 = vld [vmem:[#allocation48_spill] sm:$0xff]  ;;  %v15506_v14 = vld [vmem:[#allocation58_spill] sm:$0xff] }
 0x192   : > { %v9661_v12 = vadd.f32 %v3759_v49, %v3623_v19  ;;  %v9663_v45 = vadd.f32 %v3760_v31, %v3624_v11  ;;  %v4006_v55 = vadd.f32 %v15500_v37, %v3805_v2  ;;  %v4007_v23 = vadd.f32 %v15501_v26, %v3806_v52  ;;  %v9673_v53 = vld [vmem:[%s7991_s15 + $0x10] ss:$0 sm:$0xff]  ;;  %v15519_v35 = vld [vmem:[#allocation72_spill] sm:$0xff] }
 0x193   : > { %v4008_v0 = vadd.f32 %v15502_v63, %v3807_v22  ;;  %v4009_v56 = vadd.f32 %v15503_v48, %v3808_v8  ;;  %v4010_v42 = vadd.f32 %v15504_v57, %v3809_v39  ;;  %v4011_v46 = vadd.f32 %v15505_v51, %v3810_v54  ;;  %15507 = vst [vmem:[#allocation140_spill] sm:$0xff] %v9673_v53  ;;  %v15508_v32 = vld [vmem:[#allocation62_spill] sm:$0xff]  ;;  %v15517_v39 = vld [vmem:[#allocation105_spill] sm:$0xff]  ;;  %v15523_v26 = vld [vmem:[#allocation88_spill] sm:$0xff] }
 0x194   : > { %15498 = vst [vmem:[#allocation138_spill] sm:$0xff] %v9661_v12  ;;  %15499 = vst [vmem:[#allocation139_spill] sm:$0xff] %v9663_v45  ;;  %v4012_v5 = vadd.f32 %v15506_v14, %v3811_v15  ;;  %v4013_v40 = vadd.f32 %v15508_v32, %v3812_v1  ;;  %v15509_v33 = vld [vmem:[#allocation66_spill] sm:$0xff]  ;;  %v4022_v15 = vadd.f32 %v15517_v39, %v3821_v28  ;;  %v15524_v48 = vld [vmem:[#allocation93_spill] sm:$0xff] }
 0x195   : > { %v4014_v27 = vadd.f32 %v15509_v33, %v3813_v10  ;;  %v15510_v18 = vld [vmem:[#allocation70_spill] sm:$0xff]  ;;  %v4023_v1 = vadd.f32 %v15518_v17, %v3822_v58  ;;  %v4143_v10 = vmul.f32 %v9673_v53, %v9244_v41  ;;  %v4147_v9 = vmul.f32 %v9673_v53, %v9256_v4  ;;  %v15522_v58 = vld [vmem:[#allocation84_spill] sm:$0xff]  ;;  %v9731_v17 = vld [vmem:[%s7991_s15 + $0x11] ss:$0 sm:$0xff] }
 0x196   : > { %v4015_v60 = vadd.f32 %v15510_v18, %v3814_v29  ;;  %v15511_v43 = vld [vmem:[#allocation74_spill] sm:$0xff]  ;;  %v4148_v13 = vmul.f32 %v9673_v53, %v9258_v16  ;;  %v4149_v59 = vmul.f32 %v9673_v53, %v9264_v6  ;;  %v4150_v41 = vmul.f32 %v9673_v53, %v9266_v3  ;;  %v15525_v51 = vld [vmem:[#allocation100_spill] sm:$0xff]  ;;  %15529 = vst [vmem:[#allocation14_spill] sm:$0xff] %v9731_v17 }
 0x197   : > { %v4016_v21 = vadd.f32 %v15511_v43, %v3815_v30  ;;  %v15512_v19 = vld [vmem:[#allocation78_spill] sm:$0xff]  ;;  %v4144_v30 = vmul.f32 %v9673_v53, %v9246_v44  ;;  %v4151_v44 = vmul.f32 %v9673_v53, %v9268_v20  ;;  %v4153_v29 = vmul.f32 %v9673_v53, %v15519_v35  ;;  %v4274_v45 = vld [vmem:[#allocation2 + $0x530] sm:$0xff]  ;;  %v4275_v12 = vld [vmem:[#allocation2 + $0x538] sm:$0xff] }
 0x198   : > { %v4017_v38 = vadd.f32 %v15512_v19, %v3816_v62  ;;  %v15513_v49 = vld [vmem:[#allocation82_spill] sm:$0xff]  ;;  %v4145_v62 = vmul.f32 %v9673_v53, %v9248_v25  ;;  %v4152_v25 = vmul.f32 %v9673_v53, %v9274_v7  ;;  %v4156_v37 = vmul.f32 %v9673_v53, %v15522_v58 }
 0x199   : > { %v4018_v22 = vadd.f32 %v15513_v49, %v3817_v61  ;;  %v15514_v11 = vld [vmem:[#allocation86_spill] sm:$0xff]  ;;  %v4146_v61 = vmul.f32 %v9673_v53, %v9254_v24  ;;  %v4157_v63 = vmul.f32 %v9673_v53, %v15523_v26  ;;  %v4158_v57 = vmul.f32 %v9673_v53, %v15524_v48 }
 0x19a   : > { %v4019_v2 = vadd.f32 %v15514_v11, %v3818_v50  ;;  %v15515_v31 = vld [vmem:[#allocation90_spill] sm:$0xff]  ;;  %v15520_v50 = vld [vmem:[#allocation76_spill] sm:$0xff]  ;;  %v4159_v14 = vmul.f32 %v9673_v53, %v15525_v51  ;;  %v9728_v19 = vadd.f32 %v4143_v10, %v4006_v55  ;;  %v4208_v49 = vadd.f32 %v4144_v30, %v4007_v23  ;;  %v15537_v30 = vld [vmem:[#allocation95_spill] sm:$0xff] }
 0x19b   : > { %v4020_v54 = vadd.f32 %v15515_v31, %v3819_v34  ;;  %v15516_v52 = vld [vmem:[#allocation98_spill] sm:$0xff]  ;;  %v4154_v34 = vmul.f32 %v9673_v53, %v15520_v50  ;;  %v4209_v11 = vadd.f32 %v4145_v62, %v4008_v0  ;;  %v4210_v31 = vadd.f32 %v4146_v61, %v4009_v56  ;;  %v9736_v0 = vld [vmem:[#allocation2 + $0x550] sm:$0xff]  ;;  %v9738_v56 = vld [vmem:[#allocation2 + $0x558] sm:$0xff] }
 0x19c   : > { %v4021_v8 = vadd.f32 %v15516_v52, %v3820_v36  ;;  %v15521_v36 = vld [vmem:[#allocation80_spill] sm:$0xff]  ;;  %v15526_v32 = vld [vmem:[#allocation110_spill] sm:$0xff]  ;;  %15528 = vst [vmem:[#allocation142_spill] sm:$0xff] %v9728_v19  ;;  %v4211_v52 = vadd.f32 %v4147_v9, %v4010_v42  ;;  %v4212_v39 = vadd.f32 %v4148_v13, %v4011_v46  ;;  %v4213_v51 = vadd.f32 %v4149_v59, %v4012_v5  ;;  %v15539_v13 = vld [vmem:[#allocation97_spill] sm:$0xff] }
 0x19d   : > { %v4155_v28 = vmul.f32 %v9673_v53, %v15521_v36  ;;  %v4160_v33 = vmul.f32 %v9673_v53, %v15526_v32  ;;  %v9722_v18 = vld [vmem:[#allocation2] sm:$0xff]  ;;  %v4214_v32 = vadd.f32 %v4150_v41, %v4013_v40  ;;  %v4215_v48 = vadd.f32 %v4151_v44, %v4014_v27  ;;  %v9733_v36 = vld [vmem:[#allocation2 + $0x548] sm:$0xff]  ;;  %15531 = vst [vmem:[#allocation144_spill] sm:$0xff] %v9736_v0  ;;  %v15538_v61 = vld [vmem:[#allocation96_spill] sm:$0xff] }
 0x19e   : > { %v9726_v43 = vmul.f32 %v9722_v18, %v9673_v53  ;;  %v4216_v26 = vadd.f32 %v4152_v25, %v4015_v60  ;;  %v4276_v58 = vld [vmem:[#allocation2 + $0x540] sm:$0xff]  ;;  %15530 = vst [vmem:[#allocation143_spill] sm:$0xff] %v9733_v36  ;;  %v4217_v53 = vadd.f32 %v4153_v29, %v4016_v21  ;;  %v4218_v55 = vadd.f32 %v4154_v34, %v4017_v38  ;;  %v15542_v34 = vld [vmem:[#allocation103_spill] sm:$0xff] }
 0x19f   : > { %v4219_v10 = vadd.f32 %v4155_v28, %v4018_v22  ;;  %v4220_v23 = vadd.f32 %v4156_v37, %v4019_v2  ;;  %15532 = vst [vmem:[#allocation145_spill] sm:$0xff] %v9738_v56  ;;  %v4221_v42 = vadd.f32 %v4157_v63, %v4020_v54  ;;  %v4222_v46 = vadd.f32 %v4158_v57, %v4021_v8  ;;  %v15534_v54 = vld [vmem:[#allocation22_spill] sm:$0xff]  ;;  %v15540_v41 = vld [vmem:[#allocation101_spill] sm:$0xff]  ;;  %v15544_v63 = vld [vmem:[#allocation108_spill] sm:$0xff] }
 0x1a0   : > { %15527 = vst [vmem:[#allocation141_spill] sm:$0xff] %v9726_v43  ;;  %v350_v43 = vld [vmem:[%s7983_s26 + $0xd8] sm:$0xff]  ;;  %v4223_v5 = vadd.f32 %v4159_v14, %v4022_v15  ;;  %v4224_v40 = vadd.f32 %v4160_v33, %v4023_v1  ;;  %v9741_v27 = vmul.f32 %v9731_v17, %v4274_v45  ;;  %v4345_v60 = vmul.f32 %v9731_v17, %v4275_v12  ;;  %v15536_v1 = vld [vmem:[#allocation91_spill] sm:$0xff]  ;;  %v15541_v25 = vld [vmem:[#allocation102_spill] sm:$0xff] }
 0x1a1   : > { %464 = vst [vmem:[#allocation2 + $0xfa] sm:$0x3f] %v350_v43  ;;  %579 = vst [vmem:[#allocation2 + $0x379] sm:$0x7f] %v350_v43  ;;  %v4346_v21 = vmul.f32 %v9731_v17, %v4276_v58  ;;  %v4347_v38 = vmul.f32 %v9731_v17, %v9733_v36  ;;  %v4348_v22 = vmul.f32 %v9731_v17, %v9736_v0  ;;  %v15535_v15 = vld [vmem:[#allocation16_spill] sm:$0xff]  ;;  %v15543_v58 = vld [vmem:[#allocation107_spill] sm:$0xff] }
 0x1a2   : > { %662 = vst [vmem:[#allocation2 + $0x5f8] sm:$0xff] %v350_v43  ;;  %777 = vst [vmem:[#allocation2 + $0x877] sm:$0xff] %v350_v43  ;;  %v4349_v2 = vmul.f32 %v9731_v17, %v9738_v56  ;;  %v4350_v8 = vmul.f32 %v9731_v17, %v15534_v54  ;;  %v4351_v45 = vmul.f32 %v9731_v17, %v15535_v15  ;;  %v15545_v14 = vld [vmem:[#allocation109_spill] sm:$0xff] }
 0x1a3   : > { %892 = vst [vmem:[#allocation2 + $0xaf6] sm:$0xff] %v350_v43  ;;  %15533 = vst [vmem:[#allocation146_spill] sm:$0xff] %v9741_v27  ;;  %v4352_v12 = vmul.f32 %v9731_v17, %v15536_v1  ;;  %v4353_v62 = vmul.f32 %v9731_v17, %v15537_v30  ;;  %v4354_v9 = vmul.f32 %v9731_v17, %v15538_v61 }
 0x1a4   : > { %v4355_v59 = vmul.f32 %v9731_v17, %v15539_v13  ;;  %v4356_v44 = vmul.f32 %v9731_v17, %v15540_v41  ;;  %v4357_v29 = vmul.f32 %v9731_v17, %v15541_v25  ;;  %v4358_v28 = vmul.f32 %v9731_v17, %v15542_v34 }
 0x1a5   : > { %v4359_v37 = vmul.f32 %v9731_v17, %v15543_v58  ;;  %v4360_v57 = vmul.f32 %v9731_v17, %v15544_v63  ;;  %v4361_v33 = vmul.f32 %v9731_v17, %v15545_v14  ;;  %v9777_v43 = vmul.f32 %v9722_v18, %v9731_v17  ;;  %v9780_v58 = vld [vmem:[%s7991_s15 + $0x12] ss:$0 sm:$0xff] }
 0x1a6   : > { %v4409_v27 = vadd.f32 %v4345_v60, %v4208_v49  ;;  %v4410_v19 = vadd.f32 %v4346_v21, %v4209_v11  ;;  %v4411_v13 = vadd.f32 %v4347_v38, %v4210_v31  ;;  %v4412_v61 = vadd.f32 %v4348_v22, %v4211_v52  ;;  %15547 = vst [vmem:[#allocation32_spill] sm:$0xff] %v9780_v58  ;;  %v15550_v11 = vld [vmem:[#allocation115_spill] sm:$0xff]  ;;  %v15553_v31 = vld [vmem:[#allocation118_spill] sm:$0xff]  ;;  %v15558_v60 = vld [vmem:[#allocation29_spill] sm:$0xff] }
 0x1a7   : > { %15546 = vst [vmem:[#allocation147_spill] sm:$0xff] %v9777_v43  ;;  %v4413_v25 = vadd.f32 %v4349_v2, %v4212_v39  ;;  %v4414_v41 = vadd.f32 %v4350_v8, %v4213_v51  ;;  %v4415_v34 = vadd.f32 %v4351_v45, %v4214_v32  ;;  %v4416_v30 = vadd.f32 %v4352_v12, %v4215_v48  ;;  %v15548_v43 = vld [vmem:[#allocation114_spill] sm:$0xff]  ;;  %v15551_v32 = vld [vmem:[#allocation116_spill] sm:$0xff]  ;;  %v15552_v48 = vld [vmem:[#allocation117_spill] sm:$0xff] }
 0x1a8   : > { %v4417_v1 = vadd.f32 %v4353_v62, %v4216_v26  ;;  %v4418_v15 = vadd.f32 %v4354_v9, %v4217_v53  ;;  %v4419_v63 = vadd.f32 %v4355_v59, %v4218_v55  ;;  %v4420_v54 = vadd.f32 %v4356_v44, %v4219_v10  ;;  %v15554_v39 = vld [vmem:[#allocation119_spill] sm:$0xff]  ;;  %v15555_v10 = vld [vmem:[#allocation120_spill] sm:$0xff]  ;;  %v15559_v38 = vld [vmem:[#allocation30_spill] sm:$0xff] }
 0x1a9   : > { %v4421_v56 = vadd.f32 %v4357_v29, %v4220_v23  ;;  %v4422_v14 = vadd.f32 %v4358_v28, %v4221_v42  ;;  %v4423_v0 = vadd.f32 %v4359_v37, %v4222_v46  ;;  %v4424_v36 = vadd.f32 %v4360_v57, %v4223_v5  ;;  %v15556_v42 = vld [vmem:[#allocation121_spill] sm:$0xff]  ;;  %v15557_v5 = vld [vmem:[#allocation122_spill] sm:$0xff]  ;;  %v15561_v45 = vld [vmem:[#allocation12_spill] sm:$0xff] }
 0x1aa   : > { %v4425_v17 = vadd.f32 %v4361_v33, %v4224_v40  ;;  %v9784_v49 = vmul.f32 %v9780_v58, %v15548_v43  ;;  %v4546_v51 = vmul.f32 %v9780_v58, %v15550_v11  ;;  %v4547_v26 = vmul.f32 %v9780_v58, %v15551_v32  ;;  %v15560_v2 = vld [vmem:[#allocation17_spill] sm:$0xff]  ;;  %v15563_v59 = vld [vmem:[#allocation27_spill] sm:$0xff]  ;;  %v15564_v29 = vld [vmem:[#allocation18_spill] sm:$0xff] }
 0x1ab   : > { %v4548_v53 = vmul.f32 %v9780_v58, %v15552_v48  ;;  %v4549_v52 = vmul.f32 %v9780_v58, %v15553_v31  ;;  %v4550_v55 = vmul.f32 %v9780_v58, %v15554_v39  ;;  %v4551_v23 = vmul.f32 %v9780_v58, %v15555_v10  ;;  %v15562_v62 = vld [vmem:[#allocation21_spill] sm:$0xff]  ;;  %v15565_v37 = vld [vmem:[#allocation23_spill] sm:$0xff]  ;;  %v15566_v33 = vld [vmem:[#allocation24_spill] sm:$0xff] }
 0x1ac   : > { %15549 = vst [vmem:[#allocation35_spill] sm:$0xff] %v9784_v49  ;;  %v4552_v46 = vmul.f32 %v9780_v58, %v15556_v42  ;;  %v4553_v40 = vmul.f32 %v9780_v58, %v15557_v5  ;;  %v4554_v21 = vmul.f32 %v9780_v58, %v15558_v60  ;;  %v4555_v22 = vmul.f32 %v9780_v58, %v15559_v38  ;;  %v9825_v5 = vld [vmem:[%s7991_s15 + $0x13] ss:$0 sm:$0xff] }
 0x1ad   : > { %v4556_v8 = vmul.f32 %v9780_v58, %v15560_v2  ;;  %v4557_v12 = vmul.f32 %v9780_v58, %v15561_v45  ;;  %v4558_v9 = vmul.f32 %v9780_v58, %v15562_v62  ;;  %v4559_v44 = vmul.f32 %v9780_v58, %v15563_v59  ;;  %v361_v39 = vld [vmem:[%s7983_s26 + $0x130] sm:$0xff] }
 0x1ae   : > { %v4560_v28 = vmul.f32 %v9780_v58, %v15564_v29  ;;  %v4561_v57 = vmul.f32 %v9780_v58, %v15565_v37  ;;  %v4562_v43 = vmul.f32 %v9780_v58, %v15566_v33  ;;  %v9822_v11 = vmul.f32 %v9722_v18, %v9780_v58  ;;  %475 = vst [vmem:[#allocation2 + $0x192] sm:$0xff] %v361_v39 }
 0x1af   : > { %v4610_v32 = vadd.f32 %v4546_v51, %v4409_v27  ;;  %v4611_v49 = vadd.f32 %v4547_v26, %v4410_v19  ;;  %v4612_v62 = vadd.f32 %v4548_v53, %v4411_v13  ;;  %v4613_v45 = vadd.f32 %v4549_v52, %v4412_v61  ;;  %590 = vst [vmem:[#allocation2 + $0x411] sm:$0xff] %v361_v39  ;;  %v15568_v19 = vld [vmem:[#allocation25_spill] sm:$0xff]  ;;  %v15579_v52 = vld [vmem:[#allocation130_spill] sm:$0xff] }
 0x1b0   : > { %15567 = vst [vmem:[#allocation39_spill] sm:$0xff] %v9822_v11  ;;  %v4614_v2 = vadd.f32 %v4550_v55, %v4413_v25  ;;  %v4615_v59 = vadd.f32 %v4551_v23, %v4414_v41  ;;  %v4616_v38 = vadd.f32 %v4552_v46, %v4415_v34  ;;  %v4617_v60 = vadd.f32 %v4553_v40, %v4416_v30  ;;  %v15575_v41 = vld [vmem:[#allocation126_spill] sm:$0xff]  ;;  %v15576_v34 = vld [vmem:[#allocation127_spill] sm:$0xff]  ;;  %v15578_v26 = vld [vmem:[#allocation129_spill] sm:$0xff] }
 0x1b1   : > { %v4618_v29 = vadd.f32 %v4554_v21, %v4417_v1  ;;  %v4619_v37 = vadd.f32 %v4555_v22, %v4418_v15  ;;  %v4620_v42 = vadd.f32 %v4556_v8, %v4419_v63  ;;  %v4621_v10 = vadd.f32 %v4557_v12, %v4420_v54  ;;  %788 = vst [vmem:[#allocation2 + $0x90f] sm:$0xfe] %v361_v39  ;;  %v15570_v1 = vld [vmem:[#allocation26_spill] sm:$0xff]  ;;  %v15571_v15 = vld [vmem:[#allocation28_spill] sm:$0xff]  ;;  %v15580_v55 = vld [vmem:[#allocation131_spill] sm:$0xff] }
 0x1b2   : > { %v4622_v33 = vadd.f32 %v4558_v9, %v4421_v56  ;;  %v4623_v31 = vadd.f32 %v4559_v44, %v4422_v14  ;;  %v4624_v48 = vadd.f32 %v4560_v28, %v4423_v0  ;;  %v4625_v58 = vadd.f32 %v4561_v57, %v4424_v36  ;;  %903 = vst [vmem:[#allocation2 + $0xb8e] sm:$0xfc] %v361_v39  ;;  %v15572_v56 = vld [vmem:[#allocation13_spill] sm:$0xff]  ;;  %v15573_v0 = vld [vmem:[#allocation124_spill] sm:$0xff]  ;;  %v15583_v8 = vld [vmem:[#allocation134_spill] sm:$0xff] }
 0x1b3   : > { %v4626_v11 = vadd.f32 %v4562_v43, %v4425_v17  ;;  %v9830_v27 = vmul.f32 %v9825_v5, %v15568_v19  ;;  %v4747_v30 = vmul.f32 %v9825_v5, %v15570_v1  ;;  %v4748_v54 = vmul.f32 %v9825_v5, %v15571_v15  ;;  %v15574_v17 = vld [vmem:[#allocation125_spill] sm:$0xff]  ;;  %v15577_v14 = vld [vmem:[#allocation128_spill] sm:$0xff]  ;;  %v15584_v9 = vld [vmem:[#allocation135_spill] sm:$0xff] }
 0x1b4   : > { %v4749_v61 = vmul.f32 %v9825_v5, %v15572_v56  ;;  %v4750_v36 = vmul.f32 %v9825_v5, %v15573_v0  ;;  %v4751_v13 = vmul.f32 %v9825_v5, %v15574_v17  ;;  %v4752_v25 = vmul.f32 %v9825_v5, %v15575_v41  ;;  %v15581_v46 = vld [vmem:[#allocation132_spill] sm:$0xff]  ;;  %v15582_v21 = vld [vmem:[#allocation133_spill] sm:$0xff] }
 0x1b5   : > { %15569 = vst [vmem:[#allocation43_spill] sm:$0xff] %v9830_v27  ;;  %v4753_v63 = vmul.f32 %v9825_v5, %v15576_v34  ;;  %v4754_v51 = vmul.f32 %v9825_v5, %v15577_v14  ;;  %v4755_v53 = vmul.f32 %v9825_v5, %v15578_v26  ;;  %v4756_v39 = vmul.f32 %v9825_v5, %v15579_v52  ;;  %v15585_v28 = vld [vmem:[#allocation136_spill] sm:$0xff] }
 0x1b6   : > { %v4757_v23 = vmul.f32 %v9825_v5, %v15580_v55  ;;  %v4758_v40 = vmul.f32 %v9825_v5, %v15581_v46  ;;  %v4759_v22 = vmul.f32 %v9825_v5, %v15582_v21  ;;  %v4760_v12 = vmul.f32 %v9825_v5, %v15583_v8  ;;  %v362_v41 = vld [vmem:[%s7983_s26 + $0x138] sm:$0xff] }
 0x1b7   : > { %v4761_v44 = vmul.f32 %v9825_v5, %v15584_v9  ;;  %v4762_v57 = vmul.f32 %v9825_v5, %v15585_v28  ;;  %v4763_v43 = vmul.f32 %v9825_v5, %v9625_v47  ;;  %v9868_v19 = vmul.f32 %v9722_v18, %v9825_v5  ;;  %476 = vst [vmem:[#allocation2 + $0x19a] sm:$0x3f] %v362_v41 }
 0x1b8   : > { %v4811_v1 = vadd.f32 %v4747_v30, %v4610_v32  ;;  %v4812_v15 = vadd.f32 %v4748_v54, %v4611_v49  ;;  %v4813_v27 = vadd.f32 %v4749_v61, %v4612_v62  ;;  %v4814_v21 = vadd.f32 %v4750_v36, %v4613_v45  ;;  %591 = vst [vmem:[#allocation2 + $0x419] sm:$0x7f] %v362_v41  ;;  %v15587_v49 = vld [vmem:[#allocation45_spill] sm:$0xff]  ;;  %v15591_v45 = vld [vmem:[#allocation59_spill] sm:$0xff] }
 0x1b9   : > { %15586 = vst [vmem:[#allocation47_spill] sm:$0xff] %v9868_v19  ;;  %v4815_v46 = vadd.f32 %v4751_v13, %v4614_v2  ;;  %v4816_v8 = vadd.f32 %v4752_v25, %v4615_v59  ;;  %v4817_v55 = vadd.f32 %v4753_v63, %v4616_v38  ;;  %v4818_v52 = vadd.f32 %v4754_v51, %v4617_v60  ;;  %v15589_v38 = vld [vmem:[#allocation51_spill] sm:$0xff]  ;;  %v15600_v25 = vld [vmem:[#allocation92_spill] sm:$0xff] }
 0x1ba   : > { %v4819_v9 = vadd.f32 %v4755_v53, %v4618_v29  ;;  %v4820_v26 = vadd.f32 %v4756_v39, %v4619_v37  ;;  %v4821_v14 = vadd.f32 %v4757_v23, %v4620_v42  ;;  %v4822_v28 = vadd.f32 %v4758_v40, %v4621_v10  ;;  %674 = vst [vmem:[#allocation2 + $0x698] sm:$0xff] %v362_v41  ;;  %v15590_v10 = vld [vmem:[#allocation55_spill] sm:$0xff]  ;;  %v15602_v53 = vld [vmem:[#allocation106_spill] sm:$0xff]  ;;  %v15603_v23 = vld [vmem:[#allocation113_spill] sm:$0xff] }
 0x1bb   : > { %v4823_v34 = vadd.f32 %v4759_v22, %v4622_v33  ;;  %v4824_v47 = vadd.f32 %v4760_v12, %v4623_v31  ;;  %v4825_v17 = vadd.f32 %v4761_v44, %v4624_v48  ;;  %v9871_v0 = vadd.f32 %v4762_v57, %v4625_v58  ;;  %789 = vst [vmem:[#allocation2 + $0x917] sm:$0xff] %v362_v41  ;;  %v9882_v31 = vld [vmem:[%s7991_s15 + $0x15] ss:$0 sm:$0xff] }
 0x1bc   : > { %v9873_v19 = vadd.f32 %v4763_v43, %v4626_v11  ;;  %904 = vst [vmem:[#allocation2 + $0xb96] sm:$0xff] %v362_v41  ;;  %v9876_v60 = vadd.f32 %v15587_v49, %v4811_v1  ;;  %v5013_v42 = vadd.f32 %v15589_v38, %v4812_v15  ;;  %v5014_v2 = vadd.f32 %v15590_v10, %v4813_v27  ;;  %v15593_v58 = vld [vmem:[#allocation63_spill] sm:$0xff]  ;;  %v15607_v22 = vld [vmem:[#allocation88_spill] sm:$0xff] }
 0x1bd   : > { %v5015_v62 = vadd.f32 %v15591_v45, %v4814_v21  ;;  %15592 = vst [vmem:[#allocation57_spill] sm:$0xff] %v9882_v31  ;;  %v5016_v48 = vadd.f32 %v15593_v58, %v4815_v46  ;;  %v15594_v59 = vld [vmem:[#allocation67_spill] sm:$0xff]  ;;  %v5023_v27 = vadd.f32 %v15600_v25, %v4822_v28  ;;  %v5025_v39 = vadd.f32 %v15602_v53, %v4824_v47  ;;  %v15606_v21 = vld [vmem:[#allocation84_spill] sm:$0xff] }
 0x1be   : > { %15588 = vst [vmem:[#allocation53_spill] sm:$0xff] %v9876_v60  ;;  %v5017_v29 = vadd.f32 %v15594_v59, %v4816_v8  ;;  %v15595_v37 = vld [vmem:[#allocation71_spill] sm:$0xff]  ;;  %v5026_v46 = vadd.f32 %v15603_v23, %v4825_v17  ;;  %v9897_v40 = vmul.f32 %v9882_v31, %v9254_v24  ;;  %v5154_v47 = vmul.f32 %v9882_v31, %v9268_v20  ;;  %v15608_v8 = vld [vmem:[#allocation93_spill] sm:$0xff]  ;;  %v15609_v12 = vld [vmem:[#allocation100_spill] sm:$0xff] }
 0x1bf   : > { %v5018_v33 = vadd.f32 %v15595_v37, %v4817_v55  ;;  %v15596_v11 = vld [vmem:[#allocation75_spill] sm:$0xff]  ;;  %v5155_v17 = vmul.f32 %v9882_v31, %v9274_v7  ;;  %v5156_v24 = vmul.f32 %v9882_v31, %v15519_v35  ;;  %v15605_v55 = vld [vmem:[#allocation80_spill] sm:$0xff]  ;;  %v5161_v20 = vmul.f32 %v9882_v31, %v15608_v8 }
 0x1c0   : > { %v5019_v32 = vadd.f32 %v15596_v11, %v4818_v52  ;;  %v15597_v30 = vld [vmem:[#allocation79_spill] sm:$0xff]  ;;  %15604 = vst [vmem:[#allocation61_spill] sm:$0xff] %v9897_v40  ;;  %v5150_v52 = vmul.f32 %v9882_v31, %v9256_v4  ;;  %v5157_v4 = vmul.f32 %v9882_v31, %v15520_v50  ;;  %v5162_v7 = vmul.f32 %v9882_v31, %v15609_v12 }
 0x1c1   : > { %v5020_v54 = vadd.f32 %v15597_v30, %v4819_v9  ;;  %v15598_v61 = vld [vmem:[#allocation83_spill] sm:$0xff]  ;;  %v15610_v9 = vld [vmem:[#allocation110_spill] sm:$0xff]  ;;  %v9929_v50 = vmul.f32 %v9722_v18, %v9882_v31  ;;  %v5218_v1 = vadd.f32 %v5154_v47, %v5017_v29  ;;  %v5219_v15 = vadd.f32 %v5155_v17, %v5018_v33  ;;  %v15628_v17 = vld [vmem:[#allocation97_spill] sm:$0xff] }
 0x1c2   : > { %v5021_v36 = vadd.f32 %v15598_v61, %v4820_v26  ;;  %v15599_v13 = vld [vmem:[#allocation87_spill] sm:$0xff]  ;;  %v5151_v26 = vmul.f32 %v9882_v31, %v9258_v16  ;;  %v5158_v16 = vmul.f32 %v9882_v31, %v15605_v55  ;;  %v5163_v35 = vmul.f32 %v9882_v31, %v15610_v9  ;;  %v363_v30 = vld [vmem:[%s7983_s26 + $0x140] sm:$0xff] }
 0x1c3   : > { %v5022_v41 = vadd.f32 %v15599_v13, %v4821_v14  ;;  %v15601_v63 = vld [vmem:[#allocation99_spill] sm:$0xff]  ;;  %v5152_v14 = vmul.f32 %v9882_v31, %v9264_v6  ;;  %v5159_v6 = vmul.f32 %v9882_v31, %v15606_v21  ;;  %15611 = vst [vmem:[#allocation65_spill] sm:$0xff] %v9929_v50  ;;  %v9931_v44 = vadd.f32 %v5150_v52, %v5013_v42  ;;  %v15619_v33 = vld [vmem:[#allocation22_spill] sm:$0xff] }
 0x1c4   : > { %v5024_v51 = vadd.f32 %v15601_v63, %v4823_v34  ;;  %v5153_v34 = vmul.f32 %v9882_v31, %v9266_v3  ;;  %v5160_v3 = vmul.f32 %v9882_v31, %v15607_v22  ;;  %v5215_v28 = vadd.f32 %v5151_v26, %v5014_v2  ;;  %v9934_v11 = vld [vmem:[%s7991_s15 + $0x16] ss:$0 sm:$0xff]  ;;  %477 = vst [vmem:[#allocation2 + $0x1a2] sm:$0xff] %v363_v30  ;;  %v351_v50 = vld [vmem:[%s7983_s26 + $0xe0] sm:$0xff] }
 0x1c5   : > { %15612 = vst [vmem:[#allocation69_spill] sm:$0xff] %v9931_v44  ;;  %v5216_v57 = vadd.f32 %v5152_v14, %v5015_v62  ;;  %v5220_v49 = vadd.f32 %v5156_v24, %v5019_v32  ;;  %v5221_v38 = vadd.f32 %v5157_v4, %v5020_v54  ;;  %v5222_v10 = vadd.f32 %v5158_v16, %v5021_v36  ;;  %v15614_v13 = vld [vmem:[#allocation143_spill] sm:$0xff]  ;;  %v15616_v2 = vld [vmem:[#allocation144_spill] sm:$0xff]  ;;  %v15630_v16 = vld [vmem:[#allocation109_spill] sm:$0xff] }
 0x1c6   : > { %v5217_v43 = vadd.f32 %v5153_v34, %v5016_v48  ;;  %v5223_v45 = vadd.f32 %v5159_v6, %v5022_v41  ;;  %v5224_v58 = vadd.f32 %v5160_v3, %v5023_v27  ;;  %v5225_v59 = vadd.f32 %v5161_v20, %v5024_v51  ;;  %15613 = vst [vmem:[#allocation73_spill] sm:$0xff] %v9934_v11  ;;  %v15618_v48 = vld [vmem:[#allocation145_spill] sm:$0xff]  ;;  %v15620_v54 = vld [vmem:[#allocation16_spill] sm:$0xff]  ;;  %v15621_v41 = vld [vmem:[#allocation91_spill] sm:$0xff] }
 0x1c7   : > { %v5226_v37 = vadd.f32 %v5162_v7, %v5025_v39  ;;  %v5227_v61 = vadd.f32 %v5163_v35, %v5026_v46  ;;  %v9939_v42 = vmul.f32 %v9934_v11, %v15614_v13  ;;  %v9943_v62 = vmul.f32 %v9934_v11, %v15616_v2  ;;  %592 = vst [vmem:[#allocation2 + $0x421] sm:$0xff] %v363_v30  ;;  %v15622_v27 = vld [vmem:[#allocation95_spill] sm:$0xff]  ;;  %v15623_v51 = vld [vmem:[#allocation101_spill] sm:$0xff]  ;;  %v15624_v39 = vld [vmem:[#allocation102_spill] sm:$0xff] }
 0x1c8   : > { %v5352_v29 = vmul.f32 %v9934_v11, %v15618_v48  ;;  %790 = vst [vmem:[#allocation2 + $0x91f] sm:$0xfe] %v363_v30  ;;  %905 = vst [vmem:[#allocation2 + $0xb9e] sm:$0xfc] %v363_v30  ;;  %v5353_v32 = vmul.f32 %v9934_v11, %v15619_v33  ;;  %v5354_v36 = vmul.f32 %v9934_v11, %v15620_v54  ;;  %v15625_v46 = vld [vmem:[#allocation103_spill] sm:$0xff]  ;;  %v15627_v34 = vld [vmem:[#allocation96_spill] sm:$0xff] }
 0x1c9   : > { %15615 = vst [vmem:[#allocation77_spill] sm:$0xff] %v9939_v42  ;;  %15617 = vst [vmem:[#allocation81_spill] sm:$0xff] %v9943_v62  ;;  %v5355_v25 = vmul.f32 %v9934_v11, %v15621_v41  ;;  %v5356_v63 = vmul.f32 %v9934_v11, %v15622_v27  ;;  %v5359_v53 = vmul.f32 %v9934_v11, %v15623_v51  ;;  %v15626_v26 = vld [vmem:[#allocation107_spill] sm:$0xff]  ;;  %v15629_v4 = vld [vmem:[#allocation108_spill] sm:$0xff] }
 0x1ca   : > { %v5360_v23 = vmul.f32 %v9934_v11, %v15624_v39  ;;  %v5361_v52 = vmul.f32 %v9934_v11, %v15625_v46  ;;  %v5362_v14 = vmul.f32 %v9934_v11, %v15626_v26  ;;  %v5357_v47 = vmul.f32 %v9934_v11, %v15627_v34  ;;  %v9976_v20 = vld [vmem:[%s7991_s15 + $0x17] ss:$0 sm:$0xff]  ;;  %v15632_v41 = vld [vmem:[#allocation117_spill] sm:$0xff]  ;;  %v15634_v51 = vld [vmem:[#allocation118_spill] sm:$0xff]  ;;  %465 = vst [vmem:[#allocation2 + $0x102] sm:$0xff] %v351_v50 }
 0x1cb   : > { %v5358_v24 = vmul.f32 %v9934_v11, %v15628_v17  ;;  %v5363_v55 = vmul.f32 %v9934_v11, %v15629_v4  ;;  %v5364_v21 = vmul.f32 %v9934_v11, %v15630_v16  ;;  %v9973_v6 = vmul.f32 %v9722_v18, %v9934_v11  ;;  %v15645_v39 = vld [vmem:[#allocation27_spill] sm:$0xff]  ;;  %v15646_v46 = vld [vmem:[#allocation18_spill] sm:$0xff]  ;;  %v15648_v34 = vld [vmem:[#allocation24_spill] sm:$0xff]  ;;  %580 = vst [vmem:[#allocation2 + $0x381] sm:$0xff] %v351_v50 }
 0x1cc   : > { %v5416_v22 = vadd.f32 %v5352_v29, %v5215_v28  ;;  %v5417_v3 = vadd.f32 %v5353_v32, %v5216_v57  ;;  %v5418_v8 = vadd.f32 %v5354_v36, %v5217_v43  ;;  %v5419_v12 = vadd.f32 %v5355_v25, %v5218_v1  ;;  %v15636_v57 = vld [vmem:[#allocation119_spill] sm:$0xff]  ;;  %v15637_v1 = vld [vmem:[#allocation120_spill] sm:$0xff]  ;;  %v15642_v29 = vld [vmem:[#allocation17_spill] sm:$0xff]  ;;  %778 = vst [vmem:[#allocation2 + $0x87f] sm:$0xfe] %v351_v50 }
 0x1cd   : > { %15631 = vst [vmem:[#allocation85_spill] sm:$0xff] %v9973_v6  ;;  %v5420_v7 = vadd.f32 %v5356_v63, %v5219_v15  ;;  %v5421_v9 = vadd.f32 %v5357_v47, %v5220_v49  ;;  %v5422_v35 = vadd.f32 %v5358_v24, %v5221_v38  ;;  %v5423_v30 = vadd.f32 %v5359_v53, %v5222_v10  ;;  %v15638_v49 = vld [vmem:[#allocation121_spill] sm:$0xff]  ;;  %v15639_v10 = vld [vmem:[#allocation122_spill] sm:$0xff]  ;;  %v15643_v36 = vld [vmem:[#allocation12_spill] sm:$0xff] }
 0x1ce   : > { %v5424_v13 = vadd.f32 %v5360_v23, %v5223_v45  ;;  %v5425_v2 = vadd.f32 %v5361_v52, %v5224_v58  ;;  %v5426_v48 = vadd.f32 %v5362_v14, %v5225_v59  ;;  %v5427_v33 = vadd.f32 %v5363_v55, %v5226_v37  ;;  %v15640_v58 = vld [vmem:[#allocation29_spill] sm:$0xff]  ;;  %v15641_v37 = vld [vmem:[#allocation30_spill] sm:$0xff]  ;;  %v15647_v26 = vld [vmem:[#allocation23_spill] sm:$0xff]  ;;  %893 = vst [vmem:[#allocation2 + $0xafe] sm:$0xfc] %v351_v50 }
 0x1cf   : > { %v5428_v54 = vadd.f32 %v5364_v21, %v5227_v61  ;;  %v9980_v27 = vmul.f32 %v9976_v20, %v15632_v41  ;;  %v9984_v28 = vmul.f32 %v9976_v20, %v15634_v51  ;;  %v5553_v43 = vmul.f32 %v9976_v20, %v15636_v57  ;;  %v15644_v63 = vld [vmem:[#allocation21_spill] sm:$0xff]  ;;  %v10017_v55 = vld [vmem:[%s7991_s15 + $0x18] ss:$0 sm:$0xff] }
 0x1d0   : > { %v5554_v15 = vmul.f32 %v9976_v20, %v15637_v1  ;;  %v5555_v38 = vmul.f32 %v9976_v20, %v15638_v49  ;;  %v5556_v45 = vmul.f32 %v9976_v20, %v15639_v10  ;;  %v5557_v59 = vmul.f32 %v9976_v20, %v15640_v58  ;;  %v10172_v44 = vld [vmem:[%s7991_s15 + $0x3] ss:$0 sm:$0xff]  ;;  %v10183_v6 = vld [vmem:[%s7991_s15 + $0x4] ss:$0 sm:$0xff] }
 0x1d1   : > { %15633 = vst [vmem:[#allocation89_spill] sm:$0xff] %v9980_v27  ;;  %15635 = vst [vmem:[#allocation94_spill] sm:$0xff] %v9984_v28  ;;  %v5558_v61 = vmul.f32 %v9976_v20, %v15641_v37  ;;  %v5559_v32 = vmul.f32 %v9976_v20, %v15642_v29  ;;  %v5560_v25 = vmul.f32 %v9976_v20, %v15643_v36  ;;  %v15662_v36 = vld [vmem:[#allocation134_spill] sm:$0xff] }
 0x1d2   : > { %v5561_v53 = vmul.f32 %v9976_v20, %v15644_v63  ;;  %v5562_v23 = vmul.f32 %v9976_v20, %v15645_v39  ;;  %v5563_v52 = vmul.f32 %v9976_v20, %v15646_v46  ;;  %v5564_v14 = vmul.f32 %v9976_v20, %v15647_v26  ;;  %v15663_v63 = vld [vmem:[#allocation135_spill] sm:$0xff]  ;;  %15681 = vst [vmem:[#allocation33_spill] sm:$0xff] %v10172_v44 }
 0x1d3   : > { %v5565_v47 = vmul.f32 %v9976_v20, %v15648_v34  ;;  %v10014_v17 = vmul.f32 %v9722_v18, %v9976_v20  ;;  %v5617_v24 = vadd.f32 %v5553_v43, %v5416_v22  ;;  %v5618_v4 = vadd.f32 %v5554_v15, %v5417_v3  ;;  %v15651_v3 = vld [vmem:[#allocation124_spill] sm:$0xff]  ;;  %v15659_v15 = vld [vmem:[#allocation131_spill] sm:$0xff]  ;;  %15682 = vst [vmem:[#allocation37_spill] sm:$0xff] %v10183_v6 }
 0x1d4   : > { %v5619_v16 = vadd.f32 %v5555_v38, %v5418_v8  ;;  %v5620_v21 = vadd.f32 %v5556_v45, %v5419_v12  ;;  %v5621_v41 = vadd.f32 %v5557_v59, %v5420_v7  ;;  %v5622_v51 = vadd.f32 %v5558_v61, %v5421_v9  ;;  %v15653_v12 = vld [vmem:[#allocation125_spill] sm:$0xff]  ;;  %v15654_v9 = vld [vmem:[#allocation126_spill] sm:$0xff]  ;;  %v15660_v45 = vld [vmem:[#allocation132_spill] sm:$0xff] }
 0x1d5   : > { %15649 = vst [vmem:[#allocation104_spill] sm:$0xff] %v10014_v17  ;;  %v5623_v57 = vadd.f32 %v5559_v32, %v5422_v35  ;;  %v5624_v1 = vadd.f32 %v5560_v25, %v5423_v30  ;;  %v5625_v49 = vadd.f32 %v5561_v53, %v5424_v13  ;;  %v10019_v10 = vadd.f32 %v5562_v23, %v5425_v2  ;;  %v15655_v30 = vld [vmem:[#allocation127_spill] sm:$0xff]  ;;  %v15656_v2 = vld [vmem:[#allocation128_spill] sm:$0xff]  ;;  %v15661_v61 = vld [vmem:[#allocation133_spill] sm:$0xff] }
 0x1d6   : > { %v10021_v58 = vadd.f32 %v5563_v52, %v5426_v48  ;;  %v10023_v37 = vadd.f32 %v5564_v14, %v5427_v33  ;;  %v10025_v29 = vadd.f32 %v5565_v47, %v5428_v54  ;;  %v10029_v22 = vmul.f32 %v10017_v55, %v15572_v56  ;;  %v15657_v33 = vld [vmem:[#allocation129_spill] sm:$0xff]  ;;  %v15658_v54 = vld [vmem:[#allocation130_spill] sm:$0xff]  ;;  %v15664_v23 = vld [vmem:[#allocation136_spill] sm:$0xff] }
 0x1d7   : > { %v10033_v8 = vmul.f32 %v10017_v55, %v15651_v3  ;;  %v5754_v7 = vmul.f32 %v10017_v55, %v15653_v12  ;;  %v5755_v35 = vmul.f32 %v10017_v55, %v15654_v9  ;;  %v5756_v13 = vmul.f32 %v10017_v55, %v15655_v30  ;;  %v364_v39 = vld [vmem:[%s7983_s26 + $0x148] sm:$0xff]  ;;  %v15665_v52 = vld [vmem:[#allocation137_spill] sm:$0xff] }
 0x1d8   : > { %15650 = vst [vmem:[#allocation111_spill] sm:$0xff] %v10029_v22  ;;  %v5757_v48 = vmul.f32 %v10017_v55, %v15656_v2  ;;  %v5758_v56 = vmul.f32 %v10017_v55, %v15657_v33  ;;  %v5759_v43 = vmul.f32 %v10017_v55, %v15658_v54  ;;  %v5760_v38 = vmul.f32 %v10017_v55, %v15659_v15  ;;  %v954_v47 = vld [vmem:[#allocation2 + $0xc0] sm:$0xff]  ;;  %v10091_v33 = vld [vmem:[%s7991_s15 + $0xf] ss:$0 sm:$0xff] }
 0x1d9   : > { %15652 = vst [vmem:[#allocation49_spill] sm:$0xff] %v10033_v8  ;;  %v5761_v59 = vmul.f32 %v10017_v55, %v15660_v45  ;;  %v5762_v32 = vmul.f32 %v10017_v55, %v15661_v61  ;;  %v10055_v25 = vmul.f32 %v10017_v55, %v15662_v36  ;;  %v10059_v53 = vmul.f32 %v10017_v55, %v15663_v63  ;;  %v10081_v9 = vld [vmem:[%s7991_s15 + $0x5] ss:$0 sm:$0xff]  ;;  %v10166_v28 = vld [vmem:[%s7991_s15 + $0xb] ss:$0 sm:$0xff] }
 0x1da   : > { %v10064_v46 = vmul.f32 %v10017_v55, %v15664_v23  ;;  %v10068_v26 = vmul.f32 %v10017_v55, %v15665_v52  ;;  %v10072_v14 = vmul.f32 %v9722_v18, %v10017_v55  ;;  %v10074_v34 = vadd.f32 %v5754_v7, %v5617_v24  ;;  %478 = vst [vmem:[#allocation2 + $0x1aa] sm:$0x3f] %v364_v39  ;;  %v10085_v18 = vld [vmem:[%s7991_s15 + $0xa] ss:$0 sm:$0xff]  ;;  %v15672_v23 = vld [vmem:[#allocation64_spill] sm:$0xff] }
 0x1db   : > { %593 = vst [vmem:[#allocation2 + $0x429] sm:$0x7f] %v364_v39  ;;  %676 = vst [vmem:[#allocation2 + $0x6a8] sm:$0xff] %v364_v39  ;;  %v10076_v3 = vadd.f32 %v5755_v35, %v5618_v4  ;;  %v10078_v12 = vadd.f32 %v5756_v13, %v5619_v16  ;;  %v1959_v30 = vmul.f32 %v10081_v9, %v954_v47  ;;  %v955_v7 = vld [vmem:[#allocation2 + $0xc8] sm:$0xff] }
 0x1dc   : > { %15666 = vst [vmem:[#allocation50_spill] sm:$0xff] %v10072_v14  ;;  %15667 = vst [vmem:[#allocation31_spill] sm:$0xff] %v10074_v34  ;;  %v2961_v24 = vmul.f32 %v10085_v18, %v954_v47  ;;  %v10088_v2 = vadd.f32 %v5757_v48, %v5620_v21  ;;  %v3960_v54 = vmul.f32 %v10091_v33, %v954_v47  ;;  %v10095_v4 = vld [vmem:[%s7991_s15 + $0x14] ss:$0 sm:$0xff]  ;;  %v10105_v48 = vld [vmem:[#allocation2 + $0x340] sm:$0xff] }
 0x1dd   : > { %791 = vst [vmem:[#allocation2 + $0x927] sm:$0xff] %v364_v39  ;;  %906 = vst [vmem:[#allocation2 + $0xba6] sm:$0xff] %v364_v39  ;;  %v4963_v16 = vmul.f32 %v10095_v4, %v954_v47  ;;  %v1960_v35 = vmul.f32 %v10081_v9, %v955_v7  ;;  %v10099_v13 = vadd.f32 %v5758_v56, %v5621_v41  ;;  %v10114_v39 = vld [vmem:[%s7991_s15] ss:$0 sm:$0xff] }
 0x1de   : > { %15668 = vst [vmem:[#allocation34_spill] sm:$0xff] %v10076_v3  ;;  %15669 = vst [vmem:[#allocation38_spill] sm:$0xff] %v10091_v33  ;;  %v10101_v15 = vadd.f32 %v5759_v43, %v5622_v51  ;;  %v2962_v45 = vmul.f32 %v10085_v18, %v955_v7  ;;  %v3961_v21 = vmul.f32 %v10091_v33, %v955_v7  ;;  %v10117_v51 = vld [vmem:[#allocation2 + $0x348] sm:$0xff]  ;;  %v15671_v56 = vld [vmem:[#allocation148_spill] sm:$0xff] }
 0x1df   : > { %15670 = vst [vmem:[#allocation42_spill] sm:$0xff] %v10095_v4  ;;  %v10107_v61 = vadd.f32 %v5760_v38, %v5623_v57  ;;  %v10109_v36 = vadd.f32 %v5761_v59, %v5624_v1  ;;  %v10111_v63 = vadd.f32 %v5762_v32, %v5625_v49  ;;  %v1024_v41 = vmul.f32 %v10114_v39, %v954_v47  ;;  %v15673_v38 = vld [vmem:[#allocation138_spill] sm:$0xff]  ;;  %v15674_v59 = vld [vmem:[#allocation149_spill] sm:$0xff] }
 0x1e0   : > { %v2023_v43 = vadd.f32 %v1959_v30, %v15671_v56  ;;  %v3025_v52 = vadd.f32 %v2961_v24, %v15672_v23  ;;  %v1025_v8 = vmul.f32 %v10114_v39, %v955_v7  ;;  %v4964_v57 = vmul.f32 %v10095_v4, %v955_v7  ;;  %v10129_v3 = vld [vmem:[%s7991_s15 + $0x1] ss:$0 sm:$0xff]  ;;  %v15676_v24 = vld [vmem:[#allocation68_spill] sm:$0xff]  ;;  %v15677_v23 = vld [vmem:[#allocation139_spill] sm:$0xff]  ;;  %15680 = vst [vmem:[#allocation60_spill] sm:$0xff] %v10166_v28 }
 0x1e1   : > { %v10124_v1 = vadd.f32 %v3960_v54, %v15673_v38  ;;  %v5027_v49 = vadd.f32 %v4963_v16, %v9871_v0  ;;  %v2024_v32 = vadd.f32 %v1960_v35, %v15674_v59  ;;  %15675 = vst [vmem:[#allocation46_spill] sm:$0xff] %v10129_v3  ;;  %v1160_v47 = vmul.f32 %v10129_v3, %v10105_v48  ;;  %v10133_v30 = vld [vmem:[#allocation2 + $0x840] sm:$0xff]  ;;  %v10148_v38 = vld [vmem:[#allocation2 + $0x848] sm:$0xff] }
 0x1e2   : > { %v3026_v56 = vadd.f32 %v2962_v45, %v15676_v24  ;;  %v10137_v7 = vadd.f32 %v3961_v21, %v15677_v23  ;;  %v1161_v0 = vmul.f32 %v10129_v3, %v10117_v51  ;;  %v10142_v54 = vld [vmem:[%s7991_s15 + $0x2] ss:$0 sm:$0xff]  ;;  %v10152_v45 = vld [vmem:[#allocation2 + $0x5c8] sm:$0xff]  ;;  %v10159_v23 = vld [vmem:[%s7991_s15 + $0x6] ss:$0 sm:$0xff]  ;;  %v3161_v27 = vmul.f32 %v10166_v28, %v10105_v48 }
 0x1e3   : > { %15678 = vst [vmem:[#allocation52_spill] sm:$0xff] %v10142_v54  ;;  %v10144_v16 = vld [vmem:[#allocation2 + $0xc2] sm:$0xff]  ;;  %v1361_v21 = vmul.f32 %v10152_v45, %v10142_v54  ;;  %15679 = vst [vmem:[#allocation56_spill] sm:$0xff] %v10159_v23  ;;  %v2160_v22 = vmul.f32 %v10159_v23, %v10105_v48  ;;  %v2161_v34 = vmul.f32 %v10159_v23, %v10117_v51 }
 0x1e4   : > { %v1360_v35 = vmul.f32 %v10144_v16, %v10142_v54  ;;  %v10150_v59 = vld [vmem:[#allocation2 + $0xac0] sm:$0xff]  ;;  %v10156_v24 = vld [vmem:[#allocation2 + $0xac8] sm:$0xff]  ;;  %v5028_v62 = vadd.f32 %v4964_v57, %v9873_v19  ;;  %v1560_v42 = vmul.f32 %v10172_v44, %v10133_v30  ;;  %v3162_v40 = vmul.f32 %v10166_v28, %v10117_v51 }
 0x1e5   : > { %v5164_v60 = vmul.f32 %v9882_v31, %v10105_v48  ;;  %v1224_v14 = vadd.f32 %v1160_v47, %v1024_v41  ;;  %v1561_v17 = vmul.f32 %v10172_v44, %v10148_v38  ;;  %v10187_v19 = vmul.f32 %v10183_v6, %v10150_v59  ;;  %v10197_v41 = vld [vmem:[%s7991_s15 + $0x7] ss:$0 sm:$0xff]  ;;  %v10204_v54 = vld [vmem:[%s7991_s15 + $0xc] ss:$0 sm:$0xff] }
 0x1e6   : > { %v5165_v57 = vmul.f32 %v9882_v31, %v10117_v51  ;;  %v1225_v23 = vadd.f32 %v1161_v0, %v1025_v8  ;;  %v10194_v28 = vmul.f32 %v10183_v6, %v10156_v24  ;;  %15683 = vst [vmem:[#allocation40_spill] sm:$0xff] %v10197_v41  ;;  %v2361_v47 = vmul.f32 %v10197_v41, %v10144_v16 }
 0x1e7   : > { %v2362_v44 = vmul.f32 %v10197_v41, %v10152_v45  ;;  %v2224_v31 = vadd.f32 %v2160_v22, %v2023_v43  ;;  %v2225_v8 = vadd.f32 %v2161_v34, %v2024_v32  ;;  %v3225_v0 = vadd.f32 %v3161_v27, %v3025_v52  ;;  %15684 = vst [vmem:[#allocation44_spill] sm:$0xff] %v10204_v54  ;;  %v10213_v22 = vld [vmem:[%s7991_s15 + $0x8] ss:$0 sm:$0xff]  ;;  %v10222_v32 = vld [vmem:[%s7991_s15 + $0x9] ss:$0 sm:$0xff] }
 0x1e8   : > { %v3361_v6 = vmul.f32 %v10204_v54, %v10144_v16  ;;  %v3226_v4 = vadd.f32 %v3162_v40, %v3026_v56  ;;  %v3362_v3 = vmul.f32 %v10204_v54, %v10152_v45  ;;  %v5228_v33 = vadd.f32 %v5164_v60, %v5027_v49  ;;  %15685 = vst [vmem:[#allocation48_spill] sm:$0xff] %v10213_v22 }
 0x1e9   : > { %v5365_v41 = vmul.f32 %v10144_v16, %v9934_v11  ;;  %v1424_v50 = vadd.f32 %v1360_v35, %v1224_v14  ;;  %v2562_v27 = vmul.f32 %v10213_v22, %v10133_v30  ;;  %v5229_v34 = vadd.f32 %v5165_v57, %v5028_v62  ;;  %15686 = vst [vmem:[#allocation54_spill] sm:$0xff] %v10222_v32  ;;  %v15687_v14 = vld [vmem:[#allocation140_spill] sm:$0xff]  ;;  %v10230_v57 = vld [vmem:[%s7991_s15 + $0xd] ss:$0 sm:$0xff] }
 0x1ea   : > { %v5366_v43 = vmul.f32 %v10152_v45, %v9934_v11  ;;  %v1425_v52 = vadd.f32 %v1361_v21, %v1225_v23  ;;  %v2563_v40 = vmul.f32 %v10213_v22, %v10148_v38  ;;  %v2763_v60 = vmul.f32 %v10222_v32, %v10150_v59  ;;  %15688 = vst [vmem:[#allocation58_spill] sm:$0xff] %v10230_v57 }
 0x1eb   : > { %v4161_v49 = vmul.f32 %v15687_v14, %v10105_v48  ;;  %v2425_v56 = vadd.f32 %v2361_v47, %v2224_v31  ;;  %v2426_v35 = vadd.f32 %v2362_v44, %v2225_v8  ;;  %v3425_v62 = vadd.f32 %v3361_v6, %v3225_v0 }
 0x1ec   : > { %v3561_v21 = vmul.f32 %v10230_v57, %v10133_v30  ;;  %v3426_v23 = vadd.f32 %v3362_v3, %v3226_v4  ;;  %v3562_v54 = vmul.f32 %v10230_v57, %v10148_v38  ;;  %v5429_v22 = vadd.f32 %v5365_v41, %v5228_v33  ;;  %v15689_v4 = vld [vmem:[#allocation14_spill] sm:$0xff]  ;;  %v15690_v57 = vld [vmem:[#allocation123_spill] sm:$0xff] }
 0x1ed   : > { %v5566_v11 = vmul.f32 %v9976_v20, %v10133_v30  ;;  %v2764_v31 = vmul.f32 %v10222_v32, %v10156_v24  ;;  %v4162_v44 = vmul.f32 %v15687_v14, %v10117_v51  ;;  %v5430_v6 = vadd.f32 %v5366_v43, %v5229_v34 }
 0x1ee   : > { %v5567_v48 = vmul.f32 %v9976_v20, %v10148_v38  ;;  %v1624_v47 = vadd.f32 %v1560_v42, %v1424_v50  ;;  %v1625_v8 = vadd.f32 %v1561_v17, %v1425_v52  ;;  %v4225_v3 = vadd.f32 %v4161_v49, %v10124_v1 }
 0x1ef   : > { %v4362_v33 = vmul.f32 %v10144_v16, %v15689_v4  ;;  %v2626_v41 = vadd.f32 %v2562_v27, %v2425_v56  ;;  %v2627_v0 = vadd.f32 %v2563_v40, %v2426_v35  ;;  %v3761_v51 = vmul.f32 %v15690_v57, %v10150_v59 }
 0x1f0   : > { %v3762_v34 = vmul.f32 %v15690_v57, %v10156_v24  ;;  %v3625_v43 = vadd.f32 %v3561_v21, %v3425_v62  ;;  %v3626_v42 = vadd.f32 %v3562_v54, %v3426_v23  ;;  %v5630_v17 = vadd.f32 %v5566_v11, %v5429_v22  ;;  %v15691_v11 = vld [vmem:[#allocation32_spill] sm:$0xff] }
 0x1f1   : > { %v5767_v1 = vmul.f32 %v10017_v55, %v10150_v59  ;;  %v4226_v16 = vadd.f32 %v4162_v44, %v10137_v7  ;;  %v4363_v50 = vmul.f32 %v10152_v45, %v15689_v4  ;;  %v5631_v27 = vadd.f32 %v5567_v48, %v5430_v6  ;;  %v352_v44 = vld [vmem:[%s7983_s26 + $0xe8] sm:$0xff] }
 0x1f2   : > { %v5768_v52 = vmul.f32 %v10017_v55, %v10156_v24  ;;  %v5827_v40 = vadd.f32 %v10055_v25, %v10019_v10  ;;  %v5828_v14 = vadd.f32 %v10059_v53, %v10021_v58  ;;  %v4426_v54 = vadd.f32 %v4362_v33, %v4225_v3  ;;  %466 = vst [vmem:[#allocation2 + $0x10a] sm:$0x3f] %v352_v44 }
 0x1f3   : > { %v4563_v22 = vmul.f32 %v15691_v11, %v10133_v30  ;;  %v5829_v7 = vadd.f32 %v10064_v46, %v10023_v37  ;;  %v5830_v45 = vadd.f32 %v10068_v26, %v10025_v29  ;;  %v10280_v10 = vadd.f32 %v10187_v19, %v1624_v47  ;;  %v10296_v46 = vld [vmem:[%s10273_s12] ss:$0 sm:$0xff]  ;;  %581 = vst [vmem:[#allocation2 + $0x389] sm:$0x7f] %v352_v44 }
 0x1f4   : > { %v10283_v58 = vadd.f32 %v10194_v28, %v1625_v8  ;;  %v10285_v25 = vadd.f32 %v2763_v60, %v2626_v41  ;;  %v10287_v53 = vadd.f32 %v2764_v31, %v2627_v0  ;;  %v10289_v30 = vadd.f32 %v3761_v51, %v3625_v43  ;;  %664 = vst [vmem:[#allocation2 + $0x608] sm:$0xff] %v352_v44  ;;  %v365_v0 = vld [vmem:[%s7983_s26 + $0x150] sm:$0xff]  ;;  %v366_v51 = vld [vmem:[%s7983_s26 + $0x158] sm:$0xff] }
 0x1f5   : > { %v5831_v49 = vadd.f32 %v5767_v1, %v5630_v17  ;;  %v10291_v56 = vadd.f32 %v3762_v34, %v3626_v42  ;;  %v4427_v35 = vadd.f32 %v4363_v50, %v4226_v16  ;;  %v4564_v37 = vmul.f32 %v15691_v11, %v10148_v38  ;;  %779 = vst [vmem:[#allocation2 + $0x887] sm:$0xff] %v352_v44  ;;  %v956_v1 = vld [vmem:[#allocation2 + $0xd0] sm:$0xff] }
 0x1f6   : > { %v5832_v29 = vadd.f32 %v5768_v52, %v5631_v27  ;;  %v4627_v26 = vadd.f32 %v4563_v22, %v4426_v54  ;;  %v4764_v28 = vmul.f32 %v9825_v5, %v10150_v59  ;;  %v10302_v19 = vadd.f32 %v10296_v46, %v10101_v15  ;;  %894 = vst [vmem:[#allocation2 + $0xb06] sm:$0xff] %v352_v44 }
 0x1f7   : > { %v10306_v60 = vadd.f32 %v10296_v46, %v10107_v61  ;;  %v10310_v62 = vadd.f32 %v10296_v46, %v10099_v13  ;;  %v10314_v38 = vadd.f32 %v10296_v46, %v10109_v36  ;;  %v10318_v57 = vadd.f32 %v10296_v46, %v10111_v63  ;;  %479 = vst [vmem:[#allocation2 + $0x1b2] sm:$0xff] %v365_v0 }
 0x1f8   : > { %15692 = vst [vmem:[#allocation62_spill] sm:$0xff] %v10302_v19  ;;  %v10321_v59 = vadd.f32 %v10296_v46, %v5827_v40  ;;  %v10324_v15 = vadd.f32 %v10296_v46, %v5828_v14  ;;  %v10327_v61 = vadd.f32 %v10296_v46, %v5829_v7  ;;  %v10330_v13 = vadd.f32 %v10296_v46, %v5830_v45 }
 0x1f9   : > { %15693 = vst [vmem:[#allocation66_spill] sm:$0xff] %v10310_v62  ;;  %v10333_v21 = vadd.f32 %v10296_v46, %v5831_v49  ;;  %v4628_v36 = vadd.f32 %v4564_v37, %v4427_v35  ;;  %v4765_v63 = vmul.f32 %v9825_v5, %v10156_v24  ;;  %v10339_v23 = vadd.f32 %v10296_v46, %v10078_v12 }
 0x1fa   : > { %v10342_v31 = vadd.f32 %v10296_v46, %v5832_v29  ;;  %v10345_v6 = vadd.f32 %v4764_v28, %v4627_v26  ;;  %v10349_v48 = vadd.f32 %v10296_v46, %v10088_v2  ;;  %v5958_v47 = vmul.f32 %v10302_v19, %v10302_v19  ;;  %594 = vst [vmem:[#allocation2 + $0x431] sm:$0xff] %v365_v0 }
 0x1fb   : > { %15694 = vst [vmem:[#allocation70_spill] sm:$0xff] %v10339_v23  ;;  %v5959_v5 = vmul.f32 %v10306_v60, %v10306_v60  ;;  %v5957_v12 = vmul.f32 %v10310_v62, %v10310_v62  ;;  %v5960_v2 = vmul.f32 %v10314_v38, %v10314_v38  ;;  %v5961_v24 = vmul.f32 %v10318_v57, %v10318_v57 }
 0x1fc   : > { %15695 = vst [vmem:[#allocation74_spill] sm:$0xff] %v10349_v48  ;;  %v5962_v8 = vmul.f32 %v10321_v59, %v10321_v59  ;;  %v5963_v3 = vmul.f32 %v10324_v15, %v10324_v15  ;;  %v5964_v4 = vmul.f32 %v10327_v61, %v10327_v61  ;;  %v5965_v33 = vmul.f32 %v10330_v13, %v10330_v13 }
 0x1fd   : > { %v5966_v41 = vmul.f32 %v10333_v21, %v10333_v21  ;;  %v5967_v34 = vmul.f32 %v10342_v31, %v10342_v31  ;;  %v10376_v43 = vmul.f32 0.5, %v10306_v60  ;;  %v10379_v42 = vmul.f32 0.5, %v10314_v38  ;;  %792 = vst [vmem:[#allocation2 + $0x92f] sm:$0xfe] %v365_v0  ;;  %907 = vst [vmem:[#allocation2 + $0xbae] sm:$0xfc] %v365_v0 }
 0x1fe   : > { %v10382_v17 = vmul.f32 0.5, %v10318_v57  ;;  %480 = vst [vmem:[#allocation2 + $0x1ba] sm:$0x3f] %v366_v51  ;;  %595 = vst [vmem:[#allocation2 + $0x439] sm:$0x7f] %v366_v51  ;;  %v10385_v16 = vmul.f32 0.5, %v10321_v59  ;;  %v10390_v40 = vadd.f32 %v4765_v63, %v4628_v36  ;;  %v1961_v26 = vmul.f32 %v10081_v9, %v956_v1 }
 0x1ff   : > { %15696 = vst [vmem:[#allocation78_spill] sm:$0xff] %v10376_v43  ;;  %15697 = vst [vmem:[#allocation82_spill] sm:$0xff] %v10379_v42  ;;  %v10388_v50 = vmul.f32 0.5, %v10324_v15  ;;  %v6086_v27 = vmul.f32 0.035677407, %v5958_v47  ;;  %v10393_v22 = vmul.f32 0.5, %v10327_v61  ;;  %v2963_v63 = vmul.f32 %v10085_v18, %v956_v1 }
 0x200   : > { %678 = vst [vmem:[#allocation2 + $0x6b8] sm:$0xff] %v366_v51  ;;  %793 = vst [vmem:[#allocation2 + $0x937] sm:$0xff] %v366_v51  ;;  %v6087_v52 = vmul.f32 0.035677407, %v5959_v5  ;;  %v6088_v14 = vmul.f32 0.035677407, %v5960_v2  ;;  %v10402_v47 = vmul.f32 %v10349_v48, %v10349_v48 }
 0x201   : > { %908 = vst [vmem:[#allocation2 + $0xbb6] sm:$0xff] %v366_v51  ;;  %v6089_v54 = vmul.f32 0.035677407, %v5961_v24  ;;  %v6090_v11 = vmul.f32 0.035677407, %v5962_v8  ;;  %v10396_v7 = vmul.f32 0.5, %v10330_v13 }
 0x202   : > { %v6091_v45 = vmul.f32 0.035677407, %v5963_v3  ;;  %v6092_v49 = vmul.f32 0.035677407, %v5964_v4  ;;  %v6085_v35 = vmul.f32 0.035677407, %v5957_v12 }
 0x203   : > { %v6093_v37 = vmul.f32 0.035677407, %v5965_v33  ;;  %v6094_v29 = vmul.f32 0.035677407, %v5966_v41  ;;  %v6095_v28 = vmul.f32 0.035677407, %v5967_v34  ;;  %v1026_v34 = vmul.f32 %v10114_v39, %v956_v1 }
 0x204   : > { %v6150_v44 = vadd.f32 0.7978846, %v6086_v27  ;;  %v6151_v36 = vadd.f32 0.7978846, %v6087_v52  ;;  %15698 = vst [vmem:[#allocation86_spill] sm:$0xff] %v10402_v47  ;;  %v10404_v8 = vld [vmem:[#allocation2 + $0x350] sm:$0xff] }
 0x205   : > { %v6152_v5 = vadd.f32 0.7978846, %v6088_v14  ;;  %v6153_v2 = vadd.f32 0.7978846, %v6089_v54  ;;  %v6154_v24 = vadd.f32 0.7978846, %v6090_v11  ;;  %v2025_v14 = vadd.f32 %v1961_v26, %v10280_v10 }
 0x206   : > { %v10407_v12 = vmul.f32 0.5, %v10333_v21  ;;  %v10410_v3 = vmul.f32 0.5, %v10342_v31  ;;  %v6155_v4 = vadd.f32 0.7978846, %v6091_v45  ;;  %v6156_v33 = vadd.f32 0.7978846, %v6092_v49 }
 0x207   : > { %v10412_v41 = vadd.f32 0.7978846, %v6085_v35  ;;  %v6157_v0 = vadd.f32 0.7978846, %v6093_v37  ;;  %v6158_v51 = vadd.f32 0.7978846, %v6094_v29  ;;  %v6214_v52 = vmul.f32 %v6150_v44, %v10302_v19 }
 0x208   : > { %v6159_v27 = vadd.f32 0.7978846, %v6095_v28  ;;  %v10418_v54 = vadd.f32 %v2963_v63, %v10285_v25  ;;  %v10420_v11 = vld [vmem:[#allocation2 + $0x358] sm:$0xff]  ;;  %v6215_v42 = vmul.f32 %v6151_v36, %v10306_v60  ;;  %v6216_v45 = vmul.f32 %v6152_v5, %v10314_v38  ;;  %v15700_v44 = vld [vmem:[#allocation38_spill] sm:$0xff] }
 0x209   : > { %15699 = vst [vmem:[#allocation90_spill] sm:$0xff] %v10412_v41  ;;  %v6217_v49 = vmul.f32 %v6153_v2, %v10318_v57  ;;  %v6218_v35 = vmul.f32 %v6154_v24, %v10321_v59  ;;  %v957_v37 = vld [vmem:[#allocation2 + $0xd8] sm:$0xff]  ;;  %v6219_v29 = vmul.f32 %v6155_v4, %v10324_v15  ;;  %v6220_v28 = vmul.f32 %v6156_v33, %v10327_v61  ;;  %v15701_v25 = vld [vmem:[#allocation46_spill] sm:$0xff] }
 0x20a   : > { %v3962_v10 = vmul.f32 %v15700_v44, %v956_v1  ;;  %v1162_v26 = vmul.f32 %v15701_v25, %v10404_v8  ;;  %v6221_v63 = vmul.f32 %v6157_v0, %v10330_v13  ;;  %v6222_v60 = vmul.f32 %v6158_v51, %v10333_v21  ;;  %v15702_v59 = vld [vmem:[#allocation42_spill] sm:$0xff]  ;;  %v10445_v4 = vld [vmem:[#allocation2 + $0xd2] sm:$0xff] }
 0x20b   : > { %v1027_v38 = vmul.f32 %v10114_v39, %v957_v37  ;;  %v1163_v57 = vmul.f32 %v15701_v25, %v10420_v11  ;;  %7268 = vtanh.f32 %v6214_v52  ;;  %v4965_v36 = vmul.f32 %v15702_v59, %v956_v1  ;;  %v15703_v33 = vld [vmem:[#allocation52_spill] sm:$0xff] }
 0x20c   : > { %v1962_v15 = vmul.f32 %v10081_v9, %v957_v37  ;;  %v4966_v61 = vmul.f32 %v15702_v59, %v957_v37  ;;  %v6223_v5 = vmul.f32 %v6159_v27, %v10342_v31  ;;  %7270 = vtanh.f32 %v6215_v42  ;;  %v10449_v0 = vld [vmem:[#allocation2 + $0x850] sm:$0xff]  ;;  %v10451_v31 = vld [vmem:[#allocation2 + $0x5d8] sm:$0xff] }
 0x20d   : > { %v2964_v2 = vmul.f32 %v10085_v18, %v957_v37  ;;  %v3963_v13 = vmul.f32 %v15700_v44, %v957_v37  ;;  %7272 = vtanh.f32 %v6216_v45  ;;  %v10443_v21 = vadd.f32 %v3962_v10, %v10289_v30  ;;  %v10455_v27 = vld [vmem:[#allocation2 + $0x858] sm:$0xff] }
 0x20e   : > { %v1226_v24 = vadd.f32 %v1162_v26, %v1026_v34  ;;  %v1362_v1 = vmul.f32 %v10445_v4, %v15703_v33  ;;  %7274 = vtanh.f32 %v6217_v49  ;;  %v1227_v51 = vadd.f32 %v1163_v57, %v1027_v38  ;;  %v15704_v30 = vld [vmem:[#allocation56_spill] sm:$0xff]  ;;  %v15705_v49 = vld [vmem:[#allocation33_spill] sm:$0xff] }
 0x20f   : > { %v1363_v42 = vmul.f32 %v10451_v31, %v15703_v33  ;;  %v2162_v52 = vmul.f32 %v15704_v30, %v10404_v8  ;;  %7276 = vtanh.f32 %v6218_v35  ;;  %v5029_v34 = vadd.f32 %v4965_v36, %v10345_v6  ;;  %v10464_v26 = vld [vmem:[#allocation2 + $0xad0] sm:$0xff]  ;;  %v15706_v57 = vld [vmem:[#allocation57_spill] sm:$0xff] }
 0x210   : > { %v2026_v45 = vadd.f32 %v1962_v15, %v10283_v58  ;;  %v5030_v37 = vadd.f32 %v4966_v61, %v10390_v40  ;;  %7278 = vtanh.f32 %v6219_v29  ;;  %v1562_v10 = vmul.f32 %v15705_v49, %v10449_v0  ;;  %v15707_v36 = vld [vmem:[#allocation40_spill] sm:$0xff] }
 0x211   : > { %v2163_v38 = vmul.f32 %v15704_v30, %v10420_v11  ;;  %v5166_v43 = vmul.f32 %v15706_v57, %v10404_v8  ;;  %7280 = vtanh.f32 %v6220_v28  ;;  %v1426_v35 = vadd.f32 %v1362_v1, %v1226_v24  ;;  %v10478_v41 = vld [vmem:[#allocation2 + $0xad8] sm:$0xff] }
 0x212   : > { %v1563_v6 = vmul.f32 %v15705_v49, %v10455_v27  ;;  %v5167_v58 = vmul.f32 %v15706_v57, %v10420_v11  ;;  %7282 = vtanh.f32 %v6221_v63  ;;  %v1427_v40 = vadd.f32 %v1363_v42, %v1227_v51  ;;  %v15708_v28 = vld [vmem:[#allocation37_spill] sm:$0xff] }
 0x213   : > { %v2226_v29 = vadd.f32 %v2162_v52, %v2025_v14  ;;  %v2363_v15 = vmul.f32 %v10445_v4, %v15707_v36  ;;  %7284 = vtanh.f32 %v6222_v60  ;;  %v3028_v61 = vadd.f32 %v2964_v2, %v10287_v53  ;;  %v15709_v51 = vld [vmem:[#allocation73_spill] sm:$0xff] }
 0x214   : > { %v4027_v19 = vadd.f32 %v3963_v13, %v10291_v56  ;;  %v1762_v24 = vmul.f32 %v15708_v28, %v10464_v26  ;;  %v2227_v1 = vadd.f32 %v2163_v38, %v2026_v45  ;;  %v2364_v57 = vmul.f32 %v10451_v31, %v15707_v36 }
 0x215   : > { %v5230_v63 = vadd.f32 %v5166_v43, %v5029_v34  ;;  %v5367_v14 = vmul.f32 %v10445_v4, %v15709_v51  ;;  %v10486_v42 = vpop.eup %7268  ;;  %7286 = vtanh.f32 %v6223_v5  ;;  %v1626_v60 = vadd.f32 %v1562_v10, %v1426_v35  ;;  %v15712_v43 = vld [vmem:[#allocation48_spill] sm:$0xff] }
 0x216   : > { %15710 = vst [vmem:[#allocation98_spill] sm:$0xff] %v10486_v42  ;;  %v5231_v53 = vadd.f32 %v5167_v58, %v5030_v37  ;;  %v5368_v56 = vmul.f32 %v10451_v31, %v15709_v51  ;;  %v10490_v2 = vpop.eup %7270  ;;  %v1627_v13 = vadd.f32 %v1563_v6, %v1427_v40  ;;  %v1763_v52 = vmul.f32 %v15708_v28, %v10478_v41  ;;  %v15714_v10 = vld [vmem:[#allocation60_spill] sm:$0xff]  ;;  %v10513_v42 = vld [vmem:[%s7991_s15 + $0x10] ss:$0 sm:$0xff] }
 0x217   : > { %15711 = vst [vmem:[#allocation105_spill] sm:$0xff] %v10490_v2  ;;  %v2427_v45 = vadd.f32 %v2363_v15, %v2226_v29  ;;  %v2564_v34 = vmul.f32 %v15712_v43, %v10449_v0  ;;  %v10496_v38 = vpop.eup %7272  ;;  %v2565_v5 = vmul.f32 %v15712_v43, %v10455_v27  ;;  %v2765_v37 = vmul.f32 %v10222_v32, %v10464_v26 }
 0x218   : > { %15713 = vst [vmem:[#allocation112_spill] sm:$0xff] %v10496_v38  ;;  %v3163_v35 = vmul.f32 %v15714_v10, %v10404_v8  ;;  %v3164_v6 = vmul.f32 %v15714_v10, %v10420_v11  ;;  %v7275_v58 = vpop.eup %7274  ;;  %v2428_v40 = vadd.f32 %v2364_v57, %v2227_v1  ;;  %v2766_v29 = vmul.f32 %v10222_v32, %v10478_v41 }
 0x219   : > { %v5431_v15 = vadd.f32 %v5367_v14, %v5230_v63  ;;  %v5568_v51 = vmul.f32 %v9976_v20, %v10449_v0  ;;  %v7277_v38 = vpop.eup %7276  ;;  %v10510_v2 = vadd.f32 %v1762_v24, %v1626_v60  ;;  %15715 = vst [vmem:[#allocation72_spill] sm:$0xff] %v10513_v42  ;;  %v4163_v62 = vmul.f32 %v10513_v42, %v10404_v8  ;;  %v15716_v14 = vld [vmem:[#allocation44_spill] sm:$0xff] }
 0x21a   : > { %v5432_v48 = vadd.f32 %v5368_v56, %v5231_v53  ;;  %v5569_v47 = vmul.f32 %v9976_v20, %v10455_v27  ;;  %v7279_v1 = vpop.eup %7278  ;;  %v10519_v57 = vadd.f32 %v1763_v52, %v1627_v13  ;;  %v2628_v63 = vadd.f32 %v2564_v34, %v2427_v45  ;;  %v15717_v13 = vld [vmem:[#allocation58_spill] sm:$0xff] }
 0x21b   : > { %v3363_v23 = vmul.f32 %v10445_v4, %v15716_v14  ;;  %v4164_v24 = vmul.f32 %v10513_v42, %v10420_v11  ;;  %v7281_v60 = vpop.eup %7280  ;;  %v6345_v10 = vadd.f32 1.0, %v7275_v58  ;;  %v3227_v32 = vadd.f32 %v3163_v35, %v10418_v54  ;;  %v10534_v42 = vld [vmem:[%s7991_s15 + $0x11] ss:$0 sm:$0xff] }
 0x21c   : > { %v3228_v8 = vadd.f32 %v3164_v6, %v3028_v61  ;;  %v3364_v53 = vmul.f32 %v10451_v31, %v15716_v14  ;;  %v7283_v20 = vpop.eup %7282  ;;  %v2629_v56 = vadd.f32 %v2565_v5, %v2428_v40  ;;  %v3563_v52 = vmul.f32 %v15717_v13, %v10449_v0 }
 0x21d   : > { %v5632_v45 = vadd.f32 %v5568_v51, %v5431_v15  ;;  %v5769_v34 = vmul.f32 %v10017_v55, %v10464_v26  ;;  %v7285_v43 = vpop.eup %7284  ;;  %v4227_v11 = vadd.f32 %v4163_v62, %v10443_v21  ;;  %v4364_v54 = vmul.f32 %v10534_v42, %v10445_v4 }
 0x21e   : > { %v5633_v61 = vadd.f32 %v5569_v47, %v5432_v48  ;;  %v5770_v5 = vmul.f32 %v10017_v55, %v10478_v41  ;;  %v6346_v35 = vadd.f32 1.0, %v7277_v38  ;;  %v10540_v6 = vadd.f32 %v2765_v37, %v2628_v63  ;;  %v10550_v38 = vld [vmem:[%s7991_s15 + $0xe] ss:$0 sm:$0xff] }
 0x21f   : > { %v4228_v58 = vadd.f32 %v4164_v24, %v4027_v19  ;;  %v4365_v40 = vmul.f32 %v10534_v42, %v10451_v31  ;;  %v7287_v15 = vpop.eup %7286  ;;  %v6348_v62 = vadd.f32 1.0, %v7281_v60  ;;  %v3427_v21 = vadd.f32 %v3363_v23, %v3227_v32  ;;  %v10555_v31 = vld [vmem:[%s7991_s15 + $0x12] ss:$0 sm:$0xff] }
 0x220   : > { %v3428_v51 = vadd.f32 %v3364_v53, %v3228_v8  ;;  %v3564_v4 = vmul.f32 %v15717_v13, %v10455_v27  ;;  %v6347_v14 = vadd.f32 1.0, %v7279_v1  ;;  %v6349_v48 = vadd.f32 1.0, %v7283_v20 }
 0x221   : > { %v10547_v47 = vmul.f32 %v6345_v10, %v10382_v17  ;;  %v5833_v55 = vadd.f32 %v5769_v34, %v5632_v45  ;;  %v3763_v19 = vmul.f32 %v10550_v38, %v10464_v26  ;;  %v4428_v37 = vadd.f32 %v4364_v54, %v4227_v11  ;;  %v958_v34 = vld [vmem:[#allocation2 + $0xe0] sm:$0xff] }
 0x222   : > { %v4565_v32 = vmul.f32 %v10555_v31, %v10449_v0  ;;  %v5834_v23 = vadd.f32 %v5770_v5, %v5633_v61  ;;  %v6350_v63 = vadd.f32 1.0, %v7285_v43  ;;  %v6351_v1 = vadd.f32 1.0, %v7287_v15  ;;  %v367_v54 = vld [vmem:[%s7983_s26 + $0x160] sm:$0xff] }
 0x223   : > { %15718 = vst [vmem:[#allocation76_spill] sm:$0xff] %v10547_v47  ;;  %v4429_v24 = vadd.f32 %v4365_v40, %v4228_v58  ;;  %v4566_v17 = vmul.f32 %v10555_v31, %v10455_v27  ;;  %v10562_v10 = vmul.f32 %v6348_v62, %v10393_v22  ;;  %v3627_v60 = vadd.f32 %v3563_v52, %v3427_v21  ;;  %v10579_v52 = vld [vmem:[%s7991_s15 + $0x13] ss:$0 sm:$0xff] }
 0x224   : > { %v3628_v8 = vadd.f32 %v3564_v4, %v3428_v51  ;;  %v3764_v53 = vmul.f32 %v10550_v38, %v10478_v41  ;;  %v10567_v20 = vmul.f32 %v6346_v35, %v10385_v16  ;;  %v10570_v0 = vmul.f32 %v6349_v48, %v10396_v7  ;;  %481 = vst [vmem:[#allocation2 + $0x1c2] sm:$0xff] %v367_v54  ;;  %v10612_v51 = vld [vmem:[#allocation2 + $0x360] sm:$0xff] }
 0x225   : > { %15719 = vst [vmem:[#allocation114_spill] sm:$0xff] %v10562_v10  ;;  %v2830_v43 = vadd.f32 %v2766_v29, %v2629_v56  ;;  %v10573_v45 = vadd.f32 %v10296_v46, %v5833_v55  ;;  %v10576_v27 = vmul.f32 %v6347_v14, %v10388_v50  ;;  %v4629_v22 = vadd.f32 %v4565_v32, %v4428_v37  ;;  %v959_v14 = vld [vmem:[#allocation2 + $0xe8] sm:$0xff] }
 0x226   : > { %15720 = vst [vmem:[#allocation115_spill] sm:$0xff] %v10567_v20  ;;  %15721 = vst [vmem:[#allocation116_spill] sm:$0xff] %v10570_v0  ;;  %v4766_v11 = vmul.f32 %v10579_v52, %v10464_v26  ;;  %v10584_v16 = vadd.f32 %v10296_v46, %v5834_v23  ;;  %v10588_v7 = vmul.f32 %v6350_v63, %v10407_v12  ;;  %v10623_v37 = vld [vmem:[#allocation2 + $0x368] sm:$0xff] }
 0x227   : > { %15722 = vst [vmem:[#allocation25_spill] sm:$0xff] %v10576_v27  ;;  %v10591_v29 = vmul.f32 %v6351_v1, %v10410_v3  ;;  %v4630_v56 = vadd.f32 %v4566_v17, %v4429_v24  ;;  %v4767_v50 = vmul.f32 %v10579_v52, %v10478_v41  ;;  %596 = vst [vmem:[#allocation2 + $0x441] sm:$0xff] %v367_v54  ;;  %v368_v32 = vld [vmem:[%s7983_s26 + $0x168] sm:$0xff]  ;;  %v966_v17 = vld [vmem:[#allocation2 + $0x160] sm:$0xff] }
 0x228   : > { %15723 = vst [vmem:[#allocation26_spill] sm:$0xff] %v10588_v7  ;;  %794 = vst [vmem:[#allocation2 + $0x93f] sm:$0xfe] %v367_v54  ;;  %v10597_v26 = vmul.f32 %v10562_v10, %v10562_v10  ;;  %v3827_v61 = vadd.f32 %v3763_v19, %v3627_v60  ;;  %v3828_v5 = vadd.f32 %v3764_v53, %v3628_v8  ;;  %v10632_v60 = vld [vmem:[#allocation2 + $0x3e0] sm:$0xff] }
 0x229   : > { %15724 = vst [vmem:[#allocation28_spill] sm:$0xff] %v10591_v29  ;;  %909 = vst [vmem:[#allocation2 + $0xbbe] sm:$0xfc] %v367_v54  ;;  %v1963_v12 = vmul.f32 %v10081_v9, %v958_v34  ;;  %v10602_v3 = vmul.f32 %v10570_v0, %v10570_v0  ;;  %v5968_v41 = vmul.f32 %v10573_v45, %v10573_v45  ;;  %v10743_v0 = vld [vmem:[#allocation2 + $0xb68] sm:$0xff] }
 0x22a   : > { %15725 = vst [vmem:[#allocation13_spill] sm:$0xff] %v10597_v26  ;;  %v2965_v35 = vmul.f32 %v10085_v18, %v958_v34  ;;  %v3964_v58 = vmul.f32 %v15700_v44, %v958_v34  ;;  %v4830_v40 = vadd.f32 %v4766_v11, %v4629_v22  ;;  %v5969_v15 = vmul.f32 %v10584_v16, %v10584_v16  ;;  %v10639_v22 = vld [vmem:[#allocation2 + $0x3e8] sm:$0xff] }
 0x22b   : > { %15726 = vst [vmem:[#allocation45_spill] sm:$0xff] %v10602_v3  ;;  %v4967_v62 = vmul.f32 %v15702_v59, %v958_v34  ;;  %v1964_v21 = vmul.f32 %v10081_v9, %v959_v14  ;;  %v10616_v4 = vmul.f32 %v10588_v7, %v10588_v7  ;;  %v10620_v48 = vmul.f32 %v10591_v29, %v10591_v29  ;;  %v10702_v3 = vld [vmem:[#allocation2 + $0x8e8] sm:$0xff] }
 0x22c   : > { %v4831_v55 = vadd.f32 %v4767_v50, %v4630_v56  ;;  %v1028_v19 = vmul.f32 %v10114_v39, %v958_v34  ;;  %v10627_v23 = vadd.f32 %v1963_v12, %v10510_v2  ;;  %v1029_v63 = vmul.f32 %v10114_v39, %v959_v14  ;;  %482 = vst [vmem:[#allocation2 + $0x1ca] sm:$0x3f] %v368_v32  ;;  %v967_v34 = vld [vmem:[#allocation2 + $0x168] sm:$0xff] }
 0x22d   : > { %15727 = vst [vmem:[#allocation51_spill] sm:$0xff] %v10616_v4  ;;  %15728 = vst [vmem:[#allocation55_spill] sm:$0xff] %v10620_v48  ;;  %v2966_v1 = vmul.f32 %v10085_v18, %v959_v14  ;;  %v3965_v24 = vmul.f32 %v15700_v44, %v959_v14  ;;  %v6096_v8 = vmul.f32 0.035677407, %v5968_v41  ;;  %v10635_v53 = vadd.f32 %v2965_v35, %v10540_v6 }
 0x22e   : > { %597 = vst [vmem:[#allocation2 + $0x449] sm:$0x7f] %v368_v32  ;;  %680 = vst [vmem:[#allocation2 + $0x6c8] sm:$0xff] %v368_v32  ;;  %v10637_v2 = vadd.f32 %v3964_v58, %v3827_v61  ;;  %v1164_v44 = vmul.f32 %v15701_v25, %v10612_v51  ;;  %v6097_v11 = vmul.f32 0.035677407, %v5969_v15  ;;  %v10643_v54 = vadd.f32 %v4967_v62, %v4830_v40 }
 0x22f   : > { %795 = vst [vmem:[#allocation2 + $0x947] sm:$0xff] %v368_v32  ;;  %910 = vst [vmem:[#allocation2 + $0xbc6] sm:$0xff] %v368_v32  ;;  %v10646_v56 = vadd.f32 %v1964_v21, %v10519_v57  ;;  %v1165_v50 = vmul.f32 %v15701_v25, %v10623_v37  ;;  %v4968_v6 = vmul.f32 %v15702_v59, %v959_v14  ;;  %v6160_v15 = vadd.f32 0.7978846, %v6096_v8  ;;  %v10663_v14 = vld [vmem:[#allocation2 + $0xe2] sm:$0xff]  ;;  %v15729_v8 = vld [vmem:[#allocation15_spill] sm:$0xff] }
 0x230   : > { %v1036_v61 = vmul.f32 %v10114_v39, %v966_v17  ;;  %v1971_v12 = vmul.f32 %v10081_v9, %v966_v17  ;;  %v1172_v41 = vmul.f32 %v15701_v25, %v10632_v60  ;;  %v10655_v35 = vadd.f32 %v2966_v1, %v2830_v43 }
 0x231   : > { %v10657_v58 = vadd.f32 %v3965_v24, %v3828_v5  ;;  %v1037_v40 = vmul.f32 %v10114_v39, %v967_v34  ;;  %v1173_v57 = vmul.f32 %v15701_v25, %v10639_v22  ;;  %v2973_v62 = vmul.f32 %v10085_v18, %v966_v17  ;;  %v10668_v5 = vld [vmem:[#allocation2 + $0x5e8] sm:$0xff]  ;;  %v10672_v24 = vld [vmem:[#allocation2 + $0x860] sm:$0xff] }
 0x232   : > { %v1228_v59 = vadd.f32 %v1164_v44, %v1028_v19  ;;  %v1364_v21 = vmul.f32 %v10663_v14, %v15703_v33  ;;  %v6161_v32 = vadd.f32 0.7978846, %v6097_v11  ;;  %v1972_v43 = vmul.f32 %v10081_v9, %v967_v34  ;;  %v10675_v44 = vld [vmem:[#allocation2 + $0x162] sm:$0xff] }
 0x233   : > { %v1229_v1 = vadd.f32 %v1165_v50, %v1029_v63  ;;  %v1365_v39 = vmul.f32 %v10668_v5, %v15703_v33  ;;  %v5032_v25 = vadd.f32 %v4968_v6, %v4831_v55  ;;  %v2035_v17 = vadd.f32 %v1971_v12, %v15729_v8  ;;  %v10683_v50 = vld [vmem:[#allocation2 + $0x668] sm:$0xff]  ;;  %v10689_v6 = vld [vmem:[#allocation2 + $0x8e0] sm:$0xff] }
 0x234   : > { %v1236_v19 = vadd.f32 %v1172_v41, %v1036_v61  ;;  %v1372_v48 = vmul.f32 %v10675_v44, %v15703_v33  ;;  %v10680_v11 = vmul.f32 0.5, %v10573_v45  ;;  %v2974_v9 = vmul.f32 %v10085_v18, %v967_v34  ;;  %v10687_v55 = vld [vmem:[#allocation2 + $0x868] sm:$0xff] }
 0x235   : > { %v1237_v63 = vadd.f32 %v1173_v57, %v1037_v40  ;;  %v1373_v4 = vmul.f32 %v10683_v50, %v15703_v33  ;;  %v10692_v61 = vmul.f32 0.5, %v10584_v16  ;;  %v6224_v12 = vmul.f32 %v6160_v15, %v10573_v45  ;;  %v15730_v40 = vld [vmem:[#allocation36_spill] sm:$0xff]  ;;  %v10708_v15 = vld [vmem:[#allocation2 + $0xae0] sm:$0xff] }
 0x236   : > { %v1428_v41 = vadd.f32 %v1364_v21, %v1228_v59  ;;  %v1564_v18 = vmul.f32 %v15705_v49, %v10672_v24  ;;  %v6225_v34 = vmul.f32 %v6161_v32, %v10584_v16  ;;  %v10699_v57 = vadd.f32 %v2973_v62, %v15730_v40  ;;  %v10711_v59 = vld [vmem:[%s7991_s15 + $0x15] ss:$0 sm:$0xff] }
 0x237   : > { %v2036_v33 = vadd.f32 %v1972_v43, %v15729_v8  ;;  %v1429_v29 = vadd.f32 %v1365_v39, %v1229_v1  ;;  %v1436_v7 = vadd.f32 %v1372_v48, %v1236_v19  ;;  %v1565_v26 = vmul.f32 %v15705_v49, %v10687_v55  ;;  %v10726_v8 = vld [vmem:[#allocation2 + $0xae8] sm:$0xff] }
 0x238   : > { %v1572_v45 = vmul.f32 %v15705_v49, %v10689_v6  ;;  %v5168_v16 = vmul.f32 %v10711_v59, %v10612_v51  ;;  %v10716_v62 = vadd.f32 %v2974_v9, %v15730_v40  ;;  %v1437_v21 = vadd.f32 %v1373_v4, %v1237_v63  ;;  %v369_v63 = vld [vmem:[%s7983_s26 + $0x170] sm:$0xff] }
 0x239   : > { %v2164_v48 = vmul.f32 %v15704_v30, %v10612_v51  ;;  %v5169_v32 = vmul.f32 %v10711_v59, %v10623_v37  ;;  %7288 = vtanh.f32 %v6224_v12  ;;  %v1573_v43 = vmul.f32 %v15705_v49, %v10702_v3  ;;  %483 = vst [vmem:[#allocation2 + $0x1d2] sm:$0xff] %v369_v63  ;;  %598 = vst [vmem:[#allocation2 + $0x451] sm:$0xff] %v369_v63 }
 0x23a   : > { %v1628_v1 = vadd.f32 %v1564_v18, %v1428_v41  ;;  %v2165_v39 = vmul.f32 %v15704_v30, %v10623_v37  ;;  %7290 = vtanh.f32 %v6225_v34  ;;  %v1764_v4 = vmul.f32 %v15708_v28, %v10708_v15  ;;  %v10737_v41 = vld [vmem:[%s7991_s15 + $0x16] ss:$0 sm:$0xff]  ;;  %796 = vst [vmem:[#allocation2 + $0x94f] sm:$0xfe] %v369_v63  ;;  %911 = vst [vmem:[#allocation2 + $0xbce] sm:$0xfc] %v369_v63 }
 0x23b   : > { %v2172_v19 = vmul.f32 %v15704_v30, %v10632_v60  ;;  %v2173_v9 = vmul.f32 %v15704_v30, %v10639_v22  ;;  %v1629_v12 = vadd.f32 %v1565_v26, %v1429_v29  ;;  %v1636_v40 = vadd.f32 %v1572_v45, %v1436_v7  ;;  %v10741_v34 = vld [vmem:[#allocation2 + $0xb60] sm:$0xff] }
 0x23c   : > { %v5232_v49 = vadd.f32 %v5168_v16, %v10643_v54  ;;  %v5369_v18 = vmul.f32 %v10737_v41, %v10663_v14  ;;  %v2228_v30 = vadd.f32 %v2164_v48, %v10627_v23  ;;  %v2365_v7 = vmul.f32 %v10663_v14, %v15707_v36 }
 0x23d   : > { %v5233_v29 = vadd.f32 %v5169_v32, %v5032_v25  ;;  %v5370_v26 = vmul.f32 %v10737_v41, %v10668_v5  ;;  %v1637_v54 = vadd.f32 %v1573_v43, %v1437_v21  ;;  %v1765_v45 = vmul.f32 %v15708_v28, %v10726_v8  ;;  %v10764_v43 = vld [vmem:[%s7991_s15 + $0x17] ss:$0 sm:$0xff] }
 0x23e   : > { %v2229_v16 = vadd.f32 %v2165_v39, %v10646_v56  ;;  %v2366_v63 = vmul.f32 %v10668_v5, %v15707_v36  ;;  %v2236_v10 = vadd.f32 %v2172_v19, %v2035_v17  ;;  %v2237_v27 = vadd.f32 %v2173_v9, %v2036_v33  ;;  %15731 = vst [vmem:[#allocation59_spill] sm:$0xff] %v10764_v43  ;;  %v15732_v33 = vld [vmem:[#allocation48_spill] sm:$0xff] }
 0x23f   : > { %v2373_v23 = vmul.f32 %v10675_v44, %v15707_v36  ;;  %v2374_v25 = vmul.f32 %v10683_v50, %v15707_v36  ;;  %v1772_v48 = vmul.f32 %v15708_v28, %v10741_v34  ;;  %v1773_v21 = vmul.f32 %v15708_v28, %v10743_v0 }
 0x240   : > { %v5433_v32 = vadd.f32 %v5369_v18, %v5232_v49  ;;  %v5570_v56 = vmul.f32 %v10764_v43, %v10672_v24  ;;  %v2429_v17 = vadd.f32 %v2365_v7, %v2228_v30  ;;  %v2566_v39 = vmul.f32 %v15732_v33, %v10672_v24 }
 0x241   : > { %v5434_v19 = vadd.f32 %v5370_v26, %v5233_v29  ;;  %v5571_v36 = vmul.f32 %v10764_v43, %v10687_v55  ;;  %v10772_v9 = vadd.f32 %v1764_v4, %v1628_v1  ;;  %v10774_v20 = vadd.f32 %v1765_v45, %v1629_v12  ;;  %v15735_v1 = vld [vmem:[#allocation54_spill] sm:$0xff]  ;;  %v10787_v45 = vld [vmem:[%s7991_s15 + $0x18] ss:$0 sm:$0xff] }
 0x242   : > { %v2430_v28 = vadd.f32 %v2366_v63, %v2229_v16  ;;  %v2567_v49 = vmul.f32 %v15732_v33, %v10687_v55  ;;  %v2437_v18 = vadd.f32 %v2373_v23, %v2236_v10  ;;  %v2438_v47 = vadd.f32 %v2374_v25, %v2237_v27  ;;  %15736 = vst [vmem:[#allocation71_spill] sm:$0xff] %v10787_v45  ;;  %v15737_v63 = vld [vmem:[#allocation60_spill] sm:$0xff] }
 0x243   : > { %15733 = vst [vmem:[#allocation63_spill] sm:$0xff] %v10772_v9  ;;  %15734 = vst [vmem:[#allocation67_spill] sm:$0xff] %v10774_v20  ;;  %v2574_v30 = vmul.f32 %v15732_v33, %v10689_v6  ;;  %v2575_v7 = vmul.f32 %v15732_v33, %v10702_v3  ;;  %v7289_v29 = vpop.eup %7288  ;;  %v10782_v26 = vadd.f32 %v1772_v48, %v1636_v40 }
 0x244   : > { %v2767_v4 = vmul.f32 %v15735_v1, %v10708_v15  ;;  %v5634_v12 = vadd.f32 %v5570_v56, %v5433_v32  ;;  %v5771_v16 = vmul.f32 %v10787_v45, %v10708_v15  ;;  %v7291_v10 = vpop.eup %7290  ;;  %v2630_v27 = vadd.f32 %v2566_v39, %v2429_v17 }
 0x245   : > { %v3173_v23 = vmul.f32 %v15737_v63, %v10632_v60  ;;  %v5635_v25 = vadd.f32 %v5571_v36, %v5434_v19  ;;  %v5772_v33 = vmul.f32 %v10787_v45, %v10726_v8  ;;  %v10795_v40 = vadd.f32 %v1773_v21, %v1637_v54 }
 0x246   : > { %v2631_v48 = vadd.f32 %v2567_v49, %v2430_v28  ;;  %v2768_v32 = vmul.f32 %v15735_v1, %v10726_v8  ;;  %v2775_v56 = vmul.f32 %v15735_v1, %v10741_v34  ;;  %v2638_v20 = vadd.f32 %v2574_v30, %v2437_v18  ;;  %v15739_v49 = vld [vmem:[#allocation44_spill] sm:$0xff] }
 0x247   : > { %v2639_v9 = vadd.f32 %v2575_v7, %v2438_v47  ;;  %v3165_v17 = vmul.f32 %v15737_v63, %v10612_v51  ;;  %v3166_v60 = vmul.f32 %v15737_v63, %v10623_v37  ;;  %v6352_v39 = vadd.f32 1.0, %v7289_v29  ;;  %v15741_v29 = vld [vmem:[#allocation72_spill] sm:$0xff] }
 0x248   : > { %v2776_v54 = vmul.f32 %v15735_v1, %v10743_v0  ;;  %v3174_v21 = vmul.f32 %v15737_v63, %v10639_v22  ;;  %v5835_v19 = vadd.f32 %v5771_v16, %v5634_v12  ;;  %v10809_v36 = vadd.f32 %v2767_v4, %v2630_v27 }
 0x249   : > { %v3237_v28 = vadd.f32 %v3173_v23, %v10699_v57  ;;  %v3373_v47 = vmul.f32 %v10675_v44, %v15739_v49  ;;  %v5836_v18 = vadd.f32 %v5772_v33, %v5635_v25  ;;  %v6353_v30 = vadd.f32 1.0, %v7291_v10  ;;  %v370_v23 = vld [vmem:[%s7983_s26 + $0x178] sm:$0xff] }
 0x24a   : > { %15738 = vst [vmem:[#allocation75_spill] sm:$0xff] %v10809_v36  ;;  %v10814_v7 = vadd.f32 %v2768_v32, %v2631_v48  ;;  %v4165_v45 = vmul.f32 %v15741_v29, %v10612_v51  ;;  %v4166_v1 = vmul.f32 %v15741_v29, %v10623_v37  ;;  %v3229_v22 = vadd.f32 %v3165_v17, %v10635_v53 }
 0x24b   : > { %v3230_v4 = vadd.f32 %v3166_v60, %v10655_v35  ;;  %v3365_v57 = vmul.f32 %v10663_v14, %v15739_v49  ;;  %v3366_v44 = vmul.f32 %v10668_v5, %v15739_v49  ;;  %v10826_v12 = vadd.f32 %v2775_v56, %v2638_v20  ;;  %484 = vst [vmem:[#allocation2 + $0x1da] sm:$0x3f] %v370_v23 }
 0x24c   : > { %15740 = vst [vmem:[#allocation79_spill] sm:$0xff] %v10814_v7  ;;  %v3238_v16 = vadd.f32 %v3174_v21, %v10716_v62  ;;  %v3374_v51 = vmul.f32 %v10683_v50, %v15739_v49  ;;  %v10832_v37 = vadd.f32 %v10296_v46, %v5835_v19  ;;  %v10834_v53 = vadd.f32 %v2776_v54, %v2639_v9 }
 0x24d   : > { %v3437_v10 = vadd.f32 %v3373_v47, %v3237_v28  ;;  %v3573_v35 = vmul.f32 %v15717_v13, %v10689_v6  ;;  %v10839_v27 = vadd.f32 %v10296_v46, %v5836_v18  ;;  %v4229_v20 = vadd.f32 %v4165_v45, %v10637_v2  ;;  %599 = vst [vmem:[#allocation2 + $0x459] sm:$0x7f] %v370_v23  ;;  %v10885_v47 = vld [vmem:[%s7991_s15 + $0xf] ss:$0 sm:$0xff] }
 0x24e   : > { %v4230_v63 = vadd.f32 %v4166_v1, %v10657_v58  ;;  %v4366_v62 = vmul.f32 %v10663_v14, %v10534_v42  ;;  %v4367_v50 = vmul.f32 %v10668_v5, %v10534_v42  ;;  %v3429_v9 = vadd.f32 %v3365_v57, %v3229_v22  ;;  %682 = vst [vmem:[#allocation2 + $0x6d8] sm:$0xff] %v370_v23 }
 0x24f   : > { %v3430_v25 = vadd.f32 %v3366_v44, %v3230_v4  ;;  %v3565_v33 = vmul.f32 %v15717_v13, %v10672_v24  ;;  %v3566_v46 = vmul.f32 %v15717_v13, %v10687_v55  ;;  %797 = vst [vmem:[#allocation2 + $0x957] sm:$0xff] %v370_v23  ;;  %912 = vst [vmem:[#allocation2 + $0xbd6] sm:$0xff] %v370_v23  ;;  %v353_v4 = vld [vmem:[%s7983_s26 + $0xf0] sm:$0xff]  ;;  %v1105_v23 = vld [vmem:[#allocation2 + $0x3f8] sm:$0xff] }
 0x250   : > { %v10853_v2 = vmul.f32 %v6352_v39, %v10680_v11  ;;  %v3438_v58 = vadd.f32 %v3374_v51, %v3238_v16  ;;  %v3574_v14 = vmul.f32 %v15717_v13, %v10702_v3  ;;  %v5970_v5 = vmul.f32 %v10832_v37, %v10832_v37  ;;  %v10898_v16 = vld [vmem:[%s7991_s15 + $0x5] ss:$0 sm:$0xff]  ;;  %467 = vst [vmem:[#allocation2 + $0x112] sm:$0xff] %v353_v4 }
 0x251   : > { %v10860_v6 = vmul.f32 %v6353_v30, %v10692_v61  ;;  %v3637_v45 = vadd.f32 %v3573_v35, %v3437_v10  ;;  %v3773_v48 = vmul.f32 %v10550_v38, %v10741_v34  ;;  %v5971_v32 = vmul.f32 %v10839_v27, %v10839_v27  ;;  %v10902_v10 = vld [vmem:[%s7991_s15 + $0xa] ss:$0 sm:$0xff]  ;;  %582 = vst [vmem:[#allocation2 + $0x391] sm:$0xff] %v353_v4 }
 0x252   : > { %15742 = vst [vmem:[#allocation83_spill] sm:$0xff] %v10853_v2  ;;  %v4430_v56 = vadd.f32 %v4366_v62, %v4229_v20  ;;  %v4431_v11 = vadd.f32 %v4367_v50, %v4230_v63  ;;  %v4567_v17 = vmul.f32 %v10555_v31, %v10672_v24  ;;  %v4568_v13 = vmul.f32 %v10555_v31, %v10687_v55  ;;  %v968_v55 = vld [vmem:[#allocation2 + $0x170] sm:$0xff]  ;;  %v969_v20 = vld [vmem:[#allocation2 + $0x178] sm:$0xff] }
 0x253   : > { %15743 = vst [vmem:[#allocation87_spill] sm:$0xff] %v10860_v6  ;;  %v3629_v3 = vadd.f32 %v3565_v33, %v3429_v9  ;;  %v3630_v60 = vadd.f32 %v3566_v46, %v3430_v25  ;;  %v3765_v61 = vmul.f32 %v10550_v38, %v10708_v15  ;;  %v3766_v34 = vmul.f32 %v10550_v38, %v10726_v8  ;;  %v1104_v63 = vld [vmem:[#allocation2 + $0x3f0] sm:$0xff]  ;;  %v10908_v25 = vld [vmem:[%s7991_s15] ss:$0 sm:$0xff] }
 0x254   : > { %v10876_v39 = vmul.f32 %v10853_v2, %v10853_v2  ;;  %v3638_v54 = vadd.f32 %v3574_v14, %v3438_v58  ;;  %v3774_v24 = vmul.f32 %v10550_v38, %v10743_v0  ;;  %v6098_v21 = vmul.f32 0.035677407, %v5970_v5  ;;  %780 = vst [vmem:[#allocation2 + $0x88f] sm:$0xfe] %v353_v4  ;;  %895 = vst [vmem:[#allocation2 + $0xb0e] sm:$0xfc] %v353_v4 }
 0x255   : > { %v10882_v19 = vmul.f32 %v10860_v6, %v10860_v6  ;;  %v3837_v28 = vadd.f32 %v3773_v48, %v3637_v45  ;;  %v6099_v49 = vmul.f32 0.035677407, %v5971_v32  ;;  %v3974_v18 = vmul.f32 %v10885_v47, %v968_v55  ;;  %v10918_v48 = vld [vmem:[%s7991_s15 + $0x1] ss:$0 sm:$0xff] }
 0x256   : > { %15744 = vst [vmem:[#allocation92_spill] sm:$0xff] %v10876_v39  ;;  %v4631_v30 = vadd.f32 %v4567_v17, %v4430_v56  ;;  %v4632_v1 = vadd.f32 %v4568_v13, %v4431_v11  ;;  %v4768_v22 = vmul.f32 %v10579_v52, %v10708_v15  ;;  %v4769_v0 = vmul.f32 %v10579_v52, %v10726_v8  ;;  %v7452_v4 = vld [vmem:[#allocation2 + $0x678] sm:$0xff] }
 0x257   : > { %15745 = vst [vmem:[#allocation99_spill] sm:$0xff] %v10882_v19  ;;  %v10893_v57 = vadd.f32 %v3765_v61, %v3629_v3  ;;  %v10895_v44 = vadd.f32 %v3766_v34, %v3630_v60  ;;  %v1973_v51 = vmul.f32 %v10898_v16, %v968_v55  ;;  %v2975_v35 = vmul.f32 %v10902_v10, %v968_v55  ;;  %v10982_v19 = vld [vmem:[%s7991_s15 + $0x9] ss:$0 sm:$0xff] }
 0x258   : > { %v3838_v15 = vadd.f32 %v3774_v24, %v3638_v54  ;;  %v6162_v8 = vadd.f32 0.7978846, %v6098_v21  ;;  %v1974_v62 = vmul.f32 %v10898_v16, %v969_v20  ;;  %v3975_v50 = vmul.f32 %v10885_v47, %v969_v20  ;;  %v10930_v24 = vld [vmem:[%s7991_s15 + $0x6] ss:$0 sm:$0xff]  ;;  %v7449_v21 = vld [vmem:[#allocation2 + $0x172] sm:$0xff]  ;;  %15754 = vst [vmem:[#allocation143_spill] sm:$0xff] %v10982_v19 }
 0x259   : > { %15746 = vst [vmem:[#allocation106_spill] sm:$0xff] %v10893_v57  ;;  %15747 = vst [vmem:[#allocation113_spill] sm:$0xff] %v10895_v44  ;;  %v6163_v9 = vadd.f32 0.7978846, %v6099_v49  ;;  %v1038_v33 = vmul.f32 %v10908_v25, %v968_v55  ;;  %v4038_v46 = vadd.f32 %v3974_v18, %v3837_v28  ;;  %v4175_v58 = vmul.f32 %v15741_v29, %v1104_v63  ;;  %v11021_v57 = vld [vmem:[#allocation2 + $0xb80] sm:$0xff] }
 0x25a   : > { %v10912_v14 = vadd.f32 %v4768_v22, %v4631_v30  ;;  %v10914_v5 = vadd.f32 %v4769_v0, %v4632_v1  ;;  %v2976_v45 = vmul.f32 %v10902_v10, %v969_v20  ;;  %v1174_v32 = vmul.f32 %v10918_v48, %v1104_v63  ;;  %15748 = vst [vmem:[#allocation80_spill] sm:$0xff] %v10930_v24  ;;  %v10941_v22 = vld [vmem:[%s7991_s15 + $0x2] ss:$0 sm:$0xff] }
 0x25b   : > { %v2037_v56 = vadd.f32 %v1973_v51, %v10782_v26  ;;  %v3039_v11 = vadd.f32 %v2975_v35, %v10826_v12  ;;  %v1039_v17 = vmul.f32 %v10908_v25, %v969_v20  ;;  %v1175_v13 = vmul.f32 %v10918_v48, %v1105_v23  ;;  %15750 = vst [vmem:[#allocation88_spill] sm:$0xff] %v10941_v22  ;;  %v10947_v20 = vld [vmem:[%s7991_s15 + $0x7] ss:$0 sm:$0xff] }
 0x25c   : > { %v6226_v3 = vmul.f32 %v6162_v8, %v10832_v37  ;;  %v2038_v60 = vadd.f32 %v1974_v62, %v10795_v40  ;;  %v4039_v61 = vadd.f32 %v3975_v50, %v3838_v15  ;;  %v4176_v34 = vmul.f32 %v15741_v29, %v1105_v23  ;;  %v10937_v40 = vld [vmem:[%s7991_s15 + $0xb] ss:$0 sm:$0xff]  ;;  %v1505_v62 = vld [vmem:[#allocation2 + $0x8f8] sm:$0xff] }
 0x25d   : > { %v6227_v54 = vmul.f32 %v6163_v9, %v10839_v27  ;;  %v2174_v26 = vmul.f32 %v10930_v24, %v1104_v63  ;;  %v4239_v12 = vadd.f32 %v4175_v58, %v4038_v46  ;;  %v4376_v55 = vmul.f32 %v7449_v21, %v10534_v42  ;;  %15749 = vst [vmem:[#allocation84_spill] sm:$0xff] %v10937_v40 }
 0x25e   : > { %v3040_v28 = vadd.f32 %v2976_v45, %v10834_v53  ;;  %v1238_v49 = vadd.f32 %v1174_v32, %v1038_v33  ;;  %v2175_v18 = vmul.f32 %v10930_v24, %v1105_v23  ;;  %v3175_v30 = vmul.f32 %v10937_v40, %v1104_v63  ;;  %v1504_v53 = vld [vmem:[#allocation2 + $0x8f0] sm:$0xff]  ;;  %v10954_v45 = vld [vmem:[%s7991_s15 + $0xc] ss:$0 sm:$0xff] }
 0x25f   : > { %v1239_v1 = vadd.f32 %v1175_v13, %v1039_v17  ;;  %v1374_v0 = vmul.f32 %v10941_v22, %v7449_v21  ;;  %v1375_v51 = vmul.f32 %v7452_v4, %v10941_v22  ;;  %v3176_v35 = vmul.f32 %v10937_v40, %v1105_v23  ;;  %v10958_v13 = vld [vmem:[%s7991_s15 + $0x3] ss:$0 sm:$0xff] }
 0x260   : > { %7292 = vtanh.f32 %v6226_v3  ;;  %v2375_v15 = vmul.f32 %v10947_v20, %v7449_v21  ;;  %v4240_v8 = vadd.f32 %v4176_v34, %v4039_v61  ;;  %v4377_v63 = vmul.f32 %v7452_v4, %v10534_v42  ;;  %15751 = vst [vmem:[#allocation93_spill] sm:$0xff] %v10958_v13 }
 0x261   : > { %7294 = vtanh.f32 %v6227_v54  ;;  %v2238_v50 = vadd.f32 %v2174_v26, %v2037_v56  ;;  %v4440_v9 = vadd.f32 %v4376_v55, %v4239_v12  ;;  %v4577_v33 = vmul.f32 %v10555_v31, %v1504_v53  ;;  %v1704_v54 = vld [vmem:[#allocation2 + $0xb70] sm:$0xff]  ;;  %v1705_v12 = vld [vmem:[#allocation2 + $0xb78] sm:$0xff] }
 0x262   : > { %v2239_v46 = vadd.f32 %v2175_v18, %v2038_v60  ;;  %v2376_v58 = vmul.f32 %v10947_v20, %v7452_v4  ;;  %v3239_v23 = vadd.f32 %v3175_v30, %v3039_v11  ;;  %v3375_v32 = vmul.f32 %v10954_v45, %v7449_v21  ;;  %v10965_v21 = vld [vmem:[%s7991_s15 + $0x8] ss:$0 sm:$0xff] }
 0x263   : > { %v1438_v17 = vadd.f32 %v1374_v0, %v1238_v49  ;;  %v1574_v3 = vmul.f32 %v10958_v13, %v1504_v53  ;;  %v3240_v61 = vadd.f32 %v3176_v35, %v3040_v28  ;;  %v3376_v56 = vmul.f32 %v10954_v45, %v7452_v4  ;;  %v10971_v4 = vld [vmem:[%s7991_s15 + $0xd] ss:$0 sm:$0xff] }
 0x264   : > { %v1439_v34 = vadd.f32 %v1375_v51, %v1239_v1  ;;  %v1575_v60 = vmul.f32 %v10958_v13, %v1505_v62  ;;  %v4441_v26 = vadd.f32 %v4377_v63, %v4240_v8  ;;  %v4578_v11 = vmul.f32 %v10555_v31, %v1505_v62  ;;  %15752 = vst [vmem:[#allocation100_spill] sm:$0xff] %v10971_v4  ;;  %v10975_v8 = vld [vmem:[%s7991_s15 + $0x4] ss:$0 sm:$0xff] }
 0x265   : > { %v2439_v55 = vadd.f32 %v2375_v15, %v2238_v50  ;;  %v2576_v49 = vmul.f32 %v10965_v21, %v1504_v53  ;;  %v4641_v18 = vadd.f32 %v4577_v33, %v4440_v9  ;;  %v4778_v28 = vmul.f32 %v10579_v52, %v1704_v54  ;;  %15753 = vst [vmem:[#allocation110_spill] sm:$0xff] %v10975_v8 }
 0x266   : > { %v2440_v30 = vadd.f32 %v2376_v58, %v2239_v46  ;;  %v2577_v1 = vmul.f32 %v10965_v21, %v1505_v62  ;;  %v3439_v0 = vadd.f32 %v3375_v32, %v3239_v23  ;;  %v3575_v51 = vmul.f32 %v10971_v4, %v1504_v53  ;;  %v970_v23 = vld [vmem:[#allocation2 + $0x180] sm:$0xff] }
 0x267   : > { %v1638_v35 = vadd.f32 %v1574_v3, %v1438_v17  ;;  %v1774_v15 = vmul.f32 %v10975_v8, %v1704_v54  ;;  %v3440_v63 = vadd.f32 %v3376_v56, %v3240_v61  ;;  %v3576_v50 = vmul.f32 %v10971_v4, %v1505_v62  ;;  %v10986_v3 = vld [vmem:[%s7991_s15 + $0x14] ss:$0 sm:$0xff] }
 0x268   : > { %v1639_v9 = vadd.f32 %v1575_v60, %v1439_v34  ;;  %v1775_v33 = vmul.f32 %v10975_v8, %v1705_v12  ;;  %v4642_v46 = vadd.f32 %v4578_v11, %v4441_v26  ;;  %v4779_v58 = vmul.f32 %v10579_v52, %v1705_v12  ;;  %15755 = vst [vmem:[#allocation144_spill] sm:$0xff] %v10986_v3 }
 0x269   : > { %v2640_v32 = vadd.f32 %v2576_v49, %v2439_v55  ;;  %v2777_v53 = vmul.f32 %v10982_v19, %v1704_v54  ;;  %v4842_v17 = vadd.f32 %v4778_v28, %v4641_v18  ;;  %v4979_v39 = vmul.f32 %v10986_v3, %v970_v23  ;;  %v971_v28 = vld [vmem:[#allocation2 + $0x188] sm:$0xff] }
 0x26a   : > { %v7293_v61 = vpop.eup %7292  ;;  %v2641_v62 = vadd.f32 %v2577_v1, %v2440_v30  ;;  %v2778_v56 = vmul.f32 %v10982_v19, %v1705_v12  ;;  %v3639_v34 = vadd.f32 %v3575_v51, %v3439_v0  ;;  %v3775_v60 = vmul.f32 %v10550_v38, %v1704_v54  ;;  %v10995_v30 = vld [vmem:[#allocation2 + $0x400] sm:$0xff]  ;;  %v354_v1 = vld [vmem:[%s7983_s26 + $0xf8] sm:$0xff] }
 0x26b   : > { %v7295_v26 = vpop.eup %7294  ;;  %v6034_v11 = vmul.f32 0.5, %v10832_v37  ;;  %v6035_v55 = vmul.f32 0.5, %v10839_v27  ;;  %v3640_v49 = vadd.f32 %v3576_v50, %v3440_v63  ;;  %v3776_v18 = vmul.f32 %v10550_v38, %v1705_v12  ;;  %468 = vst [vmem:[#allocation2 + $0x11a] sm:$0x3f] %v354_v1  ;;  %583 = vst [vmem:[#allocation2 + $0x399] sm:$0x7f] %v354_v1 }
 0x26c   : > { %v1838_v6 = vadd.f32 %v1774_v15, %v1638_v35  ;;  %v1839_v2 = vadd.f32 %v1775_v33, %v1639_v9  ;;  %v4843_v44 = vadd.f32 %v4779_v58, %v4642_v46  ;;  %v4980_v7 = vmul.f32 %v10986_v3, %v971_v28  ;;  %666 = vst [vmem:[#allocation2 + $0x618] sm:$0xff] %v354_v1  ;;  %v1107_v33 = vld [vmem:[#allocation2 + $0x408] sm:$0xff] }
 0x26d   : > { %v6354_v0 = vadd.f32 1.0, %v7293_v61  ;;  %v2841_v51 = vadd.f32 %v2777_v53, %v2640_v32  ;;  %v5043_v54 = vadd.f32 %v4979_v39, %v4842_v17  ;;  %v5180_v37 = vmul.f32 %v10711_v59, %v10995_v30  ;;  %781 = vst [vmem:[#allocation2 + $0x897] sm:$0xff] %v354_v1  ;;  %896 = vst [vmem:[#allocation2 + $0xb16] sm:$0xff] %v354_v1 }
 0x26e   : > { %v6355_v27 = vadd.f32 1.0, %v7295_v26  ;;  %v2842_v12 = vadd.f32 %v2778_v56, %v2641_v62  ;;  %v3839_v35 = vadd.f32 %v3775_v60, %v3639_v34  ;;  %v1975_v15 = vmul.f32 %v10898_v16, %v970_v23  ;;  %v7461_v56 = vld [vmem:[#allocation2 + $0x182] sm:$0xff] }
 0x26f   : > { %v3840_v63 = vadd.f32 %v3776_v18, %v3640_v49  ;;  %v2977_v50 = vmul.f32 %v10902_v10, %v970_v23  ;;  %v3976_v9 = vmul.f32 %v10885_v47, %v970_v23  ;;  %v1976_v39 = vmul.f32 %v10898_v16, %v971_v28 }
 0x270   : > { %v2978_v46 = vmul.f32 %v10902_v10, %v971_v28  ;;  %v3977_v58 = vmul.f32 %v10885_v47, %v971_v28  ;;  %v5044_v32 = vadd.f32 %v4980_v7, %v4843_v44  ;;  %v5181_v53 = vmul.f32 %v10711_v59, %v1107_v33 }
 0x271   : > { %v11007_v17 = vmul.f32 %v6354_v0, %v6034_v11  ;;  %v1040_v61 = vmul.f32 %v10908_v25, %v970_v23  ;;  %v5244_v62 = vadd.f32 %v5180_v37, %v5043_v54  ;;  %v5381_v34 = vmul.f32 %v7461_v56, %v10737_v41  ;;  %v11017_v0 = vld [vmem:[#allocation2 + $0x900] sm:$0xff]  ;;  %v11019_v37 = vld [vmem:[#allocation2 + $0x908] sm:$0xff] }
 0x272   : > { %v11011_v60 = vmul.f32 %v6355_v27, %v6035_v55  ;;  %v2039_v26 = vadd.f32 %v1975_v15, %v1838_v6  ;;  %v1041_v49 = vmul.f32 %v10908_v25, %v971_v28  ;;  %v1176_v18 = vmul.f32 %v10918_v48, %v10995_v30  ;;  %v7462_v6 = vld [vmem:[#allocation2 + $0x688] sm:$0xff] }
 0x273   : > { %15756 = vst [vmem:[#allocation145_spill] sm:$0xff] %v11007_v17  ;;  %v3041_v1 = vadd.f32 %v2977_v50, %v2841_v51  ;;  %v4040_v7 = vadd.f32 %v3976_v9, %v3839_v35  ;;  %v2040_v44 = vadd.f32 %v1976_v39, %v1839_v2  ;;  %v1177_v11 = vmul.f32 %v10918_v48, %v1107_v33  ;;  %v11029_v51 = vld [vmem:[#allocation2 + $0xb88] sm:$0xff] }
 0x274   : > { %15757 = vst [vmem:[#allocation22_spill] sm:$0xff] %v11011_v60  ;;  %v3042_v23 = vadd.f32 %v2978_v46, %v2842_v12  ;;  %v4041_v54 = vadd.f32 %v3977_v58, %v3840_v63  ;;  %v5245_v55 = vadd.f32 %v5181_v53, %v5044_v32  ;;  %v5382_v28 = vmul.f32 %v7462_v6, %v10737_v41 }
 0x275   : > { %v11026_v27 = vmul.f32 %v11007_v17, %v11007_v17  ;;  %v1376_v2 = vmul.f32 %v7461_v56, %v10941_v22  ;;  %v5445_v35 = vadd.f32 %v5381_v34, %v5244_v62  ;;  %v5582_v12 = vmul.f32 %v10764_v43, %v11017_v0 }
 0x276   : > { %v11035_v15 = vmul.f32 %v11011_v60, %v11011_v60  ;;  %v1240_v63 = vadd.f32 %v1176_v18, %v1040_v61  ;;  %v1377_v50 = vmul.f32 %v7462_v6, %v10941_v22  ;;  %v1576_v9 = vmul.f32 %v10958_v13, %v11017_v0 }
 0x277   : > { %15758 = vst [vmem:[#allocation16_spill] sm:$0xff] %v11026_v27  ;;  %v1241_v39 = vadd.f32 %v1177_v11, %v1041_v49  ;;  %v1577_v46 = vmul.f32 %v10958_v13, %v11019_v37  ;;  %v1776_v58 = vmul.f32 %v10975_v8, %v11021_v57  ;;  %v2176_v32 = vmul.f32 %v10930_v24, %v10995_v30 }
 0x278   : > { %15759 = vst [vmem:[#allocation91_spill] sm:$0xff] %v11035_v15  ;;  %v11048_v53 = vmul.f32 %v10975_v8, %v11029_v51  ;;  %v2177_v61 = vmul.f32 %v10930_v24, %v1107_v33  ;;  %v5446_v62 = vadd.f32 %v5382_v28, %v5245_v55  ;;  %v5583_v34 = vmul.f32 %v10764_v43, %v11019_v37  ;;  %v15760_v15 = vld [vmem:[#allocation71_spill] sm:$0xff] }
 0x279   : > { %v3177_v49 = vmul.f32 %v10937_v40, %v10995_v30  ;;  %v3178_v18 = vmul.f32 %v10937_v40, %v1107_v33  ;;  %v5646_v11 = vadd.f32 %v5582_v12, %v5445_v35  ;;  %v5783_v27 = vmul.f32 %v15760_v15, %v11021_v57 }
 0x27a   : > { %v1440_v60 = vadd.f32 %v1376_v2, %v1240_v63  ;;  %v2377_v17 = vmul.f32 %v7461_v56, %v10947_v20  ;;  %v4177_v8 = vmul.f32 %v15741_v29, %v10995_v30  ;;  %v4178_v55 = vmul.f32 %v15741_v29, %v1107_v33 }
 0x27b   : > { %v1441_v28 = vadd.f32 %v1377_v50, %v1241_v39  ;;  %v2240_v24 = vadd.f32 %v2176_v32, %v2039_v26  ;;  %v2378_v13 = vmul.f32 %v7462_v6, %v10947_v20  ;;  %v2578_v40 = vmul.f32 %v10965_v21, %v11017_v0  ;;  %v371_v32 = vld [vmem:[%s7983_s26 + $0x180] sm:$0xff] }
 0x27c   : > { %v2241_v35 = vadd.f32 %v2177_v61, %v2040_v44  ;;  %v3377_v12 = vmul.f32 %v7461_v56, %v10954_v45  ;;  %v5647_v36 = vadd.f32 %v5583_v34, %v5446_v62  ;;  %v5784_v2 = vmul.f32 %v15760_v15, %v11029_v51  ;;  %485 = vst [vmem:[#allocation2 + $0x1e2] sm:$0xff] %v371_v32  ;;  %v960_v34 = vld [vmem:[#allocation2 + $0xf0] sm:$0xff] }
 0x27d   : > { %v3241_v63 = vadd.f32 %v3177_v49, %v3041_v1  ;;  %v3242_v43 = vadd.f32 %v3178_v18, %v3042_v23  ;;  %v3378_v30 = vmul.f32 %v7462_v6, %v10954_v45  ;;  %v5847_v29 = vadd.f32 %v5783_v27, %v5646_v11  ;;  %600 = vst [vmem:[#allocation2 + $0x461] sm:$0xff] %v371_v32  ;;  %v11083_v23 = vld [vmem:[%s10273_s12] ss:$0 sm:$0xff]  ;;  %v961_v11 = vld [vmem:[#allocation2 + $0xf8] sm:$0xff] }
 0x27e   : > { %v4241_v33 = vadd.f32 %v4177_v8, %v4040_v7  ;;  %v4242_v50 = vadd.f32 %v4178_v55, %v4041_v54  ;;  %v4378_v26 = vmul.f32 %v7461_v56, %v10534_v42  ;;  %v4379_v39 = vmul.f32 %v7462_v6, %v10534_v42  ;;  %798 = vst [vmem:[#allocation2 + $0x95f] sm:$0xfe] %v371_v32 }
 0x27f   : > { %v1640_v44 = vadd.f32 %v1576_v9, %v1440_v60  ;;  %v2441_v61 = vadd.f32 %v2377_v17, %v2240_v24  ;;  %v2579_v62 = vmul.f32 %v10965_v21, %v11019_v37  ;;  %v2779_v1 = vmul.f32 %v10982_v19, %v11021_v57  ;;  %913 = vst [vmem:[#allocation2 + $0xbde] sm:$0xfc] %v371_v32 }
 0x280   : > { %v2442_v8 = vadd.f32 %v2378_v13, %v2241_v35  ;;  %v2780_v56 = vmul.f32 %v10982_v19, %v11029_v51  ;;  %v3577_v42 = vmul.f32 %v10971_v4, %v11017_v0  ;;  %v5848_v7 = vadd.f32 %v5784_v2, %v5647_v36 }
 0x281   : > { %v3441_v60 = vadd.f32 %v3377_v12, %v3241_v63  ;;  %v3442_v24 = vadd.f32 %v3378_v30, %v3242_v43  ;;  %v3578_v17 = vmul.f32 %v10971_v4, %v11019_v37  ;;  %v11086_v54 = vadd.f32 %v11083_v23, %v5847_v29  ;;  %v11109_v30 = vld [vmem:[#allocation2 + $0x370] sm:$0xff] }
 0x282   : > { %v4442_v6 = vadd.f32 %v4378_v26, %v4241_v33  ;;  %v4443_v27 = vadd.f32 %v4379_v39, %v4242_v50  ;;  %v4579_v13 = vmul.f32 %v10555_v31, %v11017_v0  ;;  %v4580_v9 = vmul.f32 %v10555_v31, %v11019_v37  ;;  %v11117_v50 = vld [vmem:[#allocation2 + $0x378] sm:$0xff] }
 0x283   : > { %v1641_v36 = vadd.f32 %v1577_v46, %v1441_v28  ;;  %v11092_v49 = vadd.f32 %v1776_v58, %v1640_v44  ;;  %v2642_v43 = vadd.f32 %v2578_v40, %v2441_v61  ;;  %v4969_v18 = vmul.f32 %v10986_v3, %v960_v34  ;;  %v372_v61 = vld [vmem:[%s7983_s26 + $0x188] sm:$0xff] }
 0x284   : > { %v2643_v55 = vadd.f32 %v2579_v62, %v2442_v8  ;;  %v3777_v35 = vmul.f32 %v10550_v38, %v11021_v57  ;;  %v11098_v12 = vadd.f32 %v11083_v23, %v5848_v7  ;;  %v4970_v0 = vmul.f32 %v10986_v3, %v961_v11  ;;  %486 = vst [vmem:[#allocation2 + $0x1ea] sm:$0x3f] %v372_v61 }
 0x285   : > { %v3641_v2 = vadd.f32 %v3577_v42, %v3441_v60  ;;  %v3642_v63 = vadd.f32 %v3578_v17, %v3442_v24  ;;  %v3778_v31 = vmul.f32 %v10550_v38, %v11029_v51  ;;  %v5982_v40 = vmul.f32 %v11086_v54, %v11086_v54  ;;  %601 = vst [vmem:[#allocation2 + $0x469] sm:$0x7f] %v372_v61  ;;  %v11144_v60 = vld [vmem:[#allocation2 + $0xf2] sm:$0xff] }
 0x286   : > { %v4643_v37 = vadd.f32 %v4579_v13, %v4442_v6  ;;  %v4644_v46 = vadd.f32 %v4580_v9, %v4443_v27  ;;  %v4780_v58 = vmul.f32 %v10579_v52, %v11021_v57  ;;  %v4781_v28 = vmul.f32 %v10579_v52, %v11029_v51  ;;  %684 = vst [vmem:[#allocation2 + $0x6e8] sm:$0xff] %v372_v61  ;;  %v11149_v13 = vld [vmem:[#allocation2 + $0x5f8] sm:$0xff] }
 0x287   : > { %v11112_v29 = vadd.f32 %v11048_v53, %v1641_v36  ;;  %v11114_v33 = vadd.f32 %v2779_v1, %v2642_v43  ;;  %v5033_v38 = vadd.f32 %v4969_v18, %v10912_v14  ;;  %v5170_v26 = vmul.f32 %v10711_v59, %v11109_v30  ;;  %799 = vst [vmem:[#allocation2 + $0x967] sm:$0xff] %v372_v61 }
 0x288   : > { %v11121_v39 = vadd.f32 %v2780_v56, %v2643_v55  ;;  %v5983_v57 = vmul.f32 %v11098_v12, %v11098_v12  ;;  %v5034_v52 = vadd.f32 %v4970_v0, %v10914_v5  ;;  %v5171_v51 = vmul.f32 %v10711_v59, %v11117_v50  ;;  %914 = vst [vmem:[#allocation2 + $0xbe6] sm:$0xff] %v372_v61 }
 0x289   : > { %v11128_v53 = vadd.f32 %v3777_v35, %v3641_v2  ;;  %v6110_v32 = vmul.f32 0.035677407, %v5982_v40  ;;  %v1030_v14 = vmul.f32 %v10908_v25, %v960_v34  ;;  %v1166_v44 = vmul.f32 %v10918_v48, %v11109_v30  ;;  %v15762_v35 = vld [vmem:[#allocation63_spill] sm:$0xff] }
 0x28a   : > { %v11134_v62 = vadd.f32 %v3778_v31, %v3642_v63  ;;  %v11136_v1 = vadd.f32 %v4780_v58, %v4643_v37  ;;  %v11138_v8 = vadd.f32 %v4781_v28, %v4644_v46  ;;  %v1965_v5 = vmul.f32 %v10898_v16, %v960_v34  ;;  %v11160_v40 = vld [vmem:[#allocation2 + $0x870] sm:$0xff]  ;;  %v11164_v58 = vld [vmem:[#allocation2 + $0x878] sm:$0xff] }
 0x28b   : > { %v1031_v56 = vmul.f32 %v10908_v25, %v961_v11  ;;  %v1167_v42 = vmul.f32 %v10918_v48, %v11117_v50  ;;  %v5234_v7 = vadd.f32 %v5170_v26, %v5033_v38  ;;  %v5371_v24 = vmul.f32 %v11144_v60, %v10737_v41  ;;  %v15763_v28 = vld [vmem:[#allocation59_spill] sm:$0xff] }
 0x28c   : > { %15761 = vst [vmem:[#allocation95_spill] sm:$0xff] %v11134_v62  ;;  %v6111_v17 = vmul.f32 0.035677407, %v5983_v57  ;;  %v2967_v6 = vmul.f32 %v10902_v10, %v960_v34  ;;  %v5235_v27 = vadd.f32 %v5171_v51, %v5034_v52  ;;  %v5372_v9 = vmul.f32 %v11149_v13, %v10737_v41  ;;  %v15764_v57 = vld [vmem:[#allocation75_spill] sm:$0xff]  ;;  %v15769_v62 = vld [vmem:[#allocation113_spill] sm:$0xff] }
 0x28d   : > { %v6174_v36 = vadd.f32 0.7978846, %v6110_v32  ;;  %v3966_v43 = vmul.f32 %v10885_v47, %v960_v34  ;;  %v1230_v18 = vadd.f32 %v1166_v44, %v1030_v14  ;;  %v1366_v55 = vmul.f32 %v11144_v60, %v10941_v22  ;;  %v15765_v14 = vld [vmem:[#allocation106_spill] sm:$0xff] }
 0x28e   : > { %v2029_v0 = vadd.f32 %v1965_v5, %v15762_v35  ;;  %v1966_v2 = vmul.f32 %v10898_v16, %v961_v11  ;;  %v2968_v63 = vmul.f32 %v10902_v10, %v961_v11  ;;  %v3967_v31 = vmul.f32 %v10885_v47, %v961_v11  ;;  %v15766_v5 = vld [vmem:[#allocation93_spill] sm:$0xff] }
 0x28f   : > { %v1231_v37 = vadd.f32 %v1167_v42, %v1031_v56  ;;  %v1367_v46 = vmul.f32 %v11149_v13, %v10941_v22  ;;  %v5435_v34 = vadd.f32 %v5371_v24, %v5234_v7  ;;  %v5572_v38 = vmul.f32 %v15763_v28, %v11160_v40  ;;  %v15767_v42 = vld [vmem:[#allocation67_spill] sm:$0xff] }
 0x290   : > { %v6175_v26 = vadd.f32 0.7978846, %v6111_v17  ;;  %v3031_v52 = vadd.f32 %v2967_v6, %v15764_v57  ;;  %v5436_v51 = vadd.f32 %v5372_v9, %v5235_v27  ;;  %v5573_v32 = vmul.f32 %v15763_v28, %v11164_v58  ;;  %v15768_v24 = vld [vmem:[#allocation79_spill] sm:$0xff]  ;;  %v11182_v57 = vld [vmem:[#allocation2 + $0xaf8] sm:$0xff] }
 0x291   : > { %v6238_v11 = vmul.f32 %v6174_v36, %v11086_v54  ;;  %v4030_v44 = vadd.f32 %v3966_v43, %v15765_v14  ;;  %v1430_v61 = vadd.f32 %v1366_v55, %v1230_v18  ;;  %v1566_v56 = vmul.f32 %v15766_v5, %v11160_v40  ;;  %v11180_v27 = vld [vmem:[#allocation2 + $0xaf0] sm:$0xff] }
 0x292   : > { %v2030_v7 = vadd.f32 %v1966_v2, %v15767_v42  ;;  %v3032_v35 = vadd.f32 %v2968_v63, %v15768_v24  ;;  %v4031_v17 = vadd.f32 %v3967_v31, %v15769_v62  ;;  %v1567_v6 = vmul.f32 %v15766_v5, %v11164_v58  ;;  %v15770_v36 = vld [vmem:[#allocation80_spill] sm:$0xff] }
 0x293   : > { %v1431_v9 = vadd.f32 %v1367_v46, %v1231_v37  ;;  %v2166_v43 = vmul.f32 %v15770_v36, %v11109_v30  ;;  %v5636_v18 = vadd.f32 %v5572_v38, %v5435_v34  ;;  %v5773_v55 = vmul.f32 %v15760_v15, %v11180_v27  ;;  %v15771_v34 = vld [vmem:[#allocation110_spill] sm:$0xff]  ;;  %v15772_v42 = vld [vmem:[#allocation84_spill] sm:$0xff] }
 0x294   : > { %v6239_v2 = vmul.f32 %v6175_v26, %v11098_v12  ;;  %v2167_v62 = vmul.f32 %v15770_v36, %v11117_v50  ;;  %v5637_v63 = vadd.f32 %v5573_v32, %v5436_v51  ;;  %v5774_v31 = vmul.f32 %v15760_v15, %v11182_v57 }
 0x295   : > { %v11194_v37 = vmul.f32 0.5, %v11086_v54  ;;  %7296 = vtanh.f32 %v6238_v11  ;;  %v1630_v46 = vadd.f32 %v1566_v56, %v1430_v61  ;;  %v1766_v38 = vmul.f32 %v15771_v34, %v11180_v27  ;;  %v11207_v11 = vld [vmem:[%s7991_s15 + $0x10] ss:$0 sm:$0xff] }
 0x296   : > { %v1767_v14 = vmul.f32 %v15771_v34, %v11182_v57  ;;  %v2367_v26 = vmul.f32 %v11144_v60, %v10947_v20  ;;  %v3167_v51 = vmul.f32 %v15772_v42, %v11109_v30  ;;  %v3168_v32 = vmul.f32 %v15772_v42, %v11117_v50 }
 0x297   : > { %v1631_v24 = vadd.f32 %v1567_v6, %v1431_v9  ;;  %v2230_v54 = vadd.f32 %v2166_v43, %v2029_v0  ;;  %v4167_v61 = vmul.f32 %v11207_v11, %v11109_v30  ;;  %v5837_v56 = vadd.f32 %v5773_v55, %v5636_v18  ;;  %v373_v18 = vld [vmem:[%s7983_s26 + $0x190] sm:$0xff] }
 0x298   : > { %7298 = vtanh.f32 %v6239_v2  ;;  %v2231_v34 = vadd.f32 %v2167_v62, %v2030_v7  ;;  %v2368_v36 = vmul.f32 %v11149_v13, %v10947_v20  ;;  %v5838_v5 = vadd.f32 %v5774_v31, %v5637_v63  ;;  %v11230_v2 = vld [vmem:[%s7991_s15 + $0x11] ss:$0 sm:$0xff]  ;;  %487 = vst [vmem:[#allocation2 + $0x1f2] sm:$0xff] %v373_v18  ;;  %602 = vst [vmem:[#allocation2 + $0x471] sm:$0xff] %v373_v18 }
 0x299   : > { %v11214_v22 = vmul.f32 0.5, %v11098_v12  ;;  %v11216_v42 = vadd.f32 %v1766_v38, %v1630_v46  ;;  %v2568_v0 = vmul.f32 %v10965_v21, %v11160_v40  ;;  %v4168_v6 = vmul.f32 %v11207_v11, %v11117_v50  ;;  %800 = vst [vmem:[#allocation2 + $0x96f] sm:$0xfe] %v373_v18  ;;  %915 = vst [vmem:[#allocation2 + $0xbee] sm:$0xfc] %v373_v18 }
 0x29a   : > { %v3231_v30 = vadd.f32 %v3167_v51, %v3031_v52  ;;  %v3232_v9 = vadd.f32 %v3168_v32, %v3032_v35  ;;  %v3367_v7 = vmul.f32 %v11144_v60, %v10954_v45  ;;  %v3368_v43 = vmul.f32 %v11149_v13, %v10954_v45 }
 0x29b   : > { %15773 = vst [vmem:[#allocation101_spill] sm:$0xff] %v11216_v42  ;;  %v11227_v55 = vadd.f32 %v1767_v14, %v1631_v24  ;;  %v4231_v12 = vadd.f32 %v4167_v61, %v4030_v44  ;;  %v4368_v62 = vmul.f32 %v11230_v2, %v11144_v60  ;;  %v11235_v63 = vadd.f32 %v11083_v23, %v5837_v56  ;;  %v11253_v24 = vld [vmem:[%s7991_s15 + $0x12] ss:$0 sm:$0xff]  ;;  %v11260_v61 = vld [vmem:[#allocation2 + $0x198] sm:$0xff] }
 0x29c   : > { %v2431_v50 = vadd.f32 %v2367_v26, %v2230_v54  ;;  %v2432_v52 = vadd.f32 %v2368_v36, %v2231_v34  ;;  %v2569_v35 = vmul.f32 %v10965_v21, %v11164_v58  ;;  %v11240_v44 = vadd.f32 %v11083_v23, %v5838_v5  ;;  %v972_v34 = vld [vmem:[#allocation2 + $0x190] sm:$0xff] }
 0x29d   : > { %15774 = vst [vmem:[#allocation102_spill] sm:$0xff] %v11227_v55  ;;  %v2769_v31 = vmul.f32 %v10982_v19, %v11180_v27  ;;  %v2770_v60 = vmul.f32 %v10982_v19, %v11182_v57  ;;  %v4232_v46 = vadd.f32 %v4168_v6, %v4031_v17  ;;  %v4369_v38 = vmul.f32 %v11230_v2, %v11149_v13  ;;  %v11280_v42 = vld [vmem:[#allocation2 + $0x410] sm:$0xff] }
 0x29e   : > { %v3431_v14 = vadd.f32 %v3367_v7, %v3231_v30  ;;  %v3432_v26 = vadd.f32 %v3368_v43, %v3232_v9  ;;  %v3567_v36 = vmul.f32 %v10971_v4, %v11160_v40  ;;  %v3568_v5 = vmul.f32 %v10971_v4, %v11164_v58  ;;  %v11267_v7 = vld [vmem:[%s7991_s15 + $0xe] ss:$0 sm:$0xff] }
 0x29f   : > { %v7297_v51 = vpop.eup %7296  ;;  %v4432_v32 = vadd.f32 %v4368_v62, %v4231_v12  ;;  %v4569_v17 = vmul.f32 %v11253_v24, %v11160_v40  ;;  %v5972_v13 = vmul.f32 %v11235_v63, %v11235_v63  ;;  %v4981_v54 = vmul.f32 %v10986_v3, %v972_v34  ;;  %15775 = vst [vmem:[#allocation103_spill] sm:$0xff] %v11267_v7 }
 0x2a0   : > { %v2632_v56 = vadd.f32 %v2568_v0, %v2431_v50  ;;  %v2633_v6 = vadd.f32 %v2569_v35, %v2432_v52  ;;  %v5973_v30 = vmul.f32 %v11240_v44, %v11240_v44  ;;  %v4982_v9 = vmul.f32 %v10986_v3, %v11260_v61  ;;  %v11276_v35 = vld [vmem:[%s7991_s15 + $0x13] ss:$0 sm:$0xff] }
 0x2a1   : > { %v3767_v40 = vmul.f32 %v11267_v7, %v11180_v27  ;;  %v3768_v43 = vmul.f32 %v11267_v7, %v11182_v57  ;;  %v4433_v18 = vadd.f32 %v4369_v38, %v4232_v46  ;;  %v4570_v12 = vmul.f32 %v11253_v24, %v11164_v58  ;;  %v11283_v7 = vld [vmem:[#allocation2 + $0x418] sm:$0xff] }
 0x2a2   : > { %v7299_v0 = vpop.eup %7298  ;;  %v6366_v62 = vadd.f32 1.0, %v7297_v51  ;;  %v3631_v50 = vadd.f32 %v3567_v36, %v3431_v14  ;;  %v3632_v52 = vadd.f32 %v3568_v5, %v3432_v26  ;;  %v4770_v55 = vmul.f32 %v11276_v35, %v11180_v27 }
 0x2a3   : > { %v4633_v3 = vadd.f32 %v4569_v17, %v4432_v32  ;;  %v6100_v19 = vmul.f32 0.035677407, %v5972_v13  ;;  %v5045_v4 = vadd.f32 %v4981_v54, %v11136_v1  ;;  %v5182_v58 = vmul.f32 %v10711_v59, %v11280_v42  ;;  %v11306_v54 = vld [vmem:[#allocation2 + $0x192] sm:$0xff] }
 0x2a4   : > { %v11287_v46 = vadd.f32 %v2769_v31, %v2632_v56  ;;  %v6101_v38 = vmul.f32 0.035677407, %v5973_v30  ;;  %v5046_v14 = vadd.f32 %v4982_v9, %v11138_v8  ;;  %v5183_v26 = vmul.f32 %v10711_v59, %v11283_v7 }
 0x2a5   : > { %v6367_v27 = vadd.f32 1.0, %v7299_v0  ;;  %v11292_v36 = vadd.f32 %v2770_v60, %v2633_v6  ;;  %v4634_v5 = vadd.f32 %v4570_v12, %v4433_v18  ;;  %v4771_v1 = vmul.f32 %v11276_v35, %v11182_v57  ;;  %v11311_v6 = vld [vmem:[#allocation2 + $0x698] sm:$0xff] }
 0x2a6   : > { %v11297_v51 = vmul.f32 %v6366_v62, %v11194_v37  ;;  %v11299_v32 = vadd.f32 %v3767_v40, %v3631_v50  ;;  %v11301_v31 = vadd.f32 %v3768_v43, %v3632_v52  ;;  %v1977_v17 = vmul.f32 %v10898_v16, %v972_v34 }
 0x2a7   : > { %v11304_v8 = vadd.f32 %v4770_v55, %v4633_v3  ;;  %v6164_v13 = vadd.f32 0.7978846, %v6100_v19  ;;  %v5246_v59 = vadd.f32 %v5182_v58, %v5045_v4  ;;  %v5383_v60 = vmul.f32 %v11306_v54, %v10737_v41 }
 0x2a8   : > { %15776 = vst [vmem:[#allocation107_spill] sm:$0xff] %v11297_v51  ;;  %v6165_v56 = vadd.f32 0.7978846, %v6101_v38  ;;  %v2979_v57 = vmul.f32 %v10902_v10, %v972_v34  ;;  %v5247_v37 = vadd.f32 %v5183_v26, %v5046_v14  ;;  %v5384_v30 = vmul.f32 %v11311_v6, %v10737_v41 }
 0x2a9   : > { %v11316_v9 = vmul.f32 %v6367_v27, %v11214_v22  ;;  %v11318_v3 = vadd.f32 %v4771_v1, %v4634_v5  ;;  %v1042_v19 = vmul.f32 %v10908_v25, %v972_v34  ;;  %v3978_v4 = vmul.f32 %v10885_v47, %v972_v34  ;;  %v11331_v22 = vld [vmem:[#allocation2 + $0x910] sm:$0xff]  ;;  %v11336_v34 = vld [vmem:[#allocation2 + $0x918] sm:$0xff] }
 0x2aa   : > { %v11324_v55 = vmul.f32 %v11297_v51, %v11297_v51  ;;  %v2041_v40 = vadd.f32 %v1977_v17, %v11092_v49  ;;  %v1978_v43 = vmul.f32 %v10898_v16, %v11260_v61  ;;  %v2980_v41 = vmul.f32 %v10902_v10, %v11260_v61  ;;  %v374_v1 = vld [vmem:[%s7983_s26 + $0x198] sm:$0xff] }
 0x2ab   : > { %15777 = vst [vmem:[#allocation96_spill] sm:$0xff] %v11316_v9  ;;  %v6228_v18 = vmul.f32 %v6164_v13, %v11235_v63  ;;  %v1178_v12 = vmul.f32 %v10918_v48, %v11280_v42  ;;  %v5447_v0 = vadd.f32 %v5383_v60, %v5246_v59  ;;  %v5584_v49 = vmul.f32 %v15763_v28, %v11331_v22  ;;  %v11362_v13 = vld [vmem:[#allocation2 + $0xb98] sm:$0xff]  ;;  %v15780_v59 = vld [vmem:[#allocation95_spill] sm:$0xff] }
 0x2ac   : > { %15778 = vst [vmem:[#allocation97_spill] sm:$0xff] %v11324_v55  ;;  %v6229_v62 = vmul.f32 %v6165_v56, %v11240_v44  ;;  %v3043_v50 = vadd.f32 %v2979_v57, %v11114_v33  ;;  %v5448_v52 = vadd.f32 %v5384_v30, %v5247_v37  ;;  %v5585_v10 = vmul.f32 %v15763_v28, %v11336_v34  ;;  %v15781_v30 = vld [vmem:[#allocation93_spill] sm:$0xff] }
 0x2ad   : > { %v4042_v58 = vadd.f32 %v3978_v4, %v11128_v53  ;;  %v1043_v38 = vmul.f32 %v10908_v25, %v11260_v61  ;;  %v3979_v14 = vmul.f32 %v10885_v47, %v11260_v61  ;;  %v1179_v26 = vmul.f32 %v10918_v48, %v11283_v7  ;;  %v11359_v53 = vld [vmem:[#allocation2 + $0xb90] sm:$0xff]  ;;  %488 = vst [vmem:[#allocation2 + $0x1fa] sm:$0x3f] %v374_v1 }
 0x2ae   : > { %v11352_v27 = vmul.f32 0.5, %v11235_v63  ;;  %v11355_v33 = vmul.f32 0.5, %v11240_v44  ;;  %v2042_v5 = vadd.f32 %v1978_v43, %v11112_v29  ;;  %v3044_v28 = vadd.f32 %v2980_v41, %v11121_v39  ;;  %603 = vst [vmem:[#allocation2 + $0x479] sm:$0x7f] %v374_v1  ;;  %686 = vst [vmem:[#allocation2 + $0x6f8] sm:$0xff] %v374_v1  ;;  %v15779_v29 = vld [vmem:[#allocation88_spill] sm:$0xff] }
 0x2af   : > { %7300 = vtanh.f32 %v6228_v18  ;;  %v1242_v17 = vadd.f32 %v1178_v12, %v1042_v19  ;;  %v5648_v47 = vadd.f32 %v5584_v49, %v5447_v0  ;;  %v5785_v61 = vmul.f32 %v15760_v15, %v11359_v53  ;;  %801 = vst [vmem:[#allocation2 + $0x977] sm:$0xff] %v374_v1  ;;  %916 = vst [vmem:[#allocation2 + $0xbf6] sm:$0xff] %v374_v1  ;;  %v15782_v43 = vld [vmem:[#allocation80_spill] sm:$0xff]  ;;  %v15783_v18 = vld [vmem:[#allocation110_spill] sm:$0xff] }
 0x2b0   : > { %7302 = vtanh.f32 %v6229_v62  ;;  %v1378_v39 = vmul.f32 %v11306_v54, %v15779_v29  ;;  %v5649_v63 = vadd.f32 %v5585_v10, %v5448_v52  ;;  %v5786_v44 = vmul.f32 %v15760_v15, %v11362_v13  ;;  %v15784_v0 = vld [vmem:[#allocation84_spill] sm:$0xff] }
 0x2b1   : > { %v4043_v60 = vadd.f32 %v3979_v14, %v15780_v59  ;;  %v1243_v56 = vadd.f32 %v1179_v26, %v1043_v38  ;;  %v1379_v57 = vmul.f32 %v11311_v6, %v15779_v29  ;;  %v4179_v37 = vmul.f32 %v11207_v11, %v11280_v42 }
 0x2b2   : > { %v1578_v19 = vmul.f32 %v15781_v30, %v11331_v22  ;;  %v1579_v4 = vmul.f32 %v15781_v30, %v11336_v34  ;;  %v2178_v41 = vmul.f32 %v15782_v43, %v11280_v42  ;;  %v2179_v15 = vmul.f32 %v15782_v43, %v11283_v7 }
 0x2b3   : > { %v11385_v12 = vmul.f32 %v15783_v18, %v11359_v53  ;;  %v3179_v49 = vmul.f32 %v15784_v0, %v11280_v42  ;;  %v3180_v62 = vmul.f32 %v15784_v0, %v11283_v7  ;;  %v5849_v52 = vadd.f32 %v5785_v61, %v5648_v47 }
 0x2b4   : > { %v1442_v10 = vadd.f32 %v1378_v39, %v1242_v17  ;;  %v11393_v38 = vmul.f32 %v15783_v18, %v11362_v13  ;;  %v4180_v14 = vmul.f32 %v11207_v11, %v11283_v7  ;;  %v5850_v26 = vadd.f32 %v5786_v44, %v5649_v63 }
 0x2b5   : > { %v1443_v1 = vadd.f32 %v1379_v57, %v1243_v56  ;;  %v2379_v59 = vmul.f32 %v11306_v54, %v10947_v20  ;;  %v4243_v43 = vadd.f32 %v4179_v37, %v4042_v58  ;;  %v4380_v42 = vmul.f32 %v11306_v54, %v11230_v2 }
 0x2b6   : > { %v2242_v55 = vadd.f32 %v2178_v41, %v2041_v40  ;;  %v2243_v0 = vadd.f32 %v2179_v15, %v2042_v5  ;;  %v2380_v17 = vmul.f32 %v11311_v6, %v10947_v20  ;;  %v3379_v47 = vmul.f32 %v11306_v54, %v10954_v45 }
 0x2b7   : > { %v3243_v61 = vadd.f32 %v3179_v49, %v3043_v50  ;;  %v3244_v39 = vadd.f32 %v3180_v62, %v3044_v28  ;;  %v3380_v7 = vmul.f32 %v11311_v6, %v10954_v45  ;;  %v11408_v63 = vadd.f32 %v11083_v23, %v5849_v52 }
 0x2b8   : > { %v1642_v58 = vadd.f32 %v1578_v19, %v1442_v10  ;;  %v4244_v44 = vadd.f32 %v4180_v14, %v4043_v60  ;;  %v4381_v40 = vmul.f32 %v11311_v6, %v11230_v2  ;;  %v11413_v5 = vadd.f32 %v11083_v23, %v5850_v26  ;;  %v15785_v6 = vld [vmem:[#allocation100_spill] sm:$0xff] }
 0x2b9   : > { %v7301_v20 = vpop.eup %7300  ;;  %v1643_v56 = vadd.f32 %v1579_v4, %v1443_v1  ;;  %v2580_v54 = vmul.f32 %v10965_v21, %v11331_v22  ;;  %v4444_v50 = vadd.f32 %v4380_v42, %v4243_v43  ;;  %v4581_v45 = vmul.f32 %v11253_v24, %v11331_v22 }
 0x2ba   : > { %v7303_v28 = vpop.eup %7302  ;;  %v2443_v57 = vadd.f32 %v2379_v59, %v2242_v55  ;;  %v2444_v37 = vadd.f32 %v2380_v17, %v2243_v0  ;;  %v2581_v60 = vmul.f32 %v10965_v21, %v11336_v34  ;;  %v3579_v19 = vmul.f32 %v15785_v6, %v11331_v22  ;;  %v375_v21 = vld [vmem:[%s7983_s26 + $0x1a0] sm:$0xff]  ;;  %v15786_v22 = vld [vmem:[#allocation143_spill] sm:$0xff] }
 0x2bb   : > { %v3443_v41 = vadd.f32 %v3379_v47, %v3243_v61  ;;  %v3444_v15 = vadd.f32 %v3380_v7, %v3244_v39  ;;  %v3580_v4 = vmul.f32 %v15785_v6, %v11336_v34  ;;  %v5984_v49 = vmul.f32 %v11408_v63, %v11408_v63  ;;  %489 = vst [vmem:[#allocation2 + $0x202] sm:$0xff] %v375_v21  ;;  %v15787_v0 = vld [vmem:[#allocation103_spill] sm:$0xff] }
 0x2bc   : > { %v6356_v62 = vadd.f32 1.0, %v7301_v20  ;;  %v4445_v52 = vadd.f32 %v4381_v40, %v4244_v44  ;;  %v4582_v55 = vmul.f32 %v11253_v24, %v11336_v34  ;;  %v5985_v10 = vmul.f32 %v11413_v5, %v11413_v5  ;;  %604 = vst [vmem:[#allocation2 + $0x481] sm:$0xff] %v375_v21  ;;  %802 = vst [vmem:[#allocation2 + $0x97f] sm:$0xfe] %v375_v21 }
 0x2bd   : > { %v6357_v14 = vadd.f32 1.0, %v7303_v28  ;;  %v2781_v26 = vmul.f32 %v15786_v22, %v11359_v53  ;;  %v4645_v1 = vadd.f32 %v4581_v45, %v4444_v50  ;;  %v4782_v59 = vmul.f32 %v11276_v35, %v11359_v53  ;;  %917 = vst [vmem:[#allocation2 + $0xbfe] sm:$0xfc] %v375_v21  ;;  %v974_v50 = vld [vmem:[#allocation2 + $0x1a0] sm:$0xff]  ;;  %v11476_v21 = vld [vmem:[%s7991_s15 + $0x15] ss:$0 sm:$0xff] }
 0x2be   : > { %v2644_v43 = vadd.f32 %v2580_v54, %v2443_v57  ;;  %v2645_v42 = vadd.f32 %v2581_v60, %v2444_v37  ;;  %v2782_v34 = vmul.f32 %v15786_v22, %v11362_v13  ;;  %v3779_v17 = vmul.f32 %v15787_v0, %v11359_v53  ;;  %v15791_v57 = vld [vmem:[#allocation144_spill] sm:$0xff]  ;;  %15794 = vst [vmem:[#allocation120_spill] sm:$0xff] %v11476_v21 }
 0x2bf   : > { %v3643_v47 = vadd.f32 %v3579_v19, %v3443_v41  ;;  %v3644_v61 = vadd.f32 %v3580_v4, %v3444_v15  ;;  %v3780_v39 = vmul.f32 %v15787_v0, %v11362_v13  ;;  %v6112_v7 = vmul.f32 0.035677407, %v5984_v49  ;;  %v11458_v49 = vld [vmem:[#allocation2 + $0x420] sm:$0xff] }
 0x2c0   : > { %v11443_v44 = vmul.f32 %v6356_v62, %v11352_v27  ;;  %v4646_v40 = vadd.f32 %v4582_v55, %v4445_v52  ;;  %v4783_v20 = vmul.f32 %v11276_v35, %v11362_v13  ;;  %v6113_v54 = vmul.f32 0.035677407, %v5985_v10  ;;  %v11473_v10 = vld [vmem:[#allocation2 + $0x428] sm:$0xff] }
 0x2c1   : > { %v11449_v45 = vmul.f32 %v11316_v9, %v11316_v9  ;;  %v11452_v53 = vmul.f32 %v6357_v14, %v11355_v33  ;;  %v4846_v28 = vadd.f32 %v4782_v59, %v4645_v1  ;;  %v4983_v37 = vmul.f32 %v15791_v57, %v974_v50 }
 0x2c2   : > { %15788 = vst [vmem:[#allocation108_spill] sm:$0xff] %v11443_v44  ;;  %v1842_v27 = vadd.f32 %v11385_v12, %v1642_v58  ;;  %v1843_v60 = vadd.f32 %v11393_v38, %v1643_v56  ;;  %v2845_v6 = vadd.f32 %v2781_v26, %v2644_v43  ;;  %v1979_v13 = vmul.f32 %v10898_v16, %v974_v50  ;;  %v11465_v12 = vld [vmem:[%s7991_s15 + $0xa] ss:$0 sm:$0xff]  ;;  %v11482_v26 = vld [vmem:[%s7991_s15 + $0xf] ss:$0 sm:$0xff] }
 0x2c3   : > { %15789 = vst [vmem:[#allocation109_spill] sm:$0xff] %v11449_v45  ;;  %15790 = vst [vmem:[#allocation117_spill] sm:$0xff] %v11452_v53  ;;  %v2846_v19 = vadd.f32 %v2782_v34, %v2645_v42  ;;  %v3843_v41 = vadd.f32 %v3779_v17, %v3643_v47  ;;  %v3844_v15 = vadd.f32 %v3780_v39, %v3644_v61  ;;  %v6176_v4 = vadd.f32 0.7978846, %v6112_v7  ;;  %v975_v16 = vld [vmem:[#allocation2 + $0x1a8] sm:$0xff] }
 0x2c4   : > { %v11462_v33 = vmul.f32 %v11443_v44, %v11443_v44  ;;  %v4847_v62 = vadd.f32 %v4783_v20, %v4646_v40  ;;  %v6177_v52 = vadd.f32 0.7978846, %v6113_v54  ;;  %v2981_v38 = vmul.f32 %v11465_v12, %v974_v50  ;;  %v11491_v34 = vld [vmem:[%s7991_s15 + $0x5] ss:$0 sm:$0xff]  ;;  %v11500_v7 = vld [vmem:[%s7991_s15] ss:$0 sm:$0xff] }
 0x2c5   : > { %v11470_v58 = vmul.f32 %v11452_v53, %v11452_v53  ;;  %v5047_v56 = vadd.f32 %v4983_v37, %v4846_v28  ;;  %v4984_v55 = vmul.f32 %v15791_v57, %v975_v16  ;;  %v5184_v14 = vmul.f32 %v11476_v21, %v11458_v49  ;;  %15795 = vst [vmem:[#allocation121_spill] sm:$0xff] %v11500_v7  ;;  %v11504_v20 = vld [vmem:[%s7991_s15 + $0x1] ss:$0 sm:$0xff]  ;;  %v11511_v57 = vld [vmem:[%s7991_s15 + $0x16] ss:$0 sm:$0xff]  ;;  %v7480_v37 = vld [vmem:[#allocation2 + $0x1a2] sm:$0xff] }
 0x2c6   : > { %15792 = vst [vmem:[#allocation118_spill] sm:$0xff] %v11462_v33  ;;  %v1044_v22 = vmul.f32 %v10908_v25, %v974_v50  ;;  %v3980_v1 = vmul.f32 %v11482_v26, %v974_v50  ;;  %v11485_v59 = vadd.f32 %v1979_v13, %v1842_v27  ;;  %v1180_v43 = vmul.f32 %v10918_v48, %v11458_v49  ;;  %v11526_v45 = vld [vmem:[%s7991_s15 + $0x2] ss:$0 sm:$0xff]  ;;  %v11579_v53 = vld [vmem:[%s7991_s15 + $0x7] ss:$0 sm:$0xff] }
 0x2c7   : > { %15793 = vst [vmem:[#allocation119_spill] sm:$0xff] %v11470_v58  ;;  %v6240_v42 = vmul.f32 %v6176_v4, %v11408_v63  ;;  %v1980_v17 = vmul.f32 %v11491_v34, %v975_v16  ;;  %v2982_v47 = vmul.f32 %v11465_v12, %v975_v16  ;;  %v3981_v25 = vmul.f32 %v11482_v26, %v975_v16  ;;  %v11573_v58 = vld [vmem:[%s7991_s15 + $0x18] ss:$0 sm:$0xff] }
 0x2c8   : > { %v6241_v61 = vmul.f32 %v6177_v52, %v11413_v5  ;;  %v11497_v39 = vadd.f32 %v2981_v38, %v2845_v6  ;;  %v1045_v40 = vmul.f32 %v11500_v7, %v975_v16  ;;  %15796 = vst [vmem:[#allocation122_spill] sm:$0xff] %v11504_v20  ;;  %v1181_v48 = vmul.f32 %v11504_v20, %v11473_v10 }
 0x2c9   : > { %v5048_v54 = vadd.f32 %v4984_v55, %v4847_v62  ;;  %v5185_v50 = vmul.f32 %v11476_v21, %v11473_v10  ;;  %v5248_v28 = vadd.f32 %v5184_v14, %v5047_v56  ;;  %15797 = vst [vmem:[#allocation29_spill] sm:$0xff] %v11511_v57  ;;  %v5385_v27 = vmul.f32 %v7480_v37, %v11511_v57  ;;  %v11518_v56 = vld [vmem:[#allocation2 + $0x920] sm:$0xff]  ;;  %v11520_v55 = vld [vmem:[#allocation2 + $0x928] sm:$0xff] }
 0x2ca   : > { %v11515_v6 = vmul.f32 0.5, %v11408_v63  ;;  %v4044_v13 = vadd.f32 %v3980_v1, %v3843_v41  ;;  %v1244_v4 = vadd.f32 %v1180_v43, %v1044_v22  ;;  %v1380_v52 = vmul.f32 %v7480_v37, %v15779_v29  ;;  %15798 = vst [vmem:[#allocation30_spill] sm:$0xff] %v11526_v45  ;;  %v7482_v41 = vld [vmem:[#allocation2 + $0x6a8] sm:$0xff]  ;;  %v11529_v29 = vld [vmem:[#allocation2 + $0xba0] sm:$0xff]  ;;  %15802 = vst [vmem:[#allocation27_spill] sm:$0xff] %v11579_v53 }
 0x2cb   : > { %7304 = vtanh.f32 %v6240_v42  ;;  %v2044_v62 = vadd.f32 %v1980_v17, %v1843_v60  ;;  %v3046_v38 = vadd.f32 %v2982_v47, %v2846_v19  ;;  %v4045_v16 = vadd.f32 %v3981_v25, %v3844_v15  ;;  %v11531_v60 = vld [vmem:[#allocation2 + $0xba8] sm:$0xff] }
 0x2cc   : > { %v11523_v14 = vmul.f32 0.5, %v11413_v5  ;;  %7306 = vtanh.f32 %v6241_v61  ;;  %v1245_v63 = vadd.f32 %v1181_v48, %v1045_v40  ;;  %v1381_v22 = vmul.f32 %v7482_v41, %v11526_v45  ;;  %v376_v19 = vld [vmem:[%s7983_s26 + $0x1a8] sm:$0xff]  ;;  %v11536_v5 = vld [vmem:[%s7991_s15 + $0x17] ss:$0 sm:$0xff]  ;;  %v11545_v61 = vld [vmem:[%s7991_s15 + $0x6] ss:$0 sm:$0xff] }
 0x2cd   : > { %v5249_v15 = vadd.f32 %v5185_v50, %v5048_v54  ;;  %v5386_v1 = vmul.f32 %v7482_v41, %v11511_v57  ;;  %v5449_v43 = vadd.f32 %v5385_v27, %v5248_v28  ;;  %15799 = vst [vmem:[#allocation17_spill] sm:$0xff] %v11536_v5  ;;  %v5586_v42 = vmul.f32 %v11536_v5, %v11518_v56  ;;  %v11560_v28 = vld [vmem:[%s7991_s15 + $0xb] ss:$0 sm:$0xff]  ;;  %v11594_v21 = vld [vmem:[%s7991_s15 + $0x8] ss:$0 sm:$0xff] }
 0x2ce   : > { %490 = vst [vmem:[#allocation2 + $0x20a] sm:$0x3f] %v376_v19  ;;  %605 = vst [vmem:[#allocation2 + $0x489] sm:$0x7f] %v376_v19  ;;  %v1444_v17 = vadd.f32 %v1380_v52, %v1244_v4  ;;  %v1580_v47 = vmul.f32 %v15781_v30, %v11518_v56  ;;  %v1581_v25 = vmul.f32 %v15781_v30, %v11520_v55 }
 0x2cf   : > { %688 = vst [vmem:[#allocation2 + $0x708] sm:$0xff] %v376_v19  ;;  %803 = vst [vmem:[#allocation2 + $0x987] sm:$0xff] %v376_v19  ;;  %v2180_v40 = vmul.f32 %v11545_v61, %v11458_v49  ;;  %v11551_v48 = vmul.f32 %v15783_v18, %v11529_v29  ;;  %v11555_v54 = vmul.f32 %v15783_v18, %v11531_v60 }
 0x2d0   : > { %918 = vst [vmem:[#allocation2 + $0xc06] sm:$0xff] %v376_v19  ;;  %15800 = vst [vmem:[#allocation12_spill] sm:$0xff] %v11545_v61  ;;  %v2181_v50 = vmul.f32 %v11545_v61, %v11473_v10  ;;  %v3181_v30 = vmul.f32 %v11560_v28, %v11458_v49  ;;  %v1445_v27 = vadd.f32 %v1381_v22, %v1245_v63 }
 0x2d1   : > { %15801 = vst [vmem:[#allocation21_spill] sm:$0xff] %v11560_v28  ;;  %v3182_v4 = vmul.f32 %v11560_v28, %v11473_v10  ;;  %v4181_v52 = vmul.f32 %v11207_v11, %v11458_v49  ;;  %v4182_v18 = vmul.f32 %v11207_v11, %v11473_v10  ;;  %v5450_v19 = vadd.f32 %v5386_v1, %v5249_v15  ;;  %v11585_v15 = vld [vmem:[%s7991_s15 + $0xc] ss:$0 sm:$0xff] }
 0x2d2   : > { %v5587_v9 = vmul.f32 %v11536_v5, %v11520_v55  ;;  %v5650_v51 = vadd.f32 %v5586_v42, %v5449_v43  ;;  %v5787_v63 = vmul.f32 %v11573_v58, %v11529_v29  ;;  %v1644_v22 = vadd.f32 %v1580_v47, %v1444_v17  ;;  %15803 = vst [vmem:[#allocation18_spill] sm:$0xff] %v11594_v21 }
 0x2d3   : > { %v2244_v33 = vadd.f32 %v2180_v40, %v11485_v59  ;;  %v2381_v49 = vmul.f32 %v11579_v53, %v7480_v37  ;;  %v2382_v44 = vmul.f32 %v11579_v53, %v7482_v41  ;;  %v2245_v11 = vadd.f32 %v2181_v50, %v2044_v62 }
 0x2d4   : > { %v3245_v10 = vadd.f32 %v3181_v30, %v11497_v39  ;;  %v3381_v1 = vmul.f32 %v11585_v15, %v7480_v37  ;;  %v3382_v43 = vmul.f32 %v11585_v15, %v7482_v41  ;;  %v3246_v42 = vadd.f32 %v3182_v4, %v3046_v38 }
 0x2d5   : > { %v4245_v17 = vadd.f32 %v4181_v52, %v4044_v13  ;;  %v4382_v59 = vmul.f32 %v7480_v37, %v11230_v2  ;;  %v4383_v47 = vmul.f32 %v7482_v41, %v11230_v2  ;;  %v7305_v40 = vpop.eup %7304  ;;  %v4246_v28 = vadd.f32 %v4182_v18, %v4045_v16  ;;  %v11601_v16 = vld [vmem:[%s7991_s15 + $0xd] ss:$0 sm:$0xff] }
 0x2d6   : > { %v5651_v5 = vadd.f32 %v5587_v9, %v5450_v19  ;;  %v5788_v39 = vmul.f32 %v11573_v58, %v11531_v60  ;;  %v5851_v62 = vadd.f32 %v5787_v63, %v5650_v51  ;;  %v7307_v50 = vpop.eup %7306  ;;  %v1645_v30 = vadd.f32 %v1581_v25, %v1445_v27 }
 0x2d7   : > { %v2445_v57 = vadd.f32 %v2381_v49, %v2244_v33  ;;  %v2582_v13 = vmul.f32 %v11594_v21, %v11518_v56  ;;  %v2583_v37 = vmul.f32 %v11594_v21, %v11520_v55  ;;  %v2446_v2 = vadd.f32 %v2382_v44, %v2245_v11  ;;  %v11615_v49 = vld [vmem:[%s7991_s15 + $0x9] ss:$0 sm:$0xff] }
 0x2d8   : > { %v3445_v38 = vadd.f32 %v3381_v1, %v3245_v10  ;;  %v3581_v9 = vmul.f32 %v11601_v16, %v11518_v56  ;;  %v3582_v51 = vmul.f32 %v11601_v16, %v11520_v55  ;;  %v3446_v33 = vadd.f32 %v3382_v43, %v3246_v42 }
 0x2d9   : > { %v4446_v41 = vadd.f32 %v4382_v59, %v4245_v17  ;;  %v4583_v25 = vmul.f32 %v11253_v24, %v11518_v56  ;;  %v4584_v27 = vmul.f32 %v11253_v24, %v11520_v55  ;;  %v6368_v4 = vadd.f32 1.0, %v7305_v40 }
 0x2da   : > { %v4447_v52 = vadd.f32 %v4383_v47, %v4246_v28  ;;  %v5852_v44 = vadd.f32 %v5788_v39, %v5651_v5  ;;  %v11612_v18 = vadd.f32 %v11083_v23, %v5851_v62  ;;  %v6369_v19 = vadd.f32 1.0, %v7307_v50  ;;  %v1897_v5 = vld [vmem:[#allocation2 + $0x100] sm:$0xff] }
 0x2db   : > { %v2646_v63 = vadd.f32 %v2582_v13, %v2445_v57  ;;  %v2783_v11 = vmul.f32 %v11615_v49, %v11529_v29  ;;  %v2784_v10 = vmul.f32 %v11615_v49, %v11531_v60  ;;  %v2647_v56 = vadd.f32 %v2583_v37, %v2446_v2  ;;  %v1898_v37 = vld [vmem:[#allocation2 + $0x108] sm:$0xff]  ;;  %v377_v2 = vld [vmem:[%s7983_s26 + $0x1b0] sm:$0xff] }
 0x2dc   : > { %v3645_v1 = vadd.f32 %v3581_v9, %v3445_v38  ;;  %v3781_v24 = vmul.f32 %v15787_v0, %v11529_v29  ;;  %v3782_v55 = vmul.f32 %v15787_v0, %v11531_v60  ;;  %v3646_v28 = vadd.f32 %v3582_v51, %v3446_v33  ;;  %491 = vst [vmem:[#allocation2 + $0x212] sm:$0xff] %v377_v2  ;;  %v976_v33 = vld [vmem:[#allocation2 + $0x1b0] sm:$0xff] }
 0x2dd   : > { %v4647_v57 = vadd.f32 %v4583_v25, %v4446_v41  ;;  %v4784_v43 = vmul.f32 %v11276_v35, %v11529_v29  ;;  %v4785_v42 = vmul.f32 %v11276_v35, %v11531_v60  ;;  %v11630_v17 = vmul.f32 %v6368_v4, %v11515_v6  ;;  %606 = vst [vmem:[#allocation2 + $0x491] sm:$0xff] %v377_v2  ;;  %v11664_v41 = vld [vmem:[#allocation2 + $0x430] sm:$0xff] }
 0x2de   : > { %v4648_v59 = vadd.f32 %v4584_v27, %v4447_v52  ;;  %v11633_v47 = vadd.f32 %v11083_v23, %v5852_v44  ;;  %v5986_v40 = vmul.f32 %v11612_v18, %v11612_v18  ;;  %v11638_v39 = vmul.f32 %v6369_v19, %v11523_v14  ;;  %v11648_v23 = vld [vmem:[%s7991_s15 + $0x14] ss:$0 sm:$0xff]  ;;  %804 = vst [vmem:[#allocation2 + $0x98f] sm:$0xfe] %v377_v2  ;;  %v15809_v27 = vld [vmem:[#allocation101_spill] sm:$0xff] }
 0x2df   : > { %15804 = vst [vmem:[#allocation23_spill] sm:$0xff] %v11630_v17  ;;  %v1844_v62 = vadd.f32 %v11551_v48, %v1644_v22  ;;  %v11642_v29 = vadd.f32 %v11555_v54, %v1645_v30  ;;  %v1967_v35 = vmul.f32 %v11491_v34, %v1897_v5  ;;  %v2847_v60 = vadd.f32 %v2783_v11, %v2646_v63  ;;  %v977_v19 = vld [vmem:[#allocation2 + $0x1b8] sm:$0xff] }
 0x2e0   : > { %15805 = vst [vmem:[#allocation24_spill] sm:$0xff] %v11638_v39  ;;  %v2969_v6 = vmul.f32 %v11465_v12, %v1897_v5  ;;  %v3968_v50 = vmul.f32 %v11482_v26, %v1897_v5  ;;  %15806 = vst [vmem:[#allocation124_spill] sm:$0xff] %v11648_v23  ;;  %v4971_v13 = vmul.f32 %v11648_v23, %v1897_v5  ;;  %v6114_v51 = vmul.f32 0.035677407, %v5986_v40  ;;  %v11675_v63 = vld [vmem:[#allocation2 + $0x438] sm:$0xff] }
 0x2e1   : > { %v11652_v14 = vadd.f32 %v2784_v10, %v2647_v56  ;;  %v3845_v38 = vadd.f32 %v3781_v24, %v3645_v1  ;;  %v11654_v48 = vadd.f32 %v3782_v55, %v3646_v28  ;;  %v4848_v54 = vadd.f32 %v4784_v43, %v4647_v57  ;;  %919 = vst [vmem:[#allocation2 + $0xc0e] sm:$0xfc] %v377_v2  ;;  %v11711_v2 = vld [vmem:[#allocation2 + $0x380] sm:$0xff] }
 0x2e2   : > { %v11658_v22 = vmul.f32 %v11630_v17, %v11630_v17  ;;  %v11660_v30 = vadd.f32 %v4785_v42, %v4648_v59  ;;  %v5987_v9 = vmul.f32 %v11633_v47, %v11633_v47  ;;  %v11668_v25 = vmul.f32 %v11638_v39, %v11638_v39  ;;  %v11759_v39 = vld [vmem:[#allocation2 + $0xbb8] sm:$0xff] }
 0x2e3   : > { %v11671_v4 = vadd.f32 %v1967_v35, %v15809_v27  ;;  %v1968_v52 = vmul.f32 %v11491_v34, %v1898_v37  ;;  %v2970_v44 = vmul.f32 %v11465_v12, %v1898_v37  ;;  %v11678_v11 = vadd.f32 %v2969_v6, %v11287_v46  ;;  %v11716_v27 = vld [vmem:[#allocation2 + $0x1b2] sm:$0xff] }
 0x2e4   : > { %15807 = vst [vmem:[#allocation125_spill] sm:$0xff] %v11658_v22  ;;  %15808 = vst [vmem:[#allocation126_spill] sm:$0xff] %v11668_v25  ;;  %v11681_v10 = vadd.f32 %v3968_v50, %v11299_v32  ;;  %v11684_v56 = vadd.f32 %v4971_v13, %v11304_v8  ;;  %v3969_v1 = vmul.f32 %v11482_v26, %v1898_v37  ;;  %v6115_v57 = vmul.f32 0.035677407, %v5987_v9  ;;  %v15810_v8 = vld [vmem:[#allocation102_spill] sm:$0xff] }
 0x2e5   : > { %v4972_v24 = vmul.f32 %v11648_v23, %v1898_v37  ;;  %v1046_v55 = vmul.f32 %v11500_v7, %v976_v33  ;;  %v1981_v5 = vmul.f32 %v11491_v34, %v976_v33  ;;  %v1182_v28 = vmul.f32 %v11504_v20, %v11664_v41 }
 0x2e6   : > { %v6178_v46 = vadd.f32 0.7978846, %v6114_v51  ;;  %v1047_v43 = vmul.f32 %v11500_v7, %v977_v19  ;;  %v1183_v32 = vmul.f32 %v11504_v20, %v11675_v63  ;;  %v2032_v42 = vadd.f32 %v1968_v52, %v15810_v8 }
 0x2e7   : > { %v11697_v59 = vadd.f32 %v2970_v44, %v11292_v36  ;;  %v2983_v40 = vmul.f32 %v11465_v12, %v976_v33  ;;  %v3982_v35 = vmul.f32 %v11482_v26, %v976_v33  ;;  %v11702_v6 = vmul.f32 0.5, %v11612_v18  ;;  %v11720_v44 = vld [vmem:[#allocation2 + $0x388] sm:$0xff] }
 0x2e8   : > { %v11705_v50 = vmul.f32 0.5, %v11633_v47  ;;  %v11708_v13 = vadd.f32 %v3969_v1, %v11301_v31  ;;  %v4985_v37 = vmul.f32 %v11648_v23, %v976_v33  ;;  %v11714_v36 = vadd.f32 %v4972_v24, %v11318_v3  ;;  %v11723_v33 = vld [vmem:[#allocation2 + $0x6b8] sm:$0xff] }
 0x2e9   : > { %v2045_v9 = vadd.f32 %v1981_v5, %v1844_v62  ;;  %v1246_v51 = vadd.f32 %v1182_v28, %v1046_v55  ;;  %v1382_v52 = vmul.f32 %v11716_v27, %v11526_v45  ;;  %v6179_v8 = vadd.f32 0.7978846, %v6115_v57  ;;  %v11727_v62 = vld [vmem:[#allocation2 + $0x930] sm:$0xff]  ;;  %v11734_v28 = vld [vmem:[#allocation2 + $0x938] sm:$0xff] }
 0x2ea   : > { %v6242_v31 = vmul.f32 %v6178_v46, %v11612_v18  ;;  %v1247_v1 = vadd.f32 %v1183_v32, %v1047_v43  ;;  %v1383_v3 = vmul.f32 %v11723_v33, %v11526_v45  ;;  %v11729_v24 = vadd.f32 %v2983_v40, %v2847_v60  ;;  %v378_v60 = vld [vmem:[%s7983_s26 + $0x1b8] sm:$0xff] }
 0x2eb   : > { %v11731_v55 = vadd.f32 %v3982_v35, %v3845_v38  ;;  %v1982_v5 = vmul.f32 %v11491_v34, %v977_v19  ;;  %v2168_v18 = vmul.f32 %v11545_v61, %v11711_v2  ;;  %v11738_v57 = vadd.f32 %v4985_v37, %v4848_v54  ;;  %v11747_v35 = vld [vmem:[%s7991_s15 + $0x3] ss:$0 sm:$0xff]  ;;  %492 = vst [vmem:[#allocation2 + $0x21a] sm:$0x3f] %v378_v60 }
 0x2ec   : > { %v2984_v46 = vmul.f32 %v11465_v12, %v977_v19  ;;  %v3983_v43 = vmul.f32 %v11482_v26, %v977_v19  ;;  %v2169_v32 = vmul.f32 %v11545_v61, %v11720_v44  ;;  %v4986_v38 = vmul.f32 %v11648_v23, %v977_v19  ;;  %15811 = vst [vmem:[#allocation127_spill] sm:$0xff] %v11747_v35 }
 0x2ed   : > { %v1446_v40 = vadd.f32 %v1382_v52, %v1246_v51  ;;  %v1582_v25 = vmul.f32 %v11747_v35, %v11727_v62  ;;  %v2182_v54 = vmul.f32 %v11545_v61, %v11664_v41  ;;  %607 = vst [vmem:[#allocation2 + $0x499] sm:$0x7f] %v378_v60  ;;  %690 = vst [vmem:[#allocation2 + $0x718] sm:$0xff] %v378_v60  ;;  %7308 = vtanh.f32 %v6242_v31  ;;  %v11756_v51 = vld [vmem:[#allocation2 + $0xbb0] sm:$0xff] }
 0x2ee   : > { %805 = vst [vmem:[#allocation2 + $0x997] sm:$0xff] %v378_v60  ;;  %920 = vst [vmem:[#allocation2 + $0xc16] sm:$0xff] %v378_v60  ;;  %v6243_v37 = vmul.f32 %v6179_v8, %v11633_v47  ;;  %v1447_v22 = vadd.f32 %v1383_v3, %v1247_v1  ;;  %v1583_v19 = vmul.f32 %v11747_v35, %v11734_v28  ;;  %v11764_v60 = vld [vmem:[#allocation2 + $0x102] sm:$0xff] }
 0x2ef   : > { %v2046_v52 = vadd.f32 %v1982_v5, %v11642_v29  ;;  %v2183_v17 = vmul.f32 %v11545_v61, %v11675_v63  ;;  %v2232_v45 = vadd.f32 %v2168_v18, %v11671_v4  ;;  %v2369_v47 = vmul.f32 %v11764_v60, %v11579_v53  ;;  %v11774_v29 = vld [vmem:[#allocation2 + $0x608] sm:$0xff]  ;;  %v11778_v5 = vld [vmem:[#allocation2 + $0x880] sm:$0xff] }
 0x2f0   : > { %v11769_v8 = vadd.f32 %v2984_v46, %v11652_v14  ;;  %v11772_v31 = vadd.f32 %v3983_v43, %v11654_v48  ;;  %v2233_v1 = vadd.f32 %v2169_v32, %v2032_v42  ;;  %v2370_v3 = vmul.f32 %v11774_v29, %v11579_v53  ;;  %v11781_v18 = vld [vmem:[%s7991_s15 + $0x4] ss:$0 sm:$0xff]  ;;  %v11787_v48 = vld [vmem:[#allocation2 + $0x888] sm:$0xff]  ;;  %v15813_v43 = vld [vmem:[#allocation120_spill] sm:$0xff] }
 0x2f1   : > { %v1646_v4 = vadd.f32 %v1582_v25, %v1446_v40  ;;  %15812 = vst [vmem:[#allocation128_spill] sm:$0xff] %v11781_v18  ;;  %v1782_v35 = vmul.f32 %v11781_v18, %v11756_v51  ;;  %v2246_v61 = vadd.f32 %v2182_v54, %v2045_v9  ;;  %v2383_v14 = vmul.f32 %v11716_v27, %v11579_v53 }
 0x2f2   : > { %7310 = vtanh.f32 %v6243_v37  ;;  %v1647_v42 = vadd.f32 %v1583_v19, %v1447_v22  ;;  %v1783_v46 = vmul.f32 %v11781_v18, %v11759_v39  ;;  %v5172_v32 = vmul.f32 %v15813_v43, %v11711_v2  ;;  %v11800_v37 = vld [vmem:[#allocation2 + $0xb00] sm:$0xff] }
 0x2f3   : > { %v2247_v25 = vadd.f32 %v2183_v17, %v2046_v52  ;;  %v2384_v40 = vmul.f32 %v11723_v33, %v11579_v53  ;;  %v2433_v23 = vadd.f32 %v2369_v47, %v2232_v45  ;;  %v2570_v9 = vmul.f32 %v11594_v21, %v11778_v5  ;;  %v11808_v52 = vld [vmem:[#allocation2 + $0xb08] sm:$0xff] }
 0x2f4   : > { %v5050_v54 = vadd.f32 %v4986_v38, %v11660_v30  ;;  %v2434_v20 = vadd.f32 %v2370_v3, %v2233_v1  ;;  %v2571_v22 = vmul.f32 %v11594_v21, %v11787_v48  ;;  %v5173_v19 = vmul.f32 %v15813_v43, %v11720_v44  ;;  %v15816_v3 = vld [vmem:[#allocation29_spill] sm:$0xff] }
 0x2f5   : > { %v11804_v18 = vadd.f32 %v1782_v35, %v1646_v4  ;;  %v2447_v17 = vadd.f32 %v2383_v14, %v2246_v61  ;;  %v2584_v45 = vmul.f32 %v11594_v21, %v11727_v62  ;;  %v5186_v30 = vmul.f32 %v15813_v43, %v11664_v41 }
 0x2f6   : > { %v11812_v38 = vadd.f32 %v1783_v46, %v1647_v42  ;;  %v5187_v47 = vmul.f32 %v15813_v43, %v11675_v63  ;;  %v5236_v1 = vadd.f32 %v5172_v32, %v11684_v56  ;;  %v5373_v35 = vmul.f32 %v11764_v60, %v15816_v3  ;;  %v15817_v43 = vld [vmem:[#allocation17_spill] sm:$0xff] }
 0x2f7   : > { %15814 = vst [vmem:[#allocation129_spill] sm:$0xff] %v11804_v18  ;;  %v2448_v4 = vadd.f32 %v2384_v40, %v2247_v25  ;;  %v2585_v61 = vmul.f32 %v11594_v21, %v11734_v28  ;;  %v2634_v14 = vadd.f32 %v2570_v9, %v2433_v23  ;;  %v2771_v53 = vmul.f32 %v11615_v49, %v11800_v37  ;;  %v7309_v18 = vpop.eup %7308 }
 0x2f8   : > { %15815 = vst [vmem:[#allocation130_spill] sm:$0xff] %v11812_v38  ;;  %v2635_v7 = vadd.f32 %v2571_v22, %v2434_v20  ;;  %v2772_v42 = vmul.f32 %v11615_v49, %v11808_v52  ;;  %v5237_v46 = vadd.f32 %v5173_v19, %v11714_v36  ;;  %v5374_v56 = vmul.f32 %v11774_v29, %v15816_v3 }
 0x2f9   : > { %v2648_v32 = vadd.f32 %v2584_v45, %v2447_v17  ;;  %v2785_v25 = vmul.f32 %v11615_v49, %v11756_v51  ;;  %v5250_v40 = vadd.f32 %v5186_v30, %v11738_v57  ;;  %v5387_v23 = vmul.f32 %v11716_v27, %v15816_v3  ;;  %v15818_v45 = vld [vmem:[#allocation21_spill] sm:$0xff] }
 0x2fa   : > { %v5251_v9 = vadd.f32 %v5187_v47, %v5050_v54  ;;  %v5388_v20 = vmul.f32 %v11723_v33, %v15816_v3  ;;  %v5437_v22 = vadd.f32 %v5373_v35, %v5236_v1  ;;  %v5574_v36 = vmul.f32 %v15817_v43, %v11778_v5 }
 0x2fb   : > { %v6370_v19 = vadd.f32 1.0, %v7309_v18  ;;  %v2649_v21 = vadd.f32 %v2585_v61, %v2448_v4  ;;  %v2786_v17 = vmul.f32 %v11615_v49, %v11759_v39  ;;  %v3169_v38 = vmul.f32 %v15818_v45, %v11711_v2 }
 0x2fc   : > { %v7311_v57 = vpop.eup %7310  ;;  %v11841_v30 = vadd.f32 %v2771_v53, %v2634_v14  ;;  %v3170_v54 = vmul.f32 %v15818_v45, %v11720_v44  ;;  %v5438_v47 = vadd.f32 %v5374_v56, %v5237_v46  ;;  %v5575_v1 = vmul.f32 %v15817_v43, %v11787_v48 }
 0x2fd   : > { %v11847_v35 = vadd.f32 %v2772_v42, %v2635_v7  ;;  %v3183_v18 = vmul.f32 %v15818_v45, %v11664_v41  ;;  %v5451_v4 = vadd.f32 %v5387_v23, %v5250_v40  ;;  %v5588_v61 = vmul.f32 %v15817_v43, %v11727_v62 }
 0x2fe   : > { %15819 = vst [vmem:[#allocation131_spill] sm:$0xff] %v11841_v30  ;;  %v5452_v3 = vadd.f32 %v5388_v20, %v5251_v9  ;;  %v5589_v53 = vmul.f32 %v15817_v43, %v11734_v28  ;;  %v5638_v14 = vadd.f32 %v5574_v36, %v5437_v22  ;;  %v5775_v46 = vmul.f32 %v11573_v58, %v11800_v37 }
 0x2ff   : > { %v6371_v56 = vadd.f32 1.0, %v7311_v57  ;;  %v11858_v30 = vmul.f32 %v6370_v19, %v11702_v6  ;;  %v3184_v7 = vmul.f32 %v15818_v45, %v11675_v63  ;;  %v3233_v42 = vadd.f32 %v3169_v38, %v11678_v11 }
 0x300   : > { %v3234_v40 = vadd.f32 %v3170_v54, %v11697_v59  ;;  %v3369_v23 = vmul.f32 %v11764_v60, %v11585_v15  ;;  %v5639_v9 = vadd.f32 %v5575_v1, %v5438_v47  ;;  %v5776_v20 = vmul.f32 %v11573_v58, %v11808_v52 }
 0x301   : > { %15820 = vst [vmem:[#allocation132_spill] sm:$0xff] %v11858_v30  ;;  %v3247_v22 = vadd.f32 %v3183_v18, %v11729_v24  ;;  %v3370_v6 = vmul.f32 %v11774_v29, %v11585_v15  ;;  %v5652_v36 = vadd.f32 %v5588_v61, %v5451_v4  ;;  %v5789_v19 = vmul.f32 %v11573_v58, %v11756_v51  ;;  %v379_v18 = vld [vmem:[%s7983_s26 + $0x1c0] sm:$0xff] }
 0x302   : > { %v3383_v11 = vmul.f32 %v11716_v27, %v11585_v15  ;;  %v5653_v59 = vadd.f32 %v5589_v53, %v5452_v3  ;;  %v5790_v38 = vmul.f32 %v11573_v58, %v11759_v39  ;;  %v5839_v57 = vadd.f32 %v5775_v46, %v5638_v14  ;;  %493 = vst [vmem:[#allocation2 + $0x222] sm:$0xff] %v379_v18 }
 0x303   : > { %v11877_v54 = vadd.f32 %v2785_v25, %v2648_v32  ;;  %v11879_v47 = vadd.f32 %v2786_v17, %v2649_v21  ;;  %v3248_v24 = vadd.f32 %v3184_v7, %v11769_v8  ;;  %v3384_v1 = vmul.f32 %v11723_v33, %v11585_v15  ;;  %608 = vst [vmem:[#allocation2 + $0x4a1] sm:$0xff] %v379_v18  ;;  %v11895_v32 = vld [vmem:[%s7991_s15 + $0x10] ss:$0 sm:$0xff] }
 0x304   : > { %v11886_v4 = vmul.f32 %v6371_v56, %v11705_v50  ;;  %v3433_v3 = vadd.f32 %v3369_v23, %v3233_v42  ;;  %v3569_v61 = vmul.f32 %v11601_v16, %v11778_v5  ;;  %v5840_v53 = vadd.f32 %v5776_v20, %v5639_v9  ;;  %806 = vst [vmem:[#allocation2 + $0x99f] sm:$0xfe] %v379_v18  ;;  %v11902_v56 = vld [vmem:[%s10273_s12] ss:$0 sm:$0xff] }
 0x305   : > { %921 = vst [vmem:[#allocation2 + $0xc1e] sm:$0xfc] %v379_v18  ;;  %v11892_v21 = vmul.f32 %v11858_v30, %v11858_v30  ;;  %v3434_v8 = vadd.f32 %v3370_v6, %v3234_v40  ;;  %v4169_v50 = vmul.f32 %v11895_v32, %v11711_v2  ;;  %v5853_v25 = vadd.f32 %v5789_v19, %v5652_v36  ;;  %v11924_v19 = vld [vmem:[%s7991_s15 + $0x11] ss:$0 sm:$0xff] }
 0x306   : > { %15821 = vst [vmem:[#allocation133_spill] sm:$0xff] %v11886_v4  ;;  %v3447_v17 = vadd.f32 %v3383_v11, %v3247_v22  ;;  %v4170_v14 = vmul.f32 %v11895_v32, %v11720_v44  ;;  %v5854_v46 = vadd.f32 %v5790_v38, %v5653_v59  ;;  %v11905_v7 = vadd.f32 %v11902_v56, %v5839_v57 }
 0x307   : > { %15822 = vst [vmem:[#allocation134_spill] sm:$0xff] %v11892_v21  ;;  %v3448_v42 = vadd.f32 %v3384_v1, %v3248_v24  ;;  %v3570_v40 = vmul.f32 %v11601_v16, %v11787_v48  ;;  %v3583_v2 = vmul.f32 %v11601_v16, %v11727_v62  ;;  %v4183_v23 = vmul.f32 %v11895_v32, %v11664_v41  ;;  %v381_v21 = vld [vmem:[%s7983_s26 + $0x1d0] sm:$0xff] }
 0x308   : > { %v3584_v44 = vmul.f32 %v11601_v16, %v11734_v28  ;;  %v3633_v9 = vadd.f32 %v3569_v61, %v3433_v3  ;;  %v4184_v20 = vmul.f32 %v11895_v32, %v11675_v63  ;;  %v11918_v22 = vadd.f32 %v11902_v56, %v5840_v53  ;;  %495 = vst [vmem:[#allocation2 + $0x232] sm:$0xff] %v381_v21 }
 0x309   : > { %v3769_v6 = vmul.f32 %v15787_v0, %v11800_v37  ;;  %v4233_v36 = vadd.f32 %v4169_v50, %v11681_v10  ;;  %v4370_v41 = vmul.f32 %v11924_v19, %v11764_v60  ;;  %v11929_v11 = vadd.f32 %v11902_v56, %v5853_v25  ;;  %v380_v10 = vld [vmem:[%s7983_s26 + $0x1c8] sm:$0xff]  ;;  %610 = vst [vmem:[#allocation2 + $0x4b1] sm:$0xff] %v381_v21 }
 0x30a   : > { %v4234_v59 = vadd.f32 %v4170_v14, %v11708_v13  ;;  %v4371_v63 = vmul.f32 %v11924_v19, %v11774_v29  ;;  %v11935_v38 = vadd.f32 %v11902_v56, %v5854_v46  ;;  %v5974_v57 = vmul.f32 %v11905_v7, %v11905_v7  ;;  %494 = vst [vmem:[#allocation2 + $0x22a] sm:$0x3f] %v380_v10 }
 0x30b   : > { %v3634_v24 = vadd.f32 %v3570_v40, %v3434_v8  ;;  %v3770_v60 = vmul.f32 %v15787_v0, %v11808_v52  ;;  %v4247_v1 = vadd.f32 %v4183_v23, %v11731_v55  ;;  %v4384_v13 = vmul.f32 %v11924_v19, %v11716_v27  ;;  %609 = vst [vmem:[#allocation2 + $0x4a9] sm:$0x7f] %v380_v10  ;;  %v11953_v27 = vld [vmem:[%s7991_s15 + $0x12] ss:$0 sm:$0xff] }
 0x30c   : > { %692 = vst [vmem:[#allocation2 + $0x728] sm:$0xff] %v380_v10  ;;  %807 = vst [vmem:[#allocation2 + $0x9a7] sm:$0xff] %v380_v10  ;;  %v3647_v29 = vadd.f32 %v3583_v2, %v3447_v17  ;;  %v4248_v18 = vadd.f32 %v4184_v20, %v11772_v31  ;;  %v4385_v3 = vmul.f32 %v11924_v19, %v11723_v33  ;;  %v6102_v17 = vmul.f32 0.035677407, %v5974_v57 }
 0x30d   : > { %922 = vst [vmem:[#allocation2 + $0xc26] sm:$0xff] %v380_v10  ;;  %v5975_v61 = vmul.f32 %v11918_v22, %v11918_v22  ;;  %v3783_v55 = vmul.f32 %v15787_v0, %v11756_v51  ;;  %v4434_v53 = vadd.f32 %v4370_v41, %v4233_v36  ;;  %15823 = vst [vmem:[#allocation135_spill] sm:$0xff] %v11953_v27  ;;  %v11964_v0 = vld [vmem:[%s7991_s15 + $0xe] ss:$0 sm:$0xff] }
 0x30e   : > { %v4571_v8 = vmul.f32 %v11953_v27, %v11778_v5  ;;  %v5988_v50 = vmul.f32 %v11929_v11, %v11929_v11  ;;  %v4435_v31 = vadd.f32 %v4371_v63, %v4234_v59  ;;  %v4572_v33 = vmul.f32 %v11953_v27, %v11787_v48  ;;  %808 = vst [vmem:[#allocation2 + $0x9af] sm:$0xfe] %v381_v21 }
 0x30f   : > { %v5989_v25 = vmul.f32 %v11935_v38, %v11935_v38  ;;  %v3648_v14 = vadd.f32 %v3584_v44, %v3448_v42  ;;  %v3784_v46 = vmul.f32 %v11964_v0, %v11759_v39  ;;  %v4448_v40 = vadd.f32 %v4384_v13, %v4247_v1  ;;  %v11979_v44 = vld [vmem:[%s7991_s15 + $0x13] ss:$0 sm:$0xff]  ;;  %923 = vst [vmem:[#allocation2 + $0xc2e] sm:$0xfc] %v381_v21 }
 0x310   : > { %v4585_v5 = vmul.f32 %v11953_v27, %v11727_v62  ;;  %v11972_v2 = vmul.f32 %v11886_v4, %v11886_v4  ;;  %v4449_v23 = vadd.f32 %v4385_v3, %v4248_v18  ;;  %v4586_v48 = vmul.f32 %v11953_v27, %v11734_v28  ;;  %15825 = vst [vmem:[#allocation137_spill] sm:$0xff] %v11979_v44 }
 0x311   : > { %v6103_v20 = vmul.f32 0.035677407, %v5975_v61  ;;  %v11976_v36 = vadd.f32 %v3769_v6, %v3633_v9  ;;  %v4635_v42 = vadd.f32 %v4571_v8, %v4434_v53  ;;  %v4772_v41 = vmul.f32 %v11979_v44, %v11800_v37  ;;  %v978_v6 = vld [vmem:[#allocation2 + $0x1c0] sm:$0xff]  ;;  %v979_v53 = vld [vmem:[#allocation2 + $0x1c8] sm:$0xff] }
 0x312   : > { %15824 = vst [vmem:[#allocation136_spill] sm:$0xff] %v11972_v2  ;;  %v6116_v59 = vmul.f32 0.035677407, %v5988_v50  ;;  %v4636_v63 = vadd.f32 %v4572_v33, %v4435_v31  ;;  %v4773_v62 = vmul.f32 %v11979_v44, %v11808_v52  ;;  %v6117_v57 = vmul.f32 0.035677407, %v5989_v25  ;;  %v11993_v8 = vld [vmem:[#allocation2 + $0x440] sm:$0xff] }
 0x313   : > { %v6166_v10 = vadd.f32 0.7978846, %v6102_v17  ;;  %v11985_v1 = vadd.f32 %v3770_v60, %v3634_v24  ;;  %v3847_v13 = vadd.f32 %v3783_v55, %v3647_v29  ;;  %v11987_v28 = vadd.f32 %v3784_v46, %v3648_v14  ;;  %v11995_v52 = vld [vmem:[#allocation2 + $0x448] sm:$0xff]  ;;  %v15828_v33 = vld [vmem:[#allocation121_spill] sm:$0xff] }
 0x314   : > { %v4649_v9 = vadd.f32 %v4585_v5, %v4448_v40  ;;  %v4650_v18 = vadd.f32 %v4586_v48, %v4449_v23  ;;  %v4786_v3 = vmul.f32 %v11979_v44, %v11756_v51  ;;  %v4787_v37 = vmul.f32 %v11979_v44, %v11759_v39  ;;  %v15829_v14 = vld [vmem:[#allocation122_spill] sm:$0xff] }
 0x315   : > { %v6167_v61 = vadd.f32 0.7978846, %v6103_v20  ;;  %v11997_v24 = vadd.f32 %v4772_v41, %v4635_v42  ;;  %v6180_v60 = vadd.f32 0.7978846, %v6116_v59  ;;  %v1983_v29 = vmul.f32 %v11491_v34, %v978_v6  ;;  %v15830_v20 = vld [vmem:[#allocation124_spill] sm:$0xff]  ;;  %v15831_v59 = vld [vmem:[#allocation129_spill] sm:$0xff] }
 0x316   : > { %v2985_v55 = vmul.f32 %v11465_v12, %v978_v6  ;;  %v12001_v50 = vadd.f32 %v4773_v62, %v4636_v63  ;;  %v6181_v31 = vadd.f32 0.7978846, %v6117_v57  ;;  %v6230_v51 = vmul.f32 %v6166_v10, %v11905_v7 }
 0x317   : > { %15826 = vst [vmem:[#allocation148_spill] sm:$0xff] %v11997_v24  ;;  %v3984_v39 = vmul.f32 %v11482_v26, %v978_v6  ;;  %v1048_v25 = vmul.f32 %v15828_v33, %v978_v6  ;;  %v1049_v17 = vmul.f32 %v15828_v33, %v979_v53  ;;  %v1184_v46 = vmul.f32 %v15829_v14, %v11993_v8 }
 0x318   : > { %15827 = vst [vmem:[#allocation64_spill] sm:$0xff] %v12001_v50  ;;  %v1185_v40 = vmul.f32 %v15829_v14, %v11995_v52  ;;  %v4850_v5 = vadd.f32 %v4786_v3, %v4649_v9  ;;  %v4851_v23 = vadd.f32 %v4787_v37, %v4650_v18  ;;  %v6231_v48 = vmul.f32 %v6167_v61, %v11918_v22  ;;  %v12021_v37 = vld [vmem:[#allocation2 + $0x1c2] sm:$0xff] }
 0x319   : > { %v4987_v42 = vmul.f32 %v15830_v20, %v978_v6  ;;  %v6244_v41 = vmul.f32 %v6180_v60, %v11929_v11  ;;  %v2047_v63 = vadd.f32 %v1983_v29, %v15831_v59  ;;  %v3049_v62 = vadd.f32 %v2985_v55, %v11877_v54  ;;  %v15832_v6 = vld [vmem:[#allocation30_spill] sm:$0xff]  ;;  %v15833_v55 = vld [vmem:[#allocation12_spill] sm:$0xff] }
 0x31a   : > { %v1984_v57 = vmul.f32 %v11491_v34, %v979_v53  ;;  %v12018_v10 = vmul.f32 0.5, %v11905_v7  ;;  %v6245_v33 = vmul.f32 %v6181_v31, %v11935_v38  ;;  %7312 = vtanh.f32 %v6230_v51  ;;  %v12025_v60 = vld [vmem:[#allocation2 + $0x6c8] sm:$0xff]  ;;  %v12034_v29 = vld [vmem:[#allocation2 + $0x940] sm:$0xff] }
 0x31b   : > { %v4048_v9 = vadd.f32 %v3984_v39, %v3847_v13  ;;  %v1248_v18 = vadd.f32 %v1184_v46, %v1048_v25  ;;  %v1249_v3 = vadd.f32 %v1185_v40, %v1049_v17  ;;  %v1384_v61 = vmul.f32 %v12021_v37, %v15832_v6  ;;  %v12036_v13 = vld [vmem:[#allocation2 + $0x948] sm:$0xff]  ;;  %v12053_v59 = vld [vmem:[#allocation2 + $0xbc0] sm:$0xff] }
 0x31c   : > { %v1385_v54 = vmul.f32 %v12025_v60, %v15832_v6  ;;  %v12030_v34 = vmul.f32 0.5, %v11918_v22  ;;  %7314 = vtanh.f32 %v6231_v48  ;;  %v12032_v7 = vadd.f32 %v4987_v42, %v4850_v5  ;;  %v15834_v39 = vld [vmem:[#allocation130_spill] sm:$0xff]  ;;  %v15835_v48 = vld [vmem:[#allocation127_spill] sm:$0xff] }
 0x31d   : > { %v2184_v31 = vmul.f32 %v15833_v55, %v11993_v8  ;;  %7316 = vtanh.f32 %v6244_v41  ;;  %v2986_v51 = vmul.f32 %v11465_v12, %v979_v53  ;;  %v2048_v25 = vadd.f32 %v1984_v57, %v15834_v39  ;;  %v15836_v6 = vld [vmem:[#allocation27_spill] sm:$0xff] }
 0x31e   : > { %v2185_v17 = vmul.f32 %v15833_v55, %v11995_v52  ;;  %v12045_v22 = vmul.f32 0.5, %v11929_v11  ;;  %7318 = vtanh.f32 %v6245_v33  ;;  %v3985_v14 = vmul.f32 %v11482_v26, %v979_v53  ;;  %v12058_v11 = vld [vmem:[#allocation2 + $0xbc8] sm:$0xff] }
 0x31f   : > { %v4988_v46 = vmul.f32 %v15830_v20, %v979_v53  ;;  %v1448_v40 = vadd.f32 %v1384_v61, %v1248_v18  ;;  %v1449_v5 = vadd.f32 %v1385_v54, %v1249_v3  ;;  %v1584_v42 = vmul.f32 %v15835_v48, %v12034_v29 }
 0x320   : > { %v1585_v41 = vmul.f32 %v15835_v48, %v12036_v13  ;;  %v12056_v57 = vmul.f32 0.5, %v11935_v38  ;;  %v2248_v33 = vadd.f32 %v2184_v31, %v2047_v63  ;;  %v2385_v26 = vmul.f32 %v12021_v37, %v15836_v6  ;;  %v15837_v63 = vld [vmem:[#allocation128_spill] sm:$0xff] }
 0x321   : > { %v3185_v53 = vmul.f32 %v15818_v45, %v11993_v8  ;;  %v3050_v18 = vadd.f32 %v2986_v51, %v11879_v47  ;;  %v2249_v3 = vadd.f32 %v2185_v17, %v2048_v25  ;;  %v2386_v61 = vmul.f32 %v12025_v60, %v15836_v6 }
 0x322   : > { %v3186_v38 = vmul.f32 %v15818_v45, %v11995_v52  ;;  %v4049_v54 = vadd.f32 %v3985_v14, %v11987_v28  ;;  %v12070_v55 = vadd.f32 %v4988_v46, %v4851_v23  ;;  %v1784_v31 = vmul.f32 %v15837_v63, %v12053_v59  ;;  %v15838_v28 = vld [vmem:[#allocation18_spill] sm:$0xff] }
 0x323   : > { %v4185_v39 = vmul.f32 %v11895_v32, %v11993_v8  ;;  %v1648_v2 = vadd.f32 %v1584_v42, %v1448_v40  ;;  %v1649_v47 = vadd.f32 %v1585_v41, %v1449_v5  ;;  %v1785_v51 = vmul.f32 %v15837_v63, %v12058_v11 }
 0x324   : > { %v4186_v25 = vmul.f32 %v11895_v32, %v11995_v52  ;;  %v7313_v17 = vpop.eup %7312  ;;  %v2449_v6 = vadd.f32 %v2385_v26, %v2248_v33  ;;  %v2586_v23 = vmul.f32 %v15838_v28, %v12034_v29  ;;  %v3249_v14 = vadd.f32 %v3185_v53, %v3049_v62 }
 0x325   : > { %v3385_v46 = vmul.f32 %v12021_v37, %v11585_v15  ;;  %v2450_v4 = vadd.f32 %v2386_v61, %v2249_v3  ;;  %v2587_v40 = vmul.f32 %v15838_v28, %v12036_v13  ;;  %v3250_v5 = vadd.f32 %v3186_v38, %v3050_v18  ;;  %v12101_v28 = vld [vmem:[#allocation2 + $0x110] sm:$0xff] }
 0x326   : > { %v3386_v42 = vmul.f32 %v12025_v60, %v11585_v15  ;;  %v7315_v41 = vpop.eup %7314  ;;  %v2787_v62 = vmul.f32 %v11615_v49, %v12053_v59  ;;  %v2788_v33 = vmul.f32 %v11615_v49, %v12058_v11  ;;  %v4249_v26 = vadd.f32 %v4185_v39, %v4048_v9  ;;  %v382_v9 = vld [vmem:[%s7983_s26 + $0x1d8] sm:$0xff] }
 0x327   : > { %v4386_v53 = vmul.f32 %v12021_v37, %v11924_v19  ;;  %v7317_v18 = vpop.eup %7316  ;;  %v12095_v3 = vadd.f32 %v1784_v31, %v1648_v2  ;;  %v12097_v61 = vadd.f32 %v1785_v51, %v1649_v47  ;;  %v4250_v38 = vadd.f32 %v4186_v25, %v4049_v54  ;;  %496 = vst [vmem:[#allocation2 + $0x23a] sm:$0x3f] %v382_v9 }
 0x328   : > { %v4387_v21 = vmul.f32 %v12025_v60, %v11924_v19  ;;  %v7319_v30 = vpop.eup %7318  ;;  %v6358_v50 = vadd.f32 1.0, %v7313_v17  ;;  %v2650_v63 = vadd.f32 %v2586_v23, %v2449_v6  ;;  %v3449_v24 = vadd.f32 %v3385_v46, %v3249_v14  ;;  %611 = vst [vmem:[#allocation2 + $0x4b9] sm:$0x7f] %v382_v9  ;;  %694 = vst [vmem:[#allocation2 + $0x738] sm:$0xff] %v382_v9  ;;  %v12118_v46 = vld [vmem:[#allocation2 + $0x390] sm:$0xff] }
 0x329   : > { %v3585_v49 = vmul.f32 %v11601_v16, %v12034_v29  ;;  %v6359_v39 = vadd.f32 1.0, %v7315_v41  ;;  %v2651_v48 = vadd.f32 %v2587_v40, %v2450_v4  ;;  %v3450_v2 = vadd.f32 %v3386_v42, %v3250_v5  ;;  %809 = vst [vmem:[#allocation2 + $0x9b7] sm:$0xff] %v382_v9  ;;  %924 = vst [vmem:[#allocation2 + $0xc36] sm:$0xff] %v382_v9  ;;  %v12114_v4 = vld [vmem:[#allocation2 + $0x118] sm:$0xff] }
 0x32a   : > { %v3586_v31 = vmul.f32 %v11601_v16, %v12036_v13  ;;  %v3785_v54 = vmul.f32 %v11964_v0, %v12053_v59  ;;  %v4450_v47 = vadd.f32 %v4386_v53, %v4249_v26  ;;  %v4587_v51 = vmul.f32 %v11953_v27, %v12034_v29  ;;  %v15845_v9 = vld [vmem:[#allocation120_spill] sm:$0xff] }
 0x32b   : > { %v2971_v25 = vmul.f32 %v11465_v12, %v12101_v28  ;;  %v6372_v17 = vadd.f32 1.0, %v7317_v18  ;;  %v6373_v6 = vadd.f32 1.0, %v7319_v30  ;;  %v4451_v23 = vadd.f32 %v4387_v21, %v4250_v38 }
 0x32c   : > { %v4588_v14 = vmul.f32 %v11953_v27, %v12036_v13  ;;  %v12121_v40 = vmul.f32 %v6358_v50, %v12018_v10  ;;  %v12123_v5 = vadd.f32 %v2787_v62, %v2650_v63  ;;  %v3649_v42 = vadd.f32 %v3585_v49, %v3449_v24  ;;  %v15841_v10 = vld [vmem:[#allocation131_spill] sm:$0xff]  ;;  %v12137_v62 = vld [vmem:[#allocation2 + $0x398] sm:$0xff] }
 0x32d   : > { %v3786_v41 = vmul.f32 %v11964_v0, %v12058_v11  ;;  %v12128_v26 = vmul.f32 %v6359_v39, %v12030_v34  ;;  %v12130_v53 = vadd.f32 %v2788_v33, %v2651_v48  ;;  %v3650_v30 = vadd.f32 %v3586_v31, %v3450_v2  ;;  %v980_v31 = vld [vmem:[#allocation2 + $0x1d0] sm:$0xff] }
 0x32e   : > { %15839 = vst [vmem:[#allocation138_spill] sm:$0xff] %v12121_v40  ;;  %v2972_v18 = vmul.f32 %v11465_v12, %v12114_v4  ;;  %v4651_v38 = vadd.f32 %v4587_v51, %v4450_v47  ;;  %v4788_v50 = vmul.f32 %v11979_v44, %v12053_v59  ;;  %v3035_v63 = vadd.f32 %v2971_v25, %v15841_v10 }
 0x32f   : > { %15840 = vst [vmem:[#allocation149_spill] sm:$0xff] %v12128_v26  ;;  %v3171_v24 = vmul.f32 %v15818_v45, %v12118_v46  ;;  %v12142_v34 = vmul.f32 %v6372_v17, %v12045_v22  ;;  %v12145_v48 = vmul.f32 %v6373_v6, %v12056_v57  ;;  %v4652_v33 = vadd.f32 %v4588_v14, %v4451_v23  ;;  %v12169_v17 = vld [vmem:[#allocation2 + $0x1d8] sm:$0xff] }
 0x330   : > { %v4789_v12 = vmul.f32 %v11979_v44, %v12058_v11  ;;  %v12151_v21 = vmul.f32 %v12121_v40, %v12121_v40  ;;  %v12153_v49 = vadd.f32 %v3785_v54, %v3649_v42  ;;  %v5188_v39 = vmul.f32 %v15845_v9, %v11993_v8  ;;  %v12171_v6 = vld [vmem:[#allocation2 + $0x112] sm:$0xff] }
 0x331   : > { %15842 = vst [vmem:[#allocation68_spill] sm:$0xff] %v12142_v34  ;;  %15843 = vst [vmem:[#allocation139_spill] sm:$0xff] %v12145_v48  ;;  %v5189_v22 = vmul.f32 %v15845_v9, %v11995_v52  ;;  %v12161_v57 = vmul.f32 %v12128_v26, %v12128_v26  ;;  %v12163_v2 = vadd.f32 %v3786_v41, %v3650_v30  ;;  %v12185_v42 = vld [vmem:[#allocation2 + $0x890] sm:$0xff] }
 0x332   : > { %15844 = vst [vmem:[#allocation140_spill] sm:$0xff] %v12151_v21  ;;  %v3036_v47 = vadd.f32 %v2972_v18, %v11847_v35  ;;  %v3172_v51 = vmul.f32 %v15818_v45, %v12137_v62  ;;  %v4852_v54 = vadd.f32 %v4788_v50, %v4651_v38  ;;  %v4989_v25 = vmul.f32 %v15830_v20, %v980_v31  ;;  %v15849_v18 = vld [vmem:[#allocation29_spill] sm:$0xff] }
 0x333   : > { %15846 = vst [vmem:[#allocation14_spill] sm:$0xff] %v12161_v57  ;;  %v3235_v8 = vadd.f32 %v3171_v24, %v3035_v63  ;;  %v3371_v52 = vmul.f32 %v12171_v6, %v11585_v15  ;;  %v12177_v23 = vmul.f32 %v12142_v34, %v12142_v34  ;;  %v12181_v35 = vmul.f32 %v12145_v48, %v12145_v48  ;;  %v12197_v24 = vld [vmem:[#allocation2 + $0x450] sm:$0xff]  ;;  %v12250_v34 = vld [vmem:[#allocation2 + $0xb18] sm:$0xff] }
 0x334   : > { %v4853_v45 = vadd.f32 %v4789_v12, %v4652_v33  ;;  %v4990_v14 = vmul.f32 %v15830_v20, %v12169_v17  ;;  %v5252_v41 = vadd.f32 %v5188_v39, %v12032_v7  ;;  %v5253_v30 = vadd.f32 %v5189_v22, %v12070_v55  ;;  %v12199_v12 = vld [vmem:[#allocation2 + $0x618] sm:$0xff] }
 0x335   : > { %15847 = vst [vmem:[#allocation123_spill] sm:$0xff] %v12177_v23  ;;  %15848 = vst [vmem:[#allocation32_spill] sm:$0xff] %v12181_v35  ;;  %v5389_v38 = vmul.f32 %v12021_v37, %v15849_v18  ;;  %v5390_v50 = vmul.f32 %v12025_v60, %v15849_v18  ;;  %v5590_v10 = vmul.f32 %v15817_v43, %v12034_v29  ;;  %v12203_v37 = vld [vmem:[#allocation2 + $0x458] sm:$0xff]  ;;  %v12206_v60 = vld [vmem:[%s7991_s15 + $0x15] ss:$0 sm:$0xff] }
 0x336   : > { %v5591_v63 = vmul.f32 %v15817_v43, %v12036_v13  ;;  %v3236_v33 = vadd.f32 %v3172_v51, %v3036_v47  ;;  %v3372_v7 = vmul.f32 %v12199_v12, %v11585_v15  ;;  %v5053_v55 = vadd.f32 %v4989_v25, %v4852_v54  ;;  %15850 = vst [vmem:[#allocation38_spill] sm:$0xff] %v12206_v60  ;;  %v12210_v13 = vld [vmem:[#allocation2 + $0x898] sm:$0xff]  ;;  %v12220_v51 = vld [vmem:[#allocation2 + $0xb10] sm:$0xff]  ;;  %v12233_v35 = vld [vmem:[%s7991_s15 + $0xa] ss:$0 sm:$0xff] }
 0x337   : > { %v5190_v29 = vmul.f32 %v12206_v60, %v12197_v24  ;;  %v3435_v43 = vadd.f32 %v3371_v52, %v3235_v8  ;;  %v3571_v9 = vmul.f32 %v11601_v16, %v12185_v42  ;;  %v5791_v15 = vmul.f32 %v11573_v58, %v12053_v59  ;;  %v12223_v8 = vld [vmem:[%s7991_s15] ss:$0 sm:$0xff]  ;;  %v12229_v18 = vld [vmem:[%s7991_s15 + $0x5] ss:$0 sm:$0xff]  ;;  %15853 = vst [vmem:[#allocation52_spill] sm:$0xff] %v12233_v35 }
 0x338   : > { %v5792_v39 = vmul.f32 %v11573_v58, %v12058_v11  ;;  %v5054_v22 = vadd.f32 %v4990_v14, %v4853_v45  ;;  %v5191_v47 = vmul.f32 %v12206_v60, %v12203_v37  ;;  %v5453_v54 = vadd.f32 %v5389_v38, %v5252_v41  ;;  %15851 = vst [vmem:[#allocation46_spill] sm:$0xff] %v12223_v8  ;;  %v12237_v11 = vld [vmem:[%s7991_s15 + $0xf] ss:$0 sm:$0xff]  ;;  %v12244_v38 = vld [vmem:[%s7991_s15 + $0x16] ss:$0 sm:$0xff] }
 0x339   : > { %v5454_v25 = vadd.f32 %v5390_v50, %v5253_v30  ;;  %v12226_v52 = vmul.f32 %v12223_v8, %v980_v31  ;;  %15852 = vst [vmem:[#allocation42_spill] sm:$0xff] %v12229_v18  ;;  %v1985_v59 = vmul.f32 %v12229_v18, %v980_v31  ;;  %v2987_v58 = vmul.f32 %v12233_v35, %v980_v31  ;;  %v12246_v50 = vld [vmem:[#allocation2 + $0x1d2] sm:$0xff] }
 0x33a   : > { %15854 = vst [vmem:[#allocation56_spill] sm:$0xff] %v12237_v11  ;;  %v3970_v45 = vmul.f32 %v12237_v11, %v12101_v28  ;;  %v3436_v14 = vadd.f32 %v3372_v7, %v3236_v33  ;;  %v3572_v41 = vmul.f32 %v11601_v16, %v12210_v13  ;;  %v5254_v30 = vadd.f32 %v5190_v29, %v5053_v55  ;;  %v12255_v7 = vld [vmem:[#allocation2 + $0x6d8] sm:$0xff] }
 0x33b   : > { %15855 = vst [vmem:[#allocation33_spill] sm:$0xff] %v12244_v38  ;;  %v5391_v23 = vmul.f32 %v12246_v50, %v12244_v38  ;;  %v3635_v48 = vadd.f32 %v3571_v9, %v3435_v43  ;;  %v3771_v57 = vmul.f32 %v11964_v0, %v12220_v51  ;;  %v3986_v21 = vmul.f32 %v12237_v11, %v980_v31  ;;  %v12268_v31 = vld [vmem:[#allocation2 + $0x950] sm:$0xff] }
 0x33c   : > { %v5255_v33 = vadd.f32 %v5191_v47, %v5054_v22  ;;  %v5392_v16 = vmul.f32 %v12255_v7, %v12244_v38  ;;  %v3971_v55 = vmul.f32 %v12237_v11, %v12114_v4  ;;  %v5654_v29 = vadd.f32 %v5590_v10, %v5453_v54  ;;  %v12280_v54 = vld [vmem:[%s7991_s15 + $0x17] ss:$0 sm:$0xff] }
 0x33d   : > { %v5655_v26 = vadd.f32 %v5591_v63, %v5454_v25  ;;  %v12262_v43 = vadd.f32 %v1985_v59, %v12095_v3  ;;  %v12266_v9 = vmul.f32 %v12223_v8, %v12169_v17  ;;  %v4034_v22 = vadd.f32 %v3970_v45, %v11976_v36  ;;  %v12277_v3 = vld [vmem:[#allocation2 + $0x958] sm:$0xff] }
 0x33e   : > { %v3636_v47 = vadd.f32 %v3572_v41, %v3436_v14  ;;  %v3772_v40 = vmul.f32 %v11964_v0, %v12250_v34  ;;  %v4171_v38 = vmul.f32 %v11895_v32, %v12118_v46  ;;  %v1986_v10 = vmul.f32 %v12229_v18, %v12169_v17 }
 0x33f   : > { %v5455_v63 = vadd.f32 %v5391_v23, %v5254_v30  ;;  %v5592_v25 = vmul.f32 %v12280_v54, %v12268_v31  ;;  %v3835_v36 = vadd.f32 %v3771_v57, %v3635_v48  ;;  %v5456_v59 = vadd.f32 %v5392_v16, %v5255_v33  ;;  %v12296_v33 = vld [vmem:[#allocation2 + $0xbd0] sm:$0xff] }
 0x340   : > { %v5593_v45 = vmul.f32 %v12280_v54, %v12277_v3  ;;  %v4035_v14 = vadd.f32 %v3971_v55, %v11985_v1  ;;  %v4172_v41 = vmul.f32 %v11895_v32, %v12137_v62  ;;  %v5855_v18 = vadd.f32 %v5791_v15, %v5654_v29  ;;  %v12301_v55 = vld [vmem:[%s7991_s15 + $0x1] ss:$0 sm:$0xff]  ;;  %v12308_v29 = vld [vmem:[%s7991_s15 + $0x18] ss:$0 sm:$0xff] }
 0x341   : > { %v12290_v23 = vadd.f32 %v2987_v58, %v12123_v5  ;;  %v2988_v30 = vmul.f32 %v12233_v35, %v12169_v17  ;;  %v3987_v48 = vmul.f32 %v12237_v11, %v12169_v17  ;;  %v5856_v57 = vadd.f32 %v5792_v39, %v5655_v26  ;;  %15856 = vst [vmem:[#allocation57_spill] sm:$0xff] %v12301_v55  ;;  %v12305_v15 = vld [vmem:[#allocation2 + $0xbd8] sm:$0xff]  ;;  %v15857_v17 = vld [vmem:[#allocation19_spill] sm:$0xff]  ;;  %v383_v35 = vld [vmem:[%s7983_s26 + $0x1e0] sm:$0xff] }
 0x342   : > { %v3836_v16 = vadd.f32 %v3772_v40, %v3636_v47  ;;  %v4235_v8 = vadd.f32 %v4171_v38, %v4034_v22  ;;  %v4372_v1 = vmul.f32 %v12171_v6, %v11924_v19  ;;  %v1186_v5 = vmul.f32 %v12301_v55, %v12197_v24  ;;  %497 = vst [vmem:[#allocation2 + $0x242] sm:$0xff] %v383_v35 }
 0x343   : > { %v5656_v58 = vadd.f32 %v5592_v25, %v5455_v63  ;;  %v5793_v26 = vmul.f32 %v12308_v29, %v12296_v33  ;;  %v4036_v39 = vadd.f32 %v15857_v17, %v3835_v36  ;;  %v5657_v40 = vadd.f32 %v5593_v45, %v5456_v59  ;;  %612 = vst [vmem:[#allocation2 + $0x4c1] sm:$0xff] %v383_v35 }
 0x344   : > { %v5794_v38 = vmul.f32 %v12308_v29, %v12305_v15  ;;  %v4236_v22 = vadd.f32 %v4172_v41, %v4035_v14  ;;  %v4373_v47 = vmul.f32 %v12199_v12, %v11924_v19  ;;  %v12318_v11 = vadd.f32 %v11902_v56, %v5855_v18  ;;  %810 = vst [vmem:[#allocation2 + $0x9bf] sm:$0xfe] %v383_v35 }
 0x345   : > { %v12321_v63 = vadd.f32 %v3986_v21, %v12153_v49  ;;  %v12324_v25 = vadd.f32 %v1986_v10, %v12097_v61  ;;  %v1187_v36 = vmul.f32 %v12301_v55, %v12203_v37  ;;  %v12329_v59 = vadd.f32 %v2988_v30, %v12130_v53  ;;  %v15858_v49 = vld [vmem:[#allocation141_spill] sm:$0xff]  ;;  %v384_v55 = vld [vmem:[%s7983_s26 + $0x1e8] sm:$0xff]  ;;  %925 = vst [vmem:[#allocation2 + $0xc3e] sm:$0xfc] %v383_v35 }
 0x346   : > { %v4037_v45 = vadd.f32 %v15857_v17, %v3836_v16  ;;  %v4436_v14 = vadd.f32 %v4372_v1, %v4235_v8  ;;  %v4573_v41 = vmul.f32 %v11953_v27, %v12185_v42  ;;  %v12335_v18 = vadd.f32 %v11902_v56, %v5856_v57  ;;  %498 = vst [vmem:[#allocation2 + $0x24a] sm:$0x3f] %v384_v55 }
 0x347   : > { %v12338_v21 = vadd.f32 %v3987_v48, %v12163_v2  ;;  %v5857_v61 = vadd.f32 %v5793_v26, %v5656_v58  ;;  %v4237_v10 = vadd.f32 %v15858_v49, %v4036_v39  ;;  %v1250_v53 = vadd.f32 %v1186_v5, %v12226_v52  ;;  %613 = vst [vmem:[#allocation2 + $0x4c9] sm:$0x7f] %v384_v55  ;;  %v12350_v52 = vld [vmem:[%s7991_s15 + $0x2] ss:$0 sm:$0xff]  ;;  %v15861_v26 = vld [vmem:[#allocation127_spill] sm:$0xff] }
 0x348   : > { %v5858_v30 = vadd.f32 %v5794_v38, %v5657_v40  ;;  %v4437_v16 = vadd.f32 %v4373_v47, %v4236_v22  ;;  %v4574_v8 = vmul.f32 %v11953_v27, %v12210_v13  ;;  %696 = vst [vmem:[#allocation2 + $0x748] sm:$0xff] %v384_v55  ;;  %811 = vst [vmem:[#allocation2 + $0x9c7] sm:$0xff] %v384_v55  ;;  %v12357_v35 = vmul.f32 0.5, %v12318_v11  ;;  %v15862_v38 = vld [vmem:[#allocation147_spill] sm:$0xff]  ;;  %v12408_v27 = vld [vmem:[%s7991_s15 + $0x6] ss:$0 sm:$0xff] }
 0x349   : > { %926 = vst [vmem:[#allocation2 + $0xc46] sm:$0xff] %v384_v55  ;;  %v5990_v2 = vmul.f32 %v12318_v11, %v12318_v11  ;;  %v1251_v48 = vadd.f32 %v1187_v36, %v12266_v9  ;;  %15859 = vst [vmem:[#allocation40_spill] sm:$0xff] %v12350_v52  ;;  %v1386_v57 = vmul.f32 %v12350_v52, %v12246_v50 }
 0x34a   : > { %v4973_v1 = vmul.f32 %v15830_v20, %v12101_v28  ;;  %15860 = vst [vmem:[#allocation37_spill] sm:$0xff] %v12357_v35  ;;  %v4238_v5 = vadd.f32 %v15858_v49, %v4037_v45  ;;  %v4637_v55 = vadd.f32 %v4573_v41, %v4436_v14  ;;  %v4774_v58 = vmul.f32 %v11979_v44, %v12220_v51  ;;  %v15864_v14 = vld [vmem:[#allocation148_spill] sm:$0xff] }
 0x34b   : > { %v1387_v9 = vmul.f32 %v12350_v52, %v12255_v7  ;;  %v1586_v39 = vmul.f32 %v15861_v26, %v12268_v31  ;;  %v12367_v40 = vadd.f32 %v11902_v56, %v5857_v61  ;;  %v4438_v20 = vadd.f32 %v15862_v38, %v4237_v10  ;;  %v12382_v49 = vld [vmem:[%s7991_s15 + $0x14] ss:$0 sm:$0xff]  ;;  %15871 = vst [vmem:[#allocation15_spill] sm:$0xff] %v12408_v27 }
 0x34c   : > { %v5991_v28 = vmul.f32 %v12335_v18, %v12335_v18  ;;  %v12373_v22 = vadd.f32 %v11902_v56, %v5858_v30  ;;  %v4638_v47 = vadd.f32 %v4574_v8, %v4437_v16  ;;  %v4775_v36 = vmul.f32 %v11979_v44, %v12250_v34  ;;  %15865 = vst [vmem:[#allocation58_spill] sm:$0xff] %v12382_v49  ;;  %v15870_v44 = vld [vmem:[#allocation20_spill] sm:$0xff] }
 0x34d   : > { %v12378_v45 = vmul.f32 0.5, %v12335_v18  ;;  %v5037_v41 = vadd.f32 %v4973_v1, %v15864_v14  ;;  %v4974_v61 = vmul.f32 %v12382_v49, %v12114_v4  ;;  %v5174_v10 = vmul.f32 %v12206_v60, %v12118_v46  ;;  %v15866_v14 = vld [vmem:[#allocation39_spill] sm:$0xff]  ;;  %v15867_v4 = vld [vmem:[#allocation128_spill] sm:$0xff] }
 0x34e   : > { %v1450_v17 = vadd.f32 %v1386_v57, %v1250_v53  ;;  %v1587_v30 = vmul.f32 %v15861_v26, %v12277_v3  ;;  %v4439_v16 = vadd.f32 %v15862_v38, %v4238_v5  ;;  %v4838_v8 = vadd.f32 %v4774_v58, %v4637_v55  ;;  %v15868_v5 = vld [vmem:[#allocation64_spill] sm:$0xff]  ;;  %v15869_v58 = vld [vmem:[#allocation33_spill] sm:$0xff] }
 0x34f   : > { %15863 = vst [vmem:[#allocation73_spill] sm:$0xff] %v12378_v45  ;;  %v6118_v52 = vmul.f32 0.035677407, %v5990_v2  ;;  %v1451_v45 = vadd.f32 %v1387_v9, %v1251_v48  ;;  %v5992_v1 = vmul.f32 %v12367_v40, %v12367_v40  ;;  %v4639_v35 = vadd.f32 %v15866_v14, %v4438_v20 }
 0x350   : > { %v1786_v49 = vmul.f32 %v15867_v4, %v12296_v33  ;;  %v1787_v46 = vmul.f32 %v15867_v4, %v12305_v15  ;;  %v5993_v53 = vmul.f32 %v12373_v22, %v12373_v22  ;;  %v4839_v57 = vadd.f32 %v4775_v36, %v4638_v47 }
 0x351   : > { %v5038_v55 = vadd.f32 %v4974_v61, %v15868_v5  ;;  %v5175_v2 = vmul.f32 %v12206_v60, %v12137_v62  ;;  %v5238_v48 = vadd.f32 %v5174_v10, %v5037_v41  ;;  %v5375_v9 = vmul.f32 %v15869_v58, %v12171_v6  ;;  %v15872_v41 = vld [vmem:[#allocation47_spill] sm:$0xff]  ;;  %v12421_v60 = vld [vmem:[%s7991_s15 + $0x7] ss:$0 sm:$0xff] }
 0x352   : > { %v6119_v26 = vmul.f32 0.035677407, %v5991_v28  ;;  %v1650_v20 = vadd.f32 %v1586_v39, %v1450_v17  ;;  %v4640_v38 = vadd.f32 %v15866_v14, %v4439_v16  ;;  %v5039_v4 = vadd.f32 %v15870_v44, %v4838_v8  ;;  %15873 = vst [vmem:[#allocation36_spill] sm:$0xff] %v12421_v60 }
 0x353   : > { %v2186_v47 = vmul.f32 %v12408_v27, %v12197_v24  ;;  %v2187_v36 = vmul.f32 %v12408_v27, %v12203_v37  ;;  %v6120_v62 = vmul.f32 0.035677407, %v5992_v1  ;;  %v4840_v61 = vadd.f32 %v15872_v41, %v4639_v35  ;;  %v15874_v35 = vld [vmem:[#allocation65_spill] sm:$0xff] }
 0x354   : > { %v6182_v10 = vadd.f32 0.7978846, %v6118_v52  ;;  %v1651_v6 = vadd.f32 %v1587_v30, %v1451_v45  ;;  %v6121_v28 = vmul.f32 0.035677407, %v5993_v53  ;;  %v5040_v17 = vadd.f32 %v15870_v44, %v4839_v57 }
 0x355   : > { %v5239_v39 = vadd.f32 %v5175_v2, %v5038_v55  ;;  %v5376_v16 = vmul.f32 %v15869_v58, %v12199_v12  ;;  %v5439_v8 = vadd.f32 %v5375_v9, %v5238_v48  ;;  %v5576_v5 = vmul.f32 %v12280_v54, %v12185_v42 }
 0x356   : > { %v6183_v14 = vadd.f32 0.7978846, %v6119_v26  ;;  %v2387_v1 = vmul.f32 %v12421_v60, %v12246_v50  ;;  %v4841_v52 = vadd.f32 %v15872_v41, %v4640_v38  ;;  %v5240_v45 = vadd.f32 %v15874_v35, %v5039_v4 }
 0x357   : > { %v12427_v30 = vadd.f32 %v1786_v49, %v1650_v20  ;;  %v2388_v53 = vmul.f32 %v12421_v60, %v12255_v7  ;;  %v6184_v12 = vadd.f32 0.7978846, %v6120_v62  ;;  %v5041_v57 = vadd.f32 %v15870_v44, %v4840_v61  ;;  %v15875_v62 = vld [vmem:[#allocation85_spill] sm:$0xff]  ;;  %v12446_v61 = vld [vmem:[%s7991_s15 + $0xb] ss:$0 sm:$0xff] }
 0x358   : > { %v6246_v42 = vmul.f32 %v6182_v10, %v12318_v11  ;;  %v2250_v55 = vadd.f32 %v2186_v47, %v12262_v43  ;;  %v6185_v2 = vadd.f32 0.7978846, %v6121_v28  ;;  %v5241_v48 = vadd.f32 %v15874_v35, %v5040_v17  ;;  %v12453_v28 = vld [vmem:[%s7991_s15 + $0x8] ss:$0 sm:$0xff] }
 0x359   : > { %v5440_v38 = vadd.f32 %v5376_v16, %v5239_v39  ;;  %v5577_v49 = vmul.f32 %v12280_v54, %v12210_v13  ;;  %v5640_v9 = vadd.f32 %v5576_v5, %v5439_v8  ;;  %v5777_v26 = vmul.f32 %v12308_v29, %v12220_v51  ;;  %15876 = vst [vmem:[#allocation48_spill] sm:$0xff] %v12453_v28  ;;  %v15877_v8 = vld [vmem:[#allocation104_spill] sm:$0xff] }
 0x35a   : > { %v6247_v20 = vmul.f32 %v6183_v14, %v12335_v18  ;;  %v2251_v4 = vadd.f32 %v2187_v36, %v12324_v25  ;;  %v5042_v11 = vadd.f32 %v15870_v44, %v4841_v52  ;;  %v5441_v43 = vadd.f32 %v15875_v62, %v5240_v45  ;;  %v12469_v45 = vld [vmem:[%s7991_s15 + $0xc] ss:$0 sm:$0xff] }
 0x35b   : > { %v12443_v47 = vadd.f32 %v1787_v46, %v1651_v6  ;;  %v3187_v10 = vmul.f32 %v12446_v61, %v12197_v24  ;;  %v6248_v13 = vmul.f32 %v6184_v12, %v12367_v40  ;;  %v5242_v51 = vadd.f32 %v15874_v35, %v5041_v57 }
 0x35c   : > { %v2588_v25 = vmul.f32 %v12453_v28, %v12268_v31  ;;  %v3188_v18 = vmul.f32 %v12446_v61, %v12203_v37  ;;  %v6249_v14 = vmul.f32 %v6185_v2, %v12373_v22  ;;  %v5442_v46 = vadd.f32 %v15875_v62, %v5241_v48  ;;  %v385_v48 = vld [vmem:[%s7983_s26 + $0x1f0] sm:$0xff] }
 0x35d   : > { %7320 = vtanh.f32 %v6246_v42  ;;  %v5641_v36 = vadd.f32 %v5577_v49, %v5440_v38  ;;  %v5778_v6 = vmul.f32 %v12308_v29, %v12250_v34  ;;  %v5841_v17 = vadd.f32 %v5777_v26, %v5640_v9  ;;  %v386_v38 = vld [vmem:[%s7983_s26 + $0x1f8] sm:$0xff]  ;;  %499 = vst [vmem:[#allocation2 + $0x252] sm:$0xff] %v385_v48  ;;  %614 = vst [vmem:[#allocation2 + $0x4d1] sm:$0xff] %v385_v48 }
 0x35e   : > { %7322 = vtanh.f32 %v6247_v20  ;;  %v2589_v39 = vmul.f32 %v12453_v28, %v12277_v3  ;;  %v5243_v16 = vadd.f32 %v15874_v35, %v5042_v11  ;;  %v5642_v5 = vadd.f32 %v15877_v8, %v5441_v43  ;;  %812 = vst [vmem:[#allocation2 + $0x9cf] sm:$0xfe] %v385_v48  ;;  %927 = vst [vmem:[#allocation2 + $0xc4e] sm:$0xfc] %v385_v48 }
 0x35f   : > { %v3251_v52 = vadd.f32 %v3187_v10, %v12290_v23  ;;  %v3387_v12 = vmul.f32 %v12469_v45, %v12246_v50  ;;  %7324 = vtanh.f32 %v6248_v13  ;;  %v5443_v34 = vadd.f32 %v15875_v62, %v5242_v51  ;;  %500 = vst [vmem:[#allocation2 + $0x25a] sm:$0x3f] %v386_v38  ;;  %615 = vst [vmem:[#allocation2 + $0x4d9] sm:$0x7f] %v386_v38  ;;  %v12497_v10 = vld [vmem:[%s7991_s15 + $0xd] ss:$0 sm:$0xff] }
 0x360   : > { %v3252_v57 = vadd.f32 %v3188_v18, %v12329_v59  ;;  %v3388_v42 = vmul.f32 %v12469_v45, %v12255_v7  ;;  %7326 = vtanh.f32 %v6249_v14  ;;  %v5643_v2 = vadd.f32 %v15877_v8, %v5442_v46  ;;  %698 = vst [vmem:[#allocation2 + $0x758] sm:$0xff] %v386_v38  ;;  %813 = vst [vmem:[#allocation2 + $0x9d7] sm:$0xff] %v386_v38 }
 0x361   : > { %v2451_v49 = vadd.f32 %v2387_v1, %v2250_v55  ;;  %v2452_v23 = vadd.f32 %v2388_v53, %v2251_v4  ;;  %v5842_v9 = vadd.f32 %v5778_v6, %v5641_v36  ;;  %v12481_v26 = vadd.f32 %v11902_v56, %v5841_v17  ;;  %928 = vst [vmem:[#allocation2 + $0xc56] sm:$0xff] %v386_v38  ;;  %v15878_v55 = vld [vmem:[#allocation50_spill] sm:$0xff] }
 0x362   : > { %v4187_v59 = vmul.f32 %v11895_v32, %v12197_v24  ;;  %v4188_v1 = vmul.f32 %v11895_v32, %v12203_v37  ;;  %v5444_v53 = vadd.f32 %v15875_v62, %v5243_v16  ;;  %v5843_v20 = vadd.f32 %v15878_v55, %v5642_v5  ;;  %v12490_v4 = vld [vmem:[%s7991_s15 + $0x9] ss:$0 sm:$0xff] }
 0x363   : > { %v2789_v11 = vmul.f32 %v12490_v4, %v12296_v33  ;;  %v2790_v43 = vmul.f32 %v12490_v4, %v12305_v15  ;;  %v3587_v24 = vmul.f32 %v12497_v10, %v12268_v31  ;;  %v5644_v13 = vadd.f32 %v15877_v8, %v5443_v34 }
 0x364   : > { %v3451_v32 = vadd.f32 %v3387_v12, %v3251_v52  ;;  %v3452_v37 = vadd.f32 %v3388_v42, %v3252_v57  ;;  %v3588_v51 = vmul.f32 %v12497_v10, %v12277_v3  ;;  %v5844_v18 = vadd.f32 %v15878_v55, %v5643_v2 }
 0x365   : > { %v4388_v14 = vmul.f32 %v12246_v50, %v11924_v19  ;;  %v4389_v46 = vmul.f32 %v12255_v7, %v11924_v19  ;;  %v12510_v36 = vadd.f32 %v11902_v56, %v5842_v9  ;;  %v5976_v6 = vmul.f32 %v12481_v26, %v12481_v26 }
 0x366   : > { %v4251_v17 = vadd.f32 %v4187_v59, %v12321_v63  ;;  %v4252_v16 = vadd.f32 %v4188_v1, %v12338_v21  ;;  %v5645_v5 = vadd.f32 %v15877_v8, %v5444_v53  ;;  %v12518_v52 = vadd.f32 %v11902_v56, %v5843_v20  ;;  %v15879_v21 = vld [vmem:[#allocation135_spill] sm:$0xff]  ;;  %v12660_v8 = vld [vmem:[%s7991_s15 + $0x3] ss:$0 sm:$0xff] }
 0x367   : > { %v7321_v12 = vpop.eup %7320  ;;  %v2652_v50 = vadd.f32 %v2588_v25, %v2451_v49  ;;  %v2653_v34 = vadd.f32 %v2589_v39, %v2452_v23  ;;  %v3787_v19 = vmul.f32 %v11964_v0, %v12296_v33  ;;  %v5845_v7 = vadd.f32 %v15878_v55, %v5644_v13  ;;  %15899 = vst [vmem:[#allocation106_spill] sm:$0xff] %v12660_v8 }
 0x368   : > { %v7323_v57 = vpop.eup %7322  ;;  %v3651_v42 = vadd.f32 %v3587_v24, %v3451_v32  ;;  %v3788_v63 = vmul.f32 %v11964_v0, %v12305_v15  ;;  %v4589_v2 = vmul.f32 %v15879_v21, %v12268_v31  ;;  %v12528_v48 = vadd.f32 %v11902_v56, %v5844_v18  ;;  %v15880_v24 = vld [vmem:[#allocation137_spill] sm:$0xff] }
 0x369   : > { %v7325_v38 = vpop.eup %7324  ;;  %v3652_v9 = vadd.f32 %v3588_v51, %v3452_v37  ;;  %v4590_v25 = vmul.f32 %v15879_v21, %v12277_v3  ;;  %v5977_v39 = vmul.f32 %v12510_v36, %v12510_v36  ;;  %v6104_v49 = vmul.f32 0.035677407, %v5976_v6 }
 0x36a   : > { %v7327_v23 = vpop.eup %7326  ;;  %v4452_v59 = vadd.f32 %v4388_v14, %v4251_v17  ;;  %v4453_v1 = vadd.f32 %v4389_v46, %v4252_v16  ;;  %v5846_v0 = vadd.f32 %v15878_v55, %v5645_v5  ;;  %v5978_v31 = vmul.f32 %v12518_v52, %v12518_v52 }
 0x36b   : > { %v6374_v53 = vadd.f32 1.0, %v7321_v12  ;;  %v6375_v20 = vadd.f32 1.0, %v7323_v57  ;;  %v4790_v13 = vmul.f32 %v15880_v24, %v12296_v33  ;;  %v12540_v32 = vadd.f32 %v11902_v56, %v5845_v7  ;;  %v15881_v7 = vld [vmem:[#allocation37_spill] sm:$0xff] }
 0x36c   : > { %v4791_v3 = vmul.f32 %v15880_v24, %v12305_v15  ;;  %v6056_v37 = vmul.f32 0.5, %v12367_v40  ;;  %v6376_v51 = vadd.f32 1.0, %v7325_v38  ;;  %v5979_v18 = vmul.f32 %v12528_v48, %v12528_v48  ;;  %v15883_v15 = vld [vmem:[#allocation73_spill] sm:$0xff] }
 0x36d   : > { %v6057_v14 = vmul.f32 0.5, %v12373_v22  ;;  %v6377_v46 = vadd.f32 1.0, %v7327_v23  ;;  %v6105_v6 = vmul.f32 0.035677407, %v5977_v39  ;;  %v6168_v17 = vadd.f32 0.7978846, %v6104_v49 }
 0x36e   : > { %v4653_v16 = vadd.f32 %v4589_v2, %v4452_v59  ;;  %v4654_v5 = vadd.f32 %v4590_v25, %v4453_v1  ;;  %v12549_v33 = vadd.f32 %v11902_v56, %v5846_v0  ;;  %v6106_v12 = vmul.f32 0.035677407, %v5978_v31  ;;  %v982_v25 = vld [vmem:[#allocation2 + $0x1e0] sm:$0xff] }
 0x36f   : > { %v12552_v57 = vmul.f32 %v6374_v53, %v15881_v7  ;;  %v12555_v40 = vmul.f32 %v6375_v20, %v15883_v15  ;;  %v12557_v21 = vadd.f32 %v2789_v11, %v2652_v50  ;;  %v5980_v22 = vmul.f32 %v12540_v32, %v12540_v32  ;;  %v15891_v20 = vld [vmem:[#allocation42_spill] sm:$0xff]  ;;  %v15894_v15 = vld [vmem:[#allocation56_spill] sm:$0xff] }
 0x370   : > { %v12561_v38 = vadd.f32 %v2790_v43, %v2653_v34  ;;  %v12563_v39 = vadd.f32 %v3787_v19, %v3651_v42  ;;  %v12565_v2 = vmul.f32 %v6376_v51, %v6056_v37  ;;  %v6107_v56 = vmul.f32 0.035677407, %v5979_v18 }
 0x371   : > { %15882 = vst [vmem:[#allocation54_spill] sm:$0xff] %v12552_v57  ;;  %15884 = vst [vmem:[#allocation60_spill] sm:$0xff] %v12555_v40  ;;  %v12567_v49 = vadd.f32 %v3788_v63, %v3652_v9  ;;  %v12569_v23 = vmul.f32 %v6377_v46, %v6057_v14  ;;  %v6169_v59 = vadd.f32 0.7978846, %v6105_v6  ;;  %v6232_v1 = vmul.f32 %v6168_v17, %v12481_v26  ;;  %v15889_v63 = vld [vmem:[#allocation46_spill] sm:$0xff] }
 0x372   : > { %15885 = vst [vmem:[#allocation44_spill] sm:$0xff] %v12565_v2  ;;  %v4854_v11 = vadd.f32 %v4790_v13, %v4653_v16  ;;  %v4855_v50 = vadd.f32 %v4791_v3, %v4654_v5  ;;  %v5981_v0 = vmul.f32 %v12549_v33, %v12549_v33  ;;  %v6170_v43 = vadd.f32 0.7978846, %v6106_v12  ;;  %v15892_v13 = vld [vmem:[#allocation52_spill] sm:$0xff]  ;;  %v12597_v14 = vld [vmem:[#allocation2 + $0x460] sm:$0xff]  ;;  %v983_v5 = vld [vmem:[#allocation2 + $0x1e8] sm:$0xff] }
 0x373   : > { %15886 = vst [vmem:[#allocation72_spill] sm:$0xff] %v12569_v23  ;;  %v12576_v34 = vmul.f32 %v12552_v57, %v12552_v57  ;;  %v12580_v19 = vmul.f32 %v12555_v40, %v12555_v40  ;;  %v6108_v42 = vmul.f32 0.035677407, %v5980_v22  ;;  %v1052_v9 = vmul.f32 %v15889_v63, %v982_v25  ;;  %v12606_v12 = vld [vmem:[#allocation2 + $0x468] sm:$0xff]  ;;  %v12637_v57 = vld [vmem:[#allocation2 + $0x960] sm:$0xff] }
 0x374   : > { %v12585_v31 = vmul.f32 %v12565_v2, %v12565_v2  ;;  %v6171_v53 = vadd.f32 0.7978846, %v6107_v56  ;;  %v1987_v24 = vmul.f32 %v15891_v20, %v982_v25  ;;  %v2989_v3 = vmul.f32 %v15892_v13, %v982_v25  ;;  %v15895_v56 = vld [vmem:[#allocation58_spill] sm:$0xff] }
 0x375   : > { %15887 = vst [vmem:[#allocation71_spill] sm:$0xff] %v12576_v34  ;;  %15888 = vst [vmem:[#allocation63_spill] sm:$0xff] %v12580_v19  ;;  %v12591_v37 = vmul.f32 %v12569_v23, %v12569_v23  ;;  %v12594_v51 = vmul.f32 0.5, %v12481_v26  ;;  %v6233_v18 = vmul.f32 %v6169_v59, %v12510_v36  ;;  %7328 = vtanh.f32 %v6232_v1  ;;  %v12633_v2 = vld [vmem:[#allocation2 + $0x1e2] sm:$0xff]  ;;  %v15897_v34 = vld [vmem:[#allocation40_spill] sm:$0xff] }
 0x376   : > { %15890 = vst [vmem:[#allocation59_spill] sm:$0xff] %v12585_v31  ;;  %v12600_v46 = vmul.f32 0.5, %v12510_v36  ;;  %v12603_v6 = vmul.f32 0.5, %v12518_v52  ;;  %v6109_v17 = vmul.f32 0.035677407, %v5981_v0  ;;  %v6234_v16 = vmul.f32 %v6170_v43, %v12518_v52  ;;  %v15896_v52 = vld [vmem:[#allocation57_spill] sm:$0xff] }
 0x377   : > { %15893 = vst [vmem:[#allocation75_spill] sm:$0xff] %v12591_v37  ;;  %v12609_v26 = vmul.f32 0.5, %v12528_v48  ;;  %v6172_v7 = vadd.f32 0.7978846, %v6108_v42  ;;  %v3988_v22 = vmul.f32 %v15894_v15, %v982_v25  ;;  %v4991_v59 = vmul.f32 %v15895_v56, %v982_v25 }
 0x378   : > { %v12614_v36 = vmul.f32 0.5, %v12540_v32  ;;  %v6235_v1 = vmul.f32 %v6171_v53, %v12528_v48  ;;  %v12618_v0 = vadd.f32 %v1987_v24, %v12427_v30  ;;  %v1188_v43 = vmul.f32 %v15896_v52, %v12597_v14 }
 0x379   : > { %7330 = vtanh.f32 %v6233_v18  ;;  %v1053_v37 = vmul.f32 %v15889_v63, %v983_v5  ;;  %v4992_v42 = vmul.f32 %v15895_v56, %v983_v5  ;;  %v1189_v31 = vmul.f32 %v15896_v52, %v12606_v12 }
 0x37a   : > { %v12627_v25 = vmul.f32 0.5, %v12549_v33  ;;  %v6173_v23 = vadd.f32 0.7978846, %v6109_v17  ;;  %7332 = vtanh.f32 %v6234_v16  ;;  %v1988_v48 = vmul.f32 %v15891_v20, %v983_v5  ;;  %v15898_v17 = vld [vmem:[#allocation38_spill] sm:$0xff] }
 0x37b   : > { %v6236_v30 = vmul.f32 %v6172_v7, %v12540_v32  ;;  %v5055_v53 = vadd.f32 %v4991_v59, %v4854_v11  ;;  %v2990_v24 = vmul.f32 %v15892_v13, %v983_v5  ;;  %v3989_v18 = vmul.f32 %v15894_v15, %v983_v5  ;;  %v12641_v11 = vld [vmem:[#allocation2 + $0x6e8] sm:$0xff] }
 0x37c   : > { %7334 = vtanh.f32 %v6235_v1  ;;  %v1252_v19 = vadd.f32 %v1188_v43, %v1052_v9  ;;  %v1388_v40 = vmul.f32 %v12633_v2, %v15897_v34  ;;  %v5192_v16 = vmul.f32 %v15898_v17, %v12597_v14  ;;  %v12645_v7 = vld [vmem:[#allocation2 + $0x968] sm:$0xff] }
 0x37d   : > { %v5056_v55 = vadd.f32 %v4992_v42, %v4855_v50  ;;  %v1253_v32 = vadd.f32 %v1189_v31, %v1053_v37  ;;  %v1389_v5 = vmul.f32 %v12641_v11, %v15897_v34  ;;  %v5193_v9 = vmul.f32 %v15898_v17, %v12606_v12 }
 0x37e   : > { %v6237_v59 = vmul.f32 %v6173_v23, %v12549_v33  ;;  %v12651_v1 = vadd.f32 %v2989_v3, %v12557_v21  ;;  %v4052_v43 = vadd.f32 %v3988_v22, %v12563_v39  ;;  %v2052_v50 = vadd.f32 %v1988_v48, %v12443_v47  ;;  %v12664_v23 = vld [vmem:[#allocation2 + $0xbe0] sm:$0xff]  ;;  %v12668_v47 = vld [vmem:[#allocation2 + $0xbe8] sm:$0xff] }
 0x37f   : > { %v7329_v31 = vpop.eup %7328  ;;  %7336 = vtanh.f32 %v6236_v30  ;;  %v12656_v37 = vadd.f32 %v2990_v24, %v12561_v38  ;;  %v4053_v42 = vadd.f32 %v3989_v18, %v12567_v49  ;;  %v1588_v33 = vmul.f32 %v12660_v8, %v12637_v57 }
 0x380   : > { %v1452_v21 = vadd.f32 %v1388_v40, %v1252_v19  ;;  %v1589_v39 = vmul.f32 %v12660_v8, %v12645_v7  ;;  %v5256_v3 = vadd.f32 %v5192_v16, %v5055_v53  ;;  %v5393_v38 = vmul.f32 %v12633_v2, %v15869_v58  ;;  %v12677_v19 = vld [vmem:[%s7991_s15 + $0x4] ss:$0 sm:$0xff] }
 0x381   : > { %v1453_v22 = vadd.f32 %v1389_v5, %v1253_v32  ;;  %v2188_v49 = vmul.f32 %v12408_v27, %v12597_v14  ;;  %v5257_v48 = vadd.f32 %v5193_v9, %v5056_v55  ;;  %v5394_v30 = vmul.f32 %v12641_v11, %v15869_v58  ;;  %15900 = vst [vmem:[#allocation67_spill] sm:$0xff] %v12677_v19  ;;  %v12690_v5 = vld [vmem:[%s7991_s15 + $0x10] ss:$0 sm:$0xff] }
 0x382   : > { %7338 = vtanh.f32 %v6237_v59  ;;  %v6360_v40 = vadd.f32 1.0, %v7329_v31  ;;  %v1788_v24 = vmul.f32 %v12677_v19, %v12664_v23  ;;  %v2189_v53 = vmul.f32 %v12408_v27, %v12606_v12 }
 0x383   : > { %v7331_v18 = vpop.eup %7330  ;;  %v1789_v16 = vmul.f32 %v12677_v19, %v12668_v47  ;;  %v2389_v55 = vmul.f32 %v12633_v2, %v12421_v60  ;;  %v2390_v32 = vmul.f32 %v12641_v11, %v12421_v60  ;;  %v4189_v9 = vmul.f32 %v12690_v5, %v12597_v14 }
 0x384   : > { %v7333_v59 = vpop.eup %7332  ;;  %v1652_v31 = vadd.f32 %v1588_v33, %v1452_v21  ;;  %v4190_v62 = vmul.f32 %v12690_v5, %v12606_v12  ;;  %v5457_v35 = vadd.f32 %v5393_v38, %v5256_v3  ;;  %v5594_v44 = vmul.f32 %v12280_v54, %v12637_v57  ;;  %v12711_v38 = vld [vmem:[%s7991_s15 + $0x11] ss:$0 sm:$0xff] }
 0x385   : > { %v1653_v41 = vadd.f32 %v1589_v39, %v1453_v22  ;;  %v2252_v19 = vadd.f32 %v2188_v49, %v12618_v0  ;;  %v5458_v27 = vadd.f32 %v5394_v30, %v5257_v48  ;;  %v5595_v60 = vmul.f32 %v12280_v54, %v12645_v7 }
 0x386   : > { %v7335_v8 = vpop.eup %7334  ;;  %v6361_v34 = vadd.f32 1.0, %v7331_v18  ;;  %v12702_v58 = vmul.f32 %v6360_v40, %v12594_v51  ;;  %v2253_v33 = vadd.f32 %v2189_v53, %v2052_v50  ;;  %v2590_v21 = vmul.f32 %v12453_v28, %v12637_v57 }
 0x387   : > { %v2591_v3 = vmul.f32 %v12453_v28, %v12645_v7  ;;  %v3189_v39 = vmul.f32 %v12446_v61, %v12597_v14  ;;  %v4253_v0 = vadd.f32 %v4189_v9, %v4052_v43  ;;  %v4390_v22 = vmul.f32 %v12711_v38, %v12633_v2  ;;  %v12733_v28 = vld [vmem:[%s7991_s15 + $0x12] ss:$0 sm:$0xff] }
 0x388   : > { %15901 = vst [vmem:[#allocation79_spill] sm:$0xff] %v12702_v58  ;;  %v4254_v49 = vadd.f32 %v4190_v62, %v4053_v42  ;;  %v4391_v51 = vmul.f32 %v12711_v38, %v12641_v11  ;;  %v5658_v50 = vadd.f32 %v5594_v44, %v5457_v35  ;;  %v5795_v48 = vmul.f32 %v12308_v29, %v12664_v23 }
 0x389   : > { %v7337_v30 = vpop.eup %7336  ;;  %v6362_v40 = vadd.f32 1.0, %v7333_v59  ;;  %v3190_v14 = vmul.f32 %v12446_v61, %v12606_v12  ;;  %v5659_v43 = vadd.f32 %v5595_v60, %v5458_v27  ;;  %v5796_v53 = vmul.f32 %v12308_v29, %v12668_v47 }
 0x38a   : > { %v6363_v18 = vadd.f32 1.0, %v7335_v8  ;;  %v12723_v9 = vadd.f32 %v1788_v24, %v1652_v31  ;;  %v12725_v62 = vadd.f32 %v1789_v16, %v1653_v41  ;;  %v2453_v42 = vadd.f32 %v2389_v55, %v2252_v19 }
 0x38b   : > { %v12728_v44 = vmul.f32 %v6361_v34, %v12600_v46  ;;  %v3389_v35 = vmul.f32 %v12633_v2, %v12469_v45  ;;  %v4454_v59 = vadd.f32 %v4390_v22, %v4253_v0  ;;  %v4591_v27 = vmul.f32 %v12733_v28, %v12637_v57 }
 0x38c   : > { %v7339_v60 = vpop.eup %7338  ;;  %v3253_v8 = vadd.f32 %v3189_v39, %v12651_v1  ;;  %v4455_v12 = vadd.f32 %v4391_v51, %v4254_v49  ;;  %v4592_v41 = vmul.f32 %v12733_v28, %v12645_v7  ;;  %v5859_v19 = vadd.f32 %v5795_v48, %v5658_v50  ;;  %v12753_v49 = vld [vmem:[%s7991_s15 + $0x13] ss:$0 sm:$0xff] }
 0x38d   : > { %15902 = vst [vmem:[#allocation113_spill] sm:$0xff] %v12728_v44  ;;  %v12742_v34 = vmul.f32 %v12702_v58, %v12702_v58  ;;  %v3254_v2 = vadd.f32 %v3190_v14, %v12656_v37  ;;  %v3390_v46 = vmul.f32 %v12641_v11, %v12469_v45  ;;  %v5860_v24 = vadd.f32 %v5796_v53, %v5659_v43  ;;  %v984_v53 = vld [vmem:[#allocation2 + $0x1f0] sm:$0xff] }
 0x38e   : > { %v6364_v16 = vadd.f32 1.0, %v7337_v30  ;;  %v12748_v55 = vmul.f32 %v6362_v40, %v12603_v6  ;;  %v2454_v1 = vadd.f32 %v2390_v32, %v2253_v33  ;;  %v2654_v31 = vadd.f32 %v2590_v21, %v2453_v42  ;;  %v12760_v6 = vld [vmem:[%s10273_s12] ss:$0 sm:$0xff] }
 0x38f   : > { %15903 = vst [vmem:[#allocation88_spill] sm:$0xff] %v12742_v34  ;;  %v6365_v39 = vadd.f32 1.0, %v7339_v60  ;;  %v3589_v0 = vmul.f32 %v12497_v10, %v12637_v57  ;;  %v4655_v22 = vadd.f32 %v4591_v27, %v4454_v59  ;;  %v4792_v37 = vmul.f32 %v12753_v49, %v12664_v23  ;;  %v7548_v34 = vld [vmem:[#allocation2 + $0x708] sm:$0xff] }
 0x390   : > { %15904 = vst [vmem:[#allocation95_spill] sm:$0xff] %v12748_v55  ;;  %v3453_v51 = vadd.f32 %v3389_v35, %v3253_v8  ;;  %v4656_v11 = vadd.f32 %v4592_v41, %v4455_v12  ;;  %v4793_v50 = vmul.f32 %v12753_v49, %v12668_v47  ;;  %v12763_v32 = vadd.f32 %v12760_v6, %v5859_v19  ;;  %v12784_v35 = vld [vmem:[%s7991_s15 + $0xe] ss:$0 sm:$0xff] }
 0x391   : > { %v2791_v57 = vmul.f32 %v12490_v4, %v12664_v23  ;;  %v3454_v33 = vadd.f32 %v3390_v46, %v3254_v2  ;;  %v3590_v21 = vmul.f32 %v12497_v10, %v12645_v7  ;;  %v12770_v48 = vadd.f32 %v12760_v6, %v5860_v24  ;;  %v1120_v24 = vld [vmem:[#allocation2 + $0x470] sm:$0xff] }
 0x392   : > { %v12773_v30 = vmul.f32 %v6363_v18, %v12609_v26  ;;  %v12776_v40 = vmul.f32 %v6364_v16, %v12614_v36  ;;  %v2655_v14 = vadd.f32 %v2591_v3, %v2454_v1  ;;  %v2792_v43 = vmul.f32 %v12490_v4, %v12668_v47  ;;  %v985_v18 = vld [vmem:[#allocation2 + $0x1f8] sm:$0xff] }
 0x393   : > { %v12781_v42 = vmul.f32 %v6365_v39, %v12627_v25  ;;  %v3789_v7 = vmul.f32 %v12784_v35, %v12664_v23  ;;  %v4856_v59 = vadd.f32 %v4792_v37, %v4655_v22  ;;  %v4993_v26 = vmul.f32 %v15895_v56, %v984_v53  ;;  %v12816_v39 = vld [vmem:[#allocation2 + $0x478] sm:$0xff] }
 0x394   : > { %15905 = vst [vmem:[#allocation93_spill] sm:$0xff] %v12773_v30  ;;  %15906 = vst [vmem:[#allocation80_spill] sm:$0xff] %v12776_v40  ;;  %v3653_v27 = vadd.f32 %v3589_v0, %v3453_v51  ;;  %v4857_v36 = vadd.f32 %v4793_v50, %v4656_v11  ;;  %v5994_v3 = vmul.f32 %v12763_v32, %v12763_v32 }
 0x395   : > { %15907 = vst [vmem:[#allocation110_spill] sm:$0xff] %v12781_v42  ;;  %v4994_v60 = vmul.f32 %v15895_v56, %v985_v18  ;;  %v12794_v25 = vmul.f32 %v12728_v44, %v12728_v44  ;;  %v3654_v8 = vadd.f32 %v3590_v21, %v3454_v33  ;;  %v3790_v12 = vmul.f32 %v12784_v35, %v12668_v47 }
 0x396   : > { %v5995_v23 = vmul.f32 %v12770_v48, %v12770_v48  ;;  %v12802_v41 = vmul.f32 %v12748_v55, %v12748_v55  ;;  %v12806_v19 = vmul.f32 %v12773_v30, %v12773_v30  ;;  %v2855_v2 = vadd.f32 %v2791_v57, %v2654_v31 }
 0x397   : > { %15908 = vst [vmem:[#allocation84_spill] sm:$0xff] %v12794_v25  ;;  %v2856_v46 = vadd.f32 %v2792_v43, %v2655_v14  ;;  %v12810_v16 = vmul.f32 %v12776_v40, %v12776_v40  ;;  %v12814_v47 = vmul.f32 %v12781_v42, %v12781_v42  ;;  %v5057_v1 = vadd.f32 %v4993_v26, %v4856_v59  ;;  %v1520_v40 = vld [vmem:[#allocation2 + $0x970] sm:$0xff] }
 0x398   : > { %15909 = vst [vmem:[#allocation100_spill] sm:$0xff] %v12802_v41  ;;  %15910 = vst [vmem:[#allocation143_spill] sm:$0xff] %v12806_v19  ;;  %v5194_v0 = vmul.f32 %v15898_v17, %v1120_v24  ;;  %v3853_v22 = vadd.f32 %v3789_v7, %v3653_v27  ;;  %v6122_v37 = vmul.f32 0.035677407, %v5994_v3  ;;  %v5058_v51 = vadd.f32 %v4994_v60, %v4857_v36  ;;  %v7539_v27 = vld [vmem:[#allocation2 + $0x1f2] sm:$0xff]  ;;  %v15913_v36 = vld [vmem:[#allocation33_spill] sm:$0xff] }
 0x399   : > { %15911 = vst [vmem:[#allocation103_spill] sm:$0xff] %v12810_v16  ;;  %15912 = vst [vmem:[#allocation144_spill] sm:$0xff] %v12814_v47  ;;  %v5195_v31 = vmul.f32 %v15898_v17, %v12816_v39  ;;  %v3854_v11 = vadd.f32 %v3790_v12, %v3654_v8  ;;  %v6123_v50 = vmul.f32 0.035677407, %v5995_v23  ;;  %v1989_v57 = vmul.f32 %v15891_v20, %v984_v53  ;;  %v7540_v23 = vld [vmem:[#allocation2 + $0x6f8] sm:$0xff] }
 0x39a   : > { %v2991_v33 = vmul.f32 %v15892_v13, %v984_v53  ;;  %v1054_v21 = vmul.f32 %v15889_v63, %v984_v53  ;;  %v1055_v14 = vmul.f32 %v15889_v63, %v985_v18  ;;  %v1190_v43 = vmul.f32 %v15896_v52, %v1120_v24 }
 0x39b   : > { %v1191_v7 = vmul.f32 %v15896_v52, %v12816_v39  ;;  %v3990_v59 = vmul.f32 %v15894_v15, %v984_v53  ;;  %v1990_v26 = vmul.f32 %v15891_v20, %v985_v18  ;;  %v5258_v17 = vadd.f32 %v5194_v0, %v5057_v1  ;;  %v15914_v20 = vld [vmem:[#allocation40_spill] sm:$0xff] }
 0x39c   : > { %v5395_v3 = vmul.f32 %v7539_v27, %v15913_v36  ;;  %v6186_v60 = vadd.f32 0.7978846, %v6122_v37  ;;  %v2992_v8 = vmul.f32 %v15892_v13, %v985_v18  ;;  %v5259_v12 = vadd.f32 %v5195_v31, %v5058_v51  ;;  %v1521_v51 = vld [vmem:[#allocation2 + $0x978] sm:$0xff] }
 0x39d   : > { %v5396_v63 = vmul.f32 %v7540_v23, %v15913_v36  ;;  %v6187_v47 = vadd.f32 0.7978846, %v6123_v50  ;;  %v2053_v16 = vadd.f32 %v1989_v57, %v12723_v9  ;;  %v3055_v42 = vadd.f32 %v2991_v33, %v2855_v2 }
 0x39e   : > { %v3991_v52 = vmul.f32 %v15894_v15, %v985_v18  ;;  %v1254_v53 = vadd.f32 %v1190_v43, %v1054_v21  ;;  %v1255_v19 = vadd.f32 %v1191_v7, %v1055_v14  ;;  %v1390_v1 = vmul.f32 %v7539_v27, %v15914_v20  ;;  %v15915_v21 = vld [vmem:[#allocation106_spill] sm:$0xff]  ;;  %v1720_v43 = vld [vmem:[#allocation2 + $0xbf0] sm:$0xff] }
 0x39f   : > { %v1391_v0 = vmul.f32 %v7540_v23, %v15914_v20  ;;  %v4054_v37 = vadd.f32 %v3990_v59, %v3853_v22  ;;  %v2054_v13 = vadd.f32 %v1990_v26, %v12725_v62  ;;  %v5459_v31 = vadd.f32 %v5395_v3, %v5258_v17  ;;  %v15916_v7 = vld [vmem:[#allocation15_spill] sm:$0xff] }
 0x3a0   : > { %v5596_v36 = vmul.f32 %v12280_v54, %v1520_v40  ;;  %v6250_v50 = vmul.f32 %v6186_v60, %v12763_v32  ;;  %v3056_v9 = vadd.f32 %v2992_v8, %v2856_v46  ;;  %v5460_v2 = vadd.f32 %v5396_v63, %v5259_v12  ;;  %v12849_v46 = vld [vmem:[#allocation2 + $0xbf8] sm:$0xff] }
 0x3a1   : > { %v5597_v15 = vmul.f32 %v12280_v54, %v1521_v51  ;;  %v12842_v18 = vmul.f32 0.5, %v12763_v32  ;;  %v6251_v57 = vmul.f32 %v6187_v47, %v12770_v48  ;;  %v4055_v33 = vadd.f32 %v3991_v52, %v3854_v11  ;;  %v15917_v8 = vld [vmem:[#allocation36_spill] sm:$0xff] }
 0x3a2   : > { %v1590_v22 = vmul.f32 %v15915_v21, %v1520_v40  ;;  %v1454_v14 = vadd.f32 %v1390_v1, %v1254_v53  ;;  %v1455_v62 = vadd.f32 %v1391_v0, %v1255_v19  ;;  %v2190_v59 = vmul.f32 %v15916_v7, %v1120_v24 }
 0x3a3   : > { %v2191_v26 = vmul.f32 %v15916_v7, %v12816_v39  ;;  %v3191_v54 = vmul.f32 %v12446_v61, %v1120_v24  ;;  %v3192_v32 = vmul.f32 %v12446_v61, %v12816_v39  ;;  %v5660_v17 = vadd.f32 %v5596_v36, %v5459_v31 }
 0x3a4   : > { %v5797_v47 = vmul.f32 %v12308_v29, %v1720_v43  ;;  %7340 = vtanh.f32 %v6250_v50  ;;  %v4191_v11 = vmul.f32 %v12690_v5, %v1120_v24  ;;  %v5661_v19 = vadd.f32 %v5597_v15, %v5460_v2 }
 0x3a5   : > { %v5798_v3 = vmul.f32 %v12308_v29, %v12849_v46  ;;  %7342 = vtanh.f32 %v6251_v57  ;;  %v1591_v60 = vmul.f32 %v15915_v21, %v1521_v51  ;;  %v2391_v12 = vmul.f32 %v7539_v27, %v15917_v8  ;;  %v15918_v29 = vld [vmem:[#allocation67_spill] sm:$0xff] }
 0x3a6   : > { %v4192_v63 = vmul.f32 %v12690_v5, %v12816_v39  ;;  %v2254_v52 = vadd.f32 %v2190_v59, %v2053_v16  ;;  %v2255_v53 = vadd.f32 %v2191_v26, %v2054_v13  ;;  %v2392_v1 = vmul.f32 %v7540_v23, %v15917_v8  ;;  %v15919_v16 = vld [vmem:[#allocation48_spill] sm:$0xff] }
 0x3a7   : > { %v3391_v0 = vmul.f32 %v7539_v27, %v12469_v45  ;;  %v3255_v31 = vadd.f32 %v3191_v54, %v3055_v42  ;;  %v3256_v24 = vadd.f32 %v3192_v32, %v3056_v9  ;;  %v3392_v36 = vmul.f32 %v7540_v23, %v12469_v45 }
 0x3a8   : > { %v5861_v50 = vadd.f32 %v5797_v47, %v5660_v17  ;;  %v1790_v2 = vmul.f32 %v15918_v29, %v1720_v43  ;;  %v4255_v15 = vadd.f32 %v4191_v11, %v4054_v37  ;;  %v4392_v57 = vmul.f32 %v7539_v27, %v12711_v38 }
 0x3a9   : > { %v5862_v41 = vadd.f32 %v5798_v3, %v5661_v19  ;;  %v1791_v39 = vmul.f32 %v15918_v29, %v12849_v46  ;;  %v2592_v13 = vmul.f32 %v15919_v16, %v1520_v40  ;;  %v4256_v59 = vadd.f32 %v4192_v63, %v4055_v33 }
 0x3aa   : > { %v4393_v26 = vmul.f32 %v7540_v23, %v12711_v38  ;;  %v2455_v30 = vadd.f32 %v2391_v12, %v2254_v52  ;;  %v2456_v42 = vadd.f32 %v2392_v1, %v2255_v53  ;;  %v2593_v9 = vmul.f32 %v15919_v16, %v1521_v51 }
 0x3ab   : > { %v3591_v54 = vmul.f32 %v12497_v10, %v1520_v40  ;;  %v3455_v32 = vadd.f32 %v3391_v0, %v3255_v31  ;;  %v3456_v17 = vadd.f32 %v3392_v36, %v3256_v24  ;;  %v3592_v37 = vmul.f32 %v12497_v10, %v1521_v51 }
 0x3ac   : > { %v12875_v27 = vadd.f32 %v12760_v6, %v5861_v50  ;;  %v1654_v47 = vadd.f32 %v1590_v22, %v1454_v14  ;;  %v4456_v11 = vadd.f32 %v4392_v57, %v4255_v15  ;;  %v4593_v19 = vmul.f32 %v12733_v28, %v1520_v40 }
 0x3ad   : > { %v12879_v33 = vadd.f32 %v12760_v6, %v5862_v41  ;;  %v1655_v23 = vadd.f32 %v1591_v60, %v1455_v62  ;;  %v2793_v3 = vmul.f32 %v12490_v4, %v1720_v43  ;;  %v4457_v12 = vadd.f32 %v4393_v26, %v4256_v59  ;;  %v986_v60 = vld [vmem:[#allocation2 + $0x200] sm:$0xff] }
 0x3ae   : > { %v4594_v63 = vmul.f32 %v12733_v28, %v1521_v51  ;;  %v7341_v52 = vpop.eup %7340  ;;  %v2656_v53 = vadd.f32 %v2592_v13, %v2455_v30  ;;  %v2657_v1 = vadd.f32 %v2593_v9, %v2456_v42  ;;  %v2794_v0 = vmul.f32 %v12490_v4, %v12849_v46  ;;  %v12897_v9 = vld [vmem:[%s7991_s15 + $0x5] ss:$0 sm:$0xff] }
 0x3af   : > { %v3791_v22 = vmul.f32 %v12784_v35, %v1720_v43  ;;  %v7343_v14 = vpop.eup %7342  ;;  %v3655_v31 = vadd.f32 %v3591_v54, %v3455_v32  ;;  %v3656_v40 = vadd.f32 %v3592_v37, %v3456_v17  ;;  %v3792_v41 = vmul.f32 %v12784_v35, %v12849_v46  ;;  %v987_v37 = vld [vmem:[#allocation2 + $0x208] sm:$0xff] }
 0x3b0   : > { %v5996_v62 = vmul.f32 %v12875_v27, %v12875_v27  ;;  %v6059_v51 = vmul.f32 0.5, %v12770_v48  ;;  %v4657_v30 = vadd.f32 %v4593_v19, %v4456_v11  ;;  %v4794_v24 = vmul.f32 %v12753_v49, %v1720_v43  ;;  %v12901_v19 = vld [vmem:[%s7991_s15 + $0xa] ss:$0 sm:$0xff] }
 0x3b1   : > { %v5997_v36 = vmul.f32 %v12879_v33, %v12879_v33  ;;  %v6378_v50 = vadd.f32 1.0, %v7341_v52  ;;  %v1854_v15 = vadd.f32 %v1790_v2, %v1654_v47  ;;  %v4658_v57 = vadd.f32 %v4594_v63, %v4457_v12  ;;  %v1122_v2 = vld [vmem:[#allocation2 + $0x480] sm:$0xff]  ;;  %v12913_v52 = vld [vmem:[%s7991_s15 + $0xf] ss:$0 sm:$0xff] }
 0x3b2   : > { %v4795_v13 = vmul.f32 %v12753_v49, %v12849_v46  ;;  %v6379_v59 = vadd.f32 1.0, %v7343_v14  ;;  %v1855_v26 = vadd.f32 %v1791_v39, %v1655_v23  ;;  %v2857_v42 = vadd.f32 %v2793_v3, %v2656_v53  ;;  %v12909_v12 = vld [vmem:[%s7991_s15] ss:$0 sm:$0xff]  ;;  %v1123_v14 = vld [vmem:[#allocation2 + $0x488] sm:$0xff] }
 0x3b3   : > { %v1991_v48 = vmul.f32 %v12897_v9, %v986_v60  ;;  %v2858_v43 = vadd.f32 %v2794_v0, %v2657_v1  ;;  %v3855_v54 = vadd.f32 %v3791_v22, %v3655_v31  ;;  %v3856_v32 = vadd.f32 %v3792_v41, %v3656_v40  ;;  %v12920_v31 = vld [vmem:[%s7991_s15 + $0x1] ss:$0 sm:$0xff] }
 0x3b4   : > { %v6124_v17 = vmul.f32 0.035677407, %v5996_v62  ;;  %v4858_v47 = vadd.f32 %v4794_v24, %v4657_v30  ;;  %v6125_v11 = vmul.f32 0.035677407, %v5997_v36  ;;  %v2993_v46 = vmul.f32 %v12901_v19, %v986_v60  ;;  %15922 = vst [vmem:[#allocation17_spill] sm:$0xff] %v12920_v31 }
 0x3b5   : > { %v4995_v39 = vmul.f32 %v15895_v56, %v986_v60  ;;  %v12906_v23 = vmul.f32 %v6378_v50, %v12842_v18  ;;  %v4859_v3 = vadd.f32 %v4795_v13, %v4658_v57  ;;  %v1056_v63 = vmul.f32 %v12909_v12, %v986_v60 }
 0x3b6   : > { %v3992_v53 = vmul.f32 %v12913_v52, %v986_v60  ;;  %v12916_v1 = vmul.f32 %v6379_v59, %v6059_v51  ;;  %v2055_v0 = vadd.f32 %v1991_v48, %v1854_v15  ;;  %v1992_v22 = vmul.f32 %v12897_v9, %v987_v37  ;;  %v12927_v51 = vld [vmem:[%s7991_s15 + $0x15] ss:$0 sm:$0xff] }
 0x3b7   : > { %15920 = vst [vmem:[#allocation101_spill] sm:$0xff] %v12906_v23  ;;  %v1192_v18 = vmul.f32 %v12920_v31, %v1122_v2  ;;  %v6188_v40 = vadd.f32 0.7978846, %v6124_v17  ;;  %v2994_v41 = vmul.f32 %v12901_v19, %v987_v37  ;;  %v3993_v62 = vmul.f32 %v12913_v52, %v987_v37 }
 0x3b8   : > { %15921 = vst [vmem:[#allocation102_spill] sm:$0xff] %v12916_v1  ;;  %v4996_v30 = vmul.f32 %v15895_v56, %v987_v37  ;;  %v6189_v24 = vadd.f32 0.7978846, %v6125_v11  ;;  %v3057_v36 = vadd.f32 %v2993_v46, %v2857_v42  ;;  %v5059_v60 = vadd.f32 %v4995_v39, %v4858_v47  ;;  %v7547_v42 = vld [vmem:[#allocation2 + $0x202] sm:$0xff] }
 0x3b9   : > { %v5196_v50 = vmul.f32 %v12927_v51, %v1122_v2  ;;  %v12931_v15 = vmul.f32 0.5, %v12875_v27  ;;  %v4056_v57 = vadd.f32 %v3992_v53, %v3855_v54  ;;  %v1057_v13 = vmul.f32 %v12909_v12, %v987_v37  ;;  %v1522_v11 = vld [vmem:[#allocation2 + $0x980] sm:$0xff]  ;;  %v12939_v46 = vld [vmem:[#allocation2 + $0x988] sm:$0xff] }
 0x3ba   : > { %v1193_v59 = vmul.f32 %v12920_v31, %v1123_v14  ;;  %v12936_v48 = vmul.f32 0.5, %v12879_v33  ;;  %v2056_v17 = vadd.f32 %v1992_v22, %v1855_v26  ;;  %v1256_v56 = vadd.f32 %v1192_v18, %v1056_v63  ;;  %v12942_v37 = vld [vmem:[#allocation2 + $0xc00] sm:$0xff]  ;;  %v12946_v22 = vld [vmem:[#allocation2 + $0xc08] sm:$0xff] }
 0x3bb   : > { %v1392_v47 = vmul.f32 %v7547_v42, %v15914_v20  ;;  %v6252_v39 = vmul.f32 %v6188_v40, %v12875_v27  ;;  %v3058_v25 = vadd.f32 %v2994_v41, %v2858_v43  ;;  %v4057_v54 = vadd.f32 %v3993_v62, %v3856_v32  ;;  %v12949_v18 = vld [vmem:[%s7991_s15 + $0x16] ss:$0 sm:$0xff] }
 0x3bc   : > { %v5060_v53 = vadd.f32 %v4996_v30, %v4859_v3  ;;  %v6253_v55 = vmul.f32 %v6189_v24, %v12879_v33  ;;  %v1393_v26 = vmul.f32 %v7548_v34, %v15914_v20  ;;  %v5260_v63 = vadd.f32 %v5196_v50, %v5059_v60  ;;  %v12970_v50 = vld [vmem:[%s7991_s15 + $0x17] ss:$0 sm:$0xff] }
 0x3bd   : > { %v5397_v44 = vmul.f32 %v12949_v18, %v7547_v42  ;;  %v1257_v58 = vadd.f32 %v1193_v59, %v1057_v13  ;;  %v1592_v27 = vmul.f32 %v15915_v21, %v1522_v11  ;;  %v1593_v43 = vmul.f32 %v15915_v21, %v12939_v46 }
 0x3be   : > { %v2192_v32 = vmul.f32 %v15916_v7, %v1122_v2  ;;  %v1456_v33 = vadd.f32 %v1392_v47, %v1256_v56  ;;  %v12958_v20 = vmul.f32 %v15918_v29, %v12942_v37  ;;  %v2193_v3 = vmul.f32 %v15916_v7, %v1123_v14 }
 0x3bf   : > { %v4193_v40 = vmul.f32 %v12690_v5, %v1122_v2  ;;  %7344 = vtanh.f32 %v6252_v39  ;;  %v12964_v41 = vmul.f32 %v15918_v29, %v12946_v22  ;;  %v3193_v62 = vmul.f32 %v12446_v61, %v1122_v2 }
 0x3c0   : > { %v5197_v30 = vmul.f32 %v12927_v51, %v1123_v14  ;;  %7346 = vtanh.f32 %v6253_v55  ;;  %v3194_v24 = vmul.f32 %v12446_v61, %v1123_v14  ;;  %v5461_v60 = vadd.f32 %v5397_v44, %v5260_v63 }
 0x3c1   : > { %v5598_v13 = vmul.f32 %v12970_v50, %v1522_v11  ;;  %v1457_v7 = vadd.f32 %v1393_v26, %v1257_v58  ;;  %v2256_v59 = vadd.f32 %v2192_v32, %v2055_v0  ;;  %v2393_v56 = vmul.f32 %v7547_v42, %v15917_v8  ;;  %v12981_v26 = vld [vmem:[%s7991_s15 + $0x18] ss:$0 sm:$0xff] }
 0x3c2   : > { %v4194_v47 = vmul.f32 %v12690_v5, %v1123_v14  ;;  %v2257_v39 = vadd.f32 %v2193_v3, %v2056_v17  ;;  %v2394_v2 = vmul.f32 %v7548_v34, %v15917_v8  ;;  %v4257_v29 = vadd.f32 %v4193_v40, %v4056_v57 }
 0x3c3   : > { %v4394_v55 = vmul.f32 %v7547_v42, %v12711_v38  ;;  %v3257_v21 = vadd.f32 %v3193_v62, %v3057_v36  ;;  %v3393_v61 = vmul.f32 %v7547_v42, %v12469_v45  ;;  %v5261_v44 = vadd.f32 %v5197_v30, %v5060_v53 }
 0x3c4   : > { %v5398_v63 = vmul.f32 %v12949_v18, %v7548_v34  ;;  %v3258_v31 = vadd.f32 %v3194_v24, %v3058_v25  ;;  %v3394_v58 = vmul.f32 %v7548_v34, %v12469_v45  ;;  %v5662_v0 = vadd.f32 %v5598_v13, %v5461_v60 }
 0x3c5   : > { %v5799_v14 = vmul.f32 %v12981_v26, %v12942_v37  ;;  %v1656_v17 = vadd.f32 %v1592_v27, %v1456_v33  ;;  %v2594_v8 = vmul.f32 %v15919_v16, %v1522_v11  ;;  %v4258_v57 = vadd.f32 %v4194_v47, %v4057_v54 }
 0x3c6   : > { %v4395_v36 = vmul.f32 %v7548_v34, %v12711_v38  ;;  %v2457_v32 = vadd.f32 %v2393_v56, %v2256_v59  ;;  %v2595_v42 = vmul.f32 %v15919_v16, %v12939_v46  ;;  %v4458_v53 = vadd.f32 %v4394_v55, %v4257_v29 }
 0x3c7   : > { %v4595_v25 = vmul.f32 %v12733_v28, %v1522_v11  ;;  %v2458_v45 = vadd.f32 %v2394_v2, %v2257_v39  ;;  %v3593_v3 = vmul.f32 %v12497_v10, %v1522_v11  ;;  %v5462_v40 = vadd.f32 %v5398_v63, %v5261_v44  ;;  %v988_v63 = vld [vmem:[#allocation2 + $0x210] sm:$0xff] }
 0x3c8   : > { %v5599_v62 = vmul.f32 %v12970_v50, %v12939_v46  ;;  %v3457_v27 = vadd.f32 %v3393_v61, %v3257_v21  ;;  %v3458_v33 = vadd.f32 %v3394_v58, %v3258_v31  ;;  %v3594_v54 = vmul.f32 %v12497_v10, %v12939_v46 }
 0x3c9   : > { %v5863_v34 = vadd.f32 %v5799_v14, %v5662_v0  ;;  %v7345_v30 = vpop.eup %7344  ;;  %v1657_v24 = vadd.f32 %v1593_v43, %v1457_v7  ;;  %v2795_v29 = vmul.f32 %v12490_v4, %v12942_v37  ;;  %v4459_v16 = vadd.f32 %v4395_v36, %v4258_v57  ;;  %v13023_v14 = vld [vmem:[%s7991_s15 + $0x14] ss:$0 sm:$0xff] }
 0x3ca   : > { %v4596_v60 = vmul.f32 %v12733_v28, %v12939_v46  ;;  %v7347_v11 = vpop.eup %7346  ;;  %v2658_v13 = vadd.f32 %v2594_v8, %v2457_v32  ;;  %v2796_v59 = vmul.f32 %v12490_v4, %v12946_v22  ;;  %v4659_v21 = vadd.f32 %v4595_v25, %v4458_v53 }
 0x3cb   : > { %v4796_v31 = vmul.f32 %v12753_v49, %v12942_v37  ;;  %v2659_v10 = vadd.f32 %v2595_v42, %v2458_v45  ;;  %v3793_v43 = vmul.f32 %v12784_v35, %v12942_v37  ;;  %v5663_v7 = vadd.f32 %v5599_v62, %v5462_v40 }
 0x3cc   : > { %v5800_v56 = vmul.f32 %v12981_v26, %v12946_v22  ;;  %v3657_v47 = vadd.f32 %v3593_v3, %v3457_v27  ;;  %v3658_v46 = vadd.f32 %v3594_v54, %v3458_v33  ;;  %v3794_v39 = vmul.f32 %v12784_v35, %v12946_v22  ;;  %v989_v3 = vld [vmem:[#allocation2 + $0x218] sm:$0xff] }
 0x3cd   : > { %v13010_v4 = vadd.f32 %v12760_v6, %v5863_v34  ;;  %v6380_v2 = vadd.f32 1.0, %v7345_v30  ;;  %v6381_v55 = vadd.f32 1.0, %v7347_v11  ;;  %v4660_v61 = vadd.f32 %v4596_v60, %v4459_v16  ;;  %v15927_v11 = vld [vmem:[#allocation17_spill] sm:$0xff] }
 0x3ce   : > { %v4797_v44 = vmul.f32 %v12753_v49, %v12946_v22  ;;  %v13016_v37 = vmul.f32 %v12906_v23, %v12906_v23  ;;  %v13020_v58 = vmul.f32 %v12916_v1, %v12916_v1  ;;  %v4860_v0 = vadd.f32 %v4796_v31, %v4659_v21  ;;  %v13146_v23 = vld [vmem:[%s7991_s15 + $0xc] ss:$0 sm:$0xff] }
 0x3cf   : > { %v4997_v8 = vmul.f32 %v13023_v14, %v988_v63  ;;  %v1856_v57 = vadd.f32 %v12958_v20, %v1656_v17  ;;  %v1857_v36 = vadd.f32 %v12964_v41, %v1657_v24  ;;  %v2859_v32 = vadd.f32 %v2795_v29, %v2658_v13  ;;  %v13037_v17 = vld [vmem:[#allocation2 + $0x490] sm:$0xff]  ;;  %v13039_v41 = vld [vmem:[#allocation2 + $0x498] sm:$0xff] }
 0x3d0   : > { %15923 = vst [vmem:[#allocation21_spill] sm:$0xff] %v13016_v37  ;;  %15924 = vst [vmem:[#allocation121_spill] sm:$0xff] %v13020_v58  ;;  %v5864_v22 = vadd.f32 %v5800_v56, %v5663_v7  ;;  %v2860_v42 = vadd.f32 %v2796_v59, %v2659_v10  ;;  %v3857_v53 = vadd.f32 %v3793_v43, %v3657_v47 }
 0x3d1   : > { %v3858_v25 = vadd.f32 %v3794_v39, %v3658_v46  ;;  %v5998_v45 = vmul.f32 %v13010_v4, %v13010_v4  ;;  %v13031_v40 = vmul.f32 %v6380_v2, %v12931_v15  ;;  %v13034_v62 = vmul.f32 %v6381_v55, %v12936_v48  ;;  %v13067_v46 = vld [vmem:[#allocation2 + $0x212] sm:$0xff] }
 0x3d2   : > { %v4861_v27 = vadd.f32 %v4797_v44, %v4660_v61  ;;  %v4998_v20 = vmul.f32 %v13023_v14, %v989_v3  ;;  %v1058_v33 = vmul.f32 %v12909_v12, %v988_v63  ;;  %v1993_v54 = vmul.f32 %v12897_v9, %v988_v63 }
 0x3d3   : > { %15925 = vst [vmem:[#allocation122_spill] sm:$0xff] %v13031_v40  ;;  %15926 = vst [vmem:[#allocation124_spill] sm:$0xff] %v13034_v62  ;;  %v5061_v34 = vadd.f32 %v4997_v8, %v4860_v0  ;;  %v5198_v30 = vmul.f32 %v12927_v51, %v13037_v17  ;;  %v13046_v15 = vadd.f32 %v12760_v6, %v5864_v22  ;;  %v6126_v16 = vmul.f32 0.035677407, %v5998_v45  ;;  %v13077_v22 = vld [vmem:[%s7991_s15 + $0x2] ss:$0 sm:$0xff] }
 0x3d4   : > { %v2995_v48 = vmul.f32 %v12901_v19, %v988_v63  ;;  %v3994_v24 = vmul.f32 %v12913_v52, %v988_v63  ;;  %v1059_v29 = vmul.f32 %v12909_v12, %v989_v3  ;;  %v1994_v60 = vmul.f32 %v12897_v9, %v989_v3 }
 0x3d5   : > { %v1194_v13 = vmul.f32 %v15927_v11, %v13037_v17  ;;  %v1195_v59 = vmul.f32 %v15927_v11, %v13039_v41  ;;  %v13058_v21 = vmul.f32 %v13031_v40, %v13031_v40  ;;  %v13062_v31 = vmul.f32 %v13034_v62, %v13034_v62  ;;  %v13120_v40 = vld [vmem:[%s7991_s15 + $0x7] ss:$0 sm:$0xff] }
 0x3d6   : > { %v5062_v10 = vadd.f32 %v4998_v20, %v4861_v27  ;;  %v5199_v43 = vmul.f32 %v12927_v51, %v13039_v41  ;;  %v2057_v7 = vadd.f32 %v1993_v54, %v1856_v57  ;;  %v2996_v56 = vmul.f32 %v12901_v19, %v989_v3  ;;  %v7555_v27 = vld [vmem:[#allocation2 + $0x718] sm:$0xff]  ;;  %v13082_v54 = vld [vmem:[#allocation2 + $0x990] sm:$0xff] }
 0x3d7   : > { %15928 = vst [vmem:[#allocation129_spill] sm:$0xff] %v13058_v21  ;;  %15929 = vst [vmem:[#allocation30_spill] sm:$0xff] %v13062_v31  ;;  %v5262_v47 = vadd.f32 %v5198_v30, %v5061_v34  ;;  %v5399_v39 = vmul.f32 %v13067_v46, %v12949_v18  ;;  %v5999_v2 = vmul.f32 %v13046_v15, %v13046_v15  ;;  %v6190_v63 = vadd.f32 0.7978846, %v6126_v16  ;;  %v13095_v16 = vld [vmem:[#allocation2 + $0xc10] sm:$0xff] }
 0x3d8   : > { %v3059_v55 = vadd.f32 %v2995_v48, %v2859_v32  ;;  %v13073_v61 = vadd.f32 %v3994_v24, %v3857_v53  ;;  %v3995_v44 = vmul.f32 %v12913_v52, %v989_v3  ;;  %v2058_v0 = vadd.f32 %v1994_v60, %v1857_v36  ;;  %v13084_v32 = vld [vmem:[#allocation2 + $0x998] sm:$0xff]  ;;  %v15933_v31 = vld [vmem:[#allocation67_spill] sm:$0xff] }
 0x3d9   : > { %v1258_v8 = vadd.f32 %v1194_v13, %v1058_v33  ;;  %v1259_v57 = vadd.f32 %v1195_v59, %v1059_v29  ;;  %v1394_v45 = vmul.f32 %v13077_v22, %v13067_v46  ;;  %v1395_v20 = vmul.f32 %v7555_v27, %v13077_v22  ;;  %v13097_v60 = vld [vmem:[#allocation2 + $0xc18] sm:$0xff] }
 0x3da   : > { %v5263_v53 = vadd.f32 %v5199_v43, %v5062_v10  ;;  %v5400_v3 = vmul.f32 %v7555_v27, %v12949_v18  ;;  %v13088_v36 = vmul.f32 0.5, %v13010_v4  ;;  %v3060_v33 = vadd.f32 %v2996_v56, %v2860_v42  ;;  %v13100_v13 = vld [vmem:[%s7991_s15 + $0x6] ss:$0 sm:$0xff] }
 0x3db   : > { %v5463_v34 = vadd.f32 %v5399_v39, %v5262_v47  ;;  %v5600_v30 = vmul.f32 %v12970_v50, %v13082_v54  ;;  %v13093_v48 = vmul.f32 0.5, %v13046_v15  ;;  %v6127_v24 = vmul.f32 0.035677407, %v5999_v2  ;;  %v15932_v10 = vld [vmem:[#allocation106_spill] sm:$0xff] }
 0x3dc   : > { %15930 = vst [vmem:[#allocation12_spill] sm:$0xff] %v13088_v36  ;;  %v4059_v29 = vadd.f32 %v3995_v44, %v3858_v25  ;;  %v2194_v59 = vmul.f32 %v13100_v13, %v13037_v17  ;;  %v6254_v42 = vmul.f32 %v6190_v63, %v13010_v4  ;;  %v1594_v43 = vmul.f32 %v15932_v10, %v13082_v54 }
 0x3dd   : > { %15931 = vst [vmem:[#allocation130_spill] sm:$0xff] %v13093_v48  ;;  %v1595_v56 = vmul.f32 %v15932_v10, %v13084_v32  ;;  %v2195_v25 = vmul.f32 %v13100_v13, %v13039_v41  ;;  %v1458_v47 = vadd.f32 %v1394_v45, %v1258_v8  ;;  %v1459_v39 = vadd.f32 %v1395_v20, %v1259_v57  ;;  %v13125_v57 = vld [vmem:[%s7991_s15 + $0xb] ss:$0 sm:$0xff] }
 0x3de   : > { %v5464_v2 = vadd.f32 %v5400_v3, %v5263_v53  ;;  %v5601_v44 = vmul.f32 %v12970_v50, %v13084_v32  ;;  %v1794_v21 = vmul.f32 %v15933_v31, %v13095_v16  ;;  %v1795_v4 = vmul.f32 %v15933_v31, %v13097_v60 }
 0x3df   : > { %v5664_v63 = vadd.f32 %v5600_v30, %v5463_v34  ;;  %v5801_v48 = vmul.f32 %v12981_v26, %v13095_v16  ;;  %v6191_v62 = vadd.f32 0.7978846, %v6127_v24  ;;  %v2258_v58 = vadd.f32 %v2194_v59, %v2057_v7 }
 0x3e0   : > { %v2395_v8 = vmul.f32 %v13120_v40, %v13067_v46  ;;  %v3195_v45 = vmul.f32 %v13125_v57, %v13037_v17  ;;  %7348 = vtanh.f32 %v6254_v42  ;;  %v2259_v20 = vadd.f32 %v2195_v25, %v2058_v0  ;;  %v13139_v42 = vld [vmem:[%s7991_s15 + $0x8] ss:$0 sm:$0xff] }
 0x3e1   : > { %v2396_v53 = vmul.f32 %v13120_v40, %v7555_v27  ;;  %v4195_v3 = vmul.f32 %v12690_v5, %v13037_v17  ;;  %v3196_v7 = vmul.f32 %v13125_v57, %v13039_v41  ;;  %v4196_v34 = vmul.f32 %v12690_v5, %v13039_v41 }
 0x3e2   : > { %v5665_v30 = vadd.f32 %v5601_v44, %v5464_v2  ;;  %v5802_v24 = vmul.f32 %v12981_v26, %v13097_v60  ;;  %v1658_v59 = vadd.f32 %v1594_v43, %v1458_v47  ;;  %v1659_v37 = vadd.f32 %v1595_v56, %v1459_v39 }
 0x3e3   : > { %v2596_v0 = vmul.f32 %v13139_v42, %v13082_v54  ;;  %v5865_v25 = vadd.f32 %v5801_v48, %v5664_v63  ;;  %v2459_v17 = vadd.f32 %v2395_v8, %v2258_v58  ;;  %v2597_v1 = vmul.f32 %v13139_v42, %v13084_v32  ;;  %v13157_v8 = vld [vmem:[%s7991_s15 + $0x9] ss:$0 sm:$0xff] }
 0x3e4   : > { %v3259_v36 = vadd.f32 %v3195_v45, %v3059_v55  ;;  %v3395_v41 = vmul.f32 %v13146_v23, %v13067_v46  ;;  %v2460_v2 = vadd.f32 %v2396_v53, %v2259_v20  ;;  %v3396_v43 = vmul.f32 %v13146_v23, %v7555_v27 }
 0x3e5   : > { %v4259_v56 = vadd.f32 %v4195_v3, %v13073_v61  ;;  %v4396_v48 = vmul.f32 %v13067_v46, %v12711_v38  ;;  %v3260_v47 = vadd.f32 %v3196_v7, %v3060_v33  ;;  %v4260_v58 = vadd.f32 %v4196_v34, %v4059_v29  ;;  %v13167_v29 = vld [vmem:[%s7991_s15 + $0xd] ss:$0 sm:$0xff] }
 0x3e6   : > { %v4397_v39 = vmul.f32 %v7555_v27, %v12711_v38  ;;  %v5866_v44 = vadd.f32 %v5802_v24, %v5665_v30  ;;  %v6255_v55 = vmul.f32 %v6191_v62, %v13046_v15  ;;  %v1858_v63 = vadd.f32 %v1794_v21, %v1658_v59  ;;  %v13175_v3 = vld [vmem:[#allocation2 + $0x4a0] sm:$0xff] }
 0x3e7   : > { %v2797_v45 = vmul.f32 %v13157_v8, %v13095_v16  ;;  %v13162_v20 = vadd.f32 %v12760_v6, %v5865_v25  ;;  %v2660_v61 = vadd.f32 %v2596_v0, %v2459_v17  ;;  %v2798_v46 = vmul.f32 %v13157_v8, %v13097_v60 }
 0x3e8   : > { %v3459_v33 = vadd.f32 %v3395_v41, %v3259_v36  ;;  %v3595_v27 = vmul.f32 %v13167_v29, %v13082_v54  ;;  %v2661_v62 = vadd.f32 %v2597_v1, %v2460_v2  ;;  %v3596_v15 = vmul.f32 %v13167_v29, %v13084_v32  ;;  %v13187_v2 = vld [vmem:[#allocation2 + $0x4a8] sm:$0xff] }
 0x3e9   : > { %15934 = vst [vmem:[#allocation27_spill] sm:$0xff] %v13162_v20  ;;  %v4460_v21 = vadd.f32 %v4396_v48, %v4259_v56  ;;  %v4597_v53 = vmul.f32 %v12733_v28, %v13082_v54  ;;  %v3460_v7 = vadd.f32 %v3396_v43, %v3260_v47  ;;  %v4461_v34 = vadd.f32 %v4397_v39, %v4260_v58  ;;  %v990_v54 = vld [vmem:[#allocation2 + $0x220] sm:$0xff]  ;;  %v991_v39 = vld [vmem:[#allocation2 + $0x228] sm:$0xff] }
 0x3ea   : > { %v4598_v36 = vmul.f32 %v12733_v28, %v13084_v32  ;;  %v13180_v30 = vadd.f32 %v12760_v6, %v5866_v44  ;;  %v7349_v24 = vpop.eup %7348  ;;  %7350 = vtanh.f32 %v6255_v55  ;;  %v1859_v1 = vadd.f32 %v1795_v4, %v1659_v37 }
 0x3eb   : > { %v3795_v59 = vmul.f32 %v12784_v35, %v13095_v16  ;;  %v6000_v0 = vmul.f32 %v13162_v20, %v13162_v20  ;;  %v2861_v25 = vadd.f32 %v2797_v45, %v2660_v61  ;;  %v3659_v17 = vadd.f32 %v3595_v27, %v3459_v33  ;;  %v13205_v27 = vld [vmem:[#allocation2 + $0x222] sm:$0xff] }
 0x3ec   : > { %15935 = vst [vmem:[#allocation18_spill] sm:$0xff] %v13180_v30  ;;  %v1060_v41 = vmul.f32 %v12909_v12, %v990_v54  ;;  %v1196_v6 = vmul.f32 %v15927_v11, %v13175_v3  ;;  %v2862_v32 = vadd.f32 %v2798_v46, %v2661_v62  ;;  %v3796_v37 = vmul.f32 %v12784_v35, %v13097_v60 }
 0x3ed   : > { %v4661_v4 = vadd.f32 %v4597_v53, %v4460_v21  ;;  %v4798_v43 = vmul.f32 %v12753_v49, %v13095_v16  ;;  %v3660_v56 = vadd.f32 %v3596_v15, %v3460_v7  ;;  %v4662_v48 = vadd.f32 %v4598_v36, %v4461_v34  ;;  %v13212_v7 = vld [vmem:[#allocation2 + $0x9a0] sm:$0xff] }
 0x3ee   : > { %v4799_v47 = vmul.f32 %v12753_v49, %v13097_v60  ;;  %v6001_v58 = vmul.f32 %v13180_v30, %v13180_v30  ;;  %v13199_v44 = vadd.f32 1.0, %v7349_v24  ;;  %v6128_v55 = vmul.f32 0.035677407, %v6000_v0 }
 0x3ef   : > { %v1061_v45 = vmul.f32 %v12909_v12, %v991_v39  ;;  %v1197_v61 = vmul.f32 %v15927_v11, %v13187_v2  ;;  %v3859_v46 = vadd.f32 %v3795_v59, %v3659_v17  ;;  %v1995_v16 = vmul.f32 %v12897_v9, %v990_v54  ;;  %v13221_v11 = vld [vmem:[#allocation2 + $0x9a8] sm:$0xff] }
 0x3f0   : > { %15936 = vst [vmem:[#allocation131_spill] sm:$0xff] %v13199_v44  ;;  %v1260_v33 = vadd.f32 %v1196_v6, %v1060_v41  ;;  %v1396_v60 = vmul.f32 %v13205_v27, %v13077_v22  ;;  %v4862_v62 = vadd.f32 %v4798_v43, %v4661_v4  ;;  %v2997_v15 = vmul.f32 %v12901_v19, %v990_v54  ;;  %v13216_v6 = vld [vmem:[#allocation2 + $0x728] sm:$0xff] }
 0x3f1   : > { %v3996_v21 = vmul.f32 %v12913_v52, %v990_v54  ;;  %v4999_v53 = vmul.f32 %v13023_v14, %v990_v54  ;;  %v3860_v34 = vadd.f32 %v3796_v37, %v3660_v56  ;;  %v4863_v36 = vadd.f32 %v4799_v47, %v4662_v48 }
 0x3f2   : > { %v6129_v24 = vmul.f32 0.035677407, %v6001_v58  ;;  %v1996_v59 = vmul.f32 %v12897_v9, %v991_v39  ;;  %v6192_v0 = vadd.f32 0.7978846, %v6128_v55  ;;  %v2998_v17 = vmul.f32 %v12901_v19, %v991_v39 }
 0x3f3   : > { %v1261_v41 = vadd.f32 %v1197_v61, %v1061_v45  ;;  %v1397_v4 = vmul.f32 %v13216_v6, %v13077_v22  ;;  %v2059_v43 = vadd.f32 %v1995_v16, %v1858_v63  ;;  %v3997_v44 = vmul.f32 %v12913_v52, %v991_v39  ;;  %v13228_v45 = vld [vmem:[#allocation2 + $0xc20] sm:$0xff]  ;;  %v13230_v16 = vld [vmem:[#allocation2 + $0xc28] sm:$0xff] }
 0x3f4   : > { %v1460_v54 = vadd.f32 %v1396_v60, %v1260_v33  ;;  %v1596_v37 = vmul.f32 %v15932_v10, %v13212_v7  ;;  %v13225_v56 = vpop.eup %7350  ;;  %v3061_v48 = vadd.f32 %v2997_v15, %v2861_v25  ;;  %v4060_v47 = vadd.f32 %v3996_v21, %v3859_v46 }
 0x3f5   : > { %15937 = vst [vmem:[#allocation120_spill] sm:$0xff] %v13225_v56  ;;  %v5063_v58 = vadd.f32 %v4999_v53, %v4862_v62  ;;  %v5000_v55 = vmul.f32 %v13023_v14, %v991_v39  ;;  %v6193_v63 = vadd.f32 0.7978846, %v6129_v24  ;;  %v2060_v61 = vadd.f32 %v1996_v59, %v1859_v1  ;;  %v13238_v62 = vld [vmem:[%s7991_s15 + $0x3] ss:$0 sm:$0xff] }
 0x3f6   : > { %v2196_v33 = vmul.f32 %v13100_v13, %v13175_v3  ;;  %v2197_v10 = vmul.f32 %v13100_v13, %v13187_v2  ;;  %v6256_v60 = vmul.f32 %v6192_v0, %v13162_v20  ;;  %v3062_v25 = vadd.f32 %v2998_v17, %v2862_v32  ;;  %v13247_v59 = vld [vmem:[%s7991_s15 + $0x4] ss:$0 sm:$0xff] }
 0x3f7   : > { %v1461_v46 = vadd.f32 %v1397_v4, %v1261_v41  ;;  %v1597_v39 = vmul.f32 %v13238_v62, %v13221_v11  ;;  %v4061_v15 = vadd.f32 %v3997_v44, %v3860_v34  ;;  %v1660_v21 = vadd.f32 %v1596_v37, %v1460_v54 }
 0x3f8   : > { %v1796_v1 = vmul.f32 %v15933_v31, %v13228_v45  ;;  %v3197_v53 = vmul.f32 %v13125_v57, %v13175_v3  ;;  %v5064_v24 = vadd.f32 %v5000_v55, %v4863_v36  ;;  %v1797_v32 = vmul.f32 %v13247_v59, %v13230_v16 }
 0x3f9   : > { %v2397_v0 = vmul.f32 %v13205_v27, %v13120_v40  ;;  %v4197_v44 = vmul.f32 %v12690_v5, %v13175_v3  ;;  %v6257_v34 = vmul.f32 %v6193_v63, %v13180_v30  ;;  %v2260_v17 = vadd.f32 %v2196_v33, %v2059_v43  ;;  %v13267_v63 = vld [vmem:[%s7991_s15 + $0x10] ss:$0 sm:$0xff] }
 0x3fa   : > { %v2261_v31 = vadd.f32 %v2197_v10, %v2060_v61  ;;  %v5200_v41 = vmul.f32 %v12927_v51, %v13175_v3  ;;  %7352 = vtanh.f32 %v6256_v60  ;;  %v1661_v36 = vadd.f32 %v1597_v39, %v1461_v46 }
 0x3fb   : > { %v2398_v4 = vmul.f32 %v13216_v6, %v13120_v40  ;;  %v3198_v54 = vmul.f32 %v13125_v57, %v13187_v2  ;;  %v13262_v37 = vadd.f32 %v1796_v1, %v1660_v21  ;;  %v3261_v55 = vadd.f32 %v3197_v53, %v3061_v48 }
 0x3fc   : > { %v3397_v5 = vmul.f32 %v13205_v27, %v13146_v23  ;;  %v4198_v3 = vmul.f32 %v13267_v63, %v13187_v2  ;;  %v2598_v43 = vmul.f32 %v13139_v42, %v13212_v7  ;;  %v4261_v61 = vadd.f32 %v4197_v44, %v4060_v47 }
 0x3fd   : > { %v4398_v33 = vmul.f32 %v13205_v27, %v12711_v38  ;;  %v5201_v10 = vmul.f32 %v12927_v51, %v13187_v2  ;;  %7354 = vtanh.f32 %v6257_v34  ;;  %v2461_v48 = vadd.f32 %v2397_v0, %v2260_v17  ;;  %v13284_v38 = vld [vmem:[%s7991_s15 + $0x11] ss:$0 sm:$0xff]  ;;  %v15938_v0 = vld [vmem:[#allocation142_spill] sm:$0xff] }
 0x3fe   : > { %v5264_v60 = vadd.f32 %v5200_v41, %v5063_v58  ;;  %v5401_v46 = vmul.f32 %v13205_v27, %v12949_v18  ;;  %v2462_v39 = vadd.f32 %v2398_v4, %v2261_v31  ;;  %v3262_v21 = vadd.f32 %v3198_v54, %v3062_v25  ;;  %v15939_v58 = vld [vmem:[#allocation146_spill] sm:$0xff] }
 0x3ff   : > { %v3398_v1 = vmul.f32 %v13216_v6, %v13146_v23  ;;  %v3597_v47 = vmul.f32 %v13167_v29, %v13212_v7  ;;  %v3461_v53 = vadd.f32 %v3397_v5, %v3261_v55  ;;  %v4262_v44 = vadd.f32 %v4198_v3, %v4061_v15 }
 0x400   : > { %v4399_v2 = vmul.f32 %v13284_v38, %v13216_v6  ;;  %v4408_v34 = vadd.f32 %v15939_v58, %v15938_v0  ;;  %v4462_v27 = vadd.f32 %v4398_v33, %v4261_v61  ;;  %v4599_v25 = vmul.f32 %v12733_v28, %v13212_v7  ;;  %v13305_v61 = vld [vmem:[%s7991_s15 + $0x12] ss:$0 sm:$0xff] }
 0x401   : > { %v5265_v17 = vadd.f32 %v5201_v10, %v5064_v24  ;;  %v5402_v31 = vmul.f32 %v13216_v6, %v12949_v18  ;;  %v2599_v15 = vmul.f32 %v13139_v42, %v13221_v11  ;;  %v2799_v41 = vmul.f32 %v13157_v8, %v13228_v45  ;;  %v15940_v10 = vld [vmem:[#allocation35_spill] sm:$0xff] }
 0x402   : > { %v5465_v4 = vadd.f32 %v5401_v46, %v5264_v60  ;;  %v5602_v54 = vmul.f32 %v12970_v50, %v13212_v7  ;;  %v2662_v55 = vadd.f32 %v2598_v43, %v2461_v48  ;;  %v3462_v5 = vadd.f32 %v3398_v1, %v3262_v21 }
 0x403   : > { %v3598_v3 = vmul.f32 %v13167_v29, %v13221_v11  ;;  %v3797_v28 = vmul.f32 %v12784_v35, %v13228_v45  ;;  %v3661_v24 = vadd.f32 %v3597_v47, %v3461_v53  ;;  %v4463_v6 = vadd.f32 %v4399_v2, %v4262_v44  ;;  %v992_v2 = vld [vmem:[#allocation2 + $0x230] sm:$0xff] }
 0x404   : > { %v4600_v33 = vmul.f32 %v13305_v61, %v13221_v11  ;;  %v4609_v60 = vadd.f32 %v15940_v10, %v4408_v34  ;;  %v13310_v46 = vpop.eup %7352  ;;  %v4663_v7 = vadd.f32 %v4599_v25, %v4462_v27  ;;  %v4800_v43 = vmul.f32 %v12753_v49, %v13228_v45 }
 0x405   : > { %15941 = vst [vmem:[#allocation29_spill] sm:$0xff] %v13310_v46  ;;  %v5466_v48 = vadd.f32 %v5402_v31, %v5265_v17  ;;  %v5603_v21 = vmul.f32 %v12970_v50, %v13221_v11  ;;  %v1861_v1 = vadd.f32 %v1797_v32, %v1661_v36  ;;  %v2800_v47 = vmul.f32 %v13157_v8, %v13230_v16  ;;  %v13325_v11 = vld [vmem:[%s7991_s15 + $0x13] ss:$0 sm:$0xff]  ;;  %v993_v36 = vld [vmem:[#allocation2 + $0x238] sm:$0xff] }
 0x406   : > { %v5666_v53 = vadd.f32 %v5602_v54, %v5465_v4  ;;  %v5803_v44 = vmul.f32 %v12981_v26, %v13228_v45  ;;  %v2663_v0 = vadd.f32 %v2599_v15, %v2462_v39  ;;  %v2863_v58 = vadd.f32 %v2799_v41, %v2662_v55  ;;  %v15943_v31 = vld [vmem:[#allocation43_spill] sm:$0xff]  ;;  %v15944_v55 = vld [vmem:[#allocation41_spill] sm:$0xff] }
 0x407   : > { %v3662_v34 = vadd.f32 %v3598_v3, %v3462_v5  ;;  %v3798_v27 = vmul.f32 %v12784_v35, %v13230_v16  ;;  %v13322_v49 = vpop.eup %7354  ;;  %v3861_v25 = vadd.f32 %v3797_v28, %v3661_v24  ;;  %v4664_v17 = vadd.f32 %v4600_v33, %v4463_v6  ;;  %v15945_v3 = vld [vmem:[#allocation53_spill] sm:$0xff] }
 0x408   : > { %15942 = vst [vmem:[#allocation127_spill] sm:$0xff] %v13322_v49  ;;  %v4801_v32 = vmul.f32 %v13325_v11, %v13230_v16  ;;  %v4810_v4 = vadd.f32 %v15943_v31, %v4609_v60  ;;  %v4864_v45 = vadd.f32 %v4800_v43, %v4663_v7  ;;  %v5667_v54 = vadd.f32 %v5603_v21, %v5466_v48  ;;  %v15946_v28 = vld [vmem:[#allocation61_spill] sm:$0xff] }
 0x409   : > { %v5804_v39 = vmul.f32 %v12981_v26, %v13230_v16  ;;  %v1997_v15 = vmul.f32 %v12897_v9, %v992_v2  ;;  %v5867_v35 = vadd.f32 %v5803_v44, %v5666_v53  ;;  %v2999_v41 = vmul.f32 %v12901_v19, %v992_v2  ;;  %v7571_v60 = vld [vmem:[#allocation2 + $0x2c0] sm:$0xff] }
 0x40a   : > { %v5011_v5 = vadd.f32 %v15944_v55, %v4810_v4  ;;  %v5213_v24 = vadd.f32 %v15946_v28, %v15945_v3  ;;  %v3998_v6 = vmul.f32 %v12913_v52, %v992_v2  ;;  %v5001_v33 = vmul.f32 %v13023_v14, %v992_v2  ;;  %v5279_v7 = vld [vmem:[#allocation2 + $0x540] sm:$0xff]  ;;  %v13348_v55 = vld [vmem:[#allocation2 + $0x4b0] sm:$0xff] }
 0x40b   : > { %v1998_v10 = vmul.f32 %v12897_v9, %v993_v36  ;;  %v5148_v16 = vmul.f32 %v7571_v60, %v12927_v51  ;;  %v2864_v43 = vadd.f32 %v2800_v47, %v2663_v0  ;;  %v3862_v48 = vadd.f32 %v3798_v27, %v3662_v34  ;;  %v5480_v9 = vld [vmem:[#allocation2 + $0x7c0] sm:$0xff]  ;;  %v13358_v0 = vld [vmem:[#allocation2 + $0x4b8] sm:$0xff] }
 0x40c   : > { %v13341_v21 = vadd.f32 %v4801_v32, %v4664_v17  ;;  %v1062_v53 = vmul.f32 %v12909_v12, %v992_v2  ;;  %v5868_v44 = vadd.f32 %v5804_v39, %v5667_v54  ;;  %v13345_v31 = vadd.f32 %v1997_v15, %v13262_v37  ;;  %v13351_v28 = vld [vmem:[%s10273_s12] ss:$0 sm:$0xff]  ;;  %s7718_s12 = scalar_lea.vmem %s7717_s11, 16384 }
 0x40d   : > { %v1063_v4 = vmul.f32 %v12909_v12, %v993_v36  ;;  %v5212_v3 = vadd.f32 %v5148_v16, %v5011_v5  ;;  %15947 = vst [vmem:[#allocation148_spill] sm:$0xff] %v13351_v28  ;;  %v13354_v60 = vadd.f32 %v13351_v28, %v5867_v35  ;;  %v13356_v47 = vadd.f32 %v2999_v41, %v2863_v58  ;;  %v15949_v34 = vld [vmem:[#allocation77_spill] sm:$0xff]  ;;  %p7720_p9 = scmp.lt.s32.totalorder %s7718_s12, %s7712_s29 }
 0x40e   : > { %v5349_v2 = vmul.f32 %v12949_v18, %v5279_v7  ;;  %v5414_v37 = vadd.f32 %v15949_v34, %v5213_v24  ;;  %v13362_v27 = vadd.f32 %v3998_v6, %v3861_v25  ;;  %v13364_v12 = vadd.f32 %v5001_v33, %v4864_v45  ;;  %v15950_v32 = vld [vmem:[#allocation69_spill] sm:$0xff]  ;;  %v15954_v45 = vld [vmem:[#allocation94_spill] sm:$0xff]  ;;  %v15955_v6 = vld [vmem:[#allocation31_spill] sm:$0xff] }
 0x40f   : > { %15948 = vst [vmem:[#allocation128_spill] sm:$0xff] %v13354_v60  ;;  %v13366_v17 = vadd.f32 %v1998_v10, %v1861_v1  ;;  %v15951_v54 = vld [vmem:[#allocation81_spill] sm:$0xff]  ;;  %v5550_v5 = vmul.f32 %v12970_v50, %v5480_v9  ;;  %v3000_v24 = vmul.f32 %v12901_v19, %v993_v36  ;;  %v13380_v33 = vadd.f32 %v13351_v28, %v15955_v6  ;;  %v15956_v34 = vld [vmem:[#allocation111_spill] sm:$0xff]  ;;  %p7721_p11 = por %p7720_p9, %p7719_p8 }
 0x410   : > { %v5415_v39 = vadd.f32 %v15951_v54, %v15950_v32  ;;  %v5681_v15 = vld [vmem:[#allocation2 + $0xa40] sm:$0xff]  ;;  %v5413_v41 = vadd.f32 %v5349_v2, %v5212_v3  ;;  %v13389_v19 = vadd.f32 %v13351_v28, %v5868_v44  ;;  %v13393_v9 = vmul.f32 %v13354_v60, %v13354_v60 }
 0x411   : > { %v15952_v35 = vld [vmem:[#allocation17_spill] sm:$0xff]  ;;  %v5751_v7 = vmul.f32 %v12981_v26, %v5681_v15  ;;  %v15957_v2 = vld [vmem:[#allocation34_spill] sm:$0xff]  ;;  %v13405_v44 = vmul.f32 %v13023_v14, %v993_v36  ;;  %v2199_v46 = vmul.f32 %v13100_v13, %v13358_v0  ;;  %p7722_p0 = pnand %p7721_p11, %p7715_p7 }
 0x412   : > { %v1198_v58 = vmul.f32 %v15952_v35, %v13348_v55  ;;  %v15953_v16 = vld [vmem:[#allocation89_spill] sm:$0xff]  ;;  %v1199_v25 = vmul.f32 %v15952_v35, %v13358_v0  ;;  %v5616_v1 = vadd.f32 %v15954_v45, %v5415_v39  ;;  %v5614_v10 = vadd.f32 %v5550_v5, %v5413_v41  ;;  %15958 = vst [vmem:[#allocation64_spill] sm:$0xff] %v13389_v19  ;;  %v13397_v35 = vld [vmem:[#allocation2 + $0x232] sm:$0xff] }
 0x413   : > { %v5615_v18 = vadd.f32 %v15953_v16, %v5414_v37  ;;  %v13386_v50 = vadd.f32 %v13351_v28, %v15957_v2  ;;  %15959 = vst [vmem:[#allocation135_spill] sm:$0xff] %v13393_v9  ;;  %v3999_v37 = vmul.f32 %v12913_v52, %v993_v36  ;;  %v15960_v32 = vld [vmem:[#allocation49_spill] sm:$0xff]  ;;  %v1398_v26 = vmul.f32 %v13397_v35, %v13077_v22  ;;  %v13407_v16 = vld [vmem:[#allocation2 + $0x9b0] sm:$0xff] }
 0x414   : > { %v5817_v54 = vadd.f32 %v15960_v32, %v5616_v1  ;;  %v1262_v39 = vadd.f32 %v1198_v58, %v1062_v53  ;;  %v5815_v15 = vadd.f32 %v5751_v7, %v5614_v10  ;;  %v1263_v5 = vadd.f32 %v1199_v25, %v1063_v4  ;;  %v13414_v58 = vld [vmem:[#allocation2 + $0x738] sm:$0xff]  ;;  %v15961_v10 = vld [vmem:[#allocation70_spill] sm:$0xff] }
 0x415   : > { %v5816_v3 = vadd.f32 %v15956_v34, %v5615_v18  ;;  %v5953_v53 = vmul.f32 %v13380_v33, %v13380_v33  ;;  %v1399_v18 = vmul.f32 %v13414_v58, %v13077_v22  ;;  %v5954_v36 = vmul.f32 %v13386_v50, %v13386_v50  ;;  %v13427_v1 = vld [vmem:[#allocation2 + $0x9b8] sm:$0xff] }
 0x416   : > { %v13410_v52 = vadd.f32 %v13351_v28, %v5817_v54  ;;  %v13419_v45 = vadd.f32 %v13351_v28, %v5815_v15  ;;  %v3064_v4 = vadd.f32 %v3000_v24, %v2864_v43  ;;  %v13425_v25 = vadd.f32 %v3999_v37, %v3862_v48  ;;  %v13437_v2 = vld [vmem:[#allocation2 + $0xc38] sm:$0xff] }
 0x417   : > { %v13402_v41 = vadd.f32 %v13351_v28, %v5816_v3  ;;  %v5955_v22 = vmul.f32 %v15961_v10, %v15961_v10  ;;  %v1462_v7 = vadd.f32 %v1398_v26, %v1262_v39  ;;  %v1598_v34 = vmul.f32 %v13238_v62, %v13407_v16  ;;  %v13435_v3 = vld [vmem:[#allocation2 + $0xc30] sm:$0xff] }
 0x418   : > { %v5952_v6 = vmul.f32 %v13410_v52, %v13410_v52  ;;  %v5950_v43 = vmul.f32 %v13419_v45, %v13419_v45  ;;  %v13443_v24 = vmul.f32 %v13389_v19, %v13389_v19  ;;  %v2198_v37 = vmul.f32 %v13100_v13, %v13348_v55  ;;  %v15963_v19 = vld [vmem:[#allocation86_spill] sm:$0xff] }
 0x419   : > { %v5951_v14 = vmul.f32 %v13402_v41, %v13402_v41  ;;  %v6081_v54 = vmul.f32 0.035677407, %v5953_v53  ;;  %v1463_v39 = vadd.f32 %v1399_v18, %v1263_v5  ;;  %v1599_v26 = vmul.f32 %v13238_v62, %v13427_v1 }
 0x41a   : > { %15962 = vst [vmem:[#allocation137_spill] sm:$0xff] %v13443_v24  ;;  %v6080_v32 = vmul.f32 0.035677407, %v5952_v6  ;;  %v6078_v15 = vmul.f32 0.035677407, %v5950_v43  ;;  %v1798_v30 = vmul.f32 %v13247_v59, %v13435_v3  ;;  %v1662_v56 = vadd.f32 %v1598_v34, %v1462_v7 }
 0x41b   : > { %v6079_v48 = vmul.f32 0.035677407, %v5951_v14  ;;  %v6082_v49 = vmul.f32 0.035677407, %v5954_v36  ;;  %v1799_v14 = vmul.f32 %v13247_v59, %v13437_v2  ;;  %v6083_v20 = vmul.f32 0.035677407, %v5955_v22 }
 0x41c   : > { %v6084_v6 = vmul.f32 0.035677407, %v15963_v19  ;;  %v6142_v53 = vadd.f32 0.7978846, %v6078_v15  ;;  %v2262_v18 = vadd.f32 %v2198_v37, %v13345_v31  ;;  %v2399_v62 = vmul.f32 %v13397_v35, %v13120_v40 }
 0x41d   : > { %v6143_v5 = vadd.f32 0.7978846, %v6079_v48  ;;  %v6144_v36 = vadd.f32 0.7978846, %v6080_v32  ;;  %v6145_v43 = vadd.f32 0.7978846, %v6081_v54  ;;  %v1663_v60 = vadd.f32 %v1599_v26, %v1463_v39 }
 0x41e   : > { %v3199_v59 = vmul.f32 %v13125_v57, %v13348_v55  ;;  %v3200_v24 = vmul.f32 %v13125_v57, %v13358_v0  ;;  %v6146_v22 = vadd.f32 0.7978846, %v6082_v49  ;;  %v2263_v7 = vadd.f32 %v2199_v46, %v13366_v17 }
 0x41f   : > { %v2400_v19 = vmul.f32 %v13414_v58, %v13120_v40  ;;  %v6147_v34 = vadd.f32 0.7978846, %v6083_v20  ;;  %v6206_v31 = vmul.f32 %v6142_v53, %v13419_v45  ;;  %v2600_v48 = vmul.f32 %v13139_v42, %v13407_v16 }
 0x420   : > { %v6148_v37 = vadd.f32 0.7978846, %v6084_v6  ;;  %v6207_v32 = vmul.f32 %v6143_v5, %v13402_v41  ;;  %v6208_v54 = vmul.f32 %v6144_v36, %v13410_v52  ;;  %v2463_v39 = vadd.f32 %v2399_v62, %v2262_v18  ;;  %v15964_v36 = vld [vmem:[#allocation74_spill] sm:$0xff] }
 0x421   : > { %v3399_v49 = vmul.f32 %v13397_v35, %v13146_v23  ;;  %v3400_v46 = vmul.f32 %v13414_v58, %v13146_v23  ;;  %v6209_v17 = vmul.f32 %v6145_v43, %v13380_v33  ;;  %v3263_v20 = vadd.f32 %v3199_v59, %v13356_v47  ;;  %v15966_v59 = vld [vmem:[#allocation90_spill] sm:$0xff] }
 0x422   : > { %v3264_v26 = vadd.f32 %v3200_v24, %v3064_v4  ;;  %v6210_v15 = vmul.f32 %v6146_v22, %v13386_v50  ;;  %7356 = vtanh.f32 %v6206_v31  ;;  %v2464_v6 = vadd.f32 %v2400_v19, %v2263_v7  ;;  %v15965_v24 = vld [vmem:[#allocation66_spill] sm:$0xff] }
 0x423   : > { %v2601_v53 = vmul.f32 %v13139_v42, %v13427_v1  ;;  %v6211_v5 = vmul.f32 %v6147_v34, %v15961_v10  ;;  %7358 = vtanh.f32 %v6207_v32  ;;  %v2801_v18 = vmul.f32 %v13157_v8, %v13435_v3 }
 0x424   : > { %v4199_v62 = vmul.f32 %v13267_v63, %v13348_v55  ;;  %v6212_v43 = vmul.f32 %v6148_v37, %v15964_v36  ;;  %7360 = vtanh.f32 %v6208_v54  ;;  %v2664_v47 = vadd.f32 %v2600_v48, %v2463_v39 }
 0x425   : > { %v3599_v4 = vmul.f32 %v13167_v29, %v13407_v16  ;;  %v6213_v22 = vmul.f32 %v15966_v59, %v15965_v24  ;;  %7362 = vtanh.f32 %v6209_v17  ;;  %v3463_v7 = vadd.f32 %v3399_v49, %v3263_v20  ;;  %v13504_v17 = vld [vmem:[%s7991_s15 + $0xe] ss:$0 sm:$0xff] }
 0x426   : > { %v3464_v19 = vadd.f32 %v3400_v46, %v3264_v26  ;;  %v3600_v34 = vmul.f32 %v13167_v29, %v13427_v1  ;;  %7364 = vtanh.f32 %v6210_v15  ;;  %v13494_v31 = vadd.f32 %v13405_v44, %v13341_v21 }
 0x427   : > { %v2665_v37 = vadd.f32 %v2601_v53, %v2464_v6  ;;  %v2802_v48 = vmul.f32 %v13157_v8, %v13437_v2  ;;  %7366 = vtanh.f32 %v6211_v5  ;;  %v4200_v32 = vmul.f32 %v13267_v63, %v13358_v0 }
 0x428   : > { %v4263_v54 = vadd.f32 %v4199_v62, %v13362_v27  ;;  %v4400_v39 = vmul.f32 %v13397_v35, %v13284_v38  ;;  %7368 = vtanh.f32 %v6212_v43  ;;  %v1862_v49 = vadd.f32 %v1798_v30, %v1662_v56  ;;  %v13531_v62 = vld [vmem:[#allocation2 + $0x240] sm:$0xff] }
 0x429   : > { %v1863_v46 = vadd.f32 %v1799_v14, %v1663_v60  ;;  %v3799_v21 = vmul.f32 %v13504_v17, %v13435_v3  ;;  %7370 = vtanh.f32 %v6213_v22  ;;  %v13508_v44 = vadd.f32 %v2801_v18, %v2664_v47 }
 0x42a   : > { %v3663_v20 = vadd.f32 %v3599_v4, %v3463_v7  ;;  %v3664_v26 = vadd.f32 %v3600_v34, %v3464_v19  ;;  %v3800_v15 = vmul.f32 %v13504_v17, %v13437_v2  ;;  %v13512_v27 = vadd.f32 %v2802_v48, %v2665_v37 }
 0x42b   : > { %v4401_v6 = vmul.f32 %v13414_v58, %v13284_v38  ;;  %v4601_v30 = vmul.f32 %v13305_v61, %v13407_v16  ;;  %v13520_v56 = vmul.f32 %v13305_v61, %v13427_v1  ;;  %v4264_v14 = vadd.f32 %v4200_v32, %v13425_v25  ;;  %v13537_v25 = vld [vmem:[#allocation2 + $0x248] sm:$0xff] }
 0x42c   : > { %v7357_v60 = vpop.eup %7356  ;;  %v4464_v53 = vadd.f32 %v4400_v39, %v4263_v54  ;;  %v13525_v5 = vmul.f32 %v13325_v11, %v13435_v3  ;;  %v13529_v18 = vmul.f32 %v13325_v11, %v13437_v2  ;;  %v5202_v47 = vmul.f32 %v12927_v51, %v13348_v55  ;;  %v7576_v54 = vld [vmem:[%s7991_s15 + $0x5] ss:$0 sm:$0xff] }
 0x42d   : > { %v7359_v43 = vpop.eup %7358  ;;  %v5203_v4 = vmul.f32 %v12927_v51, %v13358_v0  ;;  %v6014_v59 = vmul.f32 0.5, %v13419_v45  ;;  %v6334_v22 = vadd.f32 1.0, %v7357_v60  ;;  %v13540_v19 = vadd.f32 %v3799_v21, %v3663_v20 }
 0x42e   : > { %v7361_v7 = vpop.eup %7360  ;;  %v13542_v34 = vadd.f32 %v3800_v15, %v3664_v26  ;;  %v6015_v37 = vmul.f32 0.5, %v13402_v41  ;;  %v6335_v48 = vadd.f32 1.0, %v7359_v43  ;;  %v1999_v55 = vmul.f32 %v7576_v54, %v13531_v62  ;;  %v13554_v41 = vld [vmem:[#allocation2 + $0x4c0] sm:$0xff] }
 0x42f   : > { %v7363_v32 = vpop.eup %7362  ;;  %v6016_v39 = vmul.f32 0.5, %v13410_v52  ;;  %v6336_v51 = vadd.f32 1.0, %v7361_v7  ;;  %v13548_v0 = vmul.f32 %v6334_v22, %v6014_v59  ;;  %v2000_v45 = vmul.f32 %v7576_v54, %v13537_v25 }
 0x430   : > { %v7365_v9 = vpop.eup %7364  ;;  %v6017_v21 = vmul.f32 0.5, %v13380_v33  ;;  %v6337_v20 = vadd.f32 1.0, %v7363_v32  ;;  %v13552_v26 = vmul.f32 %v6335_v48, %v6015_v37  ;;  %v6018_v60 = vmul.f32 0.5, %v13386_v50  ;;  %v13570_v50 = vld [vmem:[#allocation2 + $0x4c8] sm:$0xff] }
 0x431   : > { %15967 = vst [vmem:[#allocation37_spill] sm:$0xff] %v13548_v0  ;;  %v7367_v15 = vpop.eup %7366  ;;  %v6338_v43 = vadd.f32 1.0, %v7365_v9  ;;  %v13557_v28 = vmul.f32 %v6336_v51, %v6016_v39  ;;  %v6531_v52 = vmul.f32 %v13548_v0, %v13548_v0  ;;  %v4465_v22 = vadd.f32 %v4401_v6, %v4264_v14 }
 0x432   : > { %15968 = vst [vmem:[#allocation73_spill] sm:$0xff] %v13552_v26  ;;  %v7369_v59 = vpop.eup %7368  ;;  %v13561_v7 = vadd.f32 %v4601_v30, %v4464_v53  ;;  %v6462_v33 = vadd.f32 %v13552_v26, %v13548_v0  ;;  %v6532_v37 = vmul.f32 %v13552_v26, %v13552_v26  ;;  %v13568_v32 = vadd.f32 %v5202_v47, %v13364_v12 }
 0x433   : > { %15969 = vst [vmem:[#allocation46_spill] sm:$0xff] %v13557_v28  ;;  %v7371_v48 = vpop.eup %7370  ;;  %v6339_v9 = vadd.f32 1.0, %v7367_v15  ;;  %v13572_v54 = vmul.f32 %v6337_v20, %v6017_v21  ;;  %v13574_v39 = vmul.f32 %v6338_v43, %v6018_v60  ;;  %v2063_v6 = vadd.f32 %v1999_v55, %v1862_v49 }
 0x434   : > { %v2064_v30 = vadd.f32 %v2000_v45, %v1863_v46  ;;  %v2200_v14 = vmul.f32 %v13100_v13, %v13554_v41  ;;  %v6463_v53 = vadd.f32 %v6462_v33, %v13557_v28  ;;  %v6019_v51 = vmul.f32 0.5, %v15961_v10 }
 0x435   : > { %15970 = vst [vmem:[#allocation42_spill] sm:$0xff] %v13572_v54  ;;  %15971 = vst [vmem:[#allocation52_spill] sm:$0xff] %v13574_v39  ;;  %v6340_v26 = vadd.f32 1.0, %v7369_v59  ;;  %v6533_v12 = vmul.f32 %v13557_v28, %v13557_v28  ;;  %v6595_v47 = vadd.f32 %v6532_v37, %v6531_v52  ;;  %v2201_v21 = vmul.f32 %v13100_v13, %v13570_v50  ;;  %v13595_v52 = vld [vmem:[#allocation2 + $0x242] sm:$0xff] }
 0x436   : > { %v6020_v20 = vmul.f32 0.5, %v15964_v36  ;;  %v6341_v15 = vadd.f32 1.0, %v7371_v48  ;;  %v6464_v49 = vadd.f32 %v6463_v53, %v13572_v54  ;;  %v13586_v46 = vmul.f32 %v6339_v9, %v6019_v51  ;;  %v13600_v59 = vld [vmem:[#allocation2 + $0x9c0] sm:$0xff] }
 0x437   : > { %v6534_v55 = vmul.f32 %v13572_v54, %v13572_v54  ;;  %v6535_v10 = vmul.f32 %v13574_v39, %v13574_v39  ;;  %v6596_v45 = vadd.f32 %v6595_v47, %v6533_v12  ;;  %v13593_v60 = vadd.f32 %v5203_v4, %v13494_v31  ;;  %v15973_v37 = vld [vmem:[#allocation98_spill] sm:$0xff] }
 0x438   : > { %15972 = vst [vmem:[#allocation56_spill] sm:$0xff] %v13586_v46  ;;  %v2264_v43 = vadd.f32 %v2200_v14, %v2063_v6  ;;  %v2401_v13 = vmul.f32 %v13595_v52, %v13120_v40  ;;  %v6465_v36 = vadd.f32 %v6464_v49, %v13574_v39  ;;  %v6021_v33 = vmul.f32 0.5, %v15965_v24  ;;  %v13606_v4 = vld [vmem:[#allocation2 + $0x748] sm:$0xff]  ;;  %v15976_v49 = vld [vmem:[#allocation105_spill] sm:$0xff] }
 0x439   : > { %v6342_v48 = vadd.f32 1.0, %v15973_v37  ;;  %v13604_v9 = vmul.f32 %v6340_v26, %v6020_v20  ;;  %v6597_v53 = vadd.f32 %v6596_v45, %v6534_v55  ;;  %v2265_v31 = vadd.f32 %v2201_v21, %v2064_v30  ;;  %v15975_v14 = vld [vmem:[#allocation62_spill] sm:$0xff]  ;;  %v13620_v21 = vld [vmem:[%s7991_s15 + $0x16] ss:$0 sm:$0xff] }
 0x43a   : > { %v2402_v6 = vmul.f32 %v13606_v4, %v13120_v40  ;;  %v6022_v51 = vmul.f32 0.5, %v15975_v14  ;;  %v6466_v12 = vadd.f32 %v6465_v36, %v13586_v46  ;;  %v13612_v47 = vld [vmem:[#allocation2 + $0x9c8] sm:$0xff]  ;;  %v6343_v39 = vadd.f32 1.0, %v15976_v49  ;;  %v13627_v36 = vld [vmem:[#allocation2 + $0xc40] sm:$0xff] }
 0x43b   : > { %15974 = vst [vmem:[#allocation58_spill] sm:$0xff] %v13604_v9  ;;  %v13615_v24 = vmul.f32 %v6341_v15, %v6021_v33  ;;  %v6536_v26 = vmul.f32 %v13586_v46, %v13586_v46  ;;  %v6598_v30 = vadd.f32 %v6597_v53, %v6535_v10  ;;  %v5403_v40 = vmul.f32 %v13620_v21, %v13397_v35  ;;  %v15978_v15 = vld [vmem:[#allocation112_spill] sm:$0xff]  ;;  %v13640_v46 = vld [vmem:[#allocation2 + $0xc48] sm:$0xff] }
 0x43c   : > { %v2465_v20 = vadd.f32 %v2401_v13, %v2264_v43  ;;  %v2602_v55 = vmul.f32 %v13139_v42, %v13600_v59  ;;  %v6467_v45 = vadd.f32 %v6466_v12, %v13604_v9  ;;  %v6344_v33 = vadd.f32 1.0, %v15978_v15  ;;  %v7580_v13 = vld [vmem:[%s7991_s15 + $0xa] ss:$0 sm:$0xff] }
 0x43d   : > { %15977 = vst [vmem:[#allocation57_spill] sm:$0xff] %v13615_v24  ;;  %v13630_v37 = vmul.f32 %v6342_v48, %v6022_v51  ;;  %v6537_v10 = vmul.f32 %v13604_v9, %v13604_v9  ;;  %v6599_v53 = vadd.f32 %v6598_v30, %v6536_v26  ;;  %v4666_v14 = vadd.f32 %v13520_v56, %v4465_v22  ;;  %v15980_v15 = vld [vmem:[#allocation78_spill] sm:$0xff]  ;;  %v13653_v30 = vld [vmem:[#allocation2 + $0x250] sm:$0xff] }
 0x43e   : > { %v2466_v49 = vadd.f32 %v2402_v6, %v2265_v31  ;;  %v2603_v35 = vmul.f32 %v13139_v42, %v13612_v47  ;;  %v6468_v43 = vadd.f32 %v6467_v45, %v13615_v24  ;;  %v3001_v12 = vmul.f32 %v7580_v13, %v13531_v62  ;;  %v15982_v45 = vld [vmem:[#allocation82_spill] sm:$0xff] }
 0x43f   : > { %15979 = vst [vmem:[#allocation38_spill] sm:$0xff] %v13630_v37  ;;  %v13643_v48 = vmul.f32 %v6343_v39, %v15980_v15  ;;  %v6538_v51 = vmul.f32 %v13615_v24, %v13615_v24  ;;  %v6600_v26 = vadd.f32 %v6599_v53, %v6537_v10  ;;  %v5404_v56 = vmul.f32 %v13620_v21, %v13414_v58  ;;  %v15991_v24 = vld [vmem:[#allocation45_spill] sm:$0xff] }
 0x440   : > { %v2666_v22 = vadd.f32 %v2602_v55, %v2465_v20  ;;  %v2803_v42 = vmul.f32 %v13157_v8, %v13627_v36  ;;  %v6469_v31 = vadd.f32 %v6468_v43, %v13630_v37  ;;  %v3002_v6 = vmul.f32 %v7580_v13, %v13537_v25 }
 0x441   : > { %15981 = vst [vmem:[#allocation33_spill] sm:$0xff] %v13643_v48  ;;  %v13656_v39 = vmul.f32 %v6344_v33, %v15982_v45  ;;  %v6539_v15 = vmul.f32 %v13630_v37, %v13630_v37  ;;  %v6601_v10 = vadd.f32 %v6600_v26, %v6538_v51  ;;  %v13662_v58 = vadd.f32 %v13525_v5, %v13561_v7  ;;  %v13670_v45 = vld [vmem:[#allocation2 + $0x258] sm:$0xff] }
 0x442   : > { %v2667_v20 = vadd.f32 %v2603_v35, %v2466_v49  ;;  %v2804_v55 = vmul.f32 %v13157_v8, %v13640_v46  ;;  %v6470_v53 = vadd.f32 %v6469_v31, %v13643_v48  ;;  %v3065_v43 = vadd.f32 %v3001_v12, %v13508_v44  ;;  %v13680_v12 = vld [vmem:[#allocation2 + $0x4d0] sm:$0xff] }
 0x443   : > { %15983 = vst [vmem:[#allocation40_spill] sm:$0xff] %v13656_v39  ;;  %v3201_v33 = vmul.f32 %v13125_v57, %v13554_v41  ;;  %v6540_v51 = vmul.f32 %v13643_v48, %v13643_v48  ;;  %v6602_v26 = vadd.f32 %v6601_v10, %v6539_v15  ;;  %v5467_v5 = vadd.f32 %v5403_v40, %v13568_v32  ;;  %v13685_v48 = vld [vmem:[%s7991_s15 + $0x17] ss:$0 sm:$0xff]  ;;  %v13693_v10 = vld [vmem:[#allocation2 + $0x4d8] sm:$0xff] }
 0x444   : > { %v2867_v7 = vadd.f32 %v2803_v42, %v2666_v22  ;;  %v3003_v49 = vmul.f32 %v7580_v13, %v13653_v30  ;;  %v6471_v8 = vadd.f32 %v6470_v53, %v13656_v39  ;;  %v3066_v35 = vadd.f32 %v3002_v6, %v13512_v27  ;;  %v15984_v42 = vld [vmem:[#allocation76_spill] sm:$0xff] }
 0x445   : > { %v3202_v44 = vmul.f32 %v13125_v57, %v13570_v50  ;;  %v6541_v31 = vmul.f32 %v13656_v39, %v13656_v39  ;;  %v6603_v37 = vadd.f32 %v6602_v26, %v6540_v51  ;;  %v5604_v32 = vmul.f32 %v13685_v48, %v13407_v16 }
 0x446   : > { %v2868_v40 = vadd.f32 %v2804_v55, %v2667_v20  ;;  %v3004_v22 = vmul.f32 %v7580_v13, %v13670_v45  ;;  %v6472_v15 = vadd.f32 %v6471_v8, %v15984_v42  ;;  %v3265_v27 = vadd.f32 %v3201_v33, %v3065_v43  ;;  %v15985_v13 = vld [vmem:[#allocation115_spill] sm:$0xff] }
 0x447   : > { %v3401_v6 = vmul.f32 %v13595_v52, %v13146_v23  ;;  %v6542_v53 = vmul.f32 %v15984_v42, %v15984_v42  ;;  %v6604_v51 = vadd.f32 %v6603_v37, %v6541_v31  ;;  %v5605_v26 = vmul.f32 %v13685_v48, %v13427_v1 }
 0x448   : > { %v3067_v39 = vadd.f32 %v3003_v49, %v2867_v7  ;;  %v3203_v16 = vmul.f32 %v13125_v57, %v13680_v12  ;;  %v6473_v20 = vadd.f32 %v6472_v15, %v15985_v13  ;;  %v3266_v55 = vadd.f32 %v3202_v44, %v3066_v35  ;;  %v15986_v7 = vld [vmem:[#allocation25_spill] sm:$0xff] }
 0x449   : > { %v3402_v43 = vmul.f32 %v13606_v4, %v13146_v23  ;;  %v6543_v33 = vmul.f32 %v15985_v13, %v15985_v13  ;;  %v6605_v8 = vadd.f32 %v6604_v51, %v6542_v53  ;;  %v13707_v42 = vadd.f32 %v13529_v18, %v4666_v14  ;;  %v13717_v14 = vld [vmem:[#allocation2 + $0x252] sm:$0xff] }
 0x44a   : > { %v3068_v37 = vadd.f32 %v3004_v22, %v2868_v40  ;;  %v3204_v1 = vmul.f32 %v13125_v57, %v13693_v10  ;;  %v6474_v49 = vadd.f32 %v6473_v20, %v15986_v7  ;;  %v3465_v31 = vadd.f32 %v3401_v6, %v3265_v27  ;;  %v15987_v40 = vld [vmem:[#allocation114_spill] sm:$0xff]  ;;  %v13724_v20 = vld [vmem:[#allocation2 + $0x9d0] sm:$0xff] }
 0x44b   : > { %v3601_v35 = vmul.f32 %v13167_v29, %v13600_v59  ;;  %v6544_v44 = vmul.f32 %v15986_v7, %v15986_v7  ;;  %v6606_v15 = vadd.f32 %v6605_v8, %v6543_v33  ;;  %v5468_v53 = vadd.f32 %v5404_v56, %v13593_v60  ;;  %v13727_v33 = vld [vmem:[%s7991_s15 + $0x18] ss:$0 sm:$0xff] }
 0x44c   : > { %v3267_v18 = vadd.f32 %v3203_v16, %v3067_v39  ;;  %v3403_v57 = vmul.f32 %v13717_v14, %v13146_v23  ;;  %v6475_v22 = vadd.f32 %v6474_v49, %v15987_v40  ;;  %v5668_v51 = vadd.f32 %v5604_v32, %v5467_v5  ;;  %v13731_v39 = vld [vmem:[#allocation2 + $0x758] sm:$0xff]  ;;  %v7585_v32 = vld [vmem:[%s7991_s15 + $0xf] ss:$0 sm:$0xff] }
 0x44d   : > { %v3466_v27 = vadd.f32 %v3402_v43, %v3266_v55  ;;  %v3602_v6 = vmul.f32 %v13167_v29, %v13612_v47  ;;  %v6607_v7 = vadd.f32 %v6606_v15, %v6544_v44  ;;  %v5805_v60 = vmul.f32 %v13727_v33, %v13435_v3  ;;  %v15988_v8 = vld [vmem:[#allocation116_spill] sm:$0xff]  ;;  %v15989_v15 = vld [vmem:[#allocation13_spill] sm:$0xff] }
 0x44e   : > { %v3268_v56 = vadd.f32 %v3204_v1, %v3068_v37  ;;  %v3404_v16 = vmul.f32 %v13731_v39, %v13146_v23  ;;  %v6476_v5 = vadd.f32 %v6475_v22, %v15988_v8  ;;  %v4000_v55 = vmul.f32 %v7585_v32, %v13531_v62  ;;  %v13740_v44 = vld [vmem:[#allocation2 + $0x9d8] sm:$0xff]  ;;  %v15990_v1 = vld [vmem:[#allocation26_spill] sm:$0xff] }
 0x44f   : > { %v3665_v43 = vadd.f32 %v3601_v35, %v3465_v31  ;;  %v3801_v49 = vmul.f32 %v13504_v17, %v13627_v36  ;;  %v6608_v40 = vadd.f32 %v6607_v7, %v15989_v15  ;;  %v5806_v3 = vmul.f32 %v13727_v33, %v13437_v2  ;;  %v13751_v35 = vld [vmem:[#allocation2 + $0xc50] sm:$0xff] }
 0x450   : > { %v3467_v37 = vadd.f32 %v3403_v57, %v3267_v18  ;;  %v3603_v23 = vmul.f32 %v13167_v29, %v13724_v20  ;;  %v6477_v22 = vadd.f32 %v6476_v5, %v15990_v1  ;;  %v4001_v8 = vmul.f32 %v7585_v32, %v13537_v25  ;;  %v15992_v18 = vld [vmem:[#allocation28_spill] sm:$0xff]  ;;  %v15993_v1 = vld [vmem:[#allocation51_spill] sm:$0xff] }
 0x451   : > { %v3666_v13 = vadd.f32 %v3602_v6, %v3466_v27  ;;  %v3802_v31 = vmul.f32 %v13504_v17, %v13640_v46  ;;  %v6609_v9 = vadd.f32 %v6608_v40, %v15991_v24  ;;  %v5669_v7 = vadd.f32 %v5605_v26, %v5468_v53  ;;  %v13760_v6 = vld [vmem:[#allocation2 + $0xc58] sm:$0xff]  ;;  %v15994_v53 = vld [vmem:[#allocation83_spill] sm:$0xff] }
 0x452   : > { %v3468_v15 = vadd.f32 %v3404_v16, %v3268_v56  ;;  %v3604_v2 = vmul.f32 %v13167_v29, %v13740_v44  ;;  %v6478_v57 = vadd.f32 %v6477_v22, %v15992_v18  ;;  %v4064_v54 = vadd.f32 %v4000_v55, %v13540_v19  ;;  %v15995_v16 = vld [vmem:[#allocation55_spill] sm:$0xff] }
 0x453   : > { %v3865_v5 = vadd.f32 %v3801_v49, %v3665_v43  ;;  %v4201_v27 = vmul.f32 %v13267_v63, %v13554_v41  ;;  %v6610_v28 = vadd.f32 %v6609_v9, %v15993_v1  ;;  %v4002_v0 = vmul.f32 %v7585_v32, %v13653_v30 }
 0x454   : > { %v3667_v24 = vadd.f32 %v3603_v23, %v3467_v37  ;;  %v3803_v26 = vmul.f32 %v13504_v17, %v13751_v35  ;;  %v6479_v29 = vadd.f32 %v6478_v57, %v15994_v53  ;;  %v4065_v40 = vadd.f32 %v4001_v8, %v13542_v34  ;;  %v15996_v37 = vld [vmem:[#allocation87_spill] sm:$0xff] }
 0x455   : > { %v3866_v19 = vadd.f32 %v3802_v31, %v3666_v13  ;;  %v4202_v56 = vmul.f32 %v13267_v63, %v13570_v50  ;;  %v6611_v55 = vadd.f32 %v6610_v28, %v15995_v16  ;;  %v4003_v43 = vmul.f32 %v7585_v32, %v13670_v45  ;;  %v15997_v13 = vld [vmem:[#allocation92_spill] sm:$0xff]  ;;  %v15998_v32 = vld [vmem:[#allocation145_spill] sm:$0xff] }
 0x456   : > { %v3668_v9 = vadd.f32 %v3604_v2, %v3468_v15  ;;  %v3804_v49 = vmul.f32 %v13504_v17, %v13760_v6  ;;  %v6480_v23 = vadd.f32 %v6479_v29, %v15996_v37  ;;  %v13775_v1 = vadd.f32 %v5805_v60, %v5668_v51  ;;  %v7586_v2 = vld [vmem:[%s7991_s15 + $0x14] ss:$0 sm:$0xff] }
 0x457   : > { %v4265_v22 = vadd.f32 %v4201_v27, %v4064_v54  ;;  %v4402_v34 = vmul.f32 %v13595_v52, %v13284_v38  ;;  %v6612_v8 = vadd.f32 %v6611_v55, %v15997_v13  ;;  %v4066_v31 = vadd.f32 %v4002_v0, %v3865_v5  ;;  %v15999_v54 = vld [vmem:[#allocation99_spill] sm:$0xff]  ;;  %v16000_v5 = vld [vmem:[#allocation22_spill] sm:$0xff] }
 0x458   : > { %v3867_v57 = vadd.f32 %v3803_v26, %v3667_v24  ;;  %v4203_v28 = vmul.f32 %v13267_v63, %v13680_v12  ;;  %v6481_v15 = vadd.f32 %v6480_v23, %v15998_v32  ;;  %v5003_v17 = vmul.f32 %v7586_v2, %v13531_v62  ;;  %v16001_v62 = vld [vmem:[#allocation16_spill] sm:$0xff] }
 0x459   : > { %v4266_v16 = vadd.f32 %v4202_v56, %v4065_v40  ;;  %v4403_v51 = vmul.f32 %v13606_v4, %v13284_v38  ;;  %v6613_v60 = vadd.f32 %v6612_v8, %v15999_v54  ;;  %v4067_v27 = vadd.f32 %v4003_v43, %v3866_v19  ;;  %v16002_v56 = vld [vmem:[#allocation19_spill] sm:$0xff]  ;;  %v16003_v43 = vld [vmem:[#allocation108_spill] sm:$0xff] }
 0x45a   : > { %v3868_v29 = vadd.f32 %v3804_v49, %v3668_v9  ;;  %v4204_v0 = vmul.f32 %v13267_v63, %v13693_v10  ;;  %v6482_v24 = vadd.f32 %v6481_v15, %v16000_v5  ;;  %v13791_v26 = vadd.f32 %v5806_v3, %v5669_v7  ;;  %v16004_v7 = vld [vmem:[#allocation91_spill] sm:$0xff] }
 0x45b   : > { %v4466_v55 = vadd.f32 %v4402_v34, %v4265_v22  ;;  %v4603_v23 = vmul.f32 %v13305_v61, %v13600_v59  ;;  %v6614_v40 = vadd.f32 %v6613_v60, %v16001_v62  ;;  %v4068_v13 = vadd.f32 %v16002_v56, %v3867_v57  ;;  %v16007_v60 = vld [vmem:[#allocation141_spill] sm:$0xff] }
 0x45c   : > { %v4267_v32 = vadd.f32 %v4203_v28, %v4066_v31  ;;  %v4404_v19 = vmul.f32 %v13717_v14, %v13284_v38  ;;  %v6483_v9 = vadd.f32 %v6482_v24, %v16003_v43  ;;  %v5004_v63 = vmul.f32 %v7586_v2, %v13537_v25  ;;  %v16005_v31 = vld [vmem:[#allocation117_spill] sm:$0xff] }
 0x45d   : > { %v4467_v49 = vadd.f32 %v4403_v51, %v4266_v16  ;;  %v4604_v3 = vmul.f32 %v13305_v61, %v13612_v47  ;;  %v6615_v22 = vadd.f32 %v6614_v40, %v16004_v7  ;;  %v4069_v34 = vadd.f32 %v16002_v56, %v3868_v29  ;;  %v16006_v16 = vld [vmem:[#allocation118_spill] sm:$0xff]  ;;  %v7587_v7 = vld [vmem:[%s7991_s15 + $0x15] ss:$0 sm:$0xff]  ;;  %s7006_s15 = scalar_lea.sflag [#allocation5], %s7977_s23 }
 0x45e   : > { %v4268_v8 = vadd.f32 %v4204_v0, %v4067_v27  ;;  %v4405_v57 = vmul.f32 %v13731_v39, %v13284_v38  ;;  %v6484_v28 = vadd.f32 %v6483_v9, %v16005_v31  ;;  %v5067_v15 = vadd.f32 %v5003_v17, %v13662_v58  ;;  %v16008_v29 = vld [vmem:[#allocation138_spill] sm:$0xff]  ;;  %v16009_v17 = vld [vmem:[#allocation119_spill] sm:$0xff] }
 0x45f   : > { %v4667_v54 = vadd.f32 %v4603_v23, %v4466_v55  ;;  %v4804_v25 = vmul.f32 %v13325_v11, %v13627_v36  ;;  %v6616_v51 = vadd.f32 %v6615_v22, %v16006_v16  ;;  %v4269_v24 = vadd.f32 %v16007_v60, %v4068_v13 }
 0x460   : > { %v4468_v62 = vadd.f32 %v4404_v19, %v4267_v32  ;;  %v4605_v27 = vmul.f32 %v13305_v61, %v13724_v20  ;;  %v6485_v0 = vadd.f32 %v6484_v28, %v16008_v29  ;;  %v5068_v38 = vadd.f32 %v5004_v63, %v13707_v42  ;;  %v16010_v32 = vld [vmem:[#allocation149_spill] sm:$0xff]  ;;  %v16011_v63 = vld [vmem:[#allocation140_spill] sm:$0xff] }
 0x461   : > { %v4668_v40 = vadd.f32 %v4604_v3, %v4467_v49  ;;  %v4805_v58 = vmul.f32 %v13325_v11, %v13640_v46  ;;  %v6617_v55 = vadd.f32 %v6616_v51, %v16009_v17  ;;  %v4270_v23 = vadd.f32 %v16007_v60, %v4069_v34  ;;  %v16012_v3 = vld [vmem:[#allocation147_spill] sm:$0xff] }
 0x462   : > { %v4469_v56 = vadd.f32 %v4405_v57, %v4268_v8  ;;  %v4606_v13 = vmul.f32 %v13305_v61, %v13740_v44  ;;  %v6486_v19 = vadd.f32 %v6485_v0, %v16010_v32  ;;  %v4868_v9 = vadd.f32 %v4804_v25, %v4667_v54  ;;  %v16013_v8 = vld [vmem:[#allocation79_spill] sm:$0xff]  ;;  %v16014_v25 = vld [vmem:[#allocation14_spill] sm:$0xff] }
 0x463   : > { %v5204_v22 = vmul.f32 %v7587_v7, %v13554_v41  ;;  %v5005_v42 = vmul.f32 %v7586_v2, %v13653_v30  ;;  %v6618_v49 = vadd.f32 %v6617_v55, %v16011_v63  ;;  %v4470_v28 = vadd.f32 %v16012_v3, %v4269_v24  ;;  %v16015_v24 = vld [vmem:[#allocation113_spill] sm:$0xff]  ;;  %v16018_v63 = vld [vmem:[#allocation95_spill] sm:$0xff] }
 0x464   : > { %v4669_v16 = vadd.f32 %v4605_v27, %v4468_v62  ;;  %v4806_v34 = vmul.f32 %v13325_v11, %v13751_v35  ;;  %v6487_v57 = vadd.f32 %v6486_v19, %v16013_v8  ;;  %v4869_v51 = vadd.f32 %v4805_v58, %v4668_v40  ;;  %v16016_v40 = vld [vmem:[#allocation88_spill] sm:$0xff] }
 0x465   : > { %v5205_v61 = vmul.f32 %v7587_v7, %v13570_v50  ;;  %v5006_v54 = vmul.f32 %v7586_v2, %v13670_v45  ;;  %v6619_v60 = vadd.f32 %v6618_v49, %v16014_v25  ;;  %v4471_v41 = vadd.f32 %v16012_v3, %v4270_v23  ;;  %v16017_v50 = vld [vmem:[#allocation39_spill] sm:$0xff]  ;;  %v16019_v49 = vld [vmem:[#allocation84_spill] sm:$0xff] }
 0x466   : > { %v4670_v30 = vadd.f32 %v4606_v13, %v4469_v56  ;;  %v4807_v0 = vmul.f32 %v13325_v11, %v13760_v6  ;;  %v6488_v62 = vadd.f32 %v6487_v57, %v16015_v24  ;;  %v5268_v27 = vadd.f32 %v5204_v22, %v5067_v15  ;;  %v16024_v25 = vld [vmem:[#allocation80_spill] sm:$0xff] }
 0x467   : > { %v5405_v17 = vmul.f32 %v13620_v21, %v13595_v52  ;;  %v5069_v55 = vadd.f32 %v5005_v42, %v4868_v9  ;;  %v6620_v58 = vadd.f32 %v6619_v60, %v16016_v40  ;;  %v4671_v19 = vadd.f32 %v16017_v50, %v4470_v28  ;;  %v16020_v42 = vld [vmem:[#allocation93_spill] sm:$0xff] }
 0x468   : > { %v4870_v45 = vadd.f32 %v4806_v34, %v4669_v16  ;;  %v5206_v2 = vmul.f32 %v7587_v7, %v13680_v12  ;;  %v6489_v23 = vadd.f32 %v6488_v62, %v16018_v63  ;;  %v5269_v56 = vadd.f32 %v5205_v61, %v5068_v38  ;;  %v16021_v16 = vld [vmem:[#allocation100_spill] sm:$0xff] }
 0x469   : > { %v5406_v11 = vmul.f32 %v13620_v21, %v13606_v4  ;;  %v5070_v13 = vadd.f32 %v5006_v54, %v4869_v51  ;;  %v6621_v15 = vadd.f32 %v6620_v58, %v16019_v49  ;;  %v4672_v22 = vadd.f32 %v16017_v50, %v4471_v41  ;;  %v16022_v4 = vld [vmem:[#allocation47_spill] sm:$0xff]  ;;  %v16023_v51 = vld [vmem:[#allocation20_spill] sm:$0xff] }
 0x46a   : > { %v4871_v52 = vadd.f32 %v4807_v0, %v4670_v30  ;;  %v5207_v9 = vmul.f32 %v7587_v7, %v13693_v10  ;;  %v6490_v3 = vadd.f32 %v6489_v23, %v16020_v42  ;;  %v5469_v28 = vadd.f32 %v5405_v17, %v5268_v27  ;;  %v16026_v27 = vld [vmem:[#allocation110_spill] sm:$0xff] }
 0x46b   : > { %v5606_v12 = vmul.f32 %v13685_v48, %v13600_v59  ;;  %v5407_v38 = vmul.f32 %v13717_v14, %v13620_v21  ;;  %v6622_v34 = vadd.f32 %v6621_v15, %v16021_v16  ;;  %v4872_v57 = vadd.f32 %v16022_v4, %v4671_v19  ;;  %v16025_v59 = vld [vmem:[#allocation143_spill] sm:$0xff] }
 0x46c   : > { %v5071_v61 = vadd.f32 %v16023_v51, %v4870_v45  ;;  %v5270_v54 = vadd.f32 %v5206_v2, %v5069_v55  ;;  %v6491_v60 = vadd.f32 %v6490_v3, %v16024_v25  ;;  %v5470_v41 = vadd.f32 %v5406_v11, %v5269_v56  ;;  %v16029_v2 = vld [vmem:[#allocation107_spill] sm:$0xff]  ;;  %v16032_v3 = vld [vmem:[#allocation148_spill] sm:$0xff] }
 0x46d   : > { %v5607_v10 = vmul.f32 %v13685_v48, %v13612_v47  ;;  %v5408_v7 = vmul.f32 %v13731_v39, %v13620_v21  ;;  %v6623_v30 = vadd.f32 %v6622_v34, %v16025_v59  ;;  %v4873_v14 = vadd.f32 %v16022_v4, %v4672_v22  ;;  %v16027_v47 = vld [vmem:[#allocation103_spill] sm:$0xff]  ;;  %v16028_v39 = vld [vmem:[#allocation65_spill] sm:$0xff]  ;;  %v16037_v59 = vld [vmem:[#allocation24_spill] sm:$0xff] }
 0x46e   : > { %v5072_v0 = vadd.f32 %v16023_v51, %v4871_v52  ;;  %v5271_v62 = vadd.f32 %v5207_v9, %v5070_v13  ;;  %v6492_v17 = vadd.f32 %v6491_v60, %v16026_v27  ;;  %v5670_v40 = vadd.f32 %v5606_v12, %v5469_v28  ;;  %v16031_v52 = vld [vmem:[#allocation96_spill] sm:$0xff]  ;;  %v16036_v60 = vld [vmem:[#allocation109_spill] sm:$0xff] }
 0x46f   : > { %v5807_v55 = vmul.f32 %v13727_v33, %v13627_v36  ;;  %v5608_v58 = vmul.f32 %v13685_v48, %v13724_v20  ;;  %v6624_v50 = vadd.f32 %v6623_v30, %v16027_v47  ;;  %v5073_v21 = vadd.f32 %v16023_v51, %v4872_v57  ;;  %v16030_v36 = vld [vmem:[#allocation144_spill] sm:$0xff]  ;;  %v16035_v57 = vld [vmem:[#allocation23_spill] sm:$0xff] }
 0x470   : > { %v5272_v19 = vadd.f32 %v16028_v39, %v5071_v61  ;;  %v5471_v45 = vadd.f32 %v5407_v38, %v5270_v54  ;;  %v6493_v23 = vadd.f32 %v6492_v17, %v16029_v2  ;;  %v5671_v56 = vadd.f32 %v5607_v10, %v5470_v41  ;;  %v16033_v38 = vld [vmem:[#allocation97_spill] sm:$0xff]  ;;  %v16041_v47 = vld [vmem:[#allocation132_spill] sm:$0xff]  ;;  %v16106_v2 = vld [vmem:[#allocation139_spill] sm:$0xff] }
 0x471   : > { %v5808_v11 = vmul.f32 %v13727_v33, %v13640_v46  ;;  %v5609_v13 = vmul.f32 %v13685_v48, %v13740_v44  ;;  %v6625_v49 = vadd.f32 %v6624_v50, %v16030_v36  ;;  %v5074_v20 = vadd.f32 %v16023_v51, %v4873_v14  ;;  %v16034_v44 = vld [vmem:[#allocation85_spill] sm:$0xff]  ;;  %v16038_v14 = vld [vmem:[#allocation135_spill] sm:$0xff] }
 0x472   : > { %v5273_v15 = vadd.f32 %v16028_v39, %v5072_v0  ;;  %v5472_v22 = vadd.f32 %v5408_v7, %v5271_v62  ;;  %v6494_v9 = vadd.f32 %v6493_v23, %v16031_v52  ;;  %v13885_v28 = vadd.f32 %v16032_v3, %v13775_v1  ;;  %v16039_v17 = vld [vmem:[#allocation125_spill] sm:$0xff]  ;;  %v16043_v23 = vld [vmem:[#allocation126_spill] sm:$0xff] }
 0x473   : > { %v5871_v12 = vadd.f32 %v5807_v55, %v5670_v40  ;;  %v5809_v46 = vmul.f32 %v13727_v33, %v13751_v35  ;;  %v6626_v16 = vadd.f32 %v6625_v49, %v16033_v38  ;;  %v5274_v48 = vadd.f32 %v16028_v39, %v5073_v21  ;;  %v16042_v21 = vld [vmem:[#allocation137_spill] sm:$0xff] }
 0x474   : > { %v5473_v34 = vadd.f32 %v16034_v44, %v5272_v19  ;;  %v5672_v4 = vadd.f32 %v5608_v58, %v5471_v45  ;;  %v6495_v51 = vadd.f32 %v6494_v9, %v16035_v57  ;;  %v13895_v61 = vadd.f32 %v16032_v3, %v13791_v26  ;;  %v16044_v49 = vld [vmem:[#allocation133_spill] sm:$0xff]  ;;  %v16108_v57 = vld [vmem:[#allocation60_spill] sm:$0xff] }
 0x475   : > { %v5872_v54 = vadd.f32 %v5808_v11, %v5671_v56  ;;  %v5810_v1 = vmul.f32 %v13727_v33, %v13760_v6  ;;  %v6627_v41 = vadd.f32 %v6626_v16, %v16036_v60  ;;  %v5275_v35 = vadd.f32 %v16028_v39, %v5074_v20  ;;  %v16040_v6 = vld [vmem:[#allocation104_spill] sm:$0xff]  ;;  %v16046_v16 = vld [vmem:[#allocation50_spill] sm:$0xff] }
 0x476   : > { %v5474_v10 = vadd.f32 %v16034_v44, %v5273_v15  ;;  %v5673_v7 = vadd.f32 %v5609_v13, %v5472_v22  ;;  %v6496_v30 = vadd.f32 %v6495_v51, %v16037_v59  ;;  %v6130_v0 = vmul.f32 0.035677407, %v16038_v14  ;;  %v16048_v60 = vld [vmem:[#allocation136_spill] sm:$0xff] }
 0x477   : > { %v6004_v62 = vmul.f32 %v13885_v28, %v13885_v28  ;;  %v13907_v26 = vadd.f32 %v16032_v3, %v5871_v12  ;;  %v6628_v40 = vadd.f32 %v6627_v41, %v16039_v17  ;;  %v5475_v33 = vadd.f32 %v16034_v44, %v5274_v48  ;;  %v16045_v12 = vld [vmem:[#allocation134_spill] sm:$0xff]  ;;  %v16109_v59 = vld [vmem:[#allocation44_spill] sm:$0xff] }
 0x478   : > { %v5674_v55 = vadd.f32 %v16040_v6, %v5473_v34  ;;  %v5873_v58 = vadd.f32 %v5809_v46, %v5672_v4  ;;  %v6497_v50 = vadd.f32 %v6496_v30, %v16041_v47  ;;  %v6131_v39 = vmul.f32 0.035677407, %v16042_v21  ;;  %v16049_v30 = vld [vmem:[#allocation139_spill] sm:$0xff]  ;;  %v16052_v21 = vld [vmem:[#allocation54_spill] sm:$0xff]  ;;  %v16110_v47 = vld [vmem:[#allocation72_spill] sm:$0xff] }
 0x479   : > { %v6005_v19 = vmul.f32 %v13895_v61, %v13895_v61  ;;  %v13917_v45 = vadd.f32 %v16032_v3, %v5872_v54  ;;  %v6629_v56 = vadd.f32 %v6628_v40, %v16043_v23  ;;  %v5476_v11 = vadd.f32 %v16034_v44, %v5275_v35  ;;  %v16047_v44 = vld [vmem:[#allocation68_spill] sm:$0xff] }
 0x47a   : > { %v5675_v13 = vadd.f32 %v16040_v6, %v5474_v10  ;;  %v5874_v36 = vadd.f32 %v5810_v1, %v5673_v7  ;;  %v6498_v20 = vadd.f32 %v6497_v50, %v16044_v49  ;;  %v6194_v15 = vadd.f32 0.7978846, %v6130_v0  ;;  %v16050_v0 = vld [vmem:[#allocation128_spill] sm:$0xff] }
 0x47b   : > { %v6132_v22 = vmul.f32 0.035677407, %v6004_v62  ;;  %v6006_v9 = vmul.f32 %v13907_v26, %v13907_v26  ;;  %v6630_v46 = vadd.f32 %v6629_v56, %v16045_v12  ;;  %v5676_v38 = vadd.f32 %v16040_v6, %v5475_v33  ;;  %v16051_v33 = vld [vmem:[#allocation123_spill] sm:$0xff] }
 0x47c   : > { %v5875_v48 = vadd.f32 %v16046_v16, %v5674_v55  ;;  %v13929_v34 = vadd.f32 %v16032_v3, %v5873_v58  ;;  %v6499_v4 = vadd.f32 %v6498_v20, %v16047_v44  ;;  %v6195_v51 = vadd.f32 0.7978846, %v6131_v39 }
 0x47d   : > { %v6133_v54 = vmul.f32 0.035677407, %v6005_v19  ;;  %v6007_v1 = vmul.f32 %v13917_v45, %v13917_v45  ;;  %v6631_v41 = vadd.f32 %v6630_v46, %v16048_v60  ;;  %v5677_v35 = vadd.f32 %v16040_v6, %v5476_v11  ;;  %v16053_v19 = vld [vmem:[#allocation64_spill] sm:$0xff] }
 0x47e   : > { %v5876_v10 = vadd.f32 %v16046_v16, %v5675_v13  ;;  %v13938_v7 = vadd.f32 %v16032_v3, %v5874_v36  ;;  %v6500_v14 = vadd.f32 %v6499_v4, %v16049_v30  ;;  %v6258_v62 = vmul.f32 %v6194_v15, %v16050_v0  ;;  %v16054_v13 = vld [vmem:[#allocation32_spill] sm:$0xff] }
 0x47f   : > { %v6196_v17 = vadd.f32 0.7978846, %v6132_v22  ;;  %v6134_v40 = vmul.f32 0.035677407, %v6006_v9  ;;  %v6632_v55 = vadd.f32 %v6631_v41, %v16051_v33  ;;  %v5877_v58 = vadd.f32 %v16046_v16, %v5676_v38  ;;  %v16055_v9 = vld [vmem:[#allocation60_spill] sm:$0xff] }
 0x480   : > { %v13945_v50 = vadd.f32 %v16032_v3, %v5875_v48  ;;  %v6008_v6 = vmul.f32 %v13929_v34, %v13929_v34  ;;  %v6501_v39 = vadd.f32 %v6500_v14, %v16052_v21  ;;  %v6259_v23 = vmul.f32 %v6195_v51, %v16053_v19  ;;  %v16056_v48 = vld [vmem:[#allocation71_spill] sm:$0xff]  ;;  %v16059_v33 = vld [vmem:[#allocation72_spill] sm:$0xff] }
 0x481   : > { %v6197_v56 = vadd.f32 0.7978846, %v6133_v54  ;;  %v6135_v11 = vmul.f32 0.035677407, %v6007_v1  ;;  %v6633_v36 = vadd.f32 %v6632_v55, %v16054_v13  ;;  %v5878_v20 = vadd.f32 %v16046_v16, %v5677_v35  ;;  %v16057_v1 = vld [vmem:[#allocation44_spill] sm:$0xff] }
 0x482   : > { %v13954_v15 = vadd.f32 %v16032_v3, %v5876_v10  ;;  %v6009_v22 = vmul.f32 %v13938_v7, %v13938_v7  ;;  %v6502_v12 = vadd.f32 %v6501_v39, %v16055_v9  ;;  %7372 = vtanh.f32 %v6258_v62  ;;  %v16058_v10 = vld [vmem:[#allocation63_spill] sm:$0xff]  ;;  %v16071_v9 = vld [vmem:[#allocation18_spill] sm:$0xff] }
 0x483   : > { %v6260_v46 = vmul.f32 %v6196_v17, %v13885_v28  ;;  %v6198_v38 = vadd.f32 0.7978846, %v6134_v40  ;;  %v6634_v4 = vadd.f32 %v6633_v36, %v16056_v48  ;;  %v13962_v51 = vadd.f32 %v16032_v3, %v5877_v58  ;;  %v16060_v58 = vld [vmem:[#allocation120_spill] sm:$0xff]  ;;  %v16064_v48 = vld [vmem:[#allocation131_spill] sm:$0xff] }
 0x484   : > { %v6010_v16 = vmul.f32 %v13945_v50, %v13945_v50  ;;  %v6136_v54 = vmul.f32 0.035677407, %v6008_v6  ;;  %v6503_v60 = vadd.f32 %v6502_v12, %v16057_v1  ;;  %7374 = vtanh.f32 %v6259_v23  ;;  %v16061_v23 = vld [vmem:[#allocation59_spill] sm:$0xff]  ;;  %v16063_v12 = vld [vmem:[#allocation12_spill] sm:$0xff]  ;;  %v16070_v1 = vld [vmem:[#allocation122_spill] sm:$0xff] }
 0x485   : > { %v6261_v41 = vmul.f32 %v6197_v56, %v13895_v61  ;;  %v6199_v35 = vadd.f32 0.7978846, %v6135_v11  ;;  %v6635_v14 = vadd.f32 %v6634_v4, %v16058_v10  ;;  %v13970_v62 = vadd.f32 %v16032_v3, %v5878_v20  ;;  %v16062_v3 = vld [vmem:[#allocation101_spill] sm:$0xff] }
 0x486   : > { %v6011_v17 = vmul.f32 %v13954_v15, %v13954_v15  ;;  %v6137_v40 = vmul.f32 0.035677407, %v6009_v22  ;;  %v6504_v55 = vadd.f32 %v6503_v60, %v16059_v33  ;;  %v6383_v39 = vadd.f32 1.0, %v16060_v58  ;;  %v16065_v60 = vld [vmem:[#allocation75_spill] sm:$0xff]  ;;  %v16066_v58 = vld [vmem:[#allocation102_spill] sm:$0xff]  ;;  %v16068_v33 = vld [vmem:[#allocation29_spill] sm:$0xff] }
 0x487   : > { %7376 = vtanh.f32 %v6260_v46  ;;  %v6262_v6 = vmul.f32 %v6198_v38, %v13907_v26  ;;  %v6636_v13 = vadd.f32 %v6635_v14, %v16061_v23  ;;  %v6012_v56 = vmul.f32 %v13962_v51, %v13962_v51 }
 0x488   : > { %v6138_v11 = vmul.f32 0.035677407, %v6010_v16  ;;  %v6200_v36 = vadd.f32 0.7978846, %v6136_v54  ;;  %v6505_v20 = vadd.f32 %v6504_v55, %v16062_v3  ;;  %v13983_v4 = vmul.f32 %v16064_v48, %v16063_v12  ;;  %v16067_v16 = vld [vmem:[#allocation27_spill] sm:$0xff]  ;;  %v16069_v3 = vld [vmem:[#allocation21_spill] sm:$0xff] }
 0x489   : > { %7378 = vtanh.f32 %v6261_v41  ;;  %v6263_v22 = vmul.f32 %v6199_v35, %v13917_v45  ;;  %v6637_v46 = vadd.f32 %v6636_v13, %v16065_v60  ;;  %v6013_v38 = vmul.f32 %v13970_v62, %v13970_v62 }
 0x48a   : > { %v6139_v10 = vmul.f32 0.035677407, %v6011_v17  ;;  %v6201_v14 = vadd.f32 0.7978846, %v6137_v40  ;;  %v6506_v23 = vadd.f32 %v6505_v20, %v16066_v58  ;;  %v6064_v54 = vmul.f32 0.5, %v16067_v16  ;;  %v16072_v17 = vld [vmem:[#allocation127_spill] sm:$0xff] }
 0x48b   : > { %v6384_v55 = vadd.f32 1.0, %v16068_v33  ;;  %7380 = vtanh.f32 %v6262_v6  ;;  %v6638_v12 = vadd.f32 %v6637_v46, %v16069_v3  ;;  %v6140_v48 = vmul.f32 0.035677407, %v6012_v56  ;;  %v16073_v20 = vld [vmem:[#allocation121_spill] sm:$0xff]  ;;  %v16074_v6 = vld [vmem:[#allocation124_spill] sm:$0xff] }
 0x48c   : > { %v6202_v41 = vadd.f32 0.7978846, %v6138_v11  ;;  %v6264_v35 = vmul.f32 %v6200_v36, %v13929_v34  ;;  %v6507_v13 = vadd.f32 %v6506_v23, %v16070_v1  ;;  %v7373_v60 = vpop.eup %7372  ;;  %v6065_v21 = vmul.f32 0.5, %v16071_v9  ;;  %v16075_v11 = vld [vmem:[#allocation130_spill] sm:$0xff]  ;;  %v16076_v9 = vld [vmem:[#allocation129_spill] sm:$0xff] }
 0x48d   : > { %v6385_v40 = vadd.f32 1.0, %v16072_v17  ;;  %7382 = vtanh.f32 %v6263_v22  ;;  %v6639_v58 = vadd.f32 %v6638_v12, %v16073_v20  ;;  %v6141_v16 = vmul.f32 0.035677407, %v6013_v38  ;;  %v16077_v20 = vld [vmem:[#allocation30_spill] sm:$0xff] }
 0x48e   : > { %v6203_v30 = vadd.f32 0.7978846, %v6139_v10  ;;  %v6265_v33 = vmul.f32 %v6201_v14, %v13938_v7  ;;  %v6508_v3 = vadd.f32 %v6507_v13, %v16074_v6  ;;  %v7375_v56 = vpop.eup %7374  ;;  %v14001_v46 = vmul.f32 %v6383_v39, %v16075_v11 }
 0x48f   : > { %v6579_v36 = vmul.f32 %v13983_v4, %v13983_v4  ;;  %v14005_v23 = vmul.f32 %v6384_v55, %v6064_v54  ;;  %v6640_v17 = vadd.f32 %v6639_v58, %v16076_v9  ;;  %v6204_v22 = vadd.f32 0.7978846, %v6140_v48 }
 0x490   : > { %v6266_v12 = vmul.f32 %v6202_v41, %v13945_v50  ;;  %7384 = vtanh.f32 %v6264_v35  ;;  %v6509_v38 = vadd.f32 %v6508_v3, %v13983_v4  ;;  %v14010_v14 = vmul.f32 %v6385_v40, %v6065_v21 }
 0x491   : > { %v7377_v10 = vpop.eup %7376  ;;  %v6066_v13 = vmul.f32 0.5, %v16050_v0  ;;  %v6386_v39 = vadd.f32 1.0, %v7373_v60  ;;  %v6641_v11 = vadd.f32 %v6640_v17, %v16077_v20  ;;  %v6205_v6 = vadd.f32 0.7978846, %v6141_v16 }
 0x492   : > { %v6267_v54 = vmul.f32 %v6203_v30, %v13954_v15  ;;  %7386 = vtanh.f32 %v6265_v33  ;;  %v6510_v58 = vadd.f32 %v6509_v38, %v14001_v46  ;;  %v6580_v48 = vmul.f32 %v14001_v46, %v14001_v46 }
 0x493   : > { %v7379_v55 = vpop.eup %7378  ;;  %v6067_v41 = vmul.f32 0.5, %v16053_v19  ;;  %v6387_v35 = vadd.f32 1.0, %v7375_v56  ;;  %v6642_v21 = vadd.f32 %v6641_v11, %v6579_v36  ;;  %v6581_v0 = vmul.f32 %v14005_v23, %v14005_v23 }
 0x494   : > { %v6268_v60 = vmul.f32 %v6204_v22, %v13962_v51  ;;  %7388 = vtanh.f32 %v6266_v12  ;;  %v6511_v40 = vadd.f32 %v6510_v58, %v14005_v23  ;;  %v14023_v16 = vmul.f32 %v6386_v39, %v6066_v13 }
 0x495   : > { %v7381_v30 = vpop.eup %7380  ;;  %v6068_v33 = vmul.f32 0.5, %v13885_v28  ;;  %v6388_v3 = vadd.f32 1.0, %v7377_v10  ;;  %v6643_v9 = vadd.f32 %v6642_v21, %v6580_v48  ;;  %v6582_v19 = vmul.f32 %v14010_v14, %v14010_v14 }
 0x496   : > { %v6269_v56 = vmul.f32 %v6205_v6, %v13970_v62  ;;  %7390 = vtanh.f32 %v6267_v54  ;;  %v6512_v36 = vadd.f32 %v6511_v40, %v14010_v14  ;;  %v14030_v22 = vmul.f32 %v6387_v35, %v6067_v41 }
 0x497   : > { %v7383_v17 = vpop.eup %7382  ;;  %v6069_v12 = vmul.f32 0.5, %v13895_v61  ;;  %v6389_v38 = vadd.f32 1.0, %v7379_v55  ;;  %v6644_v13 = vadd.f32 %v6643_v9, %v6581_v0  ;;  %v6070_v39 = vmul.f32 0.5, %v13907_v26 }
 0x498   : > { %v6390_v28 = vadd.f32 1.0, %v7381_v30  ;;  %7392 = vtanh.f32 %v6268_v60  ;;  %v6513_v10 = vadd.f32 %v6512_v36, %v14023_v16  ;;  %v6583_v20 = vmul.f32 %v14023_v16, %v14023_v16 }
 0x499   : > { %v14037_v6 = vmul.f32 %v6388_v3, %v6068_v33  ;;  %v6645_v11 = vadd.f32 %v6644_v13, %v6582_v19  ;;  %v6071_v58 = vmul.f32 0.5, %v13917_v45  ;;  %v6391_v48 = vadd.f32 1.0, %v7383_v17 }
 0x49a   : > { %v7385_v54 = vpop.eup %7384  ;;  %7394 = vtanh.f32 %v6269_v56  ;;  %v6514_v61 = vadd.f32 %v6513_v10, %v14030_v22  ;;  %v6584_v26 = vmul.f32 %v14030_v22, %v14030_v22  ;;  %v14043_v55 = vmul.f32 %v6389_v38, %v6069_v12 }
 0x49b   : > { %16078 = vst [vmem:[#allocation15_spill] sm:$0xff] %v14037_v6  ;;  %v6646_v41 = vadd.f32 %v6645_v11, %v6583_v20  ;;  %v14045_v21 = vmul.f32 %v6390_v28, %v6070_v39  ;;  %v6585_v60 = vmul.f32 %v14037_v6, %v14037_v6  ;;  %v6072_v45 = vmul.f32 0.5, %v13929_v34 }
 0x49c   : > { %16079 = vst [vmem:[#allocation36_spill] sm:$0xff] %v14043_v55  ;;  %v7387_v35 = vpop.eup %7386  ;;  %v6515_v0 = vadd.f32 %v6514_v61, %v14037_v6  ;;  %v6392_v40 = vadd.f32 1.0, %v7385_v54  ;;  %v14051_v3 = vmul.f32 %v6391_v48, %v6071_v58  ;;  %v6586_v19 = vmul.f32 %v14043_v55, %v14043_v55 }
 0x49d   : > { %16080 = vst [vmem:[#allocation48_spill] sm:$0xff] %v14045_v21  ;;  %v6647_v30 = vadd.f32 %v6646_v41, %v6584_v26  ;;  %v6073_v56 = vmul.f32 0.5, %v13938_v7  ;;  %v6393_v36 = vadd.f32 1.0, %v7387_v35  ;;  %v6587_v38 = vmul.f32 %v14045_v21, %v14045_v21 }
 0x49e   : > { %v7389_v33 = vpop.eup %7388  ;;  %16081 = vst [vmem:[#allocation106_spill] sm:$0xff] %v14051_v3  ;;  %v6516_v9 = vadd.f32 %v6515_v0, %v14043_v55  ;;  %v6074_v13 = vmul.f32 0.5, %v13945_v50  ;;  %v14061_v28 = vmul.f32 %v6392_v40, %v6072_v45  ;;  %v6588_v11 = vmul.f32 %v14051_v3, %v14051_v3 }
 0x49f   : > { %v6648_v17 = vadd.f32 %v6647_v30, %v6585_v60  ;;  %v6394_v39 = vadd.f32 1.0, %v7389_v33  ;;  %v6075_v54 = vmul.f32 0.5, %v13954_v15  ;;  %v14067_v48 = vmul.f32 %v6393_v36, %v6073_v56 }
 0x4a0   : > { %v7391_v12 = vpop.eup %7390  ;;  %v6517_v34 = vadd.f32 %v6516_v9, %v14045_v21  ;;  %16082 = vst [vmem:[#allocation67_spill] sm:$0xff] %v14061_v28  ;;  %v6076_v41 = vmul.f32 0.5, %v13962_v51  ;;  %v6589_v60 = vmul.f32 %v14061_v28, %v14061_v28  ;;  %v6077_v40 = vmul.f32 0.5, %v13970_v62 }
 0x4a1   : > { %v6649_v10 = vadd.f32 %v6648_v17, %v6586_v19  ;;  %v6395_v58 = vadd.f32 1.0, %v7391_v12  ;;  %16083 = vst [vmem:[#allocation142_spill] sm:$0xff] %v14067_v48  ;;  %v14071_v0 = vmul.f32 %v6394_v39, %v6074_v13  ;;  %v6590_v9 = vmul.f32 %v14067_v48, %v14067_v48 }
 0x4a2   : > { %v7393_v20 = vpop.eup %7392  ;;  %v6518_v7 = vadd.f32 %v6517_v34, %v14051_v3 }
 0x4a3   : > { %v6650_v61 = vadd.f32 %v6649_v10, %v6587_v38  ;;  %v6396_v35 = vadd.f32 1.0, %v7393_v20  ;;  %16084 = vst [vmem:[#allocation146_spill] sm:$0xff] %v14071_v0  ;;  %v14077_v33 = vmul.f32 %v6395_v58, %v6075_v54  ;;  %v6591_v36 = vmul.f32 %v14071_v0, %v14071_v0 }
 0x4a4   : > { %v7395_v26 = vpop.eup %7394  ;;  %v6519_v50 = vadd.f32 %v6518_v7, %v14061_v28 }
 0x4a5   : > { %v6651_v45 = vadd.f32 %v6650_v61, %v6588_v11  ;;  %v6397_v30 = vadd.f32 1.0, %v7395_v26  ;;  %16085 = vst [vmem:[#allocation35_spill] sm:$0xff] %v14077_v33  ;;  %v14082_v56 = vmul.f32 %v6396_v35, %v6076_v41  ;;  %v6592_v38 = vmul.f32 %v14077_v33, %v14077_v33 }
 0x4a6   : > { %v6520_v15 = vadd.f32 %v6519_v50, %v14067_v48 }
 0x4a7   : > { %v6652_v51 = vadd.f32 %v6651_v45, %v6589_v60  ;;  %16086 = vst [vmem:[#allocation43_spill] sm:$0xff] %v14082_v56  ;;  %v14087_v62 = vmul.f32 %v6397_v30, %v6077_v40  ;;  %v6593_v39 = vmul.f32 %v14082_v56, %v14082_v56  ;;  %v6737_v30 = vlaneseq }
 0x4a8   : > { %v6521_v19 = vadd.f32 %v6520_v15, %v14071_v0 }
 0x4a9   : > { %v6653_v17 = vadd.f32 %v6652_v51, %v6590_v9  ;;  %16087 = vst [vmem:[#allocation41_spill] sm:$0xff] %v14087_v62  ;;  %v6594_v11 = vmul.f32 %v14087_v62, %v14087_v62 }
 0x4aa   : > { %v6522_v12 = vadd.f32 %v6521_v19, %v14077_v33  ;;  %v7588_v33 = vld [vmem:[#allocation2 + $0x22] sm:$0xff] }
 0x4ab   : > { %v6654_v34 = vadd.f32 %v6653_v17, %v6591_v36  ;;  %v14101_v17 = vshrl.u32 %v6737_v30, 7  ;;  %v16096_v30 = vld [vmem:[#allocation38_spill] sm:$0xff] }
 0x4ac   : > { %v6523_v13 = vadd.f32 %v6522_v12, %v14082_v56 }
 0x4ad   : > { %v6655_v10 = vadd.f32 %v6654_v34, %v6592_v38  ;;  %v14236_v34 = vld [vmem:[%s322_s17] ss:$0 sm:$0xff] }
 0x4ae   : > { %v6524_v20 = vadd.f32 %v6523_v13, %v14087_v62 }
 0x4af   : > { %v6656_v7 = vadd.f32 %v6655_v10, %v6593_v39  ;;  %v16088_v39 = vld [vmem:[#allocation37_spill] sm:$0xff] }
 0x4b0   : > { %v6525_v54 = vrot.slane %v6524_v20, 4 }
 0x4b1   : > { %v6657_v58 = vadd.f32 %v6656_v7, %v6594_v11  ;;  %v16090_v7 = vld [vmem:[#allocation46_spill] sm:$0xff]  ;;  %v16113_v11 = vld [vmem:[#allocation124_spill] sm:$0xff] }
 0x4b2   : > { %v6526_v61 = vadd.f32 %v6525_v54, %v6524_v20  ;;  %v16089_v20 = vld [vmem:[#allocation73_spill] sm:$0xff] }
 0x4b3   : > { %v6658_v26 = vrot.slane %v6657_v58, 4  ;;  %v16105_v54 = vld [vmem:[#allocation145_spill] sm:$0xff] }
 0x4b4   : > { %v6527_v41 = vrot.slane %v6526_v61, 2 }
 0x4b5   : > { %v6659_v50 = vadd.f32 %v6658_v26, %v6657_v58  ;;  %v16091_v58 = vld [vmem:[#allocation42_spill] sm:$0xff]  ;;  %v16092_v26 = vld [vmem:[#allocation52_spill] sm:$0xff] }
 0x4b6   : > { %v6528_v35 = vadd.f32 %v6527_v41, %v6526_v61  ;;  %v16099_v41 = vld [vmem:[#allocation76_spill] sm:$0xff]  ;;  %v16100_v61 = vld [vmem:[#allocation115_spill] sm:$0xff] }
 0x4b7   : > { %v6660_v60 = vrot.slane %v6659_v50, 2 }
 0x4b8   : > { %v6529_v45 = vrot.slane %v6528_v35, 1 }
 0x4b9   : > { %v6661_v40 = vadd.f32 %v6660_v60, %v6659_v50  ;;  %v16093_v50 = vld [vmem:[#allocation56_spill] sm:$0xff]  ;;  %v16094_v60 = vld [vmem:[#allocation58_spill] sm:$0xff] }
 0x4ba   : > { %v6530_v15 = vadd.f32 %v6529_v45, %v6528_v35  ;;  %v6668_v35 = vld [vmem:[%s319_s13] sm:$0x1]  ;;  %v16112_v45 = vld [vmem:[#allocation102_spill] sm:$0xff] }
 0x4bb   : > { %v6662_v9 = vrot.slane %v6661_v40, 1 }
 0x4bc   : > { %v14097_v51 = vmul.f32 0.001953125, %v6530_v15  ;;  %v16102_v15 = vld [vmem:[#allocation114_spill] sm:$0xff] }
 0x4bd   : > { %v6663_v19 = vadd.f32 %v6662_v9, %v6661_v40  ;;  %v16095_v40 = vld [vmem:[#allocation57_spill] sm:$0xff]  ;;  %v16103_v9 = vld [vmem:[#allocation116_spill] sm:$0xff] }
 0x4be   : > { %v6666_v36 = vmul.f32 %v14097_v51, %v14097_v51  ;;  %v16116_v10 = vsub.f32 %v16089_v20, %v14097_v51  ;;  %v16117_v27 = vsub.f32 %v16090_v7, %v14097_v51  ;;  %v16120_v20 = vsub.f32 %v16093_v50, %v14097_v51 }
 0x4bf   : > { %v6665_v12 = vmul.f32 0.001953125, %v6663_v19  ;;  %v16097_v19 = vld [vmem:[#allocation33_spill] sm:$0xff]  ;;  %v16121_v7 = vsub.f32 %v16094_v60, %v14097_v51 }
 0x4c1   : > { %v6667_v38 = vsub.f32 %v6665_v12, %v6666_v36  ;;  %v16098_v12 = vld [vmem:[#allocation40_spill] sm:$0xff]  ;;  %v16104_v36 = vld [vmem:[#allocation26_spill] sm:$0xff] }
 0x4c3   : > { %v6669_v13 = vadd.f32 1e-05, %v6667_v38  ;;  %v16111_v38 = vld [vmem:[#allocation101_spill] sm:$0xff] }
 0x4c5   : > { %7396 = vrsqrt.f32 %v6669_v13 }
 0x4cf   : > { %v7397_v25 = vpop.eup %7396 }
 0x4d0   : > { %v6671_v49 = vmul.f32 %v7397_v25, %v6668_v35  ;;  %v16114_v35 = vsub.s32 0, %v14101_v17 }
 0x4d2   : > { %v14228_v44 = vrot.slane %v6671_v49, %v16114_v35  ;;  %v16115_v35 = vsub.f32 %v16088_v39, %v14097_v51  ;;  %v16118_v49 = vsub.f32 %v16091_v58, %v14097_v51  ;;  %v16119_v39 = vsub.f32 %v16092_v26, %v14097_v51 }
 0x4d3   : > { %v16122_v58 = vsub.f32 %v16095_v40, %v14097_v51 }
 0x4d4   : > { %v6742_v52 = vmul.f32 %v14228_v44, %v16115_v35  ;;  %v6743_v13 = vmul.f32 %v14228_v44, %v16116_v10  ;;  %v6744_v25 = vmul.f32 %v14228_v44, %v16117_v27  ;;  %v6745_v17 = vmul.f32 %v14228_v44, %v16118_v49 }
 0x4d5   : > { %v6746_v35 = vmul.f32 %v14228_v44, %v16119_v39  ;;  %v6747_v10 = vmul.f32 %v14228_v44, %v16120_v20  ;;  %v6748_v27 = vmul.f32 %v14228_v44, %v16121_v7  ;;  %v6749_v49 = vmul.f32 %v14228_v44, %v16122_v58  ;;  %v7589_v58 = vld [vmem:[#allocation2 + $0x528] sm:$0xff] }
 0x4d6   : > { %v6813_v62 = vadd.f32 %v14236_v34, %v6742_v52  ;;  %v6814_v26 = vadd.f32 %v14236_v34, %v6743_v13  ;;  %v6815_v39 = vadd.f32 %v14236_v34, %v6744_v25  ;;  %v6816_v50 = vadd.f32 %v14236_v34, %v6745_v17  ;;  %v7590_v52 = vld [vmem:[#allocation2 + $0x32] sm:$0xff]  ;;  %v7592_v25 = vld [vmem:[#allocation2 + $0x42] sm:$0xff] }
 0x4d7   : > { %v6817_v20 = vadd.f32 %v14236_v34, %v6746_v35  ;;  %v6818_v56 = vadd.f32 %v14236_v34, %v6747_v10  ;;  %v6819_v60 = vadd.f32 %v14236_v34, %v6748_v27  ;;  %v6820_v7 = vadd.f32 %v14236_v34, %v6749_v49  ;;  %v7591_v13 = vld [vmem:[#allocation2 + $0x538] sm:$0xff]  ;;  %v7593_v17 = vld [vmem:[#allocation2 + $0x548] sm:$0xff] }
 0x4d8   : > { %v6877_v40 = vadd.f32 %v7588_v33, %v6813_v62  ;;  %v6878_v0 = vadd.f32 %v7589_v58, %v6814_v26  ;;  %v6879_v48 = vadd.f32 %v7590_v52, %v6815_v39  ;;  %v6880_v28 = vadd.f32 %v7591_v13, %v6816_v50  ;;  %v7594_v35 = vld [vmem:[#allocation2 + $0x52] sm:$0xff]  ;;  %v7596_v58 = vld [vmem:[#allocation2 + $0x62] sm:$0xff] }
 0x4d9   : > { %v6881_v3 = vadd.f32 %v7592_v25, %v6817_v20  ;;  %v6882_v21 = vadd.f32 %v7593_v17, %v6818_v56  ;;  %v6883_v55 = vadd.f32 %v7594_v35, %v6819_v60  ;;  %v7595_v10 = vld [vmem:[#allocation2 + $0x558] sm:$0xff]  ;;  %v16123_v33 = vsub.f32 %v16096_v30, %v14097_v51  ;;  %v7597_v52 = vld [vmem:[#allocation2 + $0x568] sm:$0xff] }
 0x4da   : > { %v6884_v6 = vadd.f32 %v7595_v10, %v6820_v7  ;;  %6941 = vst [vmem:[%s14288_s28] sm:$0xff] %v6877_v40  ;;  %6942 = vst [vmem:[%s14288_s28 + $0x8] sm:$0xff] %v6878_v0  ;;  %v16124_v62 = vsub.f32 %v16097_v19, %v14097_v51  ;;  %v16125_v49 = vsub.f32 %v16098_v12, %v14097_v51  ;;  %v16128_v19 = vld [vmem:[#allocation25_spill] sm:$0xff]  ;;  %v7598_v25 = vld [vmem:[#allocation2 + $0x72] sm:$0xff] }
 0x4db   : > { %6943 = vst [vmem:[%s14288_s28 + $0x10] sm:$0xff] %v6879_v48  ;;  %6944 = vst [vmem:[%s14288_s28 + $0x18] sm:$0xff] %v6880_v28  ;;  %v6750_v56 = vmul.f32 %v14228_v44, %v16123_v33  ;;  %v16126_v0 = vsub.f32 %v16099_v41, %v14097_v51  ;;  %v16127_v48 = vsub.f32 %v16100_v61, %v14097_v51  ;;  %v7599_v35 = vld [vmem:[#allocation2 + $0x578] sm:$0xff]  ;;  %v7600_v33 = vld [vmem:[#allocation2 + $0x82] sm:$0xff] }
 0x4dc   : > { %v6751_v27 = vmul.f32 %v14228_v44, %v16124_v62  ;;  %v6752_v26 = vmul.f32 %v14228_v44, %v16125_v49  ;;  %6945 = vst [vmem:[%s14288_s28 + $0x20] sm:$0xff] %v6881_v3  ;;  %6946 = vst [vmem:[%s14288_s28 + $0x28] sm:$0xff] %v6882_v21  ;;  %v16129_v39 = vsub.f32 %v16128_v19, %v14097_v51  ;;  %v7601_v62 = vld [vmem:[#allocation2 + $0x588] sm:$0xff]  ;;  %v7602_v49 = vld [vmem:[#allocation2 + $0x92] sm:$0xff] }
 0x4dd   : > { %v6753_v28 = vmul.f32 %v14228_v44, %v16126_v0  ;;  %6947 = vst [vmem:[%s14288_s28 + $0x30] sm:$0xff] %v6883_v55  ;;  %6948 = vst [vmem:[%s14288_s28 + $0x38] sm:$0xff] %v6884_v6  ;;  %v6754_v30 = vmul.f32 %v14228_v44, %v16127_v48  ;;  %v16130_v50 = vsub.f32 %v16102_v15, %v14097_v51  ;;  %v7603_v0 = vld [vmem:[#allocation2 + $0x598] sm:$0xff] }
 0x4de   : > { %v6755_v12 = vmul.f32 %v14228_v44, %v16129_v39  ;;  %v16131_v21 = vsub.f32 %v16103_v9, %v14097_v51  ;;  %v6821_v55 = vadd.f32 %v14236_v34, %v6750_v56  ;;  %v6822_v3 = vadd.f32 %v14236_v34, %v6751_v27 }
 0x4df   : > { %v6756_v41 = vmul.f32 %v14228_v44, %v16130_v50  ;;  %v6823_v61 = vadd.f32 %v14236_v34, %v6752_v26  ;;  %v6824_v20 = vadd.f32 %v14236_v34, %v6753_v28  ;;  %v6825_v60 = vadd.f32 %v14236_v34, %v6754_v30 }
 0x4e0   : > { %v6757_v6 = vmul.f32 %v14228_v44, %v16131_v21  ;;  %v6826_v7 = vadd.f32 %v14236_v34, %v6755_v12  ;;  %v6885_v9 = vadd.f32 %v7596_v58, %v6821_v55  ;;  %v6886_v13 = vadd.f32 %v7597_v52, %v6822_v3  ;;  %v7604_v58 = vld [vmem:[#allocation2 + $0xa2] sm:$0xff] }
 0x4e1   : > { %v6827_v15 = vadd.f32 %v14236_v34, %v6756_v41  ;;  %v6887_v17 = vadd.f32 %v7598_v25, %v6823_v61  ;;  %v6888_v10 = vadd.f32 %v7599_v35, %v6824_v20  ;;  %v6889_v56 = vadd.f32 %v7600_v33, %v6825_v60 }
 0x4e2   : > { %v6828_v40 = vadd.f32 %v14236_v34, %v6757_v6  ;;  %v6890_v27 = vadd.f32 %v7601_v62, %v6826_v7  ;;  %6949 = vst [vmem:[%s14288_s28 + $0x40] sm:$0xff] %v6885_v9  ;;  %6950 = vst [vmem:[%s14288_s28 + $0x48] sm:$0xff] %v6886_v13  ;;  %v16132_v48 = vsub.f32 %v16104_v36, %v14097_v51  ;;  %v7605_v9 = vld [vmem:[#allocation2 + $0x5a8] sm:$0xff]  ;;  %v7606_v13 = vld [vmem:[#allocation2 + $0xb2] sm:$0xff] }
 0x4e3   : > { %v6891_v26 = vadd.f32 %v7602_v49, %v6827_v15  ;;  %6951 = vst [vmem:[%s14288_s28 + $0x50] sm:$0xff] %v6887_v17  ;;  %6952 = vst [vmem:[%s14288_s28 + $0x58] sm:$0xff] %v6888_v10  ;;  %v16133_v19 = vsub.f32 %v15992_v18, %v14097_v51  ;;  %v16134_v12 = vsub.f32 %v15994_v53, %v14097_v51  ;;  %v7607_v17 = vld [vmem:[#allocation2 + $0x5b8] sm:$0xff]  ;;  %v7608_v10 = vld [vmem:[#allocation2 + $0xc2] sm:$0xff] }
 0x4e4   : > { %v6892_v28 = vadd.f32 %v7603_v0, %v6828_v40  ;;  %v6758_v30 = vmul.f32 %v14228_v44, %v16132_v48  ;;  %v16135_v41 = vsub.f32 %v15996_v37, %v14097_v51  ;;  %6953 = vst [vmem:[%s14288_s28 + $0x60] sm:$0xff] %v6889_v56  ;;  %6954 = vst [vmem:[%s14288_s28 + $0x68] sm:$0xff] %v6890_v27  ;;  %v7609_v56 = vld [vmem:[#allocation2 + $0x5c8] sm:$0xff]  ;;  %v7610_v27 = vld [vmem:[#allocation2 + $0xd2] sm:$0xff] }
 0x4e5   : > { %v6759_v39 = vmul.f32 %v14228_v44, %v16133_v19  ;;  %v6760_v50 = vmul.f32 %v14228_v44, %v16134_v12  ;;  %6955 = vst [vmem:[%s14288_s28 + $0x70] sm:$0xff] %v6891_v26  ;;  %v16136_v36 = vsub.f32 %v16105_v54, %v14097_v51  ;;  %v16137_v6 = vsub.f32 %v16000_v5, %v14097_v51  ;;  %v7611_v26 = vld [vmem:[#allocation2 + $0x5d8] sm:$0xff] }
 0x4e6   : > { %v6761_v21 = vmul.f32 %v14228_v44, %v16135_v41  ;;  %6956 = vst [vmem:[%s14288_s28 + $0x78] sm:$0xff] %v6892_v28  ;;  %v16138_v55 = vsub.f32 %v16003_v43, %v14097_v51  ;;  %v16139_v3 = vsub.f32 %v16005_v31, %v14097_v51  ;;  %v6829_v20 = vadd.f32 %v14236_v34, %v6758_v30 }
 0x4e7   : > { %v6762_v18 = vmul.f32 %v14228_v44, %v16136_v36  ;;  %v6763_v53 = vmul.f32 %v14228_v44, %v16137_v6  ;;  %v6830_v54 = vadd.f32 %v14236_v34, %v6759_v39  ;;  %v6831_v60 = vadd.f32 %v14236_v34, %v6760_v50  ;;  %v16146_v36 = vld [vmem:[#allocation80_spill] sm:$0xff]  ;;  %v16148_v6 = vld [vmem:[#allocation110_spill] sm:$0xff] }
 0x4e8   : > { %v6764_v37 = vmul.f32 %v14228_v44, %v16138_v55  ;;  %v6765_v61 = vmul.f32 %v14228_v44, %v16139_v3  ;;  %v6832_v5 = vadd.f32 %v14236_v34, %v6761_v21  ;;  %v6893_v31 = vadd.f32 %v7604_v58, %v6829_v20 }
 0x4e9   : > { %v6833_v7 = vadd.f32 %v14236_v34, %v6762_v18  ;;  %v6834_v15 = vadd.f32 %v14236_v34, %v6763_v53  ;;  %v6894_v52 = vadd.f32 %v7605_v9, %v6830_v54  ;;  %v6895_v25 = vadd.f32 %v7606_v13, %v6831_v60 }
 0x4ea   : > { %v6835_v43 = vadd.f32 %v14236_v34, %v6764_v37  ;;  %v6836_v40 = vadd.f32 %v14236_v34, %v6765_v61  ;;  %v6896_v35 = vadd.f32 %v7607_v17, %v6832_v5  ;;  %6957 = vst [vmem:[%s14288_s28 + $0x80] sm:$0xff] %v6893_v31  ;;  %v16140_v28 = vsub.f32 %v16008_v29, %v14097_v51  ;;  %v7612_v5 = vld [vmem:[#allocation2 + $0xe2] sm:$0xff]  ;;  %v7615_v31 = vld [vmem:[#allocation2 + $0x5f8] sm:$0xff] }
 0x4eb   : > { %v6897_v33 = vadd.f32 %v7608_v10, %v6833_v7  ;;  %v6898_v62 = vadd.f32 %v7609_v56, %v6834_v15  ;;  %6958 = vst [vmem:[%s14288_s28 + $0x88] sm:$0xff] %v6894_v52  ;;  %6959 = vst [vmem:[%s14288_s28 + $0x90] sm:$0xff] %v6895_v25  ;;  %v16141_v30 = vsub.f32 %v16010_v32, %v14097_v51  ;;  %v7613_v15 = vld [vmem:[#allocation2 + $0x5e8] sm:$0xff] }
 0x4ec   : > { %v6899_v49 = vadd.f32 %v7610_v27, %v6835_v43  ;;  %v6900_v0 = vadd.f32 %v7611_v26, %v6836_v40  ;;  %6960 = vst [vmem:[%s14288_s28 + $0x98] sm:$0xff] %v6896_v35  ;;  %v6766_v48 = vmul.f32 %v14228_v44, %v16140_v28  ;;  %v16142_v39 = vsub.f32 %v16013_v8, %v14097_v51  ;;  %v7614_v40 = vld [vmem:[#allocation2 + $0xf2] sm:$0xff]  ;;  %v7616_v52 = vld [vmem:[#allocation2 + $0x102] sm:$0xff] }
 0x4ed   : > { %v6767_v19 = vmul.f32 %v14228_v44, %v16141_v30  ;;  %v16143_v50 = vsub.f32 %v16015_v24, %v14097_v51  ;;  %6961 = vst [vmem:[%s14288_s28 + $0xa0] sm:$0xff] %v6897_v33  ;;  %6962 = vst [vmem:[%s14288_s28 + $0xa8] sm:$0xff] %v6898_v62  ;;  %v16144_v29 = vsub.f32 %v16018_v63, %v14097_v51  ;;  %v7617_v25 = vld [vmem:[#allocation2 + $0x608] sm:$0xff]  ;;  %v7618_v35 = vld [vmem:[#allocation2 + $0x112] sm:$0xff] }
 0x4ee   : > { %v6768_v12 = vmul.f32 %v14228_v44, %v16142_v39  ;;  %6963 = vst [vmem:[%s14288_s28 + $0xb0] sm:$0xff] %v6899_v49  ;;  %6964 = vst [vmem:[%s14288_s28 + $0xb8] sm:$0xff] %v6900_v0  ;;  %v16145_v21 = vsub.f32 %v16020_v42, %v14097_v51  ;;  %v16147_v18 = vsub.f32 %v16146_v36, %v14097_v51  ;;  %v7619_v33 = vld [vmem:[#allocation2 + $0x618] sm:$0xff]  ;;  %v16150_v62 = vld [vmem:[#allocation107_spill] sm:$0xff] }
 0x4ef   : > { %v6769_v41 = vmul.f32 %v14228_v44, %v16143_v50  ;;  %v6770_v32 = vmul.f32 %v14228_v44, %v16144_v29  ;;  %v16149_v53 = vsub.f32 %v16148_v6, %v14097_v51  ;;  %v6837_v37 = vadd.f32 %v14236_v34, %v6766_v48  ;;  %v16152_v26 = vld [vmem:[#allocation96_spill] sm:$0xff]  ;;  %v16154_v48 = vld [vmem:[#allocation23_spill] sm:$0xff] }
 0x4f0   : > { %v6771_v8 = vmul.f32 %v14228_v44, %v16145_v21  ;;  %v6772_v24 = vmul.f32 %v14228_v44, %v16147_v18  ;;  %v6838_v63 = vadd.f32 %v14236_v34, %v6767_v19  ;;  %v6839_v3 = vadd.f32 %v14236_v34, %v6768_v12  ;;  %v16156_v39 = vld [vmem:[#allocation24_spill] sm:$0xff]  ;;  %v16160_v21 = vld [vmem:[#allocation133_spill] sm:$0xff] }
 0x4f1   : > { %v6773_v55 = vmul.f32 %v14228_v44, %v16149_v53  ;;  %v6840_v42 = vadd.f32 %v14236_v34, %v6769_v41  ;;  %v6841_v61 = vadd.f32 %v14236_v34, %v6770_v32  ;;  %v6901_v7 = vadd.f32 %v7612_v5, %v6837_v37  ;;  %v16158_v41 = vld [vmem:[#allocation132_spill] sm:$0xff]  ;;  %v7620_v5 = vld [vmem:[#allocation2 + $0x162] sm:$0xff] }
 0x4f2   : > { %v6842_v20 = vadd.f32 %v14236_v34, %v6771_v8  ;;  %v6843_v54 = vadd.f32 %v14236_v34, %v6772_v24  ;;  %v6902_v43 = vadd.f32 %v7613_v15, %v6838_v63  ;;  %v6903_v58 = vadd.f32 %v7614_v40, %v6839_v3  ;;  %v16162_v18 = vld [vmem:[#allocation68_spill] sm:$0xff] }
 0x4f3   : > { %v6844_v60 = vadd.f32 %v14236_v34, %v6773_v55  ;;  %v6904_v9 = vadd.f32 %v7615_v31, %v6840_v42  ;;  %v6905_v13 = vadd.f32 %v7616_v52, %v6841_v61  ;;  %6965 = vst [vmem:[%s14288_s28 + $0xc0] sm:$0xff] %v6901_v7  ;;  %v16151_v27 = vsub.f32 %v16150_v62, %v14097_v51  ;;  %v7621_v7 = vld [vmem:[#allocation2 + $0x668] sm:$0xff] }
 0x4f4   : > { %v6906_v17 = vadd.f32 %v7617_v25, %v6842_v20  ;;  %v6907_v10 = vadd.f32 %v7618_v35, %v6843_v54  ;;  %6966 = vst [vmem:[%s14288_s28 + $0xc8] sm:$0xff] %v6902_v43  ;;  %6967 = vst [vmem:[%s14288_s28 + $0xd0] sm:$0xff] %v6903_v58  ;;  %v16153_v0 = vsub.f32 %v16152_v26, %v14097_v51  ;;  %v7622_v43 = vld [vmem:[#allocation2 + $0x172] sm:$0xff] }
 0x4f5   : > { %v6908_v56 = vadd.f32 %v7619_v33, %v6844_v60  ;;  %6968 = vst [vmem:[%s14288_s28 + $0xd8] sm:$0xff] %v6904_v9  ;;  %v6774_v49 = vmul.f32 %v14228_v44, %v16151_v27  ;;  %v16155_v30 = vsub.f32 %v16154_v48, %v14097_v51  ;;  %v16157_v12 = vsub.f32 %v16156_v39, %v14097_v51  ;;  %v7623_v58 = vld [vmem:[#allocation2 + $0x678] sm:$0xff]  ;;  %v7624_v9 = vld [vmem:[#allocation2 + $0x182] sm:$0xff] }
 0x4f6   : > { %v6775_v28 = vmul.f32 %v14228_v44, %v16153_v0  ;;  %6969 = vst [vmem:[%s14288_s28 + $0xe0] sm:$0xff] %v6905_v13  ;;  %6970 = vst [vmem:[%s14288_s28 + $0xe8] sm:$0xff] %v6906_v17  ;;  %v16159_v29 = vsub.f32 %v16158_v41, %v14097_v51  ;;  %v16161_v8 = vsub.f32 %v16160_v21, %v14097_v51  ;;  %v7625_v13 = vld [vmem:[#allocation2 + $0x688] sm:$0xff]  ;;  %v7626_v17 = vld [vmem:[#allocation2 + $0x192] sm:$0xff] }
 0x4f7   : > { %v6776_v19 = vmul.f32 %v14228_v44, %v16155_v30  ;;  %v6777_v50 = vmul.f32 %v14228_v44, %v16157_v12  ;;  %6971 = vst [vmem:[%s14288_s28 + $0xf0] sm:$0xff] %v6907_v10  ;;  %6972 = vst [vmem:[%s14288_s28 + $0xf8] sm:$0xff] %v6908_v56  ;;  %v16163_v24 = vsub.f32 %v16162_v18, %v14097_v51  ;;  %v7627_v10 = vld [vmem:[#allocation2 + $0x698] sm:$0xff]  ;;  %v16165_v56 = vld [vmem:[#allocation54_spill] sm:$0xff] }
 0x4f8   : > { %v6778_v32 = vmul.f32 %v14228_v44, %v16159_v29  ;;  %v6779_v36 = vmul.f32 %v14228_v44, %v16161_v8  ;;  %v16164_v53 = vsub.f32 %v16106_v2, %v14097_v51  ;;  %v6845_v37 = vadd.f32 %v14236_v34, %v6774_v49  ;;  %v7628_v18 = vld [vmem:[#allocation2 + $0x1a2] sm:$0xff] }
 0x4f9   : > { %v6780_v6 = vmul.f32 %v14228_v44, %v16163_v24  ;;  %v6846_v63 = vadd.f32 %v14236_v34, %v6775_v28  ;;  %v6847_v3 = vadd.f32 %v14236_v34, %v6776_v19  ;;  %v6848_v42 = vadd.f32 %v14236_v34, %v6777_v50  ;;  %v7629_v24 = vld [vmem:[#allocation2 + $0x6a8] sm:$0xff] }
 0x4fa   : > { %v6781_v55 = vmul.f32 %v14228_v44, %v16164_v53  ;;  %v6849_v61 = vadd.f32 %v14236_v34, %v6778_v32  ;;  %v6850_v20 = vadd.f32 %v14236_v34, %v6779_v36  ;;  %v6909_v2 = vadd.f32 %v7620_v5, %v6845_v37  ;;  %v7630_v53 = vld [vmem:[#allocation2 + $0x1b2] sm:$0xff] }
 0x4fb   : > { %v6851_v54 = vadd.f32 %v14236_v34, %v6780_v6  ;;  %v6910_v15 = vadd.f32 %v7621_v7, %v6846_v63  ;;  %v6911_v40 = vadd.f32 %v7622_v43, %v6847_v3  ;;  %v6912_v31 = vadd.f32 %v7623_v58, %v6848_v42  ;;  %v7631_v37 = vld [vmem:[#allocation2 + $0x6b8] sm:$0xff]  ;;  %v7632_v3 = vld [vmem:[#allocation2 + $0x1c2] sm:$0xff] }
 0x4fc   : > { %v6852_v60 = vadd.f32 %v14236_v34, %v6781_v55  ;;  %v6913_v52 = vadd.f32 %v7624_v9, %v6849_v61  ;;  %v6914_v25 = vadd.f32 %v7625_v13, %v6850_v20  ;;  %6973 = vst [vmem:[%s14288_s28 + $0x100] sm:$0xff] %v6909_v2  ;;  %v16166_v62 = vsub.f32 %v16165_v56, %v14097_v51  ;;  %v7633_v61 = vld [vmem:[#allocation2 + $0x6c8] sm:$0xff]  ;;  %v7635_v5 = vld [vmem:[#allocation2 + $0x6d8] sm:$0xff] }
 0x4fd   : > { %v6915_v35 = vadd.f32 %v7626_v17, %v6851_v54  ;;  %6974 = vst [vmem:[%s14288_s28 + $0x108] sm:$0xff] %v6910_v15  ;;  %6975 = vst [vmem:[%s14288_s28 + $0x110] sm:$0xff] %v6911_v40  ;;  %v16167_v49 = vsub.f32 %v16108_v57, %v14097_v51  ;;  %v16168_v0 = vsub.f32 %v16109_v59, %v14097_v51  ;;  %v7634_v54 = vld [vmem:[#allocation2 + $0x1d2] sm:$0xff] }
 0x4fe   : > { %v6916_v33 = vadd.f32 %v7627_v10, %v6852_v60  ;;  %6976 = vst [vmem:[%s14288_s28 + $0x118] sm:$0xff] %v6912_v31  ;;  %v6782_v27 = vmul.f32 %v14228_v44, %v16166_v62  ;;  %v16169_v48 = vsub.f32 %v16110_v47, %v14097_v51  ;;  %6977 = vst [vmem:[%s14288_s28 + $0x120] sm:$0xff] %v6913_v52 }
 0x4ff   : > { %v6783_v26 = vmul.f32 %v14228_v44, %v16167_v49  ;;  %v6784_v28 = vmul.f32 %v14228_v44, %v16168_v0  ;;  %6978 = vst [vmem:[%s14288_s28 + $0x128] sm:$0xff] %v6914_v25  ;;  %6979 = vst [vmem:[%s14288_s28 + $0x130] sm:$0xff] %v6915_v35  ;;  %v16170_v19 = vsub.f32 %v16111_v38, %v14097_v51  ;;  %v16180_v25 = vld [vmem:[#allocation15_spill] sm:$0xff]  ;;  %v16182_v35 = vld [vmem:[#allocation36_spill] sm:$0xff] }
 0x500   : > { %v6785_v30 = vmul.f32 %v14228_v44, %v16169_v48  ;;  %6980 = vst [vmem:[%s14288_s28 + $0x138] sm:$0xff] %v6916_v33  ;;  %v16171_v39 = vsub.f32 %v16112_v45, %v14097_v51  ;;  %v16172_v12 = vsub.f32 %v16070_v1, %v14097_v51  ;;  %v16173_v50 = vsub.f32 %v16113_v11, %v14097_v51 }
 0x501   : > { %v6786_v57 = vmul.f32 %v14228_v44, %v16170_v19  ;;  %v6853_v29 = vadd.f32 %v14236_v34, %v6782_v27  ;;  %v6854_v38 = vadd.f32 %v14236_v34, %v6783_v26  ;;  %v6855_v32 = vadd.f32 %v14236_v34, %v6784_v28  ;;  %v7636_v28 = vld [vmem:[#allocation2 + $0x1e2] sm:$0xff] }
 0x502   : > { %v6787_v59 = vmul.f32 %v14228_v44, %v16171_v39  ;;  %v6788_v47 = vmul.f32 %v14228_v44, %v16172_v12  ;;  %v6789_v41 = vmul.f32 %v14228_v44, %v16173_v50  ;;  %v6856_v45 = vadd.f32 %v14236_v34, %v6785_v30  ;;  %v7637_v30 = vld [vmem:[#allocation2 + $0x6e8] sm:$0xff] }
 0x503   : > { %v6857_v21 = vadd.f32 %v14236_v34, %v6786_v57  ;;  %v6917_v11 = vadd.f32 %v7628_v18, %v6853_v29  ;;  %v6918_v6 = vadd.f32 %v7629_v24, %v6854_v38  ;;  %v6919_v55 = vadd.f32 %v7630_v53, %v6855_v32  ;;  %v7638_v57 = vld [vmem:[#allocation2 + $0x1f2] sm:$0xff]  ;;  %v16186_v18 = vld [vmem:[#allocation106_spill] sm:$0xff] }
 0x504   : > { %v6858_v8 = vadd.f32 %v14236_v34, %v6787_v59  ;;  %v6859_v1 = vadd.f32 %v14236_v34, %v6788_v47  ;;  %v6860_v36 = vadd.f32 %v14236_v34, %v6789_v41  ;;  %v6920_v63 = vadd.f32 %v7631_v37, %v6856_v45  ;;  %v7639_v59 = vld [vmem:[#allocation2 + $0x6f8] sm:$0xff]  ;;  %v7640_v47 = vld [vmem:[#allocation2 + $0x202] sm:$0xff] }
 0x505   : > { %v6921_v42 = vadd.f32 %v7632_v3, %v6857_v21  ;;  %6981 = vst [vmem:[%s14288_s28 + $0x140] sm:$0xff] %v6917_v11  ;;  %6982 = vst [vmem:[%s14288_s28 + $0x148] sm:$0xff] %v6918_v6  ;;  %v16174_v7 = vsub.f32 %v13983_v4, %v14097_v51  ;;  %v16175_v43 = vsub.f32 %v14001_v46, %v14097_v51  ;;  %v7641_v41 = vld [vmem:[#allocation2 + $0x708] sm:$0xff]  ;;  %v7642_v38 = vld [vmem:[#allocation2 + $0x212] sm:$0xff] }
 0x506   : > { %v6922_v20 = vadd.f32 %v7633_v61, %v6858_v8  ;;  %v6923_v60 = vadd.f32 %v7634_v54, %v6859_v1  ;;  %v6924_v2 = vadd.f32 %v7635_v5, %v6860_v36  ;;  %6983 = vst [vmem:[%s14288_s28 + $0x150] sm:$0xff] %v6919_v55  ;;  %6984 = vst [vmem:[%s14288_s28 + $0x158] sm:$0xff] %v6920_v63  ;;  %v7643_v45 = vld [vmem:[#allocation2 + $0x718] sm:$0xff]  ;;  %v16188_v6 = vld [vmem:[#allocation67_spill] sm:$0xff] }
 0x507   : > { %v6790_v15 = vmul.f32 %v14228_v44, %v16174_v7  ;;  %v6791_v40 = vmul.f32 %v14228_v44, %v16175_v43  ;;  %v16176_v58 = vsub.f32 %v14005_v23, %v14097_v51  ;;  %v16177_v9 = vsub.f32 %v14010_v14, %v14097_v51  ;;  %6985 = vst [vmem:[%s14288_s28 + $0x160] sm:$0xff] %v6921_v42  ;;  %v16184_v8 = vld [vmem:[#allocation48_spill] sm:$0xff]  ;;  %v16190_v37 = vld [vmem:[#allocation142_spill] sm:$0xff]  ;;  %v16194_v54 = vld [vmem:[#allocation35_spill] sm:$0xff] }
 0x508   : > { %6986 = vst [vmem:[%s14288_s28 + $0x168] sm:$0xff] %v6922_v20  ;;  %6987 = vst [vmem:[%s14288_s28 + $0x170] sm:$0xff] %v6923_v60  ;;  %v16178_v4 = vsub.f32 %v14023_v16, %v14097_v51  ;;  %v16179_v13 = vsub.f32 %v14030_v22, %v14097_v51  ;;  %v16181_v17 = vsub.f32 %v16180_v25, %v14097_v51  ;;  %v16192_v42 = vld [vmem:[#allocation146_spill] sm:$0xff]  ;;  %v16198_v43 = vld [vmem:[#allocation41_spill] sm:$0xff] }
 0x509   : > { %v6792_v31 = vmul.f32 %v14228_v44, %v16176_v58  ;;  %v6793_v52 = vmul.f32 %v14228_v44, %v16177_v9  ;;  %6988 = vst [vmem:[%s14288_s28 + $0x178] sm:$0xff] %v6924_v2  ;;  %v16183_v10 = vsub.f32 %v16182_v35, %v14097_v51  ;;  %v6861_v56 = vadd.f32 %v14236_v34, %v6790_v15  ;;  %v16196_v2 = vld [vmem:[#allocation43_spill] sm:$0xff]  ;;  %v7646_v35 = vld [vmem:[#allocation2 + $0x232] sm:$0xff] }
 0x50a   : > { %v6794_v46 = vmul.f32 %v14228_v44, %v16178_v4  ;;  %v6795_v23 = vmul.f32 %v14228_v44, %v16179_v13  ;;  %v6796_v14 = vmul.f32 %v14228_v44, %v16181_v17  ;;  %v6862_v16 = vadd.f32 %v14236_v34, %v6791_v40  ;;  %v7645_v17 = vld [vmem:[#allocation2 + $0x728] sm:$0xff] }
 0x50b   : > { %v6797_v33 = vmul.f32 %v14228_v44, %v16183_v10  ;;  %v6863_v62 = vadd.f32 %v14236_v34, %v6792_v31  ;;  %v6864_v22 = vadd.f32 %v14236_v34, %v6793_v52  ;;  %v6925_v48 = vadd.f32 %v7636_v28, %v6861_v56 }
 0x50c   : > { %v6865_v27 = vadd.f32 %v14236_v34, %v6794_v46  ;;  %v6866_v49 = vadd.f32 %v14236_v34, %v6795_v23  ;;  %v6867_v26 = vadd.f32 %v14236_v34, %v6796_v14  ;;  %v6926_v19 = vadd.f32 %v7637_v30, %v6862_v16 }
 0x50d   : > { %v6868_v0 = vadd.f32 %v14236_v34, %v6797_v33  ;;  %v6927_v39 = vadd.f32 %v7638_v57, %v6863_v62  ;;  %v6928_v12 = vadd.f32 %v7639_v59, %v6864_v22  ;;  %6989 = vst [vmem:[%s14288_s28 + $0x180] sm:$0xff] %v6925_v48  ;;  %v16185_v1 = vsub.f32 %v16184_v8, %v14097_v51  ;;  %v7647_v33 = vld [vmem:[#allocation2 + $0x738] sm:$0xff]  ;;  %v7649_v62 = vld [vmem:[#allocation2 + $0x748] sm:$0xff] }
 0x50e   : > { %v6929_v50 = vadd.f32 %v7640_v47, %v6865_v27  ;;  %v6930_v29 = vadd.f32 %v7641_v41, %v6866_v49  ;;  %v6931_v32 = vadd.f32 %v7642_v38, %v6867_v26  ;;  %6990 = vst [vmem:[%s14288_s28 + $0x188] sm:$0xff] %v6926_v19  ;;  %v16187_v11 = vsub.f32 %v16186_v18, %v14097_v51  ;;  %v7650_v27 = vld [vmem:[#allocation2 + $0x252] sm:$0xff] }
 0x50f   : > { %v6932_v21 = vadd.f32 %v7643_v45, %v6868_v0  ;;  %6991 = vst [vmem:[%s14288_s28 + $0x190] sm:$0xff] %v6927_v39  ;;  %6992 = vst [vmem:[%s14288_s28 + $0x198] sm:$0xff] %v6928_v12  ;;  %v6798_v36 = vmul.f32 %v14228_v44, %v16185_v1  ;;  %v16189_v53 = vsub.f32 %v16188_v6, %v14097_v51  ;;  %v7651_v26 = vld [vmem:[#allocation2 + $0x758] sm:$0xff] }
 0x510   : > { %v6799_v24 = vmul.f32 %v14228_v44, %v16187_v11  ;;  %v16191_v63 = vsub.f32 %v16190_v37, %v14097_v51  ;;  %6993 = vst [vmem:[%s14288_s28 + $0x1a0] sm:$0xff] %v6929_v50  ;;  %6994 = vst [vmem:[%s14288_s28 + $0x1a8] sm:$0xff] %v6930_v29  ;;  %v16193_v61 = vsub.f32 %v16192_v42, %v14097_v51 }
 0x511   : > { %v6800_v55 = vmul.f32 %v14228_v44, %v16189_v53  ;;  %6995 = vst [vmem:[%s14288_s28 + $0x1b0] sm:$0xff] %v6931_v32  ;;  %6996 = vst [vmem:[%s14288_s28 + $0x1b8] sm:$0xff] %v6932_v21  ;;  %v16195_v60 = vsub.f32 %v16194_v54, %v14097_v51  ;;  %v16197_v7 = vsub.f32 %v16196_v2, %v14097_v51 }
 0x512   : > { %v6801_v3 = vmul.f32 %v14228_v44, %v16191_v63  ;;  %v6802_v20 = vmul.f32 %v14228_v44, %v16193_v61  ;;  %v16199_v40 = vsub.f32 %v16198_v43, %v14097_v51  ;;  %v6869_v31 = vadd.f32 %v14236_v34, %v6798_v36 }
 0x513   : > { %v6803_v5 = vmul.f32 %v14228_v44, %v16195_v60  ;;  %v6804_v15 = vmul.f32 %v14228_v44, %v16197_v7  ;;  %v6870_v9 = vadd.f32 %v14236_v34, %v6799_v24  ;;  %v6871_v52 = vadd.f32 %v14236_v34, %v6800_v55 }
 0x514   : > { %v6805_v58 = vmul.f32 %v14228_v44, %v16199_v40  ;;  %v6872_v4 = vadd.f32 %v14236_v34, %v6801_v3  ;;  %v6873_v46 = vadd.f32 %v14236_v34, %v6802_v20  ;;  %v7644_v44 = vld [vmem:[#allocation2 + $0x222] sm:$0xff] }
 0x515   : > { %v6874_v13 = vadd.f32 %v14236_v34, %v6803_v5  ;;  %v6875_v23 = vadd.f32 %v14236_v34, %v6804_v15  ;;  %v6933_v51 = vadd.f32 %v7644_v44, %v6869_v31  ;;  %v6934_v14 = vadd.f32 %v7645_v17, %v6870_v9 }
 0x516   : > { %v6876_v25 = vadd.f32 %v14236_v34, %v6805_v58  ;;  %v6935_v10 = vadd.f32 %v7646_v35, %v6871_v52  ;;  %v6936_v56 = vadd.f32 %v7647_v33, %v6872_v4  ;;  %v7648_v34 = vld [vmem:[#allocation2 + $0x242] sm:$0xff] }
 0x517   : > { %v6937_v16 = vadd.f32 %v7648_v34, %v6873_v46  ;;  %v6938_v22 = vadd.f32 %v7649_v62, %v6874_v13  ;;  %v6939_v49 = vadd.f32 %v7650_v27, %v6875_v23  ;;  %6997 = vst [vmem:[%s14288_s28 + $0x1c0] sm:$0xff] %v6933_v51  ;;  %6998 = vst [vmem:[%s14288_s28 + $0x1c8] sm:$0xff] %v6934_v14 }
 0x518   : > { %v6940_v0 = vadd.f32 %v7651_v26, %v6876_v25  ;;  %6999 = vst [vmem:[%s14288_s28 + $0x1d0] sm:$0xff] %v6935_v10  ;;  %7000 = vst [vmem:[%s14288_s28 + $0x1d8] sm:$0xff] %v6936_v56 }
 0x519   : > { %7001 = vst [vmem:[%s14288_s28 + $0x1e0] sm:$0xff] %v6937_v16  ;;  %7002 = vst [vmem:[%s14288_s28 + $0x1e8] sm:$0xff] %v6938_v22 }
 0x51a   : > { %7003 = vst [vmem:[%s14288_s28 + $0x1f0] sm:$0xff] %v6939_v49  ;;  %7004 = vst [vmem:[%s14288_s28 + $0x1f8] sm:$0xff] %v6940_v0 }
 0x51b   : > { %7725 = shalt.err (!%p7722_p0)
}
 0x51c   : > { %s7726_s9 = scalar_lea.hbm %s14631_s7, 8192  ;;  %s7730_s14 = scalar_lea.hbm %s14690_s5, 16384 }
 0x51d   : > { %p7727_p4 = scmp.ne.s32.totalorder %s14631_s7, %s7726_s9  ;;  %p7731_p5 = scmp.lt.u32.totalorder %s14631_s7, %s14690_s5 }
 0x51e   : > { %p7732_p6 = scmp.lt.u32.totalorder %s7730_s14, %s7726_s9  ;;  %p7734_p2 = scmp.lt.u32.totalorder %s7726_s9, %s14631_s7 }
 0x51f   : > { %p7728_p1 = pnand %p7727_p4, %p16200_p12 }
 0x520   : > { %p7733_p13 = por %p7732_p6, %p7731_p5 }
 0x521   : > { %p7729_p3 = pneg %p7728_p1 }
 0x522   : > { %p7735_p10 = por %p7734_p2, %p7733_p13 }
 0x524   : > { %p7736_p7 = pnand %p7735_p10, %p7729_p3 }
 0x526   : > { %7739 = shalt.err (!%p7736_p7)
}
 0x527   : > { %s7794_s28 = smov 128   ;;  %s7795_s25 = smov 256  }
 0x528   : > { %s7796_s26 = smov 8  }
 0x529   : > { %7211 = dma.vmem_to_hbm [thread:$0]  (%p16200_p12), %s14633_s22, 8192, %s14631_s7, %s7006_s15, %s7794_s28, %s7795_s25, %s7796_s26  }
 0x52a PF: > { %s7033_s0 = sand.u32 1, %s7770_s18   ;;  %p16201_p8 = scmp.ne.s32.totalorder %s15167_s6, 0 }
 0x52b   : > { %p16202_p9 = scmp.ge.s32.totalorder %s7782_s21, 2  ;;  %s7034_s29 = scalar_lea.sflag [#allocation5], %s7033_s0 }
 0x52d   : > { %p7221_p11 = pnand %p16202_p9, %p16201_p8 }
 0x52f   : > { %7765 = dma.done.wait (!%p7221_p11), %s7034_s29, 8192  }
 0x530   : > { %7767 = vsyncadd (!%p7221_p11), %s7034_s29, 4294959104  ;;  %p21_p0 = scmp.ge.s32.totalorder %s7852_s24, 4   ;;  %s16203_s18 = smov %s7774_s19 }
 0x531   : > { %s16204_s19 = smov %s7778_s20  ;;  %s16205_s20 = smov %s7864_s27 }
 0x532   : > { %s16206_s21 = smov %s7852_s24  ;;  %23 = sbr.rel (!%p21_p0) target bundleno = 9 (0x9), region = 160 }
 0x539   :  { %7039 = vsyncpa [#allocation4], 1 }
 0x53a   :  { %7041 = vsyncpa [#allocation4 + $0x1], 1 }
 0x53b   :  { %7042 = vsyncpa [#allocation7], 1 }
 0x53c   :  { %7044 = vsyncpa [#allocation7 + $0x1], 1 }
 0x53d   :  { %7045 = vsyncpa [#allocation5], 1 }
 0x53e   :  { %7047 = vsyncpa [#allocation5 + $0x1], 1 }

</bundles_post_ra>
